<compile_context>
chip_gen: v7x
topology: tpu7x:2x2x1
jax: 0.10.0
libtpu: 0.0.40
codegen_flags: <defaults>
</compile_context>

<pallas_src>
import functools
import numpy as np
import jax
import jax.numpy as jnp
from jax.experimental import pallas as pl
from jax.experimental.pallas import tpu as pltpu

# ----------------------- synthetic ConvNeXtV2 config (small) -----------------------
NUM_CHANNELS = 3
IMAGE_SIZE   = 32
PATCH_SIZE   = 4
HIDDEN_SIZES = (16, 32, 64, 128)     # hidden_size property = HIDDEN_SIZES[-2] = 64
DEPTHS       = (1, 1, 1, 1)
EPS          = 1e-6
LEFT         = 8                     # sublane-aligned column offset of the conv interior

_H0   = IMAGE_SIZE // PATCH_SIZE                                   # stage-0 spatial
GEOM  = tuple((_H0 >> s, _H0 >> s, HIDDEN_SIZES[s]) for s in range(3))  # (H, W, C)
KDEPS = DEPTHS[:3]

# TODO(synk): only the batched-tensor path of forward() is implemented; the
# list-of-images branch is just a per-image loop over identical math.
# TODO(synk): loading real HF checkpoints would additionally need the Conv2d
# (out,in,kh,kw) -> (kh*kw*in, out) weight permutation; weights here are synthetic.


# --------------------------------- shared math helpers ------------------------------
def _erf_f32(x):
    # float32 rational approximation (Abramowitz & Stegun 7.1.26), |err| < 1.5e-7
    a1, a2, a3, a4, a5 = 0.254829592, -0.284496736, 1.421413741, -1.453152027, 1.061405429
    p = 0.3275911
    ax = jnp.abs(x)
    t = 1.0 / (1.0 + p * ax)
    poly = ((((a5 * t + a4) * t + a3) * t + a2) * t + a1) * t
    y = 1.0 - poly * jnp.exp(-ax * ax)
    return jnp.where(x >= 0, y, -y)


def _gelu_exact(x):
    return 0.5 * x * (1.0 + _erf_f32(x * 0.7071067811865476))


def _ln_stats(x):
    mu = jnp.mean(x, axis=-1, keepdims=True)
    var = jnp.mean((x - mu) ** 2, axis=-1, keepdims=True)
    return (x - mu) * jax.lax.rsqrt(var + EPS)


def _ln_affine(x, g, b):
    return _ln_stats(x) * g + b


def _to_patches(x, p):
    # (N, H, W, C) -> (N, (H/p)*(W/p), p*p*C); per-patch flatten order = (ky, kx, c)
    N, H, W, C = x.shape
    x = x.reshape(N, H // p, p, W // p, p, C).transpose(0, 1, 3, 2, 4, 5)
    return x.reshape(N, (H // p) * (W // p), p * p * C)


# --------------------------- in-kernel building blocks ------------------------------
def _convnext_block(x, pad_ref, hbuf_ref, blk, H, W, C):
    """One ConvNeXtV2 block on a flat (H*W, C) activation; all in VMEM."""
    dww_ref, dwb_ref, w1_ref, b1_ref, gg_ref, gb_ref, w2_ref, b2_ref = blk
    WP = W + 16

    # Zero only the halo border strips (interior is fully overwritten below).
    pad_ref[0:3, :, :] = jnp.zeros((3, WP, C), jnp.float32)
    pad_ref[3 + H:6 + H, :, :] = jnp.zeros((3, WP, C), jnp.float32)
    pad_ref[3:3 + H, 0:LEFT, :] = jnp.zeros((H, LEFT, C), jnp.float32)
    pad_ref[3:3 + H, LEFT + W:LEFT + W + 8, :] = jnp.zeros((H, 8, C), jnp.float32)
    # Scatter the flat activation rows into the sublane-aligned interior.
    for y in range(H):
        pad_ref[3 + y, LEFT:LEFT + W, :] = x[y * W:(y + 1) * W, :]

    # Depthwise 7x7 conv: hoist the (misaligned) horizontal shift -> 7 column
    # window loads; the vertical shift slices the cheap leading axis.
    w49 = dww_ref[...]                                     # (49, 1, 1, C), idx = dy*7+dx
    acc = None
    for dx in range(7):
        col = pad_ref[:, LEFT - 3 + dx:LEFT - 3 + dx + W, :]      # (H+6, W, C)
        for dy in range(7):
            tap = col[dy:dy + H] * w49[dy * 7 + dx]
            acc = tap if acc is None else acc + tap

    # Conv rows (+ bias) written straight into the flat (S, C) staging buffer.
    dwb = dwb_ref[...]
    for y in range(H):
        hbuf_ref[y * W:(y + 1) * W, :] = acc[y] + dwb
    hf = hbuf_ref[...]                                     # (S, C)

    # LayerNorm (affine folded into w1'/b1') -> pwconv1 -> GELU -> GRN -> pwconv2.
    hn = _ln_stats(hf)
    h1 = jnp.dot(hn.astype(jnp.bfloat16), w1_ref[...],
                 preferred_element_type=jnp.float32) + b1_ref[...]        # (S, 4C)
    g = _gelu_exact(h1)
    gx = jnp.sqrt(jnp.sum(g * g, axis=0, keepdims=True))                  # (1, 4C)
    nx = gx * pl.reciprocal(jnp.mean(gx, axis=-1, keepdims=True) + EPS, approx=True)
    g = gg_ref[...] * (g * nx) + gb_ref[...] + g
    h2 = jnp.dot(g.astype(jnp.bfloat16), w2_ref[...],
                 preferred_element_type=jnp.float32) + b2_ref[...]        # (S, C)
    return h2 + x                                          # residual, stays flat (S, C)


def _downsample(x, hbuf_ref, patch_ref, w_ref, b_ref, H, W, C):
    """LayerNorm (affine folded into w'/b') + 2x2/stride-2 patchify + matmul."""
    hbuf_ref[...] = _ln_stats(x)                           # staging for strided loads
    Hn, Wn = H // 2, W // 2
    for i in range(Hn):                                    # K order = (ky, kx, c)
        for ky in range(2):
            for kx in range(2):
                r0 = (2 * i + ky) * W + kx
                xs = hbuf_ref[pl.ds(r0, Wn, stride=2), :]                 # (Wn, C)
                patch_ref[i * Wn:(i + 1) * Wn,
                          (2 * ky + kx) * C:(2 * ky + kx + 1) * C] = xs
    pm = patch_ref[...]                                    # (Sn, 4C)
    return jnp.dot(pm.astype(jnp.bfloat16), w_ref[...],
                   preferred_element_type=jnp.float32) + b_ref[...]       # (Sn, Cn)


# --------------------------------- the fused kernel ---------------------------------
def _fused_tower_kernel(*refs, geom, depths):
    """Whole forward (embed + stages 0..2) for one image; refs =
    [patches, <weights...>, out, <scratch...>] in prepare_pallas_params order."""
    n_stages = len(geom)
    n_weights = 4 + sum(8 * depths[s] + (2 if s < n_stages - 1 else 0)
                        for s in range(n_stages))
    n_inputs = 1 + n_weights
    in_refs, o_ref, scr = refs[:n_inputs], refs[n_inputs], refs[n_inputs + 1:]

    pos = [0]
    def take():
        r = in_refs[pos[0]]
        pos[0] += 1
        return r

    patches_ref = take()
    we_ref, be_ref, eg_ref, eb_ref = take(), take(), take(), take()

    # patch embedding (4x4 stride-4 conv as one matmul) + channels LayerNorm
    x = jnp.dot(patches_ref[0].astype(jnp.bfloat16), we_ref[...],
                preferred_element_type=jnp.float32) + be_ref[...]
    x = _ln_stats(x) * eg_ref[...] + eb_ref[...]                          # (64, C0)

    for s, (H, W, C) in enumerate(geom):
        pad_ref, hbuf_ref = scr[2 * s], scr[2 * s + 1]
        for _ in range(depths[s]):
            blk = [take() for _ in range(8)]
            x = _convnext_block(x, pad_ref, hbuf_ref, blk, H, W, C)
        if s < n_stages - 1:
            dwn_w, dwn_b = take(), take()
            patch_ref = scr[2 * n_stages + s]
            x = _downsample(x, hbuf_ref, patch_ref, dwn_w, dwn_b, H, W, C)

    o_ref[0] = x                                           # single bulk (S, C) store


# ------------------------------ parameter preparation -------------------------------
def prepare_pallas_params(params):
    """Fold LN affines into the following matmuls, pre-cast matmul weights to bf16
    once, and flatten into the positional order the fused kernel consumes."""
    d0 = HIDDEN_SIZES[0]
    e = params['embed']
    flat = [e['w'].astype(jnp.bfloat16), e['b'].reshape(1, d0),
            e['ln_g'].reshape(1, d0), e['ln_b'].reshape(1, d0)]
    for s in range(3):
        dim = HIDDEN_SIZES[s]
        for blk in params['stages'][s]['blocks']:
            w1f = (blk['w1'] * blk['ln_g'][:, None]).astype(jnp.bfloat16)
            b1f = (blk['b1'] + blk['ln_b'] @ blk['w1']).reshape(1, 4 * dim)
            flat += [blk['dw_w'].reshape(49, 1, 1, dim), blk['dw_b'].reshape(1, dim),
                     w1f, b1f,
                     blk['grn_g'].reshape(1, 4 * dim), blk['grn_b'].reshape(1, 4 * dim),
                     blk['w2'].astype(jnp.bfloat16), blk['b2'].reshape(1, dim)]
        if s < 2:
            d = params['stages'][s + 1]['down']
            dim_n = HIDDEN_SIZES[s + 1]
            g4 = jnp.tile(d['ln_g'], 4)                    # K order (ky, kx, c)
            b4 = jnp.tile(d['ln_b'], 4)
            flat += [(d['w'] * g4[:, None]).astype(jnp.bfloat16),
                     (d['b'] + b4 @ d['w']).reshape(1, dim_n)]
    return flat


def build_pallas_forward(params):
    flat_w = prepare_pallas_params(params)
    Hs, Ws, Cs = GEOM[-1]
    S_out, C_out = Hs * Ws, Cs
    P_emb = _H0 * _H0
    K_emb = PATCH_SIZE * PATCH_SIZE * NUM_CHANNELS

    in_specs = [pl.BlockSpec((1, P_emb, K_emb), lambda n: (n, 0, 0))]
    in_specs += [pl.BlockSpec(tuple(w.shape), (lambda n, _r=w.ndim: (0,) * _r))
                 for w in flat_w]

    scratch = []
    for (H, W, C) in GEOM:
        scratch.append(pltpu.VMEM((H + 6, W + 16, C), jnp.float32))   # conv halo buffer
        scratch.append(pltpu.VMEM((H * W, C), jnp.float32))           # flat (S,C) staging
    for s in range(len(GEOM) - 1):
        H, W, C = GEOM[s]
        scratch.append(pltpu.VMEM(((H // 2) * (W // 2), 4 * C), jnp.float32))  # patchify

    kernel = functools.partial(_fused_tower_kernel, geom=GEOM, depths=KDEPS)

    def forward(images_nchw):
        x = jnp.transpose(images_nchw, (0, 2, 3, 1)).astype(jnp.float32)   # NCHW -> NHWC
        patches = _to_patches(x, PATCH_SIZE)                               # (N, 64, 48)
        N = patches.shape[0]
        out = pl.pallas_call(
            kernel,
            out_shape=jax.ShapeDtypeStruct((N, S_out, C_out), jnp.float32),
            grid=(N,),
            in_specs=in_specs,
            out_specs=pl.BlockSpec((1, S_out, C_out), lambda n: (n, 0, 0)),
            scratch_shapes=scratch,
            compiler_params=pltpu.CompilerParams(
                dimension_semantics=("parallel",),      # batch split across v7x's 2 TCs
                vmem_limit_bytes=32 * 1024 * 1024),
        )(patches, *flat_w)
        # feature_select: NCHW.view(N,C,HW).permute(0,2,1) == NHWC flat (N, HW, C)
        return out.astype(images_nchw.dtype)

    return forward


# ------------------------------ pure-JAX reference path -----------------------------
def ref_block(x, prm):
    N, H, W, C = x.shape
    xp = jnp.pad(x, ((0, 0), (3, 3), (3, 3), (0, 0)))
    w = prm['dw_w']
    acc = jnp.zeros_like(x)
    for dy in range(7):
        for dx in range(7):
            acc = acc + xp[:, dy:dy + H, dx:dx + W, :] * w[dy, dx]
    h = acc + prm['dw_b']
    h = _ln_affine(h, prm['ln_g'], prm['ln_b'])
    h = jnp.einsum('nhwc,cd->nhwd', h, prm['w1'],
                   precision=jax.lax.Precision.HIGHEST) + prm['b1']
    h = jax.nn.gelu(h, approximate=False)
    gx = jnp.sqrt(jnp.sum(h * h, axis=(1, 2), keepdims=True))
    nx = gx / (jnp.mean(gx, axis=-1, keepdims=True) + EPS)
    h = prm['grn_g'] * (h * nx) + prm['grn_b'] + h
    return jnp.einsum('nhwd,dc->nhwc', h, prm['w2'],
                      precision=jax.lax.Precision.HIGHEST) + prm['b2'] + x


def reference_forward(images_nchw, params):
    x = jnp.transpose(images_nchw, (0, 2, 3, 1)).astype(jnp.float32)
    N = x.shape[0]
    e = params['embed']
    h = jnp.einsum('npk,kc->npc', _to_patches(x, PATCH_SIZE), e['w'],
                   precision=jax.lax.Precision.HIGHEST) + e['b']
    h = _ln_affine(h, e['ln_g'], e['ln_b']).reshape(N, _H0, _H0, HIDDEN_SIZES[0])
    for s in range(3):
        if s > 0:
            d = params['stages'][s]['down']
            h = _ln_affine(h, d['ln_g'], d['ln_b'])
            Nn, Hh, Ww, _ = h.shape
            h = jnp.einsum('nmk,kd->nmd', _to_patches(h, 2), d['w'],
                           precision=jax.lax.Precision.HIGHEST) + d['b']
            h = h.reshape(Nn, Hh // 2, Ww // 2, HIDDEN_SIZES[s])
        for blk in params['stages'][s]['blocks']:
            h = ref_block(h, blk)
    Nf, Hf, Wf, Cf = h.shape
    return h.reshape(Nf, Hf * Wf, Cf).astype(images_nchw.dtype)


# -------------------------------- deterministic params ------------------------------
def init_params(key):
    keys = iter(jax.random.split(key, 64))

    def nrm(shape, scale=0.02):
        return scale * jax.random.normal(next(keys), shape, jnp.float32)

    p, d0 = PATCH_SIZE, HIDDEN_SIZES[0]
    params = {'embed': dict(w=nrm((p * p * NUM_CHANNELS, d0)), b=nrm((d0,)),
                            ln_g=jnp.ones((d0,), jnp.float32),
                            ln_b=jnp.zeros((d0,), jnp.float32))}
    stages, prev = [], d0
    for s in range(3):
        dim = HIDDEN_SIZES[s]
        st = {}
        if s > 0:
            st['down'] = dict(ln_g=jnp.ones((prev,), jnp.float32),
                              ln_b=jnp.zeros((prev,), jnp.float32),
                              w=nrm((4 * prev, dim)), b=nrm((dim,)))
        st['blocks'] = [dict(dw_w=nrm((7, 7, dim), 0.05), dw_b=nrm((dim,)),
                             ln_g=jnp.ones((dim,), jnp.float32),
                             ln_b=jnp.zeros((dim,), jnp.float32),
                             w1=nrm((dim, 4 * dim)), b1=nrm((4 * dim,)),
                             grn_g=nrm((4 * dim,), 0.1), grn_b=nrm((4 * dim,), 0.1),
                             w2=nrm((4 * dim, dim)), b2=nrm((dim,)))
                        for _ in range(DEPTHS[s])]
        stages.append(st)
        prev = dim
    params['stages'] = stages
    return params


if __name__ == "__main__":
    pk, ik = jax.random.split(jax.random.PRNGKey(0))
    params = init_params(pk)
    images = jax.random.normal(ik, (2, NUM_CHANNELS, IMAGE_SIZE, IMAGE_SIZE), jnp.float32)

    pallas_fwd = jax.jit(build_pallas_forward(params))
    ref_fwd = jax.jit(functools.partial(reference_forward, params=params))

    out = jax.block_until_ready(pallas_fwd(images))
    ref = jax.block_until_ready(ref_fwd(images))

    n_tokens = (IMAGE_SIZE // PATCH_SIZE // 4) ** 2        # stage-2 spatial squared
    assert out.shape == (2, n_tokens, HIDDEN_SIZES[2]), out.shape
    # bf16 matmul operands (f32 MXU accumulate) + exact-erf/approx-recip GELU/GRN
    # => slightly looser tolerance than a pure-f32 comparison
    np.testing.assert_allclose(np.asarray(out), np.asarray(ref), rtol=2e-2, atol=3e-2)
    print("KERNEL_OK")
</pallas_src>

<mosaic_0001>
module attributes {stable_mosaic.version = 11 : i64} {
  func.func @_fused_tower_kernel(%arg0: i32, %arg1: memref<1x64x48xf32, #tpu.memory_space<vmem>>, %arg2: memref<48x16xbf16, #tpu.memory_space<vmem>>, %arg3: memref<1x16xf32, #tpu.memory_space<vmem>>, %arg4: memref<1x16xf32, #tpu.memory_space<vmem>>, %arg5: memref<1x16xf32, #tpu.memory_space<vmem>>, %arg6: memref<49x1x1x16xf32, #tpu.memory_space<vmem>>, %arg7: memref<1x16xf32, #tpu.memory_space<vmem>>, %arg8: memref<16x64xbf16, #tpu.memory_space<vmem>>, %arg9: memref<1x64xf32, #tpu.memory_space<vmem>>, %arg10: memref<1x64xf32, #tpu.memory_space<vmem>>, %arg11: memref<1x64xf32, #tpu.memory_space<vmem>>, %arg12: memref<64x16xbf16, #tpu.memory_space<vmem>>, %arg13: memref<1x16xf32, #tpu.memory_space<vmem>>, %arg14: memref<64x32xbf16, #tpu.memory_space<vmem>>, %arg15: memref<1x32xf32, #tpu.memory_space<vmem>>, %arg16: memref<49x1x1x32xf32, #tpu.memory_space<vmem>>, %arg17: memref<1x32xf32, #tpu.memory_space<vmem>>, %arg18: memref<32x128xbf16, #tpu.memory_space<vmem>>, %arg19: memref<1x128xf32, #tpu.memory_space<vmem>>, %arg20: memref<1x128xf32, #tpu.memory_space<vmem>>, %arg21: memref<1x128xf32, #tpu.memory_space<vmem>>, %arg22: memref<128x32xbf16, #tpu.memory_space<vmem>>, %arg23: memref<1x32xf32, #tpu.memory_space<vmem>>, %arg24: memref<128x64xbf16, #tpu.memory_space<vmem>>, %arg25: memref<1x64xf32, #tpu.memory_space<vmem>>, %arg26: memref<49x1x1x64xf32, #tpu.memory_space<vmem>>, %arg27: memref<1x64xf32, #tpu.memory_space<vmem>>, %arg28: memref<64x256xbf16, #tpu.memory_space<vmem>>, %arg29: memref<1x256xf32, #tpu.memory_space<vmem>>, %arg30: memref<1x256xf32, #tpu.memory_space<vmem>>, %arg31: memref<1x256xf32, #tpu.memory_space<vmem>>, %arg32: memref<256x64xbf16, #tpu.memory_space<vmem>>, %arg33: memref<1x64xf32, #tpu.memory_space<vmem>>, %arg34: memref<1x4x64xf32, #tpu.memory_space<vmem>>, %arg35: memref<14x24x16xf32, #tpu.memory_space<vmem>>, %arg36: memref<64x16xf32, #tpu.memory_space<vmem>>, %arg37: memref<10x20x32xf32, #tpu.memory_space<vmem>>, %arg38: memref<16x32xf32, #tpu.memory_space<vmem>>, %arg39: memref<8x18x64xf32, #tpu.memory_space<vmem>>, %arg40: memref<4x64xf32, #tpu.memory_space<vmem>>, %arg41: memref<16x64xf32, #tpu.memory_space<vmem>>, %arg42: memref<4x128xf32, #tpu.memory_space<vmem>>) attributes {dimension_semantics = [#tpu.dimension_semantics<parallel>], iteration_bounds = array<i64: 2>, scalar_prefetch = 0 : i64, scratch_operands = 8 : i64, tpu.core_type = #tpu.core_type<tc>, window_params = [{transform_indices = @transform_0, window_bounds = array<i64: 1, 64, 48>}, {pipeline_mode = #tpu.pipeline_mode<synchronous>, transform_indices = @transform_1, window_bounds = array<i64: 48, 16>}, {pipeline_mode = #tpu.pipeline_mode<synchronous>, transform_indices = @transform_2, window_bounds = array<i64: 1, 16>}, {pipeline_mode = #tpu.pipeline_mode<synchronous>, transform_indices = @transform_3, window_bounds = array<i64: 1, 16>}, {pipeline_mode = #tpu.pipeline_mode<synchronous>, transform_indices = @transform_4, window_bounds = array<i64: 1, 16>}, {pipeline_mode = #tpu.pipeline_mode<synchronous>, transform_indices = @transform_5, window_bounds = array<i64: 49, 1, 1, 16>}, {pipeline_mode = #tpu.pipeline_mode<synchronous>, transform_indices = @transform_6, window_bounds = array<i64: 1, 16>}, {pipeline_mode = #tpu.pipeline_mode<synchronous>, transform_indices = @transform_7, window_bounds = array<i64: 16, 64>}, {pipeline_mode = #tpu.pipeline_mode<synchronous>, transform_indices = @transform_8, window_bounds = array<i64: 1, 64>}, {pipeline_mode = #tpu.pipeline_mode<synchronous>, transform_indices = @transform_9, window_bounds = array<i64: 1, 64>}, {pipeline_mode = #tpu.pipeline_mode<synchronous>, transform_indices = @transform_10, window_bounds = array<i64: 1, 64>}, {pipeline_mode = #tpu.pipeline_mode<synchronous>, transform_indices = @transform_11, window_bounds = array<i64: 64, 16>}, {pipeline_mode = #tpu.pipeline_mode<synchronous>, transform_indices = @transform_12, window_bounds = array<i64: 1, 16>}, {pipeline_mode = #tpu.pipeline_mode<synchronous>, transform_indices = @transform_13, window_bounds = array<i64: 64, 32>}, {pipeline_mode = #tpu.pipeline_mode<synchronous>, transform_indices = @transform_14, window_bounds = array<i64: 1, 32>}, {pipeline_mode = #tpu.pipeline_mode<synchronous>, transform_indices = @transform_15, window_bounds = array<i64: 49, 1, 1, 32>}, {pipeline_mode = #tpu.pipeline_mode<synchronous>, transform_indices = @transform_16, window_bounds = array<i64: 1, 32>}, {pipeline_mode = #tpu.pipeline_mode<synchronous>, transform_indices = @transform_17, window_bounds = array<i64: 32, 128>}, {pipeline_mode = #tpu.pipeline_mode<synchronous>, transform_indices = @transform_18, window_bounds = array<i64: 1, 128>}, {pipeline_mode = #tpu.pipeline_mode<synchronous>, transform_indices = @transform_19, window_bounds = array<i64: 1, 128>}, {pipeline_mode = #tpu.pipeline_mode<synchronous>, transform_indices = @transform_20, window_bounds = array<i64: 1, 128>}, {pipeline_mode = #tpu.pipeline_mode<synchronous>, transform_indices = @transform_21, window_bounds = array<i64: 128, 32>}, {pipeline_mode = #tpu.pipeline_mode<synchronous>, transform_indices = @transform_22, window_bounds = array<i64: 1, 32>}, {pipeline_mode = #tpu.pipeline_mode<synchronous>, transform_indices = @transform_23, window_bounds = array<i64: 128, 64>}, {pipeline_mode = #tpu.pipeline_mode<synchronous>, transform_indices = @transform_24, window_bounds = array<i64: 1, 64>}, {pipeline_mode = #tpu.pipeline_mode<synchronous>, transform_indices = @transform_25, window_bounds = array<i64: 49, 1, 1, 64>}, {pipeline_mode = #tpu.pipeline_mode<synchronous>, transform_indices = @transform_26, window_bounds = array<i64: 1, 64>}, {pipeline_mode = #tpu.pipeline_mode<synchronous>, transform_indices = @transform_27, window_bounds = array<i64: 64, 256>}, {pipeline_mode = #tpu.pipeline_mode<synchronous>, transform_indices = @transform_28, window_bounds = array<i64: 1, 256>}, {pipeline_mode = #tpu.pipeline_mode<synchronous>, transform_indices = @transform_29, window_bounds = array<i64: 1, 256>}, {pipeline_mode = #tpu.pipeline_mode<synchronous>, transform_indices = @transform_30, window_bounds = array<i64: 1, 256>}, {pipeline_mode = #tpu.pipeline_mode<synchronous>, transform_indices = @transform_31, window_bounds = array<i64: 256, 64>}, {pipeline_mode = #tpu.pipeline_mode<synchronous>, transform_indices = @transform_32, window_bounds = array<i64: 1, 64>}, {transform_indices = @transform_33, window_bounds = array<i64: 1, 4, 64>}]} {
    %c0 = arith.constant 0 : index
    %c0_0 = arith.constant 0 : index
    %c0_1 = arith.constant 0 : index
    %0 = vector.load %arg1[%c0, %c0_0, %c0_1] : memref<1x64x48xf32, #tpu.memory_space<vmem>>, vector<1x64x48xf32>
    %1 = vector.shape_cast %0 : vector<1x64x48xf32> to vector<64x48xf32>
    %2 = arith.truncf %1 : vector<64x48xf32> to vector<64x48xbf16>
    %c0_2 = arith.constant 0 : index
    %c0_3 = arith.constant 0 : index
    %3 = vector.load %arg2[%c0_2, %c0_3] : memref<48x16xbf16, #tpu.memory_space<vmem>>, vector<48x16xbf16>
    %cst = arith.constant dense<0.000000e+00> : vector<64x16xf32>
    %4 = tpu.matmul %2, %3, %cst {dimension_numbers = #tpu.dot_dimension_numbers<[1], [0], [0], [1], [0, 0, 1, 1], [], []>} : vector<64x48xbf16>, vector<48x16xbf16>, vector<64x16xf32> -> vector<64x16xf32>
    %c0_4 = arith.constant 0 : index
    %c0_5 = arith.constant 0 : index
    %5 = vector.load %arg3[%c0_4, %c0_5] : memref<1x16xf32, #tpu.memory_space<vmem>>, vector<1x16xf32>
    %6 = vector.broadcast %5 : vector<1x16xf32> to vector<64x16xf32>
    %7 = arith.addf %4, %6 : vector<64x16xf32>
    %cst_6 = arith.constant dense<0.000000e+00> : vector<64xf32>
    %8 = vector.multi_reduction <add>, %7, %cst_6 [1] : vector<64x16xf32> to vector<64xf32>
    %9 = vector.shape_cast %8 : vector<64xf32> to vector<64x1xf32>
    %cst_7 = arith.constant 1.600000e+01 : f32
    %10 = vector.broadcast %cst_7 : f32 to vector<64x1xf32>
    %11 = arith.divf %9, %10 : vector<64x1xf32>
    %12 = vector.broadcast %11 : vector<64x1xf32> to vector<64x16xf32>
    %13 = arith.subf %7, %12 : vector<64x16xf32>
    %14 = arith.mulf %13, %13 : vector<64x16xf32>
    %cst_8 = arith.constant dense<0.000000e+00> : vector<64xf32>
    %15 = vector.multi_reduction <add>, %14, %cst_8 [1] : vector<64x16xf32> to vector<64xf32>
    %16 = vector.shape_cast %15 : vector<64xf32> to vector<64x1xf32>
    %cst_9 = arith.constant 1.600000e+01 : f32
    %17 = vector.broadcast %cst_9 : f32 to vector<64x1xf32>
    %18 = arith.divf %16, %17 : vector<64x1xf32>
    %19 = vector.broadcast %11 : vector<64x1xf32> to vector<64x16xf32>
    %20 = arith.subf %7, %19 : vector<64x16xf32>
    %cst_10 = arith.constant 9.99999997E-7 : f32
    %21 = vector.broadcast %cst_10 : f32 to vector<64x1xf32>
    %22 = arith.addf %18, %21 : vector<64x1xf32>
    %23 = math.rsqrt %22 : vector<64x1xf32>
    %24 = vector.broadcast %23 : vector<64x1xf32> to vector<64x16xf32>
    %25 = arith.mulf %20, %24 : vector<64x16xf32>
    %c0_11 = arith.constant 0 : index
    %c0_12 = arith.constant 0 : index
    %26 = vector.load %arg4[%c0_11, %c0_12] : memref<1x16xf32, #tpu.memory_space<vmem>>, vector<1x16xf32>
    %27 = vector.broadcast %26 : vector<1x16xf32> to vector<64x16xf32>
    %28 = arith.mulf %25, %27 : vector<64x16xf32>
    %c0_13 = arith.constant 0 : index
    %c0_14 = arith.constant 0 : index
    %29 = vector.load %arg5[%c0_13, %c0_14] : memref<1x16xf32, #tpu.memory_space<vmem>>, vector<1x16xf32>
    %30 = vector.broadcast %29 : vector<1x16xf32> to vector<64x16xf32>
    %31 = arith.addf %28, %30 : vector<64x16xf32>
    %cst_15 = arith.constant 0.000000e+00 : f32
    %32 = vector.broadcast %cst_15 : f32 to vector<3x24x16xf32>
    %c0_16 = arith.constant 0 : index
    %c0_17 = arith.constant 0 : index
    %c0_18 = arith.constant 0 : index
    %33 = vector.load %arg35[%c0_16, %c0_17, %c0_18] : memref<14x24x16xf32, #tpu.memory_space<vmem>>, vector<3x24x16xf32>
    tpu.vector_store %arg35[%c0_16, %c0_17, %c0_18], %32 {strides = array<i32>} : memref<14x24x16xf32, #tpu.memory_space<vmem>>, vector<3x24x16xf32>,
    %cst_19 = arith.constant 0.000000e+00 : f32
    %34 = vector.broadcast %cst_19 : f32 to vector<3x24x16xf32>
    %c11 = arith.constant 11 : index
    %c0_20 = arith.constant 0 : index
    %c0_21 = arith.constant 0 : index
    %35 = vector.load %arg35[%c11, %c0_20, %c0_21] : memref<14x24x16xf32, #tpu.memory_space<vmem>>, vector<3x24x16xf32>
    tpu.vector_store %arg35[%c11, %c0_20, %c0_21], %34 {strides = array<i32>} : memref<14x24x16xf32, #tpu.memory_space<vmem>>, vector<3x24x16xf32>,
    %cst_22 = arith.constant 0.000000e+00 : f32
    %36 = vector.broadcast %cst_22 : f32 to vector<8x8x16xf32>
    %c3 = arith.constant 3 : index
    %c0_23 = arith.constant 0 : index
    %c0_24 = arith.constant 0 : index
    %37 = vector.load %arg35[%c3, %c0_23, %c0_24] : memref<14x24x16xf32, #tpu.memory_space<vmem>>, vector<8x8x16xf32>
    tpu.vector_store %arg35[%c3, %c0_23, %c0_24], %36 {strides = array<i32>} : memref<14x24x16xf32, #tpu.memory_space<vmem>>, vector<8x8x16xf32>,
    %cst_25 = arith.constant 0.000000e+00 : f32
    %38 = vector.broadcast %cst_25 : f32 to vector<8x8x16xf32>
    %c3_26 = arith.constant 3 : index
    %c16 = arith.constant 16 : index
    %c0_27 = arith.constant 0 : index
    %39 = vector.load %arg35[%c3_26, %c16, %c0_27] : memref<14x24x16xf32, #tpu.memory_space<vmem>>, vector<8x8x16xf32>
    tpu.vector_store %arg35[%c3_26, %c16, %c0_27], %38 {strides = array<i32>} : memref<14x24x16xf32, #tpu.memory_space<vmem>>, vector<8x8x16xf32>,
    %40 = vector.extract_strided_slice %31 {offsets = [0, 0], sizes = [8, 16], strides = [1, 1]} : vector<64x16xf32> to vector<8x16xf32>
    %c3_28 = arith.constant 3 : index
    %c8 = arith.constant 8 : index
    %c0_29 = arith.constant 0 : index
    %41 = vector.load %arg35[%c3_28, %c8, %c0_29] : memref<14x24x16xf32, #tpu.memory_space<vmem>>, vector<1x8x16xf32>
    %42 = vector.shape_cast %41 : vector<1x8x16xf32> to vector<8x16xf32>
    %43 = vector.shape_cast %40 : vector<8x16xf32> to vector<1x8x16xf32>
    tpu.vector_store %arg35[%c3_28, %c8, %c0_29], %43 {strides = array<i32>} : memref<14x24x16xf32, #tpu.memory_space<vmem>>, vector<1x8x16xf32>,
    %44 = vector.extract_strided_slice %31 {offsets = [8, 0], sizes = [8, 16], strides = [1, 1]} : vector<64x16xf32> to vector<8x16xf32>
    %c4 = arith.constant 4 : index
    %c8_30 = arith.constant 8 : index
    %c0_31 = arith.constant 0 : index
    %45 = vector.load %arg35[%c4, %c8_30, %c0_31] : memref<14x24x16xf32, #tpu.memory_space<vmem>>, vector<1x8x16xf32>
    %46 = vector.shape_cast %45 : vector<1x8x16xf32> to vector<8x16xf32>
    %47 = vector.shape_cast %44 : vector<8x16xf32> to vector<1x8x16xf32>
    tpu.vector_store %arg35[%c4, %c8_30, %c0_31], %47 {strides = array<i32>} : memref<14x24x16xf32, #tpu.memory_space<vmem>>, vector<1x8x16xf32>,
    %48 = vector.extract_strided_slice %31 {offsets = [16, 0], sizes = [8, 16], strides = [1, 1]} : vector<64x16xf32> to vector<8x16xf32>
    %c5 = arith.constant 5 : index
    %c8_32 = arith.constant 8 : index
    %c0_33 = arith.constant 0 : index
    %49 = vector.load %arg35[%c5, %c8_32, %c0_33] : memref<14x24x16xf32, #tpu.memory_space<vmem>>, vector<1x8x16xf32>
    %50 = vector.shape_cast %49 : vector<1x8x16xf32> to vector<8x16xf32>
    %51 = vector.shape_cast %48 : vector<8x16xf32> to vector<1x8x16xf32>
    tpu.vector_store %arg35[%c5, %c8_32, %c0_33], %51 {strides = array<i32>} : memref<14x24x16xf32, #tpu.memory_space<vmem>>, vector<1x8x16xf32>,
    %52 = vector.extract_strided_slice %31 {offsets = [24, 0], sizes = [8, 16], strides = [1, 1]} : vector<64x16xf32> to vector<8x16xf32>
    %c6 = arith.constant 6 : index
    %c8_34 = arith.constant 8 : index
    %c0_35 = arith.constant 0 : index
    %53 = vector.load %arg35[%c6, %c8_34, %c0_35] : memref<14x24x16xf32, #tpu.memory_space<vmem>>, vector<1x8x16xf32>
    %54 = vector.shape_cast %53 : vector<1x8x16xf32> to vector<8x16xf32>
    %55 = vector.shape_cast %52 : vector<8x16xf32> to vector<1x8x16xf32>
    tpu.vector_store %arg35[%c6, %c8_34, %c0_35], %55 {strides = array<i32>} : memref<14x24x16xf32, #tpu.memory_space<vmem>>, vector<1x8x16xf32>,
    %56 = vector.extract_strided_slice %31 {offsets = [32, 0], sizes = [8, 16], strides = [1, 1]} : vector<64x16xf32> to vector<8x16xf32>
    %c7 = arith.constant 7 : index
    %c8_36 = arith.constant 8 : index
    %c0_37 = arith.constant 0 : index
    %57 = vector.load %arg35[%c7, %c8_36, %c0_37] : memref<14x24x16xf32, #tpu.memory_space<vmem>>, vector<1x8x16xf32>
    %58 = vector.shape_cast %57 : vector<1x8x16xf32> to vector<8x16xf32>
    %59 = vector.shape_cast %56 : vector<8x16xf32> to vector<1x8x16xf32>
    tpu.vector_store %arg35[%c7, %c8_36, %c0_37], %59 {strides = array<i32>} : memref<14x24x16xf32, #tpu.memory_space<vmem>>, vector<1x8x16xf32>,
    %60 = vector.extract_strided_slice %31 {offsets = [40, 0], sizes = [8, 16], strides = [1, 1]} : vector<64x16xf32> to vector<8x16xf32>
    %c8_38 = arith.constant 8 : index
    %c8_39 = arith.constant 8 : index
    %c0_40 = arith.constant 0 : index
    %61 = vector.load %arg35[%c8_38, %c8_39, %c0_40] : memref<14x24x16xf32, #tpu.memory_space<vmem>>, vector<1x8x16xf32>
    %62 = vector.shape_cast %61 : vector<1x8x16xf32> to vector<8x16xf32>
    %63 = vector.shape_cast %60 : vector<8x16xf32> to vector<1x8x16xf32>
    tpu.vector_store %arg35[%c8_38, %c8_39, %c0_40], %63 {strides = array<i32>} : memref<14x24x16xf32, #tpu.memory_space<vmem>>, vector<1x8x16xf32>,
    %64 = vector.extract_strided_slice %31 {offsets = [48, 0], sizes = [8, 16], strides = [1, 1]} : vector<64x16xf32> to vector<8x16xf32>
    %c9 = arith.constant 9 : index
    %c8_41 = arith.constant 8 : index
    %c0_42 = arith.constant 0 : index
    %65 = vector.load %arg35[%c9, %c8_41, %c0_42] : memref<14x24x16xf32, #tpu.memory_space<vmem>>, vector<1x8x16xf32>
    %66 = vector.shape_cast %65 : vector<1x8x16xf32> to vector<8x16xf32>
    %67 = vector.shape_cast %64 : vector<8x16xf32> to vector<1x8x16xf32>
    tpu.vector_store %arg35[%c9, %c8_41, %c0_42], %67 {strides = array<i32>} : memref<14x24x16xf32, #tpu.memory_space<vmem>>, vector<1x8x16xf32>,
    %68 = vector.extract_strided_slice %31 {offsets = [56, 0], sizes = [8, 16], strides = [1, 1]} : vector<64x16xf32> to vector<8x16xf32>
    %c10 = arith.constant 10 : index
    %c8_43 = arith.constant 8 : index
    %c0_44 = arith.constant 0 : index
    %69 = vector.load %arg35[%c10, %c8_43, %c0_44] : memref<14x24x16xf32, #tpu.memory_space<vmem>>, vector<1x8x16xf32>
    %70 = vector.shape_cast %69 : vector<1x8x16xf32> to vector<8x16xf32>
    %71 = vector.shape_cast %68 : vector<8x16xf32> to vector<1x8x16xf32>
    tpu.vector_store %arg35[%c10, %c8_43, %c0_44], %71 {strides = array<i32>} : memref<14x24x16xf32, #tpu.memory_space<vmem>>, vector<1x8x16xf32>,
    %c0_45 = arith.constant 0 : index
    %c0_46 = arith.constant 0 : index
    %c0_47 = arith.constant 0 : index
    %c0_48 = arith.constant 0 : index
    %72 = vector.load %arg6[%c0_45, %c0_46, %c0_47, %c0_48] : memref<49x1x1x16xf32, #tpu.memory_space<vmem>>, vector<49x1x1x16xf32>
    %c0_49 = arith.constant 0 : index
    %c5_50 = arith.constant 5 : index
    %c0_51 = arith.constant 0 : index
    %73 = vector.load %arg35[%c0_49, %c5_50, %c0_51] : memref<14x24x16xf32, #tpu.memory_space<vmem>>, vector<14x8x16xf32>
    %74 = vector.extract_strided_slice %73 {offsets = [0, 0, 0], sizes = [8, 8, 16], strides = [1, 1, 1]} : vector<14x8x16xf32> to vector<8x8x16xf32>
    %75 = vector.extract_strided_slice %72 {offsets = [0, 0, 0, 0], sizes = [1, 1, 1, 16], strides = [1, 1, 1, 1]} : vector<49x1x1x16xf32> to vector<1x1x1x16xf32>
    %76 = vector.shape_cast %75 : vector<1x1x1x16xf32> to vector<1x1x16xf32>
    %77 = vector.broadcast %76 : vector<1x1x16xf32> to vector<8x8x16xf32>
    %78 = arith.mulf %74, %77 : vector<8x8x16xf32>
    %79 = vector.extract_strided_slice %73 {offsets = [1, 0, 0], sizes = [8, 8, 16], strides = [1, 1, 1]} : vector<14x8x16xf32> to vector<8x8x16xf32>
    %80 = vector.extract_strided_slice %72 {offsets = [7, 0, 0, 0], sizes = [1, 1, 1, 16], strides = [1, 1, 1, 1]} : vector<49x1x1x16xf32> to vector<1x1x1x16xf32>
    %81 = vector.shape_cast %80 : vector<1x1x1x16xf32> to vector<1x1x16xf32>
    %82 = vector.broadcast %81 : vector<1x1x16xf32> to vector<8x8x16xf32>
    %83 = arith.mulf %79, %82 : vector<8x8x16xf32>
    %84 = arith.addf %78, %83 : vector<8x8x16xf32>
    %85 = vector.extract_strided_slice %73 {offsets = [2, 0, 0], sizes = [8, 8, 16], strides = [1, 1, 1]} : vector<14x8x16xf32> to vector<8x8x16xf32>
    %86 = vector.extract_strided_slice %72 {offsets = [14, 0, 0, 0], sizes = [1, 1, 1, 16], strides = [1, 1, 1, 1]} : vector<49x1x1x16xf32> to vector<1x1x1x16xf32>
    %87 = vector.shape_cast %86 : vector<1x1x1x16xf32> to vector<1x1x16xf32>
    %88 = vector.broadcast %87 : vector<1x1x16xf32> to vector<8x8x16xf32>
    %89 = arith.mulf %85, %88 : vector<8x8x16xf32>
    %90 = arith.addf %84, %89 : vector<8x8x16xf32>
    %91 = vector.extract_strided_slice %73 {offsets = [3, 0, 0], sizes = [8, 8, 16], strides = [1, 1, 1]} : vector<14x8x16xf32> to vector<8x8x16xf32>
    %92 = vector.extract_strided_slice %72 {offsets = [21, 0, 0, 0], sizes = [1, 1, 1, 16], strides = [1, 1, 1, 1]} : vector<49x1x1x16xf32> to vector<1x1x1x16xf32>
    %93 = vector.shape_cast %92 : vector<1x1x1x16xf32> to vector<1x1x16xf32>
    %94 = vector.broadcast %93 : vector<1x1x16xf32> to vector<8x8x16xf32>
    %95 = arith.mulf %91, %94 : vector<8x8x16xf32>
    %96 = arith.addf %90, %95 : vector<8x8x16xf32>
    %97 = vector.extract_strided_slice %73 {offsets = [4, 0, 0], sizes = [8, 8, 16], strides = [1, 1, 1]} : vector<14x8x16xf32> to vector<8x8x16xf32>
    %98 = vector.extract_strided_slice %72 {offsets = [28, 0, 0, 0], sizes = [1, 1, 1, 16], strides = [1, 1, 1, 1]} : vector<49x1x1x16xf32> to vector<1x1x1x16xf32>
    %99 = vector.shape_cast %98 : vector<1x1x1x16xf32> to vector<1x1x16xf32>
    %100 = vector.broadcast %99 : vector<1x1x16xf32> to vector<8x8x16xf32>
    %101 = arith.mulf %97, %100 : vector<8x8x16xf32>
    %102 = arith.addf %96, %101 : vector<8x8x16xf32>
    %103 = vector.extract_strided_slice %73 {offsets = [5, 0, 0], sizes = [8, 8, 16], strides = [1, 1, 1]} : vector<14x8x16xf32> to vector<8x8x16xf32>
    %104 = vector.extract_strided_slice %72 {offsets = [35, 0, 0, 0], sizes = [1, 1, 1, 16], strides = [1, 1, 1, 1]} : vector<49x1x1x16xf32> to vector<1x1x1x16xf32>
    %105 = vector.shape_cast %104 : vector<1x1x1x16xf32> to vector<1x1x16xf32>
    %106 = vector.broadcast %105 : vector<1x1x16xf32> to vector<8x8x16xf32>
    %107 = arith.mulf %103, %106 : vector<8x8x16xf32>
    %108 = arith.addf %102, %107 : vector<8x8x16xf32>
    %109 = vector.extract_strided_slice %73 {offsets = [6, 0, 0], sizes = [8, 8, 16], strides = [1, 1, 1]} : vector<14x8x16xf32> to vector<8x8x16xf32>
    %110 = vector.extract_strided_slice %72 {offsets = [42, 0, 0, 0], sizes = [1, 1, 1, 16], strides = [1, 1, 1, 1]} : vector<49x1x1x16xf32> to vector<1x1x1x16xf32>
    %111 = vector.shape_cast %110 : vector<1x1x1x16xf32> to vector<1x1x16xf32>
    %112 = vector.broadcast %111 : vector<1x1x16xf32> to vector<8x8x16xf32>
    %113 = arith.mulf %109, %112 : vector<8x8x16xf32>
    %114 = arith.addf %108, %113 : vector<8x8x16xf32>
    %c0_52 = arith.constant 0 : index
    %c6_53 = arith.constant 6 : index
    %c0_54 = arith.constant 0 : index
    %115 = vector.load %arg35[%c0_52, %c6_53, %c0_54] : memref<14x24x16xf32, #tpu.memory_space<vmem>>, vector<14x8x16xf32>
    %116 = vector.extract_strided_slice %115 {offsets = [0, 0, 0], sizes = [8, 8, 16], strides = [1, 1, 1]} : vector<14x8x16xf32> to vector<8x8x16xf32>
    %117 = vector.extract_strided_slice %72 {offsets = [1, 0, 0, 0], sizes = [1, 1, 1, 16], strides = [1, 1, 1, 1]} : vector<49x1x1x16xf32> to vector<1x1x1x16xf32>
    %118 = vector.shape_cast %117 : vector<1x1x1x16xf32> to vector<1x1x16xf32>
    %119 = vector.broadcast %118 : vector<1x1x16xf32> to vector<8x8x16xf32>
    %120 = arith.mulf %116, %119 : vector<8x8x16xf32>
    %121 = arith.addf %114, %120 : vector<8x8x16xf32>
    %122 = vector.extract_strided_slice %115 {offsets = [1, 0, 0], sizes = [8, 8, 16], strides = [1, 1, 1]} : vector<14x8x16xf32> to vector<8x8x16xf32>
    %123 = vector.extract_strided_slice %72 {offsets = [8, 0, 0, 0], sizes = [1, 1, 1, 16], strides = [1, 1, 1, 1]} : vector<49x1x1x16xf32> to vector<1x1x1x16xf32>
    %124 = vector.shape_cast %123 : vector<1x1x1x16xf32> to vector<1x1x16xf32>
    %125 = vector.broadcast %124 : vector<1x1x16xf32> to vector<8x8x16xf32>
    %126 = arith.mulf %122, %125 : vector<8x8x16xf32>
    %127 = arith.addf %121, %126 : vector<8x8x16xf32>
    %128 = vector.extract_strided_slice %115 {offsets = [2, 0, 0], sizes = [8, 8, 16], strides = [1, 1, 1]} : vector<14x8x16xf32> to vector<8x8x16xf32>
    %129 = vector.extract_strided_slice %72 {offsets = [15, 0, 0, 0], sizes = [1, 1, 1, 16], strides = [1, 1, 1, 1]} : vector<49x1x1x16xf32> to vector<1x1x1x16xf32>
    %130 = vector.shape_cast %129 : vector<1x1x1x16xf32> to vector<1x1x16xf32>
    %131 = vector.broadcast %130 : vector<1x1x16xf32> to vector<8x8x16xf32>
    %132 = arith.mulf %128, %131 : vector<8x8x16xf32>
    %133 = arith.addf %127, %132 : vector<8x8x16xf32>
    %134 = vector.extract_strided_slice %115 {offsets = [3, 0, 0], sizes = [8, 8, 16], strides = [1, 1, 1]} : vector<14x8x16xf32> to vector<8x8x16xf32>
    %135 = vector.extract_strided_slice %72 {offsets = [22, 0, 0, 0], sizes = [1, 1, 1, 16], strides = [1, 1, 1, 1]} : vector<49x1x1x16xf32> to vector<1x1x1x16xf32>
    %136 = vector.shape_cast %135 : vector<1x1x1x16xf32> to vector<1x1x16xf32>
    %137 = vector.broadcast %136 : vector<1x1x16xf32> to vector<8x8x16xf32>
    %138 = arith.mulf %134, %137 : vector<8x8x16xf32>
    %139 = arith.addf %133, %138 : vector<8x8x16xf32>
    %140 = vector.extract_strided_slice %115 {offsets = [4, 0, 0], sizes = [8, 8, 16], strides = [1, 1, 1]} : vector<14x8x16xf32> to vector<8x8x16xf32>
    %141 = vector.extract_strided_slice %72 {offsets = [29, 0, 0, 0], sizes = [1, 1, 1, 16], strides = [1, 1, 1, 1]} : vector<49x1x1x16xf32> to vector<1x1x1x16xf32>
    %142 = vector.shape_cast %141 : vector<1x1x1x16xf32> to vector<1x1x16xf32>
    %143 = vector.broadcast %142 : vector<1x1x16xf32> to vector<8x8x16xf32>
    %144 = arith.mulf %140, %143 : vector<8x8x16xf32>
    %145 = arith.addf %139, %144 : vector<8x8x16xf32>
    %146 = vector.extract_strided_slice %115 {offsets = [5, 0, 0], sizes = [8, 8, 16], strides = [1, 1, 1]} : vector<14x8x16xf32> to vector<8x8x16xf32>
    %147 = vector.extract_strided_slice %72 {offsets = [36, 0, 0, 0], sizes = [1, 1, 1, 16], strides = [1, 1, 1, 1]} : vector<49x1x1x16xf32> to vector<1x1x1x16xf32>
    %148 = vector.shape_cast %147 : vector<1x1x1x16xf32> to vector<1x1x16xf32>
    %149 = vector.broadcast %148 : vector<1x1x16xf32> to vector<8x8x16xf32>
    %150 = arith.mulf %146, %149 : vector<8x8x16xf32>
    %151 = arith.addf %145, %150 : vector<8x8x16xf32>
    %152 = vector.extract_strided_slice %115 {offsets = [6, 0, 0], sizes = [8, 8, 16], strides = [1, 1, 1]} : vector<14x8x16xf32> to vector<8x8x16xf32>
    %153 = vector.extract_strided_slice %72 {offsets = [43, 0, 0, 0], sizes = [1, 1, 1, 16], strides = [1, 1, 1, 1]} : vector<49x1x1x16xf32> to vector<1x1x1x16xf32>
    %154 = vector.shape_cast %153 : vector<1x1x1x16xf32> to vector<1x1x16xf32>
    %155 = vector.broadcast %154 : vector<1x1x16xf32> to vector<8x8x16xf32>
    %156 = arith.mulf %152, %155 : vector<8x8x16xf32>
    %157 = arith.addf %151, %156 : vector<8x8x16xf32>
    %c0_55 = arith.constant 0 : index
    %c7_56 = arith.constant 7 : index
    %c0_57 = arith.constant 0 : index
    %158 = vector.load %arg35[%c0_55, %c7_56, %c0_57] : memref<14x24x16xf32, #tpu.memory_space<vmem>>, vector<14x8x16xf32>
    %159 = vector.extract_strided_slice %158 {offsets = [0, 0, 0], sizes = [8, 8, 16], strides = [1, 1, 1]} : vector<14x8x16xf32> to vector<8x8x16xf32>
    %160 = vector.extract_strided_slice %72 {offsets = [2, 0, 0, 0], sizes = [1, 1, 1, 16], strides = [1, 1, 1, 1]} : vector<49x1x1x16xf32> to vector<1x1x1x16xf32>
    %161 = vector.shape_cast %160 : vector<1x1x1x16xf32> to vector<1x1x16xf32>
    %162 = vector.broadcast %161 : vector<1x1x16xf32> to vector<8x8x16xf32>
    %163 = arith.mulf %159, %162 : vector<8x8x16xf32>
    %164 = arith.addf %157, %163 : vector<8x8x16xf32>
    %165 = vector.extract_strided_slice %158 {offsets = [1, 0, 0], sizes = [8, 8, 16], strides = [1, 1, 1]} : vector<14x8x16xf32> to vector<8x8x16xf32>
    %166 = vector.extract_strided_slice %72 {offsets = [9, 0, 0, 0], sizes = [1, 1, 1, 16], strides = [1, 1, 1, 1]} : vector<49x1x1x16xf32> to vector<1x1x1x16xf32>
    %167 = vector.shape_cast %166 : vector<1x1x1x16xf32> to vector<1x1x16xf32>
    %168 = vector.broadcast %167 : vector<1x1x16xf32> to vector<8x8x16xf32>
    %169 = arith.mulf %165, %168 : vector<8x8x16xf32>
    %170 = arith.addf %164, %169 : vector<8x8x16xf32>
    %171 = vector.extract_strided_slice %158 {offsets = [2, 0, 0], sizes = [8, 8, 16], strides = [1, 1, 1]} : vector<14x8x16xf32> to vector<8x8x16xf32>
    %172 = vector.extract_strided_slice %72 {offsets = [16, 0, 0, 0], sizes = [1, 1, 1, 16], strides = [1, 1, 1, 1]} : vector<49x1x1x16xf32> to vector<1x1x1x16xf32>
    %173 = vector.shape_cast %172 : vector<1x1x1x16xf32> to vector<1x1x16xf32>
    %174 = vector.broadcast %173 : vector<1x1x16xf32> to vector<8x8x16xf32>
    %175 = arith.mulf %171, %174 : vector<8x8x16xf32>
    %176 = arith.addf %170, %175 : vector<8x8x16xf32>
    %177 = vector.extract_strided_slice %158 {offsets = [3, 0, 0], sizes = [8, 8, 16], strides = [1, 1, 1]} : vector<14x8x16xf32> to vector<8x8x16xf32>
    %178 = vector.extract_strided_slice %72 {offsets = [23, 0, 0, 0], sizes = [1, 1, 1, 16], strides = [1, 1, 1, 1]} : vector<49x1x1x16xf32> to vector<1x1x1x16xf32>
    %179 = vector.shape_cast %178 : vector<1x1x1x16xf32> to vector<1x1x16xf32>
    %180 = vector.broadcast %179 : vector<1x1x16xf32> to vector<8x8x16xf32>
    %181 = arith.mulf %177, %180 : vector<8x8x16xf32>
    %182 = arith.addf %176, %181 : vector<8x8x16xf32>
    %183 = vector.extract_strided_slice %158 {offsets = [4, 0, 0], sizes = [8, 8, 16], strides = [1, 1, 1]} : vector<14x8x16xf32> to vector<8x8x16xf32>
    %184 = vector.extract_strided_slice %72 {offsets = [30, 0, 0, 0], sizes = [1, 1, 1, 16], strides = [1, 1, 1, 1]} : vector<49x1x1x16xf32> to vector<1x1x1x16xf32>
    %185 = vector.shape_cast %184 : vector<1x1x1x16xf32> to vector<1x1x16xf32>
    %186 = vector.broadcast %185 : vector<1x1x16xf32> to vector<8x8x16xf32>
    %187 = arith.mulf %183, %186 : vector<8x8x16xf32>
    %188 = arith.addf %182, %187 : vector<8x8x16xf32>
    %189 = vector.extract_strided_slice %158 {offsets = [5, 0, 0], sizes = [8, 8, 16], strides = [1, 1, 1]} : vector<14x8x16xf32> to vector<8x8x16xf32>
    %190 = vector.extract_strided_slice %72 {offsets = [37, 0, 0, 0], sizes = [1, 1, 1, 16], strides = [1, 1, 1, 1]} : vector<49x1x1x16xf32> to vector<1x1x1x16xf32>
    %191 = vector.shape_cast %190 : vector<1x1x1x16xf32> to vector<1x1x16xf32>
    %192 = vector.broadcast %191 : vector<1x1x16xf32> to vector<8x8x16xf32>
    %193 = arith.mulf %189, %192 : vector<8x8x16xf32>
    %194 = arith.addf %188, %193 : vector<8x8x16xf32>
    %195 = vector.extract_strided_slice %158 {offsets = [6, 0, 0], sizes = [8, 8, 16], strides = [1, 1, 1]} : vector<14x8x16xf32> to vector<8x8x16xf32>
    %196 = vector.extract_strided_slice %72 {offsets = [44, 0, 0, 0], sizes = [1, 1, 1, 16], strides = [1, 1, 1, 1]} : vector<49x1x1x16xf32> to vector<1x1x1x16xf32>
    %197 = vector.shape_cast %196 : vector<1x1x1x16xf32> to vector<1x1x16xf32>
    %198 = vector.broadcast %197 : vector<1x1x16xf32> to vector<8x8x16xf32>
    %199 = arith.mulf %195, %198 : vector<8x8x16xf32>
    %200 = arith.addf %194, %199 : vector<8x8x16xf32>
    %c0_58 = arith.constant 0 : index
    %c8_59 = arith.constant 8 : index
    %c0_60 = arith.constant 0 : index
    %201 = vector.load %arg35[%c0_58, %c8_59, %c0_60] : memref<14x24x16xf32, #tpu.memory_space<vmem>>, vector<14x8x16xf32>
    %202 = vector.extract_strided_slice %201 {offsets = [0, 0, 0], sizes = [8, 8, 16], strides = [1, 1, 1]} : vector<14x8x16xf32> to vector<8x8x16xf32>
    %203 = vector.extract_strided_slice %72 {offsets = [3, 0, 0, 0], sizes = [1, 1, 1, 16], strides = [1, 1, 1, 1]} : vector<49x1x1x16xf32> to vector<1x1x1x16xf32>
    %204 = vector.shape_cast %203 : vector<1x1x1x16xf32> to vector<1x1x16xf32>
    %205 = vector.broadcast %204 : vector<1x1x16xf32> to vector<8x8x16xf32>
    %206 = arith.mulf %202, %205 : vector<8x8x16xf32>
    %207 = arith.addf %200, %206 : vector<8x8x16xf32>
    %208 = vector.extract_strided_slice %201 {offsets = [1, 0, 0], sizes = [8, 8, 16], strides = [1, 1, 1]} : vector<14x8x16xf32> to vector<8x8x16xf32>
    %209 = vector.extract_strided_slice %72 {offsets = [10, 0, 0, 0], sizes = [1, 1, 1, 16], strides = [1, 1, 1, 1]} : vector<49x1x1x16xf32> to vector<1x1x1x16xf32>
    %210 = vector.shape_cast %209 : vector<1x1x1x16xf32> to vector<1x1x16xf32>
    %211 = vector.broadcast %210 : vector<1x1x16xf32> to vector<8x8x16xf32>
    %212 = arith.mulf %208, %211 : vector<8x8x16xf32>
    %213 = arith.addf %207, %212 : vector<8x8x16xf32>
    %214 = vector.extract_strided_slice %201 {offsets = [2, 0, 0], sizes = [8, 8, 16], strides = [1, 1, 1]} : vector<14x8x16xf32> to vector<8x8x16xf32>
    %215 = vector.extract_strided_slice %72 {offsets = [17, 0, 0, 0], sizes = [1, 1, 1, 16], strides = [1, 1, 1, 1]} : vector<49x1x1x16xf32> to vector<1x1x1x16xf32>
    %216 = vector.shape_cast %215 : vector<1x1x1x16xf32> to vector<1x1x16xf32>
    %217 = vector.broadcast %216 : vector<1x1x16xf32> to vector<8x8x16xf32>
    %218 = arith.mulf %214, %217 : vector<8x8x16xf32>
    %219 = arith.addf %213, %218 : vector<8x8x16xf32>
    %220 = vector.extract_strided_slice %201 {offsets = [3, 0, 0], sizes = [8, 8, 16], strides = [1, 1, 1]} : vector<14x8x16xf32> to vector<8x8x16xf32>
    %221 = vector.extract_strided_slice %72 {offsets = [24, 0, 0, 0], sizes = [1, 1, 1, 16], strides = [1, 1, 1, 1]} : vector<49x1x1x16xf32> to vector<1x1x1x16xf32>
    %222 = vector.shape_cast %221 : vector<1x1x1x16xf32> to vector<1x1x16xf32>
    %223 = vector.broadcast %222 : vector<1x1x16xf32> to vector<8x8x16xf32>
    %224 = arith.mulf %220, %223 : vector<8x8x16xf32>
    %225 = arith.addf %219, %224 : vector<8x8x16xf32>
    %226 = vector.extract_strided_slice %201 {offsets = [4, 0, 0], sizes = [8, 8, 16], strides = [1, 1, 1]} : vector<14x8x16xf32> to vector<8x8x16xf32>
    %227 = vector.extract_strided_slice %72 {offsets = [31, 0, 0, 0], sizes = [1, 1, 1, 16], strides = [1, 1, 1, 1]} : vector<49x1x1x16xf32> to vector<1x1x1x16xf32>
    %228 = vector.shape_cast %227 : vector<1x1x1x16xf32> to vector<1x1x16xf32>
    %229 = vector.broadcast %228 : vector<1x1x16xf32> to vector<8x8x16xf32>
    %230 = arith.mulf %226, %229 : vector<8x8x16xf32>
    %231 = arith.addf %225, %230 : vector<8x8x16xf32>
    %232 = vector.extract_strided_slice %201 {offsets = [5, 0, 0], sizes = [8, 8, 16], strides = [1, 1, 1]} : vector<14x8x16xf32> to vector<8x8x16xf32>
    %233 = vector.extract_strided_slice %72 {offsets = [38, 0, 0, 0], sizes = [1, 1, 1, 16], strides = [1, 1, 1, 1]} : vector<49x1x1x16xf32> to vector<1x1x1x16xf32>
    %234 = vector.shape_cast %233 : vector<1x1x1x16xf32> to vector<1x1x16xf32>
    %235 = vector.broadcast %234 : vector<1x1x16xf32> to vector<8x8x16xf32>
    %236 = arith.mulf %232, %235 : vector<8x8x16xf32>
    %237 = arith.addf %231, %236 : vector<8x8x16xf32>
    %238 = vector.extract_strided_slice %201 {offsets = [6, 0, 0], sizes = [8, 8, 16], strides = [1, 1, 1]} : vector<14x8x16xf32> to vector<8x8x16xf32>
    %239 = vector.extract_strided_slice %72 {offsets = [45, 0, 0, 0], sizes = [1, 1, 1, 16], strides = [1, 1, 1, 1]} : vector<49x1x1x16xf32> to vector<1x1x1x16xf32>
    %240 = vector.shape_cast %239 : vector<1x1x1x16xf32> to vector<1x1x16xf32>
    %241 = vector.broadcast %240 : vector<1x1x16xf32> to vector<8x8x16xf32>
    %242 = arith.mulf %238, %241 : vector<8x8x16xf32>
    %243 = arith.addf %237, %242 : vector<8x8x16xf32>
    %c0_61 = arith.constant 0 : index
    %c9_62 = arith.constant 9 : index
    %c0_63 = arith.constant 0 : index
    %244 = vector.load %arg35[%c0_61, %c9_62, %c0_63] : memref<14x24x16xf32, #tpu.memory_space<vmem>>, vector<14x8x16xf32>
    %245 = vector.extract_strided_slice %244 {offsets = [0, 0, 0], sizes = [8, 8, 16], strides = [1, 1, 1]} : vector<14x8x16xf32> to vector<8x8x16xf32>
    %246 = vector.extract_strided_slice %72 {offsets = [4, 0, 0, 0], sizes = [1, 1, 1, 16], strides = [1, 1, 1, 1]} : vector<49x1x1x16xf32> to vector<1x1x1x16xf32>
    %247 = vector.shape_cast %246 : vector<1x1x1x16xf32> to vector<1x1x16xf32>
    %248 = vector.broadcast %247 : vector<1x1x16xf32> to vector<8x8x16xf32>
    %249 = arith.mulf %245, %248 : vector<8x8x16xf32>
    %250 = arith.addf %243, %249 : vector<8x8x16xf32>
    %251 = vector.extract_strided_slice %244 {offsets = [1, 0, 0], sizes = [8, 8, 16], strides = [1, 1, 1]} : vector<14x8x16xf32> to vector<8x8x16xf32>
    %252 = vector.extract_strided_slice %72 {offsets = [11, 0, 0, 0], sizes = [1, 1, 1, 16], strides = [1, 1, 1, 1]} : vector<49x1x1x16xf32> to vector<1x1x1x16xf32>
    %253 = vector.shape_cast %252 : vector<1x1x1x16xf32> to vector<1x1x16xf32>
    %254 = vector.broadcast %253 : vector<1x1x16xf32> to vector<8x8x16xf32>
    %255 = arith.mulf %251, %254 : vector<8x8x16xf32>
    %256 = arith.addf %250, %255 : vector<8x8x16xf32>
    %257 = vector.extract_strided_slice %244 {offsets = [2, 0, 0], sizes = [8, 8, 16], strides = [1, 1, 1]} : vector<14x8x16xf32> to vector<8x8x16xf32>
    %258 = vector.extract_strided_slice %72 {offsets = [18, 0, 0, 0], sizes = [1, 1, 1, 16], strides = [1, 1, 1, 1]} : vector<49x1x1x16xf32> to vector<1x1x1x16xf32>
    %259 = vector.shape_cast %258 : vector<1x1x1x16xf32> to vector<1x1x16xf32>
    %260 = vector.broadcast %259 : vector<1x1x16xf32> to vector<8x8x16xf32>
    %261 = arith.mulf %257, %260 : vector<8x8x16xf32>
    %262 = arith.addf %256, %261 : vector<8x8x16xf32>
    %263 = vector.extract_strided_slice %244 {offsets = [3, 0, 0], sizes = [8, 8, 16], strides = [1, 1, 1]} : vector<14x8x16xf32> to vector<8x8x16xf32>
    %264 = vector.extract_strided_slice %72 {offsets = [25, 0, 0, 0], sizes = [1, 1, 1, 16], strides = [1, 1, 1, 1]} : vector<49x1x1x16xf32> to vector<1x1x1x16xf32>
    %265 = vector.shape_cast %264 : vector<1x1x1x16xf32> to vector<1x1x16xf32>
    %266 = vector.broadcast %265 : vector<1x1x16xf32> to vector<8x8x16xf32>
    %267 = arith.mulf %263, %266 : vector<8x8x16xf32>
    %268 = arith.addf %262, %267 : vector<8x8x16xf32>
    %269 = vector.extract_strided_slice %244 {offsets = [4, 0, 0], sizes = [8, 8, 16], strides = [1, 1, 1]} : vector<14x8x16xf32> to vector<8x8x16xf32>
    %270 = vector.extract_strided_slice %72 {offsets = [32, 0, 0, 0], sizes = [1, 1, 1, 16], strides = [1, 1, 1, 1]} : vector<49x1x1x16xf32> to vector<1x1x1x16xf32>
    %271 = vector.shape_cast %270 : vector<1x1x1x16xf32> to vector<1x1x16xf32>
    %272 = vector.broadcast %271 : vector<1x1x16xf32> to vector<8x8x16xf32>
    %273 = arith.mulf %269, %272 : vector<8x8x16xf32>
    %274 = arith.addf %268, %273 : vector<8x8x16xf32>
    %275 = vector.extract_strided_slice %244 {offsets = [5, 0, 0], sizes = [8, 8, 16], strides = [1, 1, 1]} : vector<14x8x16xf32> to vector<8x8x16xf32>
    %276 = vector.extract_strided_slice %72 {offsets = [39, 0, 0, 0], sizes = [1, 1, 1, 16], strides = [1, 1, 1, 1]} : vector<49x1x1x16xf32> to vector<1x1x1x16xf32>
    %277 = vector.shape_cast %276 : vector<1x1x1x16xf32> to vector<1x1x16xf32>
    %278 = vector.broadcast %277 : vector<1x1x16xf32> to vector<8x8x16xf32>
    %279 = arith.mulf %275, %278 : vector<8x8x16xf32>
    %280 = arith.addf %274, %279 : vector<8x8x16xf32>
    %281 = vector.extract_strided_slice %244 {offsets = [6, 0, 0], sizes = [8, 8, 16], strides = [1, 1, 1]} : vector<14x8x16xf32> to vector<8x8x16xf32>
    %282 = vector.extract_strided_slice %72 {offsets = [46, 0, 0, 0], sizes = [1, 1, 1, 16], strides = [1, 1, 1, 1]} : vector<49x1x1x16xf32> to vector<1x1x1x16xf32>
    %283 = vector.shape_cast %282 : vector<1x1x1x16xf32> to vector<1x1x16xf32>
    %284 = vector.broadcast %283 : vector<1x1x16xf32> to vector<8x8x16xf32>
    %285 = arith.mulf %281, %284 : vector<8x8x16xf32>
    %286 = arith.addf %280, %285 : vector<8x8x16xf32>
    %c0_64 = arith.constant 0 : index
    %c10_65 = arith.constant 10 : index
    %c0_66 = arith.constant 0 : index
    %287 = vector.load %arg35[%c0_64, %c10_65, %c0_66] : memref<14x24x16xf32, #tpu.memory_space<vmem>>, vector<14x8x16xf32>
    %288 = vector.extract_strided_slice %287 {offsets = [0, 0, 0], sizes = [8, 8, 16], strides = [1, 1, 1]} : vector<14x8x16xf32> to vector<8x8x16xf32>
    %289 = vector.extract_strided_slice %72 {offsets = [5, 0, 0, 0], sizes = [1, 1, 1, 16], strides = [1, 1, 1, 1]} : vector<49x1x1x16xf32> to vector<1x1x1x16xf32>
    %290 = vector.shape_cast %289 : vector<1x1x1x16xf32> to vector<1x1x16xf32>
    %291 = vector.broadcast %290 : vector<1x1x16xf32> to vector<8x8x16xf32>
    %292 = arith.mulf %288, %291 : vector<8x8x16xf32>
    %293 = arith.addf %286, %292 : vector<8x8x16xf32>
    %294 = vector.extract_strided_slice %287 {offsets = [1, 0, 0], sizes = [8, 8, 16], strides = [1, 1, 1]} : vector<14x8x16xf32> to vector<8x8x16xf32>
    %295 = vector.extract_strided_slice %72 {offsets = [12, 0, 0, 0], sizes = [1, 1, 1, 16], strides = [1, 1, 1, 1]} : vector<49x1x1x16xf32> to vector<1x1x1x16xf32>
    %296 = vector.shape_cast %295 : vector<1x1x1x16xf32> to vector<1x1x16xf32>
    %297 = vector.broadcast %296 : vector<1x1x16xf32> to vector<8x8x16xf32>
    %298 = arith.mulf %294, %297 : vector<8x8x16xf32>
    %299 = arith.addf %293, %298 : vector<8x8x16xf32>
    %300 = vector.extract_strided_slice %287 {offsets = [2, 0, 0], sizes = [8, 8, 16], strides = [1, 1, 1]} : vector<14x8x16xf32> to vector<8x8x16xf32>
    %301 = vector.extract_strided_slice %72 {offsets = [19, 0, 0, 0], sizes = [1, 1, 1, 16], strides = [1, 1, 1, 1]} : vector<49x1x1x16xf32> to vector<1x1x1x16xf32>
    %302 = vector.shape_cast %301 : vector<1x1x1x16xf32> to vector<1x1x16xf32>
    %303 = vector.broadcast %302 : vector<1x1x16xf32> to vector<8x8x16xf32>
    %304 = arith.mulf %300, %303 : vector<8x8x16xf32>
    %305 = arith.addf %299, %304 : vector<8x8x16xf32>
    %306 = vector.extract_strided_slice %287 {offsets = [3, 0, 0], sizes = [8, 8, 16], strides = [1, 1, 1]} : vector<14x8x16xf32> to vector<8x8x16xf32>
    %307 = vector.extract_strided_slice %72 {offsets = [26, 0, 0, 0], sizes = [1, 1, 1, 16], strides = [1, 1, 1, 1]} : vector<49x1x1x16xf32> to vector<1x1x1x16xf32>
    %308 = vector.shape_cast %307 : vector<1x1x1x16xf32> to vector<1x1x16xf32>
    %309 = vector.broadcast %308 : vector<1x1x16xf32> to vector<8x8x16xf32>
    %310 = arith.mulf %306, %309 : vector<8x8x16xf32>
    %311 = arith.addf %305, %310 : vector<8x8x16xf32>
    %312 = vector.extract_strided_slice %287 {offsets = [4, 0, 0], sizes = [8, 8, 16], strides = [1, 1, 1]} : vector<14x8x16xf32> to vector<8x8x16xf32>
    %313 = vector.extract_strided_slice %72 {offsets = [33, 0, 0, 0], sizes = [1, 1, 1, 16], strides = [1, 1, 1, 1]} : vector<49x1x1x16xf32> to vector<1x1x1x16xf32>
    %314 = vector.shape_cast %313 : vector<1x1x1x16xf32> to vector<1x1x16xf32>
    %315 = vector.broadcast %314 : vector<1x1x16xf32> to vector<8x8x16xf32>
    %316 = arith.mulf %312, %315 : vector<8x8x16xf32>
    %317 = arith.addf %311, %316 : vector<8x8x16xf32>
    %318 = vector.extract_strided_slice %287 {offsets = [5, 0, 0], sizes = [8, 8, 16], strides = [1, 1, 1]} : vector<14x8x16xf32> to vector<8x8x16xf32>
    %319 = vector.extract_strided_slice %72 {offsets = [40, 0, 0, 0], sizes = [1, 1, 1, 16], strides = [1, 1, 1, 1]} : vector<49x1x1x16xf32> to vector<1x1x1x16xf32>
    %320 = vector.shape_cast %319 : vector<1x1x1x16xf32> to vector<1x1x16xf32>
    %321 = vector.broadcast %320 : vector<1x1x16xf32> to vector<8x8x16xf32>
    %322 = arith.mulf %318, %321 : vector<8x8x16xf32>
    %323 = arith.addf %317, %322 : vector<8x8x16xf32>
    %324 = vector.extract_strided_slice %287 {offsets = [6, 0, 0], sizes = [8, 8, 16], strides = [1, 1, 1]} : vector<14x8x16xf32> to vector<8x8x16xf32>
    %325 = vector.extract_strided_slice %72 {offsets = [47, 0, 0, 0], sizes = [1, 1, 1, 16], strides = [1, 1, 1, 1]} : vector<49x1x1x16xf32> to vector<1x1x1x16xf32>
    %326 = vector.shape_cast %325 : vector<1x1x1x16xf32> to vector<1x1x16xf32>
    %327 = vector.broadcast %326 : vector<1x1x16xf32> to vector<8x8x16xf32>
    %328 = arith.mulf %324, %327 : vector<8x8x16xf32>
    %329 = arith.addf %323, %328 : vector<8x8x16xf32>
    %c0_67 = arith.constant 0 : index
    %c11_68 = arith.constant 11 : index
    %c0_69 = arith.constant 0 : index
    %330 = vector.load %arg35[%c0_67, %c11_68, %c0_69] : memref<14x24x16xf32, #tpu.memory_space<vmem>>, vector<14x8x16xf32>
    %331 = vector.extract_strided_slice %330 {offsets = [0, 0, 0], sizes = [8, 8, 16], strides = [1, 1, 1]} : vector<14x8x16xf32> to vector<8x8x16xf32>
    %332 = vector.extract_strided_slice %72 {offsets = [6, 0, 0, 0], sizes = [1, 1, 1, 16], strides = [1, 1, 1, 1]} : vector<49x1x1x16xf32> to vector<1x1x1x16xf32>
    %333 = vector.shape_cast %332 : vector<1x1x1x16xf32> to vector<1x1x16xf32>
    %334 = vector.broadcast %333 : vector<1x1x16xf32> to vector<8x8x16xf32>
    %335 = arith.mulf %331, %334 : vector<8x8x16xf32>
    %336 = arith.addf %329, %335 : vector<8x8x16xf32>
    %337 = vector.extract_strided_slice %330 {offsets = [1, 0, 0], sizes = [8, 8, 16], strides = [1, 1, 1]} : vector<14x8x16xf32> to vector<8x8x16xf32>
    %338 = vector.extract_strided_slice %72 {offsets = [13, 0, 0, 0], sizes = [1, 1, 1, 16], strides = [1, 1, 1, 1]} : vector<49x1x1x16xf32> to vector<1x1x1x16xf32>
    %339 = vector.shape_cast %338 : vector<1x1x1x16xf32> to vector<1x1x16xf32>
    %340 = vector.broadcast %339 : vector<1x1x16xf32> to vector<8x8x16xf32>
    %341 = arith.mulf %337, %340 : vector<8x8x16xf32>
    %342 = arith.addf %336, %341 : vector<8x8x16xf32>
    %343 = vector.extract_strided_slice %330 {offsets = [2, 0, 0], sizes = [8, 8, 16], strides = [1, 1, 1]} : vector<14x8x16xf32> to vector<8x8x16xf32>
    %344 = vector.extract_strided_slice %72 {offsets = [20, 0, 0, 0], sizes = [1, 1, 1, 16], strides = [1, 1, 1, 1]} : vector<49x1x1x16xf32> to vector<1x1x1x16xf32>
    %345 = vector.shape_cast %344 : vector<1x1x1x16xf32> to vector<1x1x16xf32>
    %346 = vector.broadcast %345 : vector<1x1x16xf32> to vector<8x8x16xf32>
    %347 = arith.mulf %343, %346 : vector<8x8x16xf32>
    %348 = arith.addf %342, %347 : vector<8x8x16xf32>
    %349 = vector.extract_strided_slice %330 {offsets = [3, 0, 0], sizes = [8, 8, 16], strides = [1, 1, 1]} : vector<14x8x16xf32> to vector<8x8x16xf32>
    %350 = vector.extract_strided_slice %72 {offsets = [27, 0, 0, 0], sizes = [1, 1, 1, 16], strides = [1, 1, 1, 1]} : vector<49x1x1x16xf32> to vector<1x1x1x16xf32>
    %351 = vector.shape_cast %350 : vector<1x1x1x16xf32> to vector<1x1x16xf32>
    %352 = vector.broadcast %351 : vector<1x1x16xf32> to vector<8x8x16xf32>
    %353 = arith.mulf %349, %352 : vector<8x8x16xf32>
    %354 = arith.addf %348, %353 : vector<8x8x16xf32>
    %355 = vector.extract_strided_slice %330 {offsets = [4, 0, 0], sizes = [8, 8, 16], strides = [1, 1, 1]} : vector<14x8x16xf32> to vector<8x8x16xf32>
    %356 = vector.extract_strided_slice %72 {offsets = [34, 0, 0, 0], sizes = [1, 1, 1, 16], strides = [1, 1, 1, 1]} : vector<49x1x1x16xf32> to vector<1x1x1x16xf32>
    %357 = vector.shape_cast %356 : vector<1x1x1x16xf32> to vector<1x1x16xf32>
    %358 = vector.broadcast %357 : vector<1x1x16xf32> to vector<8x8x16xf32>
    %359 = arith.mulf %355, %358 : vector<8x8x16xf32>
    %360 = arith.addf %354, %359 : vector<8x8x16xf32>
    %361 = vector.extract_strided_slice %330 {offsets = [5, 0, 0], sizes = [8, 8, 16], strides = [1, 1, 1]} : vector<14x8x16xf32> to vector<8x8x16xf32>
    %362 = vector.extract_strided_slice %72 {offsets = [41, 0, 0, 0], sizes = [1, 1, 1, 16], strides = [1, 1, 1, 1]} : vector<49x1x1x16xf32> to vector<1x1x1x16xf32>
    %363 = vector.shape_cast %362 : vector<1x1x1x16xf32> to vector<1x1x16xf32>
    %364 = vector.broadcast %363 : vector<1x1x16xf32> to vector<8x8x16xf32>
    %365 = arith.mulf %361, %364 : vector<8x8x16xf32>
    %366 = arith.addf %360, %365 : vector<8x8x16xf32>
    %367 = vector.extract_strided_slice %330 {offsets = [6, 0, 0], sizes = [8, 8, 16], strides = [1, 1, 1]} : vector<14x8x16xf32> to vector<8x8x16xf32>
    %368 = vector.extract_strided_slice %72 {offsets = [48, 0, 0, 0], sizes = [1, 1, 1, 16], strides = [1, 1, 1, 1]} : vector<49x1x1x16xf32> to vector<1x1x1x16xf32>
    %369 = vector.shape_cast %368 : vector<1x1x1x16xf32> to vector<1x1x16xf32>
    %370 = vector.broadcast %369 : vector<1x1x16xf32> to vector<8x8x16xf32>
    %371 = arith.mulf %367, %370 : vector<8x8x16xf32>
    %372 = arith.addf %366, %371 : vector<8x8x16xf32>
    %c0_70 = arith.constant 0 : index
    %c0_71 = arith.constant 0 : index
    %373 = vector.load %arg7[%c0_70, %c0_71] : memref<1x16xf32, #tpu.memory_space<vmem>>, vector<1x16xf32>
    %374 = vector.extract_strided_slice %372 {offsets = [0, 0, 0], sizes = [1, 8, 16], strides = [1, 1, 1]} : vector<8x8x16xf32> to vector<1x8x16xf32>
    %375 = vector.shape_cast %374 : vector<1x8x16xf32> to vector<8x16xf32>
    %376 = vector.broadcast %373 : vector<1x16xf32> to vector<8x16xf32>
    %377 = arith.addf %375, %376 : vector<8x16xf32>
    %c0_72 = arith.constant 0 : index
    %c0_73 = arith.constant 0 : index
    %378 = vector.load %arg36[%c0_72, %c0_73] : memref<64x16xf32, #tpu.memory_space<vmem>>, vector<8x16xf32>
    tpu.vector_store %arg36[%c0_72, %c0_73], %377 {strides = array<i32>} : memref<64x16xf32, #tpu.memory_space<vmem>>, vector<8x16xf32>,
    %379 = vector.extract_strided_slice %372 {offsets = [1, 0, 0], sizes = [1, 8, 16], strides = [1, 1, 1]} : vector<8x8x16xf32> to vector<1x8x16xf32>
    %380 = vector.shape_cast %379 : vector<1x8x16xf32> to vector<8x16xf32>
    %381 = vector.broadcast %373 : vector<1x16xf32> to vector<8x16xf32>
    %382 = arith.addf %380, %381 : vector<8x16xf32>
    %c8_74 = arith.constant 8 : index
    %c0_75 = arith.constant 0 : index
    %383 = vector.load %arg36[%c8_74, %c0_75] : memref<64x16xf32, #tpu.memory_space<vmem>>, vector<8x16xf32>
    tpu.vector_store %arg36[%c8_74, %c0_75], %382 {strides = array<i32>} : memref<64x16xf32, #tpu.memory_space<vmem>>, vector<8x16xf32>,
    %384 = vector.extract_strided_slice %372 {offsets = [2, 0, 0], sizes = [1, 8, 16], strides = [1, 1, 1]} : vector<8x8x16xf32> to vector<1x8x16xf32>
    %385 = vector.shape_cast %384 : vector<1x8x16xf32> to vector<8x16xf32>
    %386 = vector.broadcast %373 : vector<1x16xf32> to vector<8x16xf32>
    %387 = arith.addf %385, %386 : vector<8x16xf32>
    %c16_76 = arith.constant 16 : index
    %c0_77 = arith.constant 0 : index
    %388 = vector.load %arg36[%c16_76, %c0_77] : memref<64x16xf32, #tpu.memory_space<vmem>>, vector<8x16xf32>
    tpu.vector_store %arg36[%c16_76, %c0_77], %387 {strides = array<i32>} : memref<64x16xf32, #tpu.memory_space<vmem>>, vector<8x16xf32>,
    %389 = vector.extract_strided_slice %372 {offsets = [3, 0, 0], sizes = [1, 8, 16], strides = [1, 1, 1]} : vector<8x8x16xf32> to vector<1x8x16xf32>
    %390 = vector.shape_cast %389 : vector<1x8x16xf32> to vector<8x16xf32>
    %391 = vector.broadcast %373 : vector<1x16xf32> to vector<8x16xf32>
    %392 = arith.addf %390, %391 : vector<8x16xf32>
    %c24 = arith.constant 24 : index
    %c0_78 = arith.constant 0 : index
    %393 = vector.load %arg36[%c24, %c0_78] : memref<64x16xf32, #tpu.memory_space<vmem>>, vector<8x16xf32>
    tpu.vector_store %arg36[%c24, %c0_78], %392 {strides = array<i32>} : memref<64x16xf32, #tpu.memory_space<vmem>>, vector<8x16xf32>,
    %394 = vector.extract_strided_slice %372 {offsets = [4, 0, 0], sizes = [1, 8, 16], strides = [1, 1, 1]} : vector<8x8x16xf32> to vector<1x8x16xf32>
    %395 = vector.shape_cast %394 : vector<1x8x16xf32> to vector<8x16xf32>
    %396 = vector.broadcast %373 : vector<1x16xf32> to vector<8x16xf32>
    %397 = arith.addf %395, %396 : vector<8x16xf32>
    %c32 = arith.constant 32 : index
    %c0_79 = arith.constant 0 : index
    %398 = vector.load %arg36[%c32, %c0_79] : memref<64x16xf32, #tpu.memory_space<vmem>>, vector<8x16xf32>
    tpu.vector_store %arg36[%c32, %c0_79], %397 {strides = array<i32>} : memref<64x16xf32, #tpu.memory_space<vmem>>, vector<8x16xf32>,
    %399 = vector.extract_strided_slice %372 {offsets = [5, 0, 0], sizes = [1, 8, 16], strides = [1, 1, 1]} : vector<8x8x16xf32> to vector<1x8x16xf32>
    %400 = vector.shape_cast %399 : vector<1x8x16xf32> to vector<8x16xf32>
    %401 = vector.broadcast %373 : vector<1x16xf32> to vector<8x16xf32>
    %402 = arith.addf %400, %401 : vector<8x16xf32>
    %c40 = arith.constant 40 : index
    %c0_80 = arith.constant 0 : index
    %403 = vector.load %arg36[%c40, %c0_80] : memref<64x16xf32, #tpu.memory_space<vmem>>, vector<8x16xf32>
    tpu.vector_store %arg36[%c40, %c0_80], %402 {strides = array<i32>} : memref<64x16xf32, #tpu.memory_space<vmem>>, vector<8x16xf32>,
    %404 = vector.extract_strided_slice %372 {offsets = [6, 0, 0], sizes = [1, 8, 16], strides = [1, 1, 1]} : vector<8x8x16xf32> to vector<1x8x16xf32>
    %405 = vector.shape_cast %404 : vector<1x8x16xf32> to vector<8x16xf32>
    %406 = vector.broadcast %373 : vector<1x16xf32> to vector<8x16xf32>
    %407 = arith.addf %405, %406 : vector<8x16xf32>
    %c48 = arith.constant 48 : index
    %c0_81 = arith.constant 0 : index
    %408 = vector.load %arg36[%c48, %c0_81] : memref<64x16xf32, #tpu.memory_space<vmem>>, vector<8x16xf32>
    tpu.vector_store %arg36[%c48, %c0_81], %407 {strides = array<i32>} : memref<64x16xf32, #tpu.memory_space<vmem>>, vector<8x16xf32>,
    %409 = vector.extract_strided_slice %372 {offsets = [7, 0, 0], sizes = [1, 8, 16], strides = [1, 1, 1]} : vector<8x8x16xf32> to vector<1x8x16xf32>
    %410 = vector.shape_cast %409 : vector<1x8x16xf32> to vector<8x16xf32>
    %411 = vector.broadcast %373 : vector<1x16xf32> to vector<8x16xf32>
    %412 = arith.addf %410, %411 : vector<8x16xf32>
    %c56 = arith.constant 56 : index
    %c0_82 = arith.constant 0 : index
    %413 = vector.load %arg36[%c56, %c0_82] : memref<64x16xf32, #tpu.memory_space<vmem>>, vector<8x16xf32>
    tpu.vector_store %arg36[%c56, %c0_82], %412 {strides = array<i32>} : memref<64x16xf32, #tpu.memory_space<vmem>>, vector<8x16xf32>,
    %c0_83 = arith.constant 0 : index
    %c0_84 = arith.constant 0 : index
    %414 = vector.load %arg36[%c0_83, %c0_84] : memref<64x16xf32, #tpu.memory_space<vmem>>, vector<64x16xf32>
    %cst_85 = arith.constant dense<0.000000e+00> : vector<64xf32>
    %415 = vector.multi_reduction <add>, %414, %cst_85 [1] : vector<64x16xf32> to vector<64xf32>
    %416 = vector.shape_cast %415 : vector<64xf32> to vector<64x1xf32>
    %cst_86 = arith.constant 1.600000e+01 : f32
    %417 = vector.broadcast %cst_86 : f32 to vector<64x1xf32>
    %418 = arith.divf %416, %417 : vector<64x1xf32>
    %419 = vector.broadcast %418 : vector<64x1xf32> to vector<64x16xf32>
    %420 = arith.subf %414, %419 : vector<64x16xf32>
    %421 = arith.mulf %420, %420 : vector<64x16xf32>
    %cst_87 = arith.constant dense<0.000000e+00> : vector<64xf32>
    %422 = vector.multi_reduction <add>, %421, %cst_87 [1] : vector<64x16xf32> to vector<64xf32>
    %423 = vector.shape_cast %422 : vector<64xf32> to vector<64x1xf32>
    %cst_88 = arith.constant 1.600000e+01 : f32
    %424 = vector.broadcast %cst_88 : f32 to vector<64x1xf32>
    %425 = arith.divf %423, %424 : vector<64x1xf32>
    %426 = vector.broadcast %418 : vector<64x1xf32> to vector<64x16xf32>
    %427 = arith.subf %414, %426 : vector<64x16xf32>
    %cst_89 = arith.constant 9.99999997E-7 : f32
    %428 = vector.broadcast %cst_89 : f32 to vector<64x1xf32>
    %429 = arith.addf %425, %428 : vector<64x1xf32>
    %430 = math.rsqrt %429 : vector<64x1xf32>
    %431 = vector.broadcast %430 : vector<64x1xf32> to vector<64x16xf32>
    %432 = arith.mulf %427, %431 : vector<64x16xf32>
    %433 = arith.truncf %432 : vector<64x16xf32> to vector<64x16xbf16>
    %c0_90 = arith.constant 0 : index
    %c0_91 = arith.constant 0 : index
    %434 = vector.load %arg8[%c0_90, %c0_91] : memref<16x64xbf16, #tpu.memory_space<vmem>>, vector<16x64xbf16>
    %cst_92 = arith.constant dense<0.000000e+00> : vector<64x64xf32>
    %435 = tpu.matmul %433, %434, %cst_92 {dimension_numbers = #tpu.dot_dimension_numbers<[1], [0], [0], [1], [0, 0, 1, 1], [], []>} : vector<64x16xbf16>, vector<16x64xbf16>, vector<64x64xf32> -> vector<64x64xf32>
    %c0_93 = arith.constant 0 : index
    %c0_94 = arith.constant 0 : index
    %436 = vector.load %arg9[%c0_93, %c0_94] : memref<1x64xf32, #tpu.memory_space<vmem>>, vector<1x64xf32>
    %437 = vector.broadcast %436 : vector<1x64xf32> to vector<64x64xf32>
    %438 = arith.addf %435, %437 : vector<64x64xf32>
    %cst_95 = arith.constant 5.000000e-01 : f32
    %439 = vector.broadcast %cst_95 : f32 to vector<64x64xf32>
    %440 = arith.mulf %439, %438 : vector<64x64xf32>
    %cst_96 = arith.constant 0.707106769 : f32
    %441 = vector.broadcast %cst_96 : f32 to vector<64x64xf32>
    %442 = arith.mulf %438, %441 : vector<64x64xf32>
    %443 = math.absf %442 : vector<64x64xf32>
    %cst_97 = arith.constant 0.327591091 : f32
    %444 = vector.broadcast %cst_97 : f32 to vector<64x64xf32>
    %445 = arith.mulf %444, %443 : vector<64x64xf32>
    %cst_98 = arith.constant 1.000000e+00 : f32
    %446 = vector.broadcast %cst_98 : f32 to vector<64x64xf32>
    %447 = arith.addf %446, %445 : vector<64x64xf32>
    %cst_99 = arith.constant 1.000000e+00 : f32
    %448 = vector.broadcast %cst_99 : f32 to vector<64x64xf32>
    %449 = arith.divf %448, %447 : vector<64x64xf32>
    %cst_100 = arith.constant 1.06140542 : f32
    %450 = vector.broadcast %cst_100 : f32 to vector<64x64xf32>
    %451 = arith.mulf %450, %449 : vector<64x64xf32>
    %cst_101 = arith.constant -1.45315206 : f32
    %452 = vector.broadcast %cst_101 : f32 to vector<64x64xf32>
    %453 = arith.addf %451, %452 : vector<64x64xf32>
    %454 = arith.mulf %453, %449 : vector<64x64xf32>
    %cst_102 = arith.constant 1.42141378 : f32
    %455 = vector.broadcast %cst_102 : f32 to vector<64x64xf32>
    %456 = arith.addf %454, %455 : vector<64x64xf32>
    %457 = arith.mulf %456, %449 : vector<64x64xf32>
    %cst_103 = arith.constant -0.284496725 : f32
    %458 = vector.broadcast %cst_103 : f32 to vector<64x64xf32>
    %459 = arith.addf %457, %458 : vector<64x64xf32>
    %460 = arith.mulf %459, %449 : vector<64x64xf32>
    %cst_104 = arith.constant 0.254829586 : f32
    %461 = vector.broadcast %cst_104 : f32 to vector<64x64xf32>
    %462 = arith.addf %460, %461 : vector<64x64xf32>
    %463 = arith.mulf %462, %449 : vector<64x64xf32>
    %cst_105 = arith.constant 0.000000e+00 : f32
    %464 = vector.broadcast %cst_105 : f32 to vector<64x64xf32>
    %465 = arith.subf %464, %443 : vector<64x64xf32>
    %466 = arith.mulf %465, %443 : vector<64x64xf32>
    %467 = math.exp %466 : vector<64x64xf32>
    %468 = arith.mulf %463, %467 : vector<64x64xf32>
    %cst_106 = arith.constant 1.000000e+00 : f32
    %469 = vector.broadcast %cst_106 : f32 to vector<64x64xf32>
    %470 = arith.subf %469, %468 : vector<64x64xf32>
    %cst_107 = arith.constant 0.000000e+00 : f32
    %471 = vector.broadcast %cst_107 : f32 to vector<64x64xf32>
    %472 = arith.cmpf oge, %442, %471 : vector<64x64xf32>
    %cst_108 = arith.constant 0.000000e+00 : f32
    %473 = vector.broadcast %cst_108 : f32 to vector<64x64xf32>
    %474 = arith.subf %473, %470 : vector<64x64xf32>
    %475 = arith.select %472, %470, %474 : vector<64x64xi1>, vector<64x64xf32>
    %cst_109 = arith.constant 1.000000e+00 : f32
    %476 = vector.broadcast %cst_109 : f32 to vector<64x64xf32>
    %477 = arith.addf %476, %475 : vector<64x64xf32>
    %478 = arith.mulf %440, %477 : vector<64x64xf32>
    %479 = arith.mulf %478, %478 : vector<64x64xf32>
    %cst_110 = arith.constant dense<0.000000e+00> : vector<64xf32>
    %480 = vector.multi_reduction <add>, %479, %cst_110 [0] : vector<64x64xf32> to vector<64xf32>
    %481 = vector.shape_cast %480 : vector<64xf32> to vector<1x64xf32>
    %482 = math.sqrt %481 : vector<1x64xf32>
    %cst_111 = arith.constant dense<0.000000e+00> : vector<1xf32>
    %483 = vector.multi_reduction <add>, %482, %cst_111 [1] : vector<1x64xf32> to vector<1xf32>
    %484 = vector.shape_cast %483 : vector<1xf32> to vector<1x1xf32>
    %cst_112 = arith.constant 6.400000e+01 : f32
    %485 = vector.broadcast %cst_112 : f32 to vector<1x1xf32>
    %486 = arith.divf %484, %485 : vector<1x1xf32>
    %cst_113 = arith.constant 9.99999997E-7 : f32
    %487 = vector.broadcast %cst_113 : f32 to vector<1x1xf32>
    %488 = arith.addf %486, %487 : vector<1x1xf32>
    %489 = tpu.reciprocal %488 {approx = true} : vector<1x1xf32> -> vector<1x1xf32>
    %490 = vector.broadcast %489 : vector<1x1xf32> to vector<1x64xf32>
    %491 = arith.mulf %482, %490 : vector<1x64xf32>
    %c0_114 = arith.constant 0 : index
    %c0_115 = arith.constant 0 : index
    %492 = vector.load %arg10[%c0_114, %c0_115] : memref<1x64xf32, #tpu.memory_space<vmem>>, vector<1x64xf32>
    %493 = vector.broadcast %491 : vector<1x64xf32> to vector<64x64xf32>
    %494 = arith.mulf %478, %493 : vector<64x64xf32>
    %495 = vector.broadcast %492 : vector<1x64xf32> to vector<64x64xf32>
    %496 = arith.mulf %495, %494 : vector<64x64xf32>
    %c0_116 = arith.constant 0 : index
    %c0_117 = arith.constant 0 : index
    %497 = vector.load %arg11[%c0_116, %c0_117] : memref<1x64xf32, #tpu.memory_space<vmem>>, vector<1x64xf32>
    %498 = vector.broadcast %497 : vector<1x64xf32> to vector<64x64xf32>
    %499 = arith.addf %496, %498 : vector<64x64xf32>
    %500 = arith.addf %499, %478 : vector<64x64xf32>
    %501 = arith.truncf %500 : vector<64x64xf32> to vector<64x64xbf16>
    %c0_118 = arith.constant 0 : index
    %c0_119 = arith.constant 0 : index
    %502 = vector.load %arg12[%c0_118, %c0_119] : memref<64x16xbf16, #tpu.memory_space<vmem>>, vector<64x16xbf16>
    %cst_120 = arith.constant dense<0.000000e+00> : vector<64x16xf32>
    %503 = tpu.matmul %501, %502, %cst_120 {dimension_numbers = #tpu.dot_dimension_numbers<[1], [0], [0], [1], [0, 0, 1, 1], [], []>} : vector<64x64xbf16>, vector<64x16xbf16>, vector<64x16xf32> -> vector<64x16xf32>
    %c0_121 = arith.constant 0 : index
    %c0_122 = arith.constant 0 : index
    %504 = vector.load %arg13[%c0_121, %c0_122] : memref<1x16xf32, #tpu.memory_space<vmem>>, vector<1x16xf32>
    %505 = vector.broadcast %504 : vector<1x16xf32> to vector<64x16xf32>
    %506 = arith.addf %503, %505 : vector<64x16xf32>
    %507 = arith.addf %506, %31 : vector<64x16xf32>
    %cst_123 = arith.constant dense<0.000000e+00> : vector<64xf32>
    %508 = vector.multi_reduction <add>, %507, %cst_123 [1] : vector<64x16xf32> to vector<64xf32>
    %509 = vector.shape_cast %508 : vector<64xf32> to vector<64x1xf32>
    %cst_124 = arith.constant 1.600000e+01 : f32
    %510 = vector.broadcast %cst_124 : f32 to vector<64x1xf32>
    %511 = arith.divf %509, %510 : vector<64x1xf32>
    %512 = vector.broadcast %511 : vector<64x1xf32> to vector<64x16xf32>
    %513 = arith.subf %507, %512 : vector<64x16xf32>
    %514 = arith.mulf %513, %513 : vector<64x16xf32>
    %cst_125 = arith.constant dense<0.000000e+00> : vector<64xf32>
    %515 = vector.multi_reduction <add>, %514, %cst_125 [1] : vector<64x16xf32> to vector<64xf32>
    %516 = vector.shape_cast %515 : vector<64xf32> to vector<64x1xf32>
    %cst_126 = arith.constant 1.600000e+01 : f32
    %517 = vector.broadcast %cst_126 : f32 to vector<64x1xf32>
    %518 = arith.divf %516, %517 : vector<64x1xf32>
    %519 = vector.broadcast %511 : vector<64x1xf32> to vector<64x16xf32>
    %520 = arith.subf %507, %519 : vector<64x16xf32>
    %cst_127 = arith.constant 9.99999997E-7 : f32
    %521 = vector.broadcast %cst_127 : f32 to vector<64x1xf32>
    %522 = arith.addf %518, %521 : vector<64x1xf32>
    %523 = math.rsqrt %522 : vector<64x1xf32>
    %524 = vector.broadcast %523 : vector<64x1xf32> to vector<64x16xf32>
    %525 = arith.mulf %520, %524 : vector<64x16xf32>
    %c0_128 = arith.constant 0 : index
    %c0_129 = arith.constant 0 : index
    %526 = vector.load %arg36[%c0_128, %c0_129] : memref<64x16xf32, #tpu.memory_space<vmem>>, vector<64x16xf32>
    tpu.vector_store %arg36[%c0_128, %c0_129], %525 {strides = array<i32>} : memref<64x16xf32, #tpu.memory_space<vmem>>, vector<64x16xf32>,
    %c0_130 = arith.constant 0 : index
    %c0_131 = arith.constant 0 : index
    %527 = tpu.strided_load %arg36[%c0_130, %c0_131] {strides = array<i32: 2, 1>} : memref<64x16xf32, #tpu.memory_space<vmem>>, vector<4x16xf32>
    %c0_132 = arith.constant 0 : index
    %c0_133 = arith.constant 0 : index
    %528 = vector.load %arg41[%c0_132, %c0_133] : memref<16x64xf32, #tpu.memory_space<vmem>>, vector<4x16xf32>
    tpu.vector_store %arg41[%c0_132, %c0_133], %527 {strides = array<i32>} : memref<16x64xf32, #tpu.memory_space<vmem>>, vector<4x16xf32>,
    %c1 = arith.constant 1 : index
    %c0_134 = arith.constant 0 : index
    %529 = tpu.strided_load %arg36[%c1, %c0_134] {strides = array<i32: 2, 1>} : memref<64x16xf32, #tpu.memory_space<vmem>>, vector<4x16xf32>
    %c0_135 = arith.constant 0 : index
    %c16_136 = arith.constant 16 : index
    %530 = vector.load %arg41[%c0_135, %c16_136] : memref<16x64xf32, #tpu.memory_space<vmem>>, vector<4x16xf32>
    tpu.vector_store %arg41[%c0_135, %c16_136], %529 {strides = array<i32>} : memref<16x64xf32, #tpu.memory_space<vmem>>, vector<4x16xf32>,
    %c8_137 = arith.constant 8 : index
    %c0_138 = arith.constant 0 : index
    %531 = tpu.strided_load %arg36[%c8_137, %c0_138] {strides = array<i32: 2, 1>} : memref<64x16xf32, #tpu.memory_space<vmem>>, vector<4x16xf32>
    %c0_139 = arith.constant 0 : index
    %c32_140 = arith.constant 32 : index
    %532 = vector.load %arg41[%c0_139, %c32_140] : memref<16x64xf32, #tpu.memory_space<vmem>>, vector<4x16xf32>
    tpu.vector_store %arg41[%c0_139, %c32_140], %531 {strides = array<i32>} : memref<16x64xf32, #tpu.memory_space<vmem>>, vector<4x16xf32>,
    %c9_141 = arith.constant 9 : index
    %c0_142 = arith.constant 0 : index
    %533 = tpu.strided_load %arg36[%c9_141, %c0_142] {strides = array<i32: 2, 1>} : memref<64x16xf32, #tpu.memory_space<vmem>>, vector<4x16xf32>
    %c0_143 = arith.constant 0 : index
    %c48_144 = arith.constant 48 : index
    %534 = vector.load %arg41[%c0_143, %c48_144] : memref<16x64xf32, #tpu.memory_space<vmem>>, vector<4x16xf32>
    tpu.vector_store %arg41[%c0_143, %c48_144], %533 {strides = array<i32>} : memref<16x64xf32, #tpu.memory_space<vmem>>, vector<4x16xf32>,
    %c16_145 = arith.constant 16 : index
    %c0_146 = arith.constant 0 : index
    %535 = tpu.strided_load %arg36[%c16_145, %c0_146] {strides = array<i32: 2, 1>} : memref<64x16xf32, #tpu.memory_space<vmem>>, vector<4x16xf32>
    %c4_147 = arith.constant 4 : index
    %c0_148 = arith.constant 0 : index
    %536 = vector.load %arg41[%c4_147, %c0_148] : memref<16x64xf32, #tpu.memory_space<vmem>>, vector<4x16xf32>
    tpu.vector_store %arg41[%c4_147, %c0_148], %535 {strides = array<i32>} : memref<16x64xf32, #tpu.memory_space<vmem>>, vector<4x16xf32>,
    %c17 = arith.constant 17 : index
    %c0_149 = arith.constant 0 : index
    %537 = tpu.strided_load %arg36[%c17, %c0_149] {strides = array<i32: 2, 1>} : memref<64x16xf32, #tpu.memory_space<vmem>>, vector<4x16xf32>
    %c4_150 = arith.constant 4 : index
    %c16_151 = arith.constant 16 : index
    %538 = vector.load %arg41[%c4_150, %c16_151] : memref<16x64xf32, #tpu.memory_space<vmem>>, vector<4x16xf32>
    tpu.vector_store %arg41[%c4_150, %c16_151], %537 {strides = array<i32>} : memref<16x64xf32, #tpu.memory_space<vmem>>, vector<4x16xf32>,
    %c24_152 = arith.constant 24 : index
    %c0_153 = arith.constant 0 : index
    %539 = tpu.strided_load %arg36[%c24_152, %c0_153] {strides = array<i32: 2, 1>} : memref<64x16xf32, #tpu.memory_space<vmem>>, vector<4x16xf32>
    %c4_154 = arith.constant 4 : index
    %c32_155 = arith.constant 32 : index
    %540 = vector.load %arg41[%c4_154, %c32_155] : memref<16x64xf32, #tpu.memory_space<vmem>>, vector<4x16xf32>
    tpu.vector_store %arg41[%c4_154, %c32_155], %539 {strides = array<i32>} : memref<16x64xf32, #tpu.memory_space<vmem>>, vector<4x16xf32>,
    %c25 = arith.constant 25 : index
    %c0_156 = arith.constant 0 : index
    %541 = tpu.strided_load %arg36[%c25, %c0_156] {strides = array<i32: 2, 1>} : memref<64x16xf32, #tpu.memory_space<vmem>>, vector<4x16xf32>
    %c4_157 = arith.constant 4 : index
    %c48_158 = arith.constant 48 : index
    %542 = vector.load %arg41[%c4_157, %c48_158] : memref<16x64xf32, #tpu.memory_space<vmem>>, vector<4x16xf32>
    tpu.vector_store %arg41[%c4_157, %c48_158], %541 {strides = array<i32>} : memref<16x64xf32, #tpu.memory_space<vmem>>, vector<4x16xf32>,
    %c32_159 = arith.constant 32 : index
    %c0_160 = arith.constant 0 : index
    %543 = tpu.strided_load %arg36[%c32_159, %c0_160] {strides = array<i32: 2, 1>} : memref<64x16xf32, #tpu.memory_space<vmem>>, vector<4x16xf32>
    %c8_161 = arith.constant 8 : index
    %c0_162 = arith.constant 0 : index
    %544 = vector.load %arg41[%c8_161, %c0_162] : memref<16x64xf32, #tpu.memory_space<vmem>>, vector<4x16xf32>
    tpu.vector_store %arg41[%c8_161, %c0_162], %543 {strides = array<i32>} : memref<16x64xf32, #tpu.memory_space<vmem>>, vector<4x16xf32>,
    %c33 = arith.constant 33 : index
    %c0_163 = arith.constant 0 : index
    %545 = tpu.strided_load %arg36[%c33, %c0_163] {strides = array<i32: 2, 1>} : memref<64x16xf32, #tpu.memory_space<vmem>>, vector<4x16xf32>
    %c8_164 = arith.constant 8 : index
    %c16_165 = arith.constant 16 : index
    %546 = vector.load %arg41[%c8_164, %c16_165] : memref<16x64xf32, #tpu.memory_space<vmem>>, vector<4x16xf32>
    tpu.vector_store %arg41[%c8_164, %c16_165], %545 {strides = array<i32>} : memref<16x64xf32, #tpu.memory_space<vmem>>, vector<4x16xf32>,
    %c40_166 = arith.constant 40 : index
    %c0_167 = arith.constant 0 : index
    %547 = tpu.strided_load %arg36[%c40_166, %c0_167] {strides = array<i32: 2, 1>} : memref<64x16xf32, #tpu.memory_space<vmem>>, vector<4x16xf32>
    %c8_168 = arith.constant 8 : index
    %c32_169 = arith.constant 32 : index
    %548 = vector.load %arg41[%c8_168, %c32_169] : memref<16x64xf32, #tpu.memory_space<vmem>>, vector<4x16xf32>
    tpu.vector_store %arg41[%c8_168, %c32_169], %547 {strides = array<i32>} : memref<16x64xf32, #tpu.memory_space<vmem>>, vector<4x16xf32>,
    %c41 = arith.constant 41 : index
    %c0_170 = arith.constant 0 : index
    %549 = tpu.strided_load %arg36[%c41, %c0_170] {strides = array<i32: 2, 1>} : memref<64x16xf32, #tpu.memory_space<vmem>>, vector<4x16xf32>
    %c8_171 = arith.constant 8 : index
    %c48_172 = arith.constant 48 : index
    %550 = vector.load %arg41[%c8_171, %c48_172] : memref<16x64xf32, #tpu.memory_space<vmem>>, vector<4x16xf32>
    tpu.vector_store %arg41[%c8_171, %c48_172], %549 {strides = array<i32>} : memref<16x64xf32, #tpu.memory_space<vmem>>, vector<4x16xf32>,
    %c48_173 = arith.constant 48 : index
    %c0_174 = arith.constant 0 : index
    %551 = tpu.strided_load %arg36[%c48_173, %c0_174] {strides = array<i32: 2, 1>} : memref<64x16xf32, #tpu.memory_space<vmem>>, vector<4x16xf32>
    %c12 = arith.constant 12 : index
    %c0_175 = arith.constant 0 : index
    %552 = vector.load %arg41[%c12, %c0_175] : memref<16x64xf32, #tpu.memory_space<vmem>>, vector<4x16xf32>
    tpu.vector_store %arg41[%c12, %c0_175], %551 {strides = array<i32>} : memref<16x64xf32, #tpu.memory_space<vmem>>, vector<4x16xf32>,
    %c49 = arith.constant 49 : index
    %c0_176 = arith.constant 0 : index
    %553 = tpu.strided_load %arg36[%c49, %c0_176] {strides = array<i32: 2, 1>} : memref<64x16xf32, #tpu.memory_space<vmem>>, vector<4x16xf32>
    %c12_177 = arith.constant 12 : index
    %c16_178 = arith.constant 16 : index
    %554 = vector.load %arg41[%c12_177, %c16_178] : memref<16x64xf32, #tpu.memory_space<vmem>>, vector<4x16xf32>
    tpu.vector_store %arg41[%c12_177, %c16_178], %553 {strides = array<i32>} : memref<16x64xf32, #tpu.memory_space<vmem>>, vector<4x16xf32>,
    %c56_179 = arith.constant 56 : index
    %c0_180 = arith.constant 0 : index
    %555 = tpu.strided_load %arg36[%c56_179, %c0_180] {strides = array<i32: 2, 1>} : memref<64x16xf32, #tpu.memory_space<vmem>>, vector<4x16xf32>
    %c12_181 = arith.constant 12 : index
    %c32_182 = arith.constant 32 : index
    %556 = vector.load %arg41[%c12_181, %c32_182] : memref<16x64xf32, #tpu.memory_space<vmem>>, vector<4x16xf32>
    tpu.vector_store %arg41[%c12_181, %c32_182], %555 {strides = array<i32>} : memref<16x64xf32, #tpu.memory_space<vmem>>, vector<4x16xf32>,
    %c57 = arith.constant 57 : index
    %c0_183 = arith.constant 0 : index
    %557 = tpu.strided_load %arg36[%c57, %c0_183] {strides = array<i32: 2, 1>} : memref<64x16xf32, #tpu.memory_space<vmem>>, vector<4x16xf32>
    %c12_184 = arith.constant 12 : index
    %c48_185 = arith.constant 48 : index
    %558 = vector.load %arg41[%c12_184, %c48_185] : memref<16x64xf32, #tpu.memory_space<vmem>>, vector<4x16xf32>
    tpu.vector_store %arg41[%c12_184, %c48_185], %557 {strides = array<i32>} : memref<16x64xf32, #tpu.memory_space<vmem>>, vector<4x16xf32>,
    %c0_186 = arith.constant 0 : index
    %c0_187 = arith.constant 0 : index
    %559 = vector.load %arg41[%c0_186, %c0_187] : memref<16x64xf32, #tpu.memory_space<vmem>>, vector<16x64xf32>
    %560 = arith.truncf %559 : vector<16x64xf32> to vector<16x64xbf16>
    %c0_188 = arith.constant 0 : index
    %c0_189 = arith.constant 0 : index
    %561 = vector.load %arg14[%c0_188, %c0_189] : memref<64x32xbf16, #tpu.memory_space<vmem>>, vector<64x32xbf16>
    %cst_190 = arith.constant dense<0.000000e+00> : vector<16x32xf32>
    %562 = tpu.matmul %560, %561, %cst_190 {dimension_numbers = #tpu.dot_dimension_numbers<[1], [0], [0], [1], [0, 0, 1, 1], [], []>} : vector<16x64xbf16>, vector<64x32xbf16>, vector<16x32xf32> -> vector<16x32xf32>
    %c0_191 = arith.constant 0 : index
    %c0_192 = arith.constant 0 : index
    %563 = vector.load %arg15[%c0_191, %c0_192] : memref<1x32xf32, #tpu.memory_space<vmem>>, vector<1x32xf32>
    %564 = vector.broadcast %563 : vector<1x32xf32> to vector<16x32xf32>
    %565 = arith.addf %562, %564 : vector<16x32xf32>
    %cst_193 = arith.constant 0.000000e+00 : f32
    %566 = vector.broadcast %cst_193 : f32 to vector<3x20x32xf32>
    %c0_194 = arith.constant 0 : index
    %c0_195 = arith.constant 0 : index
    %c0_196 = arith.constant 0 : index
    %567 = vector.load %arg37[%c0_194, %c0_195, %c0_196] : memref<10x20x32xf32, #tpu.memory_space<vmem>>, vector<3x20x32xf32>
    tpu.vector_store %arg37[%c0_194, %c0_195, %c0_196], %566 {strides = array<i32>} : memref<10x20x32xf32, #tpu.memory_space<vmem>>, vector<3x20x32xf32>,
    %cst_197 = arith.constant 0.000000e+00 : f32
    %568 = vector.broadcast %cst_197 : f32 to vector<3x20x32xf32>
    %c7_198 = arith.constant 7 : index
    %c0_199 = arith.constant 0 : index
    %c0_200 = arith.constant 0 : index
    %569 = vector.load %arg37[%c7_198, %c0_199, %c0_200] : memref<10x20x32xf32, #tpu.memory_space<vmem>>, vector<3x20x32xf32>
    tpu.vector_store %arg37[%c7_198, %c0_199, %c0_200], %568 {strides = array<i32>} : memref<10x20x32xf32, #tpu.memory_space<vmem>>, vector<3x20x32xf32>,
    %cst_201 = arith.constant 0.000000e+00 : f32
    %570 = vector.broadcast %cst_201 : f32 to vector<4x8x32xf32>
    %c3_202 = arith.constant 3 : index
    %c0_203 = arith.constant 0 : index
    %c0_204 = arith.constant 0 : index
    %571 = vector.load %arg37[%c3_202, %c0_203, %c0_204] : memref<10x20x32xf32, #tpu.memory_space<vmem>>, vector<4x8x32xf32>
    tpu.vector_store %arg37[%c3_202, %c0_203, %c0_204], %570 {strides = array<i32>} : memref<10x20x32xf32, #tpu.memory_space<vmem>>, vector<4x8x32xf32>,
    %cst_205 = arith.constant 0.000000e+00 : f32
    %572 = vector.broadcast %cst_205 : f32 to vector<4x8x32xf32>
    %c3_206 = arith.constant 3 : index
    %c12_207 = arith.constant 12 : index
    %c0_208 = arith.constant 0 : index
    %573 = vector.load %arg37[%c3_206, %c12_207, %c0_208] : memref<10x20x32xf32, #tpu.memory_space<vmem>>, vector<4x8x32xf32>
    tpu.vector_store %arg37[%c3_206, %c12_207, %c0_208], %572 {strides = array<i32>} : memref<10x20x32xf32, #tpu.memory_space<vmem>>, vector<4x8x32xf32>,
    %574 = vector.extract_strided_slice %565 {offsets = [0, 0], sizes = [4, 32], strides = [1, 1]} : vector<16x32xf32> to vector<4x32xf32>
    %c3_209 = arith.constant 3 : index
    %c8_210 = arith.constant 8 : index
    %c0_211 = arith.constant 0 : index
    %575 = vector.load %arg37[%c3_209, %c8_210, %c0_211] : memref<10x20x32xf32, #tpu.memory_space<vmem>>, vector<1x4x32xf32>
    %576 = vector.shape_cast %575 : vector<1x4x32xf32> to vector<4x32xf32>
    %577 = vector.shape_cast %574 : vector<4x32xf32> to vector<1x4x32xf32>
    tpu.vector_store %arg37[%c3_209, %c8_210, %c0_211], %577 {strides = array<i32>} : memref<10x20x32xf32, #tpu.memory_space<vmem>>, vector<1x4x32xf32>,
    %578 = vector.extract_strided_slice %565 {offsets = [4, 0], sizes = [4, 32], strides = [1, 1]} : vector<16x32xf32> to vector<4x32xf32>
    %c4_212 = arith.constant 4 : index
    %c8_213 = arith.constant 8 : index
    %c0_214 = arith.constant 0 : index
    %579 = vector.load %arg37[%c4_212, %c8_213, %c0_214] : memref<10x20x32xf32, #tpu.memory_space<vmem>>, vector<1x4x32xf32>
    %580 = vector.shape_cast %579 : vector<1x4x32xf32> to vector<4x32xf32>
    %581 = vector.shape_cast %578 : vector<4x32xf32> to vector<1x4x32xf32>
    tpu.vector_store %arg37[%c4_212, %c8_213, %c0_214], %581 {strides = array<i32>} : memref<10x20x32xf32, #tpu.memory_space<vmem>>, vector<1x4x32xf32>,
    %582 = vector.extract_strided_slice %565 {offsets = [8, 0], sizes = [4, 32], strides = [1, 1]} : vector<16x32xf32> to vector<4x32xf32>
    %c5_215 = arith.constant 5 : index
    %c8_216 = arith.constant 8 : index
    %c0_217 = arith.constant 0 : index
    %583 = vector.load %arg37[%c5_215, %c8_216, %c0_217] : memref<10x20x32xf32, #tpu.memory_space<vmem>>, vector<1x4x32xf32>
    %584 = vector.shape_cast %583 : vector<1x4x32xf32> to vector<4x32xf32>
    %585 = vector.shape_cast %582 : vector<4x32xf32> to vector<1x4x32xf32>
    tpu.vector_store %arg37[%c5_215, %c8_216, %c0_217], %585 {strides = array<i32>} : memref<10x20x32xf32, #tpu.memory_space<vmem>>, vector<1x4x32xf32>,
    %586 = vector.extract_strided_slice %565 {offsets = [12, 0], sizes = [4, 32], strides = [1, 1]} : vector<16x32xf32> to vector<4x32xf32>
    %c6_218 = arith.constant 6 : index
    %c8_219 = arith.constant 8 : index
    %c0_220 = arith.constant 0 : index
    %587 = vector.load %arg37[%c6_218, %c8_219, %c0_220] : memref<10x20x32xf32, #tpu.memory_space<vmem>>, vector<1x4x32xf32>
    %588 = vector.shape_cast %587 : vector<1x4x32xf32> to vector<4x32xf32>
    %589 = vector.shape_cast %586 : vector<4x32xf32> to vector<1x4x32xf32>
    tpu.vector_store %arg37[%c6_218, %c8_219, %c0_220], %589 {strides = array<i32>} : memref<10x20x32xf32, #tpu.memory_space<vmem>>, vector<1x4x32xf32>,
    %c0_221 = arith.constant 0 : index
    %c0_222 = arith.constant 0 : index
    %c0_223 = arith.constant 0 : index
    %c0_224 = arith.constant 0 : index
    %590 = vector.load %arg16[%c0_221, %c0_222, %c0_223, %c0_224] : memref<49x1x1x32xf32, #tpu.memory_space<vmem>>, vector<49x1x1x32xf32>
    %c0_225 = arith.constant 0 : index
    %c5_226 = arith.constant 5 : index
    %c0_227 = arith.constant 0 : index
    %591 = vector.load %arg37[%c0_225, %c5_226, %c0_227] : memref<10x20x32xf32, #tpu.memory_space<vmem>>, vector<10x4x32xf32>
    %592 = vector.extract_strided_slice %591 {offsets = [0, 0, 0], sizes = [4, 4, 32], strides = [1, 1, 1]} : vector<10x4x32xf32> to vector<4x4x32xf32>
    %593 = vector.extract_strided_slice %590 {offsets = [0, 0, 0, 0], sizes = [1, 1, 1, 32], strides = [1, 1, 1, 1]} : vector<49x1x1x32xf32> to vector<1x1x1x32xf32>
    %594 = vector.shape_cast %593 : vector<1x1x1x32xf32> to vector<1x1x32xf32>
    %595 = vector.broadcast %594 : vector<1x1x32xf32> to vector<4x4x32xf32>
    %596 = arith.mulf %592, %595 : vector<4x4x32xf32>
    %597 = vector.extract_strided_slice %591 {offsets = [1, 0, 0], sizes = [4, 4, 32], strides = [1, 1, 1]} : vector<10x4x32xf32> to vector<4x4x32xf32>
    %598 = vector.extract_strided_slice %590 {offsets = [7, 0, 0, 0], sizes = [1, 1, 1, 32], strides = [1, 1, 1, 1]} : vector<49x1x1x32xf32> to vector<1x1x1x32xf32>
    %599 = vector.shape_cast %598 : vector<1x1x1x32xf32> to vector<1x1x32xf32>
    %600 = vector.broadcast %599 : vector<1x1x32xf32> to vector<4x4x32xf32>
    %601 = arith.mulf %597, %600 : vector<4x4x32xf32>
    %602 = arith.addf %596, %601 : vector<4x4x32xf32>
    %603 = vector.extract_strided_slice %591 {offsets = [2, 0, 0], sizes = [4, 4, 32], strides = [1, 1, 1]} : vector<10x4x32xf32> to vector<4x4x32xf32>
    %604 = vector.extract_strided_slice %590 {offsets = [14, 0, 0, 0], sizes = [1, 1, 1, 32], strides = [1, 1, 1, 1]} : vector<49x1x1x32xf32> to vector<1x1x1x32xf32>
    %605 = vector.shape_cast %604 : vector<1x1x1x32xf32> to vector<1x1x32xf32>
    %606 = vector.broadcast %605 : vector<1x1x32xf32> to vector<4x4x32xf32>
    %607 = arith.mulf %603, %606 : vector<4x4x32xf32>
    %608 = arith.addf %602, %607 : vector<4x4x32xf32>
    %609 = vector.extract_strided_slice %591 {offsets = [3, 0, 0], sizes = [4, 4, 32], strides = [1, 1, 1]} : vector<10x4x32xf32> to vector<4x4x32xf32>
    %610 = vector.extract_strided_slice %590 {offsets = [21, 0, 0, 0], sizes = [1, 1, 1, 32], strides = [1, 1, 1, 1]} : vector<49x1x1x32xf32> to vector<1x1x1x32xf32>
    %611 = vector.shape_cast %610 : vector<1x1x1x32xf32> to vector<1x1x32xf32>
    %612 = vector.broadcast %611 : vector<1x1x32xf32> to vector<4x4x32xf32>
    %613 = arith.mulf %609, %612 : vector<4x4x32xf32>
    %614 = arith.addf %608, %613 : vector<4x4x32xf32>
    %615 = vector.extract_strided_slice %591 {offsets = [4, 0, 0], sizes = [4, 4, 32], strides = [1, 1, 1]} : vector<10x4x32xf32> to vector<4x4x32xf32>
    %616 = vector.extract_strided_slice %590 {offsets = [28, 0, 0, 0], sizes = [1, 1, 1, 32], strides = [1, 1, 1, 1]} : vector<49x1x1x32xf32> to vector<1x1x1x32xf32>
    %617 = vector.shape_cast %616 : vector<1x1x1x32xf32> to vector<1x1x32xf32>
    %618 = vector.broadcast %617 : vector<1x1x32xf32> to vector<4x4x32xf32>
    %619 = arith.mulf %615, %618 : vector<4x4x32xf32>
    %620 = arith.addf %614, %619 : vector<4x4x32xf32>
    %621 = vector.extract_strided_slice %591 {offsets = [5, 0, 0], sizes = [4, 4, 32], strides = [1, 1, 1]} : vector<10x4x32xf32> to vector<4x4x32xf32>
    %622 = vector.extract_strided_slice %590 {offsets = [35, 0, 0, 0], sizes = [1, 1, 1, 32], strides = [1, 1, 1, 1]} : vector<49x1x1x32xf32> to vector<1x1x1x32xf32>
    %623 = vector.shape_cast %622 : vector<1x1x1x32xf32> to vector<1x1x32xf32>
    %624 = vector.broadcast %623 : vector<1x1x32xf32> to vector<4x4x32xf32>
    %625 = arith.mulf %621, %624 : vector<4x4x32xf32>
    %626 = arith.addf %620, %625 : vector<4x4x32xf32>
    %627 = vector.extract_strided_slice %591 {offsets = [6, 0, 0], sizes = [4, 4, 32], strides = [1, 1, 1]} : vector<10x4x32xf32> to vector<4x4x32xf32>
    %628 = vector.extract_strided_slice %590 {offsets = [42, 0, 0, 0], sizes = [1, 1, 1, 32], strides = [1, 1, 1, 1]} : vector<49x1x1x32xf32> to vector<1x1x1x32xf32>
    %629 = vector.shape_cast %628 : vector<1x1x1x32xf32> to vector<1x1x32xf32>
    %630 = vector.broadcast %629 : vector<1x1x32xf32> to vector<4x4x32xf32>
    %631 = arith.mulf %627, %630 : vector<4x4x32xf32>
    %632 = arith.addf %626, %631 : vector<4x4x32xf32>
    %c0_228 = arith.constant 0 : index
    %c6_229 = arith.constant 6 : index
    %c0_230 = arith.constant 0 : index
    %633 = vector.load %arg37[%c0_228, %c6_229, %c0_230] : memref<10x20x32xf32, #tpu.memory_space<vmem>>, vector<10x4x32xf32>
    %634 = vector.extract_strided_slice %633 {offsets = [0, 0, 0], sizes = [4, 4, 32], strides = [1, 1, 1]} : vector<10x4x32xf32> to vector<4x4x32xf32>
    %635 = vector.extract_strided_slice %590 {offsets = [1, 0, 0, 0], sizes = [1, 1, 1, 32], strides = [1, 1, 1, 1]} : vector<49x1x1x32xf32> to vector<1x1x1x32xf32>
    %636 = vector.shape_cast %635 : vector<1x1x1x32xf32> to vector<1x1x32xf32>
    %637 = vector.broadcast %636 : vector<1x1x32xf32> to vector<4x4x32xf32>
    %638 = arith.mulf %634, %637 : vector<4x4x32xf32>
    %639 = arith.addf %632, %638 : vector<4x4x32xf32>
    %640 = vector.extract_strided_slice %633 {offsets = [1, 0, 0], sizes = [4, 4, 32], strides = [1, 1, 1]} : vector<10x4x32xf32> to vector<4x4x32xf32>
    %641 = vector.extract_strided_slice %590 {offsets = [8, 0, 0, 0], sizes = [1, 1, 1, 32], strides = [1, 1, 1, 1]} : vector<49x1x1x32xf32> to vector<1x1x1x32xf32>
    %642 = vector.shape_cast %641 : vector<1x1x1x32xf32> to vector<1x1x32xf32>
    %643 = vector.broadcast %642 : vector<1x1x32xf32> to vector<4x4x32xf32>
    %644 = arith.mulf %640, %643 : vector<4x4x32xf32>
    %645 = arith.addf %639, %644 : vector<4x4x32xf32>
    %646 = vector.extract_strided_slice %633 {offsets = [2, 0, 0], sizes = [4, 4, 32], strides = [1, 1, 1]} : vector<10x4x32xf32> to vector<4x4x32xf32>
    %647 = vector.extract_strided_slice %590 {offsets = [15, 0, 0, 0], sizes = [1, 1, 1, 32], strides = [1, 1, 1, 1]} : vector<49x1x1x32xf32> to vector<1x1x1x32xf32>
    %648 = vector.shape_cast %647 : vector<1x1x1x32xf32> to vector<1x1x32xf32>
    %649 = vector.broadcast %648 : vector<1x1x32xf32> to vector<4x4x32xf32>
    %650 = arith.mulf %646, %649 : vector<4x4x32xf32>
    %651 = arith.addf %645, %650 : vector<4x4x32xf32>
    %652 = vector.extract_strided_slice %633 {offsets = [3, 0, 0], sizes = [4, 4, 32], strides = [1, 1, 1]} : vector<10x4x32xf32> to vector<4x4x32xf32>
    %653 = vector.extract_strided_slice %590 {offsets = [22, 0, 0, 0], sizes = [1, 1, 1, 32], strides = [1, 1, 1, 1]} : vector<49x1x1x32xf32> to vector<1x1x1x32xf32>
    %654 = vector.shape_cast %653 : vector<1x1x1x32xf32> to vector<1x1x32xf32>
    %655 = vector.broadcast %654 : vector<1x1x32xf32> to vector<4x4x32xf32>
    %656 = arith.mulf %652, %655 : vector<4x4x32xf32>
    %657 = arith.addf %651, %656 : vector<4x4x32xf32>
    %658 = vector.extract_strided_slice %633 {offsets = [4, 0, 0], sizes = [4, 4, 32], strides = [1, 1, 1]} : vector<10x4x32xf32> to vector<4x4x32xf32>
    %659 = vector.extract_strided_slice %590 {offsets = [29, 0, 0, 0], sizes = [1, 1, 1, 32], strides = [1, 1, 1, 1]} : vector<49x1x1x32xf32> to vector<1x1x1x32xf32>
    %660 = vector.shape_cast %659 : vector<1x1x1x32xf32> to vector<1x1x32xf32>
    %661 = vector.broadcast %660 : vector<1x1x32xf32> to vector<4x4x32xf32>
    %662 = arith.mulf %658, %661 : vector<4x4x32xf32>
    %663 = arith.addf %657, %662 : vector<4x4x32xf32>
    %664 = vector.extract_strided_slice %633 {offsets = [5, 0, 0], sizes = [4, 4, 32], strides = [1, 1, 1]} : vector<10x4x32xf32> to vector<4x4x32xf32>
    %665 = vector.extract_strided_slice %590 {offsets = [36, 0, 0, 0], sizes = [1, 1, 1, 32], strides = [1, 1, 1, 1]} : vector<49x1x1x32xf32> to vector<1x1x1x32xf32>
    %666 = vector.shape_cast %665 : vector<1x1x1x32xf32> to vector<1x1x32xf32>
    %667 = vector.broadcast %666 : vector<1x1x32xf32> to vector<4x4x32xf32>
    %668 = arith.mulf %664, %667 : vector<4x4x32xf32>
    %669 = arith.addf %663, %668 : vector<4x4x32xf32>
    %670 = vector.extract_strided_slice %633 {offsets = [6, 0, 0], sizes = [4, 4, 32], strides = [1, 1, 1]} : vector<10x4x32xf32> to vector<4x4x32xf32>
    %671 = vector.extract_strided_slice %590 {offsets = [43, 0, 0, 0], sizes = [1, 1, 1, 32], strides = [1, 1, 1, 1]} : vector<49x1x1x32xf32> to vector<1x1x1x32xf32>
    %672 = vector.shape_cast %671 : vector<1x1x1x32xf32> to vector<1x1x32xf32>
    %673 = vector.broadcast %672 : vector<1x1x32xf32> to vector<4x4x32xf32>
    %674 = arith.mulf %670, %673 : vector<4x4x32xf32>
    %675 = arith.addf %669, %674 : vector<4x4x32xf32>
    %c0_231 = arith.constant 0 : index
    %c7_232 = arith.constant 7 : index
    %c0_233 = arith.constant 0 : index
    %676 = vector.load %arg37[%c0_231, %c7_232, %c0_233] : memref<10x20x32xf32, #tpu.memory_space<vmem>>, vector<10x4x32xf32>
    %677 = vector.extract_strided_slice %676 {offsets = [0, 0, 0], sizes = [4, 4, 32], strides = [1, 1, 1]} : vector<10x4x32xf32> to vector<4x4x32xf32>
    %678 = vector.extract_strided_slice %590 {offsets = [2, 0, 0, 0], sizes = [1, 1, 1, 32], strides = [1, 1, 1, 1]} : vector<49x1x1x32xf32> to vector<1x1x1x32xf32>
    %679 = vector.shape_cast %678 : vector<1x1x1x32xf32> to vector<1x1x32xf32>
    %680 = vector.broadcast %679 : vector<1x1x32xf32> to vector<4x4x32xf32>
    %681 = arith.mulf %677, %680 : vector<4x4x32xf32>
    %682 = arith.addf %675, %681 : vector<4x4x32xf32>
    %683 = vector.extract_strided_slice %676 {offsets = [1, 0, 0], sizes = [4, 4, 32], strides = [1, 1, 1]} : vector<10x4x32xf32> to vector<4x4x32xf32>
    %684 = vector.extract_strided_slice %590 {offsets = [9, 0, 0, 0], sizes = [1, 1, 1, 32], strides = [1, 1, 1, 1]} : vector<49x1x1x32xf32> to vector<1x1x1x32xf32>
    %685 = vector.shape_cast %684 : vector<1x1x1x32xf32> to vector<1x1x32xf32>
    %686 = vector.broadcast %685 : vector<1x1x32xf32> to vector<4x4x32xf32>
    %687 = arith.mulf %683, %686 : vector<4x4x32xf32>
    %688 = arith.addf %682, %687 : vector<4x4x32xf32>
    %689 = vector.extract_strided_slice %676 {offsets = [2, 0, 0], sizes = [4, 4, 32], strides = [1, 1, 1]} : vector<10x4x32xf32> to vector<4x4x32xf32>
    %690 = vector.extract_strided_slice %590 {offsets = [16, 0, 0, 0], sizes = [1, 1, 1, 32], strides = [1, 1, 1, 1]} : vector<49x1x1x32xf32> to vector<1x1x1x32xf32>
    %691 = vector.shape_cast %690 : vector<1x1x1x32xf32> to vector<1x1x32xf32>
    %692 = vector.broadcast %691 : vector<1x1x32xf32> to vector<4x4x32xf32>
    %693 = arith.mulf %689, %692 : vector<4x4x32xf32>
    %694 = arith.addf %688, %693 : vector<4x4x32xf32>
    %695 = vector.extract_strided_slice %676 {offsets = [3, 0, 0], sizes = [4, 4, 32], strides = [1, 1, 1]} : vector<10x4x32xf32> to vector<4x4x32xf32>
    %696 = vector.extract_strided_slice %590 {offsets = [23, 0, 0, 0], sizes = [1, 1, 1, 32], strides = [1, 1, 1, 1]} : vector<49x1x1x32xf32> to vector<1x1x1x32xf32>
    %697 = vector.shape_cast %696 : vector<1x1x1x32xf32> to vector<1x1x32xf32>
    %698 = vector.broadcast %697 : vector<1x1x32xf32> to vector<4x4x32xf32>
    %699 = arith.mulf %695, %698 : vector<4x4x32xf32>
    %700 = arith.addf %694, %699 : vector<4x4x32xf32>
    %701 = vector.extract_strided_slice %676 {offsets = [4, 0, 0], sizes = [4, 4, 32], strides = [1, 1, 1]} : vector<10x4x32xf32> to vector<4x4x32xf32>
    %702 = vector.extract_strided_slice %590 {offsets = [30, 0, 0, 0], sizes = [1, 1, 1, 32], strides = [1, 1, 1, 1]} : vector<49x1x1x32xf32> to vector<1x1x1x32xf32>
    %703 = vector.shape_cast %702 : vector<1x1x1x32xf32> to vector<1x1x32xf32>
    %704 = vector.broadcast %703 : vector<1x1x32xf32> to vector<4x4x32xf32>
    %705 = arith.mulf %701, %704 : vector<4x4x32xf32>
    %706 = arith.addf %700, %705 : vector<4x4x32xf32>
    %707 = vector.extract_strided_slice %676 {offsets = [5, 0, 0], sizes = [4, 4, 32], strides = [1, 1, 1]} : vector<10x4x32xf32> to vector<4x4x32xf32>
    %708 = vector.extract_strided_slice %590 {offsets = [37, 0, 0, 0], sizes = [1, 1, 1, 32], strides = [1, 1, 1, 1]} : vector<49x1x1x32xf32> to vector<1x1x1x32xf32>
    %709 = vector.shape_cast %708 : vector<1x1x1x32xf32> to vector<1x1x32xf32>
    %710 = vector.broadcast %709 : vector<1x1x32xf32> to vector<4x4x32xf32>
    %711 = arith.mulf %707, %710 : vector<4x4x32xf32>
    %712 = arith.addf %706, %711 : vector<4x4x32xf32>
    %713 = vector.extract_strided_slice %676 {offsets = [6, 0, 0], sizes = [4, 4, 32], strides = [1, 1, 1]} : vector<10x4x32xf32> to vector<4x4x32xf32>
    %714 = vector.extract_strided_slice %590 {offsets = [44, 0, 0, 0], sizes = [1, 1, 1, 32], strides = [1, 1, 1, 1]} : vector<49x1x1x32xf32> to vector<1x1x1x32xf32>
    %715 = vector.shape_cast %714 : vector<1x1x1x32xf32> to vector<1x1x32xf32>
    %716 = vector.broadcast %715 : vector<1x1x32xf32> to vector<4x4x32xf32>
    %717 = arith.mulf %713, %716 : vector<4x4x32xf32>
    %718 = arith.addf %712, %717 : vector<4x4x32xf32>
    %c0_234 = arith.constant 0 : index
    %c8_235 = arith.constant 8 : index
    %c0_236 = arith.constant 0 : index
    %719 = vector.load %arg37[%c0_234, %c8_235, %c0_236] : memref<10x20x32xf32, #tpu.memory_space<vmem>>, vector<10x4x32xf32>
    %720 = vector.extract_strided_slice %719 {offsets = [0, 0, 0], sizes = [4, 4, 32], strides = [1, 1, 1]} : vector<10x4x32xf32> to vector<4x4x32xf32>
    %721 = vector.extract_strided_slice %590 {offsets = [3, 0, 0, 0], sizes = [1, 1, 1, 32], strides = [1, 1, 1, 1]} : vector<49x1x1x32xf32> to vector<1x1x1x32xf32>
    %722 = vector.shape_cast %721 : vector<1x1x1x32xf32> to vector<1x1x32xf32>
    %723 = vector.broadcast %722 : vector<1x1x32xf32> to vector<4x4x32xf32>
    %724 = arith.mulf %720, %723 : vector<4x4x32xf32>
    %725 = arith.addf %718, %724 : vector<4x4x32xf32>
    %726 = vector.extract_strided_slice %719 {offsets = [1, 0, 0], sizes = [4, 4, 32], strides = [1, 1, 1]} : vector<10x4x32xf32> to vector<4x4x32xf32>
    %727 = vector.extract_strided_slice %590 {offsets = [10, 0, 0, 0], sizes = [1, 1, 1, 32], strides = [1, 1, 1, 1]} : vector<49x1x1x32xf32> to vector<1x1x1x32xf32>
    %728 = vector.shape_cast %727 : vector<1x1x1x32xf32> to vector<1x1x32xf32>
    %729 = vector.broadcast %728 : vector<1x1x32xf32> to vector<4x4x32xf32>
    %730 = arith.mulf %726, %729 : vector<4x4x32xf32>
    %731 = arith.addf %725, %730 : vector<4x4x32xf32>
    %732 = vector.extract_strided_slice %719 {offsets = [2, 0, 0], sizes = [4, 4, 32], strides = [1, 1, 1]} : vector<10x4x32xf32> to vector<4x4x32xf32>
    %733 = vector.extract_strided_slice %590 {offsets = [17, 0, 0, 0], sizes = [1, 1, 1, 32], strides = [1, 1, 1, 1]} : vector<49x1x1x32xf32> to vector<1x1x1x32xf32>
    %734 = vector.shape_cast %733 : vector<1x1x1x32xf32> to vector<1x1x32xf32>
    %735 = vector.broadcast %734 : vector<1x1x32xf32> to vector<4x4x32xf32>
    %736 = arith.mulf %732, %735 : vector<4x4x32xf32>
    %737 = arith.addf %731, %736 : vector<4x4x32xf32>
    %738 = vector.extract_strided_slice %719 {offsets = [3, 0, 0], sizes = [4, 4, 32], strides = [1, 1, 1]} : vector<10x4x32xf32> to vector<4x4x32xf32>
    %739 = vector.extract_strided_slice %590 {offsets = [24, 0, 0, 0], sizes = [1, 1, 1, 32], strides = [1, 1, 1, 1]} : vector<49x1x1x32xf32> to vector<1x1x1x32xf32>
    %740 = vector.shape_cast %739 : vector<1x1x1x32xf32> to vector<1x1x32xf32>
    %741 = vector.broadcast %740 : vector<1x1x32xf32> to vector<4x4x32xf32>
    %742 = arith.mulf %738, %741 : vector<4x4x32xf32>
    %743 = arith.addf %737, %742 : vector<4x4x32xf32>
    %744 = vector.extract_strided_slice %719 {offsets = [4, 0, 0], sizes = [4, 4, 32], strides = [1, 1, 1]} : vector<10x4x32xf32> to vector<4x4x32xf32>
    %745 = vector.extract_strided_slice %590 {offsets = [31, 0, 0, 0], sizes = [1, 1, 1, 32], strides = [1, 1, 1, 1]} : vector<49x1x1x32xf32> to vector<1x1x1x32xf32>
    %746 = vector.shape_cast %745 : vector<1x1x1x32xf32> to vector<1x1x32xf32>
    %747 = vector.broadcast %746 : vector<1x1x32xf32> to vector<4x4x32xf32>
    %748 = arith.mulf %744, %747 : vector<4x4x32xf32>
    %749 = arith.addf %743, %748 : vector<4x4x32xf32>
    %750 = vector.extract_strided_slice %719 {offsets = [5, 0, 0], sizes = [4, 4, 32], strides = [1, 1, 1]} : vector<10x4x32xf32> to vector<4x4x32xf32>
    %751 = vector.extract_strided_slice %590 {offsets = [38, 0, 0, 0], sizes = [1, 1, 1, 32], strides = [1, 1, 1, 1]} : vector<49x1x1x32xf32> to vector<1x1x1x32xf32>
    %752 = vector.shape_cast %751 : vector<1x1x1x32xf32> to vector<1x1x32xf32>
    %753 = vector.broadcast %752 : vector<1x1x32xf32> to vector<4x4x32xf32>
    %754 = arith.mulf %750, %753 : vector<4x4x32xf32>
    %755 = arith.addf %749, %754 : vector<4x4x32xf32>
    %756 = vector.extract_strided_slice %719 {offsets = [6, 0, 0], sizes = [4, 4, 32], strides = [1, 1, 1]} : vector<10x4x32xf32> to vector<4x4x32xf32>
    %757 = vector.extract_strided_slice %590 {offsets = [45, 0, 0, 0], sizes = [1, 1, 1, 32], strides = [1, 1, 1, 1]} : vector<49x1x1x32xf32> to vector<1x1x1x32xf32>
    %758 = vector.shape_cast %757 : vector<1x1x1x32xf32> to vector<1x1x32xf32>
    %759 = vector.broadcast %758 : vector<1x1x32xf32> to vector<4x4x32xf32>
    %760 = arith.mulf %756, %759 : vector<4x4x32xf32>
    %761 = arith.addf %755, %760 : vector<4x4x32xf32>
    %c0_237 = arith.constant 0 : index
    %c9_238 = arith.constant 9 : index
    %c0_239 = arith.constant 0 : index
    %762 = vector.load %arg37[%c0_237, %c9_238, %c0_239] : memref<10x20x32xf32, #tpu.memory_space<vmem>>, vector<10x4x32xf32>
    %763 = vector.extract_strided_slice %762 {offsets = [0, 0, 0], sizes = [4, 4, 32], strides = [1, 1, 1]} : vector<10x4x32xf32> to vector<4x4x32xf32>
    %764 = vector.extract_strided_slice %590 {offsets = [4, 0, 0, 0], sizes = [1, 1, 1, 32], strides = [1, 1, 1, 1]} : vector<49x1x1x32xf32> to vector<1x1x1x32xf32>
    %765 = vector.shape_cast %764 : vector<1x1x1x32xf32> to vector<1x1x32xf32>
    %766 = vector.broadcast %765 : vector<1x1x32xf32> to vector<4x4x32xf32>
    %767 = arith.mulf %763, %766 : vector<4x4x32xf32>
    %768 = arith.addf %761, %767 : vector<4x4x32xf32>
    %769 = vector.extract_strided_slice %762 {offsets = [1, 0, 0], sizes = [4, 4, 32], strides = [1, 1, 1]} : vector<10x4x32xf32> to vector<4x4x32xf32>
    %770 = vector.extract_strided_slice %590 {offsets = [11, 0, 0, 0], sizes = [1, 1, 1, 32], strides = [1, 1, 1, 1]} : vector<49x1x1x32xf32> to vector<1x1x1x32xf32>
    %771 = vector.shape_cast %770 : vector<1x1x1x32xf32> to vector<1x1x32xf32>
    %772 = vector.broadcast %771 : vector<1x1x32xf32> to vector<4x4x32xf32>
    %773 = arith.mulf %769, %772 : vector<4x4x32xf32>
    %774 = arith.addf %768, %773 : vector<4x4x32xf32>
    %775 = vector.extract_strided_slice %762 {offsets = [2, 0, 0], sizes = [4, 4, 32], strides = [1, 1, 1]} : vector<10x4x32xf32> to vector<4x4x32xf32>
    %776 = vector.extract_strided_slice %590 {offsets = [18, 0, 0, 0], sizes = [1, 1, 1, 32], strides = [1, 1, 1, 1]} : vector<49x1x1x32xf32> to vector<1x1x1x32xf32>
    %777 = vector.shape_cast %776 : vector<1x1x1x32xf32> to vector<1x1x32xf32>
    %778 = vector.broadcast %777 : vector<1x1x32xf32> to vector<4x4x32xf32>
    %779 = arith.mulf %775, %778 : vector<4x4x32xf32>
    %780 = arith.addf %774, %779 : vector<4x4x32xf32>
    %781 = vector.extract_strided_slice %762 {offsets = [3, 0, 0], sizes = [4, 4, 32], strides = [1, 1, 1]} : vector<10x4x32xf32> to vector<4x4x32xf32>
    %782 = vector.extract_strided_slice %590 {offsets = [25, 0, 0, 0], sizes = [1, 1, 1, 32], strides = [1, 1, 1, 1]} : vector<49x1x1x32xf32> to vector<1x1x1x32xf32>
    %783 = vector.shape_cast %782 : vector<1x1x1x32xf32> to vector<1x1x32xf32>
    %784 = vector.broadcast %783 : vector<1x1x32xf32> to vector<4x4x32xf32>
    %785 = arith.mulf %781, %784 : vector<4x4x32xf32>
    %786 = arith.addf %780, %785 : vector<4x4x32xf32>
    %787 = vector.extract_strided_slice %762 {offsets = [4, 0, 0], sizes = [4, 4, 32], strides = [1, 1, 1]} : vector<10x4x32xf32> to vector<4x4x32xf32>
    %788 = vector.extract_strided_slice %590 {offsets = [32, 0, 0, 0], sizes = [1, 1, 1, 32], strides = [1, 1, 1, 1]} : vector<49x1x1x32xf32> to vector<1x1x1x32xf32>
    %789 = vector.shape_cast %788 : vector<1x1x1x32xf32> to vector<1x1x32xf32>
    %790 = vector.broadcast %789 : vector<1x1x32xf32> to vector<4x4x32xf32>
    %791 = arith.mulf %787, %790 : vector<4x4x32xf32>
    %792 = arith.addf %786, %791 : vector<4x4x32xf32>
    %793 = vector.extract_strided_slice %762 {offsets = [5, 0, 0], sizes = [4, 4, 32], strides = [1, 1, 1]} : vector<10x4x32xf32> to vector<4x4x32xf32>
    %794 = vector.extract_strided_slice %590 {offsets = [39, 0, 0, 0], sizes = [1, 1, 1, 32], strides = [1, 1, 1, 1]} : vector<49x1x1x32xf32> to vector<1x1x1x32xf32>
    %795 = vector.shape_cast %794 : vector<1x1x1x32xf32> to vector<1x1x32xf32>
    %796 = vector.broadcast %795 : vector<1x1x32xf32> to vector<4x4x32xf32>
    %797 = arith.mulf %793, %796 : vector<4x4x32xf32>
    %798 = arith.addf %792, %797 : vector<4x4x32xf32>
    %799 = vector.extract_strided_slice %762 {offsets = [6, 0, 0], sizes = [4, 4, 32], strides = [1, 1, 1]} : vector<10x4x32xf32> to vector<4x4x32xf32>
    %800 = vector.extract_strided_slice %590 {offsets = [46, 0, 0, 0], sizes = [1, 1, 1, 32], strides = [1, 1, 1, 1]} : vector<49x1x1x32xf32> to vector<1x1x1x32xf32>
    %801 = vector.shape_cast %800 : vector<1x1x1x32xf32> to vector<1x1x32xf32>
    %802 = vector.broadcast %801 : vector<1x1x32xf32> to vector<4x4x32xf32>
    %803 = arith.mulf %799, %802 : vector<4x4x32xf32>
    %804 = arith.addf %798, %803 : vector<4x4x32xf32>
    %c0_240 = arith.constant 0 : index
    %c10_241 = arith.constant 10 : index
    %c0_242 = arith.constant 0 : index
    %805 = vector.load %arg37[%c0_240, %c10_241, %c0_242] : memref<10x20x32xf32, #tpu.memory_space<vmem>>, vector<10x4x32xf32>
    %806 = vector.extract_strided_slice %805 {offsets = [0, 0, 0], sizes = [4, 4, 32], strides = [1, 1, 1]} : vector<10x4x32xf32> to vector<4x4x32xf32>
    %807 = vector.extract_strided_slice %590 {offsets = [5, 0, 0, 0], sizes = [1, 1, 1, 32], strides = [1, 1, 1, 1]} : vector<49x1x1x32xf32> to vector<1x1x1x32xf32>
    %808 = vector.shape_cast %807 : vector<1x1x1x32xf32> to vector<1x1x32xf32>
    %809 = vector.broadcast %808 : vector<1x1x32xf32> to vector<4x4x32xf32>
    %810 = arith.mulf %806, %809 : vector<4x4x32xf32>
    %811 = arith.addf %804, %810 : vector<4x4x32xf32>
    %812 = vector.extract_strided_slice %805 {offsets = [1, 0, 0], sizes = [4, 4, 32], strides = [1, 1, 1]} : vector<10x4x32xf32> to vector<4x4x32xf32>
    %813 = vector.extract_strided_slice %590 {offsets = [12, 0, 0, 0], sizes = [1, 1, 1, 32], strides = [1, 1, 1, 1]} : vector<49x1x1x32xf32> to vector<1x1x1x32xf32>
    %814 = vector.shape_cast %813 : vector<1x1x1x32xf32> to vector<1x1x32xf32>
    %815 = vector.broadcast %814 : vector<1x1x32xf32> to vector<4x4x32xf32>
    %816 = arith.mulf %812, %815 : vector<4x4x32xf32>
    %817 = arith.addf %811, %816 : vector<4x4x32xf32>
    %818 = vector.extract_strided_slice %805 {offsets = [2, 0, 0], sizes = [4, 4, 32], strides = [1, 1, 1]} : vector<10x4x32xf32> to vector<4x4x32xf32>
    %819 = vector.extract_strided_slice %590 {offsets = [19, 0, 0, 0], sizes = [1, 1, 1, 32], strides = [1, 1, 1, 1]} : vector<49x1x1x32xf32> to vector<1x1x1x32xf32>
    %820 = vector.shape_cast %819 : vector<1x1x1x32xf32> to vector<1x1x32xf32>
    %821 = vector.broadcast %820 : vector<1x1x32xf32> to vector<4x4x32xf32>
    %822 = arith.mulf %818, %821 : vector<4x4x32xf32>
    %823 = arith.addf %817, %822 : vector<4x4x32xf32>
    %824 = vector.extract_strided_slice %805 {offsets = [3, 0, 0], sizes = [4, 4, 32], strides = [1, 1, 1]} : vector<10x4x32xf32> to vector<4x4x32xf32>
    %825 = vector.extract_strided_slice %590 {offsets = [26, 0, 0, 0], sizes = [1, 1, 1, 32], strides = [1, 1, 1, 1]} : vector<49x1x1x32xf32> to vector<1x1x1x32xf32>
    %826 = vector.shape_cast %825 : vector<1x1x1x32xf32> to vector<1x1x32xf32>
    %827 = vector.broadcast %826 : vector<1x1x32xf32> to vector<4x4x32xf32>
    %828 = arith.mulf %824, %827 : vector<4x4x32xf32>
    %829 = arith.addf %823, %828 : vector<4x4x32xf32>
    %830 = vector.extract_strided_slice %805 {offsets = [4, 0, 0], sizes = [4, 4, 32], strides = [1, 1, 1]} : vector<10x4x32xf32> to vector<4x4x32xf32>
    %831 = vector.extract_strided_slice %590 {offsets = [33, 0, 0, 0], sizes = [1, 1, 1, 32], strides = [1, 1, 1, 1]} : vector<49x1x1x32xf32> to vector<1x1x1x32xf32>
    %832 = vector.shape_cast %831 : vector<1x1x1x32xf32> to vector<1x1x32xf32>
    %833 = vector.broadcast %832 : vector<1x1x32xf32> to vector<4x4x32xf32>
    %834 = arith.mulf %830, %833 : vector<4x4x32xf32>
    %835 = arith.addf %829, %834 : vector<4x4x32xf32>
    %836 = vector.extract_strided_slice %805 {offsets = [5, 0, 0], sizes = [4, 4, 32], strides = [1, 1, 1]} : vector<10x4x32xf32> to vector<4x4x32xf32>
    %837 = vector.extract_strided_slice %590 {offsets = [40, 0, 0, 0], sizes = [1, 1, 1, 32], strides = [1, 1, 1, 1]} : vector<49x1x1x32xf32> to vector<1x1x1x32xf32>
    %838 = vector.shape_cast %837 : vector<1x1x1x32xf32> to vector<1x1x32xf32>
    %839 = vector.broadcast %838 : vector<1x1x32xf32> to vector<4x4x32xf32>
    %840 = arith.mulf %836, %839 : vector<4x4x32xf32>
    %841 = arith.addf %835, %840 : vector<4x4x32xf32>
    %842 = vector.extract_strided_slice %805 {offsets = [6, 0, 0], sizes = [4, 4, 32], strides = [1, 1, 1]} : vector<10x4x32xf32> to vector<4x4x32xf32>
    %843 = vector.extract_strided_slice %590 {offsets = [47, 0, 0, 0], sizes = [1, 1, 1, 32], strides = [1, 1, 1, 1]} : vector<49x1x1x32xf32> to vector<1x1x1x32xf32>
    %844 = vector.shape_cast %843 : vector<1x1x1x32xf32> to vector<1x1x32xf32>
    %845 = vector.broadcast %844 : vector<1x1x32xf32> to vector<4x4x32xf32>
    %846 = arith.mulf %842, %845 : vector<4x4x32xf32>
    %847 = arith.addf %841, %846 : vector<4x4x32xf32>
    %c0_243 = arith.constant 0 : index
    %c11_244 = arith.constant 11 : index
    %c0_245 = arith.constant 0 : index
    %848 = vector.load %arg37[%c0_243, %c11_244, %c0_245] : memref<10x20x32xf32, #tpu.memory_space<vmem>>, vector<10x4x32xf32>
    %849 = vector.extract_strided_slice %848 {offsets = [0, 0, 0], sizes = [4, 4, 32], strides = [1, 1, 1]} : vector<10x4x32xf32> to vector<4x4x32xf32>
    %850 = vector.extract_strided_slice %590 {offsets = [6, 0, 0, 0], sizes = [1, 1, 1, 32], strides = [1, 1, 1, 1]} : vector<49x1x1x32xf32> to vector<1x1x1x32xf32>
    %851 = vector.shape_cast %850 : vector<1x1x1x32xf32> to vector<1x1x32xf32>
    %852 = vector.broadcast %851 : vector<1x1x32xf32> to vector<4x4x32xf32>
    %853 = arith.mulf %849, %852 : vector<4x4x32xf32>
    %854 = arith.addf %847, %853 : vector<4x4x32xf32>
    %855 = vector.extract_strided_slice %848 {offsets = [1, 0, 0], sizes = [4, 4, 32], strides = [1, 1, 1]} : vector<10x4x32xf32> to vector<4x4x32xf32>
    %856 = vector.extract_strided_slice %590 {offsets = [13, 0, 0, 0], sizes = [1, 1, 1, 32], strides = [1, 1, 1, 1]} : vector<49x1x1x32xf32> to vector<1x1x1x32xf32>
    %857 = vector.shape_cast %856 : vector<1x1x1x32xf32> to vector<1x1x32xf32>
    %858 = vector.broadcast %857 : vector<1x1x32xf32> to vector<4x4x32xf32>
    %859 = arith.mulf %855, %858 : vector<4x4x32xf32>
    %860 = arith.addf %854, %859 : vector<4x4x32xf32>
    %861 = vector.extract_strided_slice %848 {offsets = [2, 0, 0], sizes = [4, 4, 32], strides = [1, 1, 1]} : vector<10x4x32xf32> to vector<4x4x32xf32>
    %862 = vector.extract_strided_slice %590 {offsets = [20, 0, 0, 0], sizes = [1, 1, 1, 32], strides = [1, 1, 1, 1]} : vector<49x1x1x32xf32> to vector<1x1x1x32xf32>
    %863 = vector.shape_cast %862 : vector<1x1x1x32xf32> to vector<1x1x32xf32>
    %864 = vector.broadcast %863 : vector<1x1x32xf32> to vector<4x4x32xf32>
    %865 = arith.mulf %861, %864 : vector<4x4x32xf32>
    %866 = arith.addf %860, %865 : vector<4x4x32xf32>
    %867 = vector.extract_strided_slice %848 {offsets = [3, 0, 0], sizes = [4, 4, 32], strides = [1, 1, 1]} : vector<10x4x32xf32> to vector<4x4x32xf32>
    %868 = vector.extract_strided_slice %590 {offsets = [27, 0, 0, 0], sizes = [1, 1, 1, 32], strides = [1, 1, 1, 1]} : vector<49x1x1x32xf32> to vector<1x1x1x32xf32>
    %869 = vector.shape_cast %868 : vector<1x1x1x32xf32> to vector<1x1x32xf32>
    %870 = vector.broadcast %869 : vector<1x1x32xf32> to vector<4x4x32xf32>
    %871 = arith.mulf %867, %870 : vector<4x4x32xf32>
    %872 = arith.addf %866, %871 : vector<4x4x32xf32>
    %873 = vector.extract_strided_slice %848 {offsets = [4, 0, 0], sizes = [4, 4, 32], strides = [1, 1, 1]} : vector<10x4x32xf32> to vector<4x4x32xf32>
    %874 = vector.extract_strided_slice %590 {offsets = [34, 0, 0, 0], sizes = [1, 1, 1, 32], strides = [1, 1, 1, 1]} : vector<49x1x1x32xf32> to vector<1x1x1x32xf32>
    %875 = vector.shape_cast %874 : vector<1x1x1x32xf32> to vector<1x1x32xf32>
    %876 = vector.broadcast %875 : vector<1x1x32xf32> to vector<4x4x32xf32>
    %877 = arith.mulf %873, %876 : vector<4x4x32xf32>
    %878 = arith.addf %872, %877 : vector<4x4x32xf32>
    %879 = vector.extract_strided_slice %848 {offsets = [5, 0, 0], sizes = [4, 4, 32], strides = [1, 1, 1]} : vector<10x4x32xf32> to vector<4x4x32xf32>
    %880 = vector.extract_strided_slice %590 {offsets = [41, 0, 0, 0], sizes = [1, 1, 1, 32], strides = [1, 1, 1, 1]} : vector<49x1x1x32xf32> to vector<1x1x1x32xf32>
    %881 = vector.shape_cast %880 : vector<1x1x1x32xf32> to vector<1x1x32xf32>
    %882 = vector.broadcast %881 : vector<1x1x32xf32> to vector<4x4x32xf32>
    %883 = arith.mulf %879, %882 : vector<4x4x32xf32>
    %884 = arith.addf %878, %883 : vector<4x4x32xf32>
    %885 = vector.extract_strided_slice %848 {offsets = [6, 0, 0], sizes = [4, 4, 32], strides = [1, 1, 1]} : vector<10x4x32xf32> to vector<4x4x32xf32>
    %886 = vector.extract_strided_slice %590 {offsets = [48, 0, 0, 0], sizes = [1, 1, 1, 32], strides = [1, 1, 1, 1]} : vector<49x1x1x32xf32> to vector<1x1x1x32xf32>
    %887 = vector.shape_cast %886 : vector<1x1x1x32xf32> to vector<1x1x32xf32>
    %888 = vector.broadcast %887 : vector<1x1x32xf32> to vector<4x4x32xf32>
    %889 = arith.mulf %885, %888 : vector<4x4x32xf32>
    %890 = arith.addf %884, %889 : vector<4x4x32xf32>
    %c0_246 = arith.constant 0 : index
    %c0_247 = arith.constant 0 : index
    %891 = vector.load %arg17[%c0_246, %c0_247] : memref<1x32xf32, #tpu.memory_space<vmem>>, vector<1x32xf32>
    %892 = vector.extract_strided_slice %890 {offsets = [0, 0, 0], sizes = [1, 4, 32], strides = [1, 1, 1]} : vector<4x4x32xf32> to vector<1x4x32xf32>
    %893 = vector.shape_cast %892 : vector<1x4x32xf32> to vector<4x32xf32>
    %894 = vector.broadcast %891 : vector<1x32xf32> to vector<4x32xf32>
    %895 = arith.addf %893, %894 : vector<4x32xf32>
    %c0_248 = arith.constant 0 : index
    %c0_249 = arith.constant 0 : index
    %896 = vector.load %arg38[%c0_248, %c0_249] : memref<16x32xf32, #tpu.memory_space<vmem>>, vector<4x32xf32>
    tpu.vector_store %arg38[%c0_248, %c0_249], %895 {strides = array<i32>} : memref<16x32xf32, #tpu.memory_space<vmem>>, vector<4x32xf32>,
    %897 = vector.extract_strided_slice %890 {offsets = [1, 0, 0], sizes = [1, 4, 32], strides = [1, 1, 1]} : vector<4x4x32xf32> to vector<1x4x32xf32>
    %898 = vector.shape_cast %897 : vector<1x4x32xf32> to vector<4x32xf32>
    %899 = vector.broadcast %891 : vector<1x32xf32> to vector<4x32xf32>
    %900 = arith.addf %898, %899 : vector<4x32xf32>
    %c4_250 = arith.constant 4 : index
    %c0_251 = arith.constant 0 : index
    %901 = vector.load %arg38[%c4_250, %c0_251] : memref<16x32xf32, #tpu.memory_space<vmem>>, vector<4x32xf32>
    tpu.vector_store %arg38[%c4_250, %c0_251], %900 {strides = array<i32>} : memref<16x32xf32, #tpu.memory_space<vmem>>, vector<4x32xf32>,
    %902 = vector.extract_strided_slice %890 {offsets = [2, 0, 0], sizes = [1, 4, 32], strides = [1, 1, 1]} : vector<4x4x32xf32> to vector<1x4x32xf32>
    %903 = vector.shape_cast %902 : vector<1x4x32xf32> to vector<4x32xf32>
    %904 = vector.broadcast %891 : vector<1x32xf32> to vector<4x32xf32>
    %905 = arith.addf %903, %904 : vector<4x32xf32>
    %c8_252 = arith.constant 8 : index
    %c0_253 = arith.constant 0 : index
    %906 = vector.load %arg38[%c8_252, %c0_253] : memref<16x32xf32, #tpu.memory_space<vmem>>, vector<4x32xf32>
    tpu.vector_store %arg38[%c8_252, %c0_253], %905 {strides = array<i32>} : memref<16x32xf32, #tpu.memory_space<vmem>>, vector<4x32xf32>,
    %907 = vector.extract_strided_slice %890 {offsets = [3, 0, 0], sizes = [1, 4, 32], strides = [1, 1, 1]} : vector<4x4x32xf32> to vector<1x4x32xf32>
    %908 = vector.shape_cast %907 : vector<1x4x32xf32> to vector<4x32xf32>
    %909 = vector.broadcast %891 : vector<1x32xf32> to vector<4x32xf32>
    %910 = arith.addf %908, %909 : vector<4x32xf32>
    %c12_254 = arith.constant 12 : index
    %c0_255 = arith.constant 0 : index
    %911 = vector.load %arg38[%c12_254, %c0_255] : memref<16x32xf32, #tpu.memory_space<vmem>>, vector<4x32xf32>
    tpu.vector_store %arg38[%c12_254, %c0_255], %910 {strides = array<i32>} : memref<16x32xf32, #tpu.memory_space<vmem>>, vector<4x32xf32>,
    %c0_256 = arith.constant 0 : index
    %c0_257 = arith.constant 0 : index
    %912 = vector.load %arg38[%c0_256, %c0_257] : memref<16x32xf32, #tpu.memory_space<vmem>>, vector<16x32xf32>
    %cst_258 = arith.constant dense<0.000000e+00> : vector<16xf32>
    %913 = vector.multi_reduction <add>, %912, %cst_258 [1] : vector<16x32xf32> to vector<16xf32>
    %914 = vector.shape_cast %913 : vector<16xf32> to vector<16x1xf32>
    %cst_259 = arith.constant 3.200000e+01 : f32
    %915 = vector.broadcast %cst_259 : f32 to vector<16x1xf32>
    %916 = arith.divf %914, %915 : vector<16x1xf32>
    %917 = vector.broadcast %916 : vector<16x1xf32> to vector<16x32xf32>
    %918 = arith.subf %912, %917 : vector<16x32xf32>
    %919 = arith.mulf %918, %918 : vector<16x32xf32>
    %cst_260 = arith.constant dense<0.000000e+00> : vector<16xf32>
    %920 = vector.multi_reduction <add>, %919, %cst_260 [1] : vector<16x32xf32> to vector<16xf32>
    %921 = vector.shape_cast %920 : vector<16xf32> to vector<16x1xf32>
    %cst_261 = arith.constant 3.200000e+01 : f32
    %922 = vector.broadcast %cst_261 : f32 to vector<16x1xf32>
    %923 = arith.divf %921, %922 : vector<16x1xf32>
    %924 = vector.broadcast %916 : vector<16x1xf32> to vector<16x32xf32>
    %925 = arith.subf %912, %924 : vector<16x32xf32>
    %cst_262 = arith.constant 9.99999997E-7 : f32
    %926 = vector.broadcast %cst_262 : f32 to vector<16x1xf32>
    %927 = arith.addf %923, %926 : vector<16x1xf32>
    %928 = math.rsqrt %927 : vector<16x1xf32>
    %929 = vector.broadcast %928 : vector<16x1xf32> to vector<16x32xf32>
    %930 = arith.mulf %925, %929 : vector<16x32xf32>
    %931 = arith.truncf %930 : vector<16x32xf32> to vector<16x32xbf16>
    %c0_263 = arith.constant 0 : index
    %c0_264 = arith.constant 0 : index
    %932 = vector.load %arg18[%c0_263, %c0_264] : memref<32x128xbf16, #tpu.memory_space<vmem>>, vector<32x128xbf16>
    %cst_265 = arith.constant dense<0.000000e+00> : vector<16x128xf32>
    %933 = tpu.matmul %931, %932, %cst_265 {dimension_numbers = #tpu.dot_dimension_numbers<[1], [0], [0], [1], [0, 0, 1, 1], [], []>} : vector<16x32xbf16>, vector<32x128xbf16>, vector<16x128xf32> -> vector<16x128xf32>
    %c0_266 = arith.constant 0 : index
    %c0_267 = arith.constant 0 : index
    %934 = vector.load %arg19[%c0_266, %c0_267] : memref<1x128xf32, #tpu.memory_space<vmem>>, vector<1x128xf32>
    %935 = vector.broadcast %934 : vector<1x128xf32> to vector<16x128xf32>
    %936 = arith.addf %933, %935 : vector<16x128xf32>
    %cst_268 = arith.constant 5.000000e-01 : f32
    %937 = vector.broadcast %cst_268 : f32 to vector<16x128xf32>
    %938 = arith.mulf %937, %936 : vector<16x128xf32>
    %cst_269 = arith.constant 0.707106769 : f32
    %939 = vector.broadcast %cst_269 : f32 to vector<16x128xf32>
    %940 = arith.mulf %936, %939 : vector<16x128xf32>
    %941 = math.absf %940 : vector<16x128xf32>
    %cst_270 = arith.constant 0.327591091 : f32
    %942 = vector.broadcast %cst_270 : f32 to vector<16x128xf32>
    %943 = arith.mulf %942, %941 : vector<16x128xf32>
    %cst_271 = arith.constant 1.000000e+00 : f32
    %944 = vector.broadcast %cst_271 : f32 to vector<16x128xf32>
    %945 = arith.addf %944, %943 : vector<16x128xf32>
    %cst_272 = arith.constant 1.000000e+00 : f32
    %946 = vector.broadcast %cst_272 : f32 to vector<16x128xf32>
    %947 = arith.divf %946, %945 : vector<16x128xf32>
    %cst_273 = arith.constant 1.06140542 : f32
    %948 = vector.broadcast %cst_273 : f32 to vector<16x128xf32>
    %949 = arith.mulf %948, %947 : vector<16x128xf32>
    %cst_274 = arith.constant -1.45315206 : f32
    %950 = vector.broadcast %cst_274 : f32 to vector<16x128xf32>
    %951 = arith.addf %949, %950 : vector<16x128xf32>
    %952 = arith.mulf %951, %947 : vector<16x128xf32>
    %cst_275 = arith.constant 1.42141378 : f32
    %953 = vector.broadcast %cst_275 : f32 to vector<16x128xf32>
    %954 = arith.addf %952, %953 : vector<16x128xf32>
    %955 = arith.mulf %954, %947 : vector<16x128xf32>
    %cst_276 = arith.constant -0.284496725 : f32
    %956 = vector.broadcast %cst_276 : f32 to vector<16x128xf32>
    %957 = arith.addf %955, %956 : vector<16x128xf32>
    %958 = arith.mulf %957, %947 : vector<16x128xf32>
    %cst_277 = arith.constant 0.254829586 : f32
    %959 = vector.broadcast %cst_277 : f32 to vector<16x128xf32>
    %960 = arith.addf %958, %959 : vector<16x128xf32>
    %961 = arith.mulf %960, %947 : vector<16x128xf32>
    %cst_278 = arith.constant 0.000000e+00 : f32
    %962 = vector.broadcast %cst_278 : f32 to vector<16x128xf32>
    %963 = arith.subf %962, %941 : vector<16x128xf32>
    %964 = arith.mulf %963, %941 : vector<16x128xf32>
    %965 = math.exp %964 : vector<16x128xf32>
    %966 = arith.mulf %961, %965 : vector<16x128xf32>
    %cst_279 = arith.constant 1.000000e+00 : f32
    %967 = vector.broadcast %cst_279 : f32 to vector<16x128xf32>
    %968 = arith.subf %967, %966 : vector<16x128xf32>
    %cst_280 = arith.constant 0.000000e+00 : f32
    %969 = vector.broadcast %cst_280 : f32 to vector<16x128xf32>
    %970 = arith.cmpf oge, %940, %969 : vector<16x128xf32>
    %cst_281 = arith.constant 0.000000e+00 : f32
    %971 = vector.broadcast %cst_281 : f32 to vector<16x128xf32>
    %972 = arith.subf %971, %968 : vector<16x128xf32>
    %973 = arith.select %970, %968, %972 : vector<16x128xi1>, vector<16x128xf32>
    %cst_282 = arith.constant 1.000000e+00 : f32
    %974 = vector.broadcast %cst_282 : f32 to vector<16x128xf32>
    %975 = arith.addf %974, %973 : vector<16x128xf32>
    %976 = arith.mulf %938, %975 : vector<16x128xf32>
    %977 = arith.mulf %976, %976 : vector<16x128xf32>
    %cst_283 = arith.constant dense<0.000000e+00> : vector<128xf32>
    %978 = vector.multi_reduction <add>, %977, %cst_283 [0] : vector<16x128xf32> to vector<128xf32>
    %979 = vector.shape_cast %978 : vector<128xf32> to vector<1x128xf32>
    %980 = math.sqrt %979 : vector<1x128xf32>
    %cst_284 = arith.constant dense<0.000000e+00> : vector<1xf32>
    %981 = vector.multi_reduction <add>, %980, %cst_284 [1] : vector<1x128xf32> to vector<1xf32>
    %982 = vector.shape_cast %981 : vector<1xf32> to vector<1x1xf32>
    %cst_285 = arith.constant 1.280000e+02 : f32
    %983 = vector.broadcast %cst_285 : f32 to vector<1x1xf32>
    %984 = arith.divf %982, %983 : vector<1x1xf32>
    %cst_286 = arith.constant 9.99999997E-7 : f32
    %985 = vector.broadcast %cst_286 : f32 to vector<1x1xf32>
    %986 = arith.addf %984, %985 : vector<1x1xf32>
    %987 = tpu.reciprocal %986 {approx = true} : vector<1x1xf32> -> vector<1x1xf32>
    %988 = vector.broadcast %987 : vector<1x1xf32> to vector<1x128xf32>
    %989 = arith.mulf %980, %988 : vector<1x128xf32>
    %c0_287 = arith.constant 0 : index
    %c0_288 = arith.constant 0 : index
    %990 = vector.load %arg20[%c0_287, %c0_288] : memref<1x128xf32, #tpu.memory_space<vmem>>, vector<1x128xf32>
    %991 = vector.broadcast %989 : vector<1x128xf32> to vector<16x128xf32>
    %992 = arith.mulf %976, %991 : vector<16x128xf32>
    %993 = vector.broadcast %990 : vector<1x128xf32> to vector<16x128xf32>
    %994 = arith.mulf %993, %992 : vector<16x128xf32>
    %c0_289 = arith.constant 0 : index
    %c0_290 = arith.constant 0 : index
    %995 = vector.load %arg21[%c0_289, %c0_290] : memref<1x128xf32, #tpu.memory_space<vmem>>, vector<1x128xf32>
    %996 = vector.broadcast %995 : vector<1x128xf32> to vector<16x128xf32>
    %997 = arith.addf %994, %996 : vector<16x128xf32>
    %998 = arith.addf %997, %976 : vector<16x128xf32>
    %999 = arith.truncf %998 : vector<16x128xf32> to vector<16x128xbf16>
    %c0_291 = arith.constant 0 : index
    %c0_292 = arith.constant 0 : index
    %1000 = vector.load %arg22[%c0_291, %c0_292] : memref<128x32xbf16, #tpu.memory_space<vmem>>, vector<128x32xbf16>
    %cst_293 = arith.constant dense<0.000000e+00> : vector<16x32xf32>
    %1001 = tpu.matmul %999, %1000, %cst_293 {dimension_numbers = #tpu.dot_dimension_numbers<[1], [0], [0], [1], [0, 0, 1, 1], [], []>} : vector<16x128xbf16>, vector<128x32xbf16>, vector<16x32xf32> -> vector<16x32xf32>
    %c0_294 = arith.constant 0 : index
    %c0_295 = arith.constant 0 : index
    %1002 = vector.load %arg23[%c0_294, %c0_295] : memref<1x32xf32, #tpu.memory_space<vmem>>, vector<1x32xf32>
    %1003 = vector.broadcast %1002 : vector<1x32xf32> to vector<16x32xf32>
    %1004 = arith.addf %1001, %1003 : vector<16x32xf32>
    %1005 = arith.addf %1004, %565 : vector<16x32xf32>
    %cst_296 = arith.constant dense<0.000000e+00> : vector<16xf32>
    %1006 = vector.multi_reduction <add>, %1005, %cst_296 [1] : vector<16x32xf32> to vector<16xf32>
    %1007 = vector.shape_cast %1006 : vector<16xf32> to vector<16x1xf32>
    %cst_297 = arith.constant 3.200000e+01 : f32
    %1008 = vector.broadcast %cst_297 : f32 to vector<16x1xf32>
    %1009 = arith.divf %1007, %1008 : vector<16x1xf32>
    %1010 = vector.broadcast %1009 : vector<16x1xf32> to vector<16x32xf32>
    %1011 = arith.subf %1005, %1010 : vector<16x32xf32>
    %1012 = arith.mulf %1011, %1011 : vector<16x32xf32>
    %cst_298 = arith.constant dense<0.000000e+00> : vector<16xf32>
    %1013 = vector.multi_reduction <add>, %1012, %cst_298 [1] : vector<16x32xf32> to vector<16xf32>
    %1014 = vector.shape_cast %1013 : vector<16xf32> to vector<16x1xf32>
    %cst_299 = arith.constant 3.200000e+01 : f32
    %1015 = vector.broadcast %cst_299 : f32 to vector<16x1xf32>
    %1016 = arith.divf %1014, %1015 : vector<16x1xf32>
    %1017 = vector.broadcast %1009 : vector<16x1xf32> to vector<16x32xf32>
    %1018 = arith.subf %1005, %1017 : vector<16x32xf32>
    %cst_300 = arith.constant 9.99999997E-7 : f32
    %1019 = vector.broadcast %cst_300 : f32 to vector<16x1xf32>
    %1020 = arith.addf %1016, %1019 : vector<16x1xf32>
    %1021 = math.rsqrt %1020 : vector<16x1xf32>
    %1022 = vector.broadcast %1021 : vector<16x1xf32> to vector<16x32xf32>
    %1023 = arith.mulf %1018, %1022 : vector<16x32xf32>
    %c0_301 = arith.constant 0 : index
    %c0_302 = arith.constant 0 : index
    %1024 = vector.load %arg38[%c0_301, %c0_302] : memref<16x32xf32, #tpu.memory_space<vmem>>, vector<16x32xf32>
    tpu.vector_store %arg38[%c0_301, %c0_302], %1023 {strides = array<i32>} : memref<16x32xf32, #tpu.memory_space<vmem>>, vector<16x32xf32>,
    %c0_303 = arith.constant 0 : index
    %c0_304 = arith.constant 0 : index
    %1025 = tpu.strided_load %arg38[%c0_303, %c0_304] {strides = array<i32: 2, 1>} : memref<16x32xf32, #tpu.memory_space<vmem>>, vector<2x32xf32>
    %c0_305 = arith.constant 0 : index
    %c0_306 = arith.constant 0 : index
    %1026 = vector.load %arg42[%c0_305, %c0_306] : memref<4x128xf32, #tpu.memory_space<vmem>>, vector<2x32xf32>
    tpu.vector_store %arg42[%c0_305, %c0_306], %1025 {strides = array<i32>} : memref<4x128xf32, #tpu.memory_space<vmem>>, vector<2x32xf32>,
    %c1_307 = arith.constant 1 : index
    %c0_308 = arith.constant 0 : index
    %1027 = tpu.strided_load %arg38[%c1_307, %c0_308] {strides = array<i32: 2, 1>} : memref<16x32xf32, #tpu.memory_space<vmem>>, vector<2x32xf32>
    %c0_309 = arith.constant 0 : index
    %c32_310 = arith.constant 32 : index
    %1028 = vector.load %arg42[%c0_309, %c32_310] : memref<4x128xf32, #tpu.memory_space<vmem>>, vector<2x32xf32>
    tpu.vector_store %arg42[%c0_309, %c32_310], %1027 {strides = array<i32>} : memref<4x128xf32, #tpu.memory_space<vmem>>, vector<2x32xf32>,
    %c4_311 = arith.constant 4 : index
    %c0_312 = arith.constant 0 : index
    %1029 = tpu.strided_load %arg38[%c4_311, %c0_312] {strides = array<i32: 2, 1>} : memref<16x32xf32, #tpu.memory_space<vmem>>, vector<2x32xf32>
    %c0_313 = arith.constant 0 : index
    %c64 = arith.constant 64 : index
    %1030 = vector.load %arg42[%c0_313, %c64] : memref<4x128xf32, #tpu.memory_space<vmem>>, vector<2x32xf32>
    tpu.vector_store %arg42[%c0_313, %c64], %1029 {strides = array<i32>} : memref<4x128xf32, #tpu.memory_space<vmem>>, vector<2x32xf32>,
    %c5_314 = arith.constant 5 : index
    %c0_315 = arith.constant 0 : index
    %1031 = tpu.strided_load %arg38[%c5_314, %c0_315] {strides = array<i32: 2, 1>} : memref<16x32xf32, #tpu.memory_space<vmem>>, vector<2x32xf32>
    %c0_316 = arith.constant 0 : index
    %c96 = arith.constant 96 : index
    %1032 = vector.load %arg42[%c0_316, %c96] : memref<4x128xf32, #tpu.memory_space<vmem>>, vector<2x32xf32>
    tpu.vector_store %arg42[%c0_316, %c96], %1031 {strides = array<i32>} : memref<4x128xf32, #tpu.memory_space<vmem>>, vector<2x32xf32>,
    %c8_317 = arith.constant 8 : index
    %c0_318 = arith.constant 0 : index
    %1033 = tpu.strided_load %arg38[%c8_317, %c0_318] {strides = array<i32: 2, 1>} : memref<16x32xf32, #tpu.memory_space<vmem>>, vector<2x32xf32>
    %c2 = arith.constant 2 : index
    %c0_319 = arith.constant 0 : index
    %1034 = vector.load %arg42[%c2, %c0_319] : memref<4x128xf32, #tpu.memory_space<vmem>>, vector<2x32xf32>
    tpu.vector_store %arg42[%c2, %c0_319], %1033 {strides = array<i32>} : memref<4x128xf32, #tpu.memory_space<vmem>>, vector<2x32xf32>,
    %c9_320 = arith.constant 9 : index
    %c0_321 = arith.constant 0 : index
    %1035 = tpu.strided_load %arg38[%c9_320, %c0_321] {strides = array<i32: 2, 1>} : memref<16x32xf32, #tpu.memory_space<vmem>>, vector<2x32xf32>
    %c2_322 = arith.constant 2 : index
    %c32_323 = arith.constant 32 : index
    %1036 = vector.load %arg42[%c2_322, %c32_323] : memref<4x128xf32, #tpu.memory_space<vmem>>, vector<2x32xf32>
    tpu.vector_store %arg42[%c2_322, %c32_323], %1035 {strides = array<i32>} : memref<4x128xf32, #tpu.memory_space<vmem>>, vector<2x32xf32>,
    %c12_324 = arith.constant 12 : index
    %c0_325 = arith.constant 0 : index
    %1037 = tpu.strided_load %arg38[%c12_324, %c0_325] {strides = array<i32: 2, 1>} : memref<16x32xf32, #tpu.memory_space<vmem>>, vector<2x32xf32>
    %c2_326 = arith.constant 2 : index
    %c64_327 = arith.constant 64 : index
    %1038 = vector.load %arg42[%c2_326, %c64_327] : memref<4x128xf32, #tpu.memory_space<vmem>>, vector<2x32xf32>
    tpu.vector_store %arg42[%c2_326, %c64_327], %1037 {strides = array<i32>} : memref<4x128xf32, #tpu.memory_space<vmem>>, vector<2x32xf32>,
    %c13 = arith.constant 13 : index
    %c0_328 = arith.constant 0 : index
    %1039 = tpu.strided_load %arg38[%c13, %c0_328] {strides = array<i32: 2, 1>} : memref<16x32xf32, #tpu.memory_space<vmem>>, vector<2x32xf32>
    %c2_329 = arith.constant 2 : index
    %c96_330 = arith.constant 96 : index
    %1040 = vector.load %arg42[%c2_329, %c96_330] : memref<4x128xf32, #tpu.memory_space<vmem>>, vector<2x32xf32>
    tpu.vector_store %arg42[%c2_329, %c96_330], %1039 {strides = array<i32>} : memref<4x128xf32, #tpu.memory_space<vmem>>, vector<2x32xf32>,
    %c0_331 = arith.constant 0 : index
    %c0_332 = arith.constant 0 : index
    %1041 = vector.load %arg42[%c0_331, %c0_332] : memref<4x128xf32, #tpu.memory_space<vmem>>, vector<4x128xf32>
    %1042 = arith.truncf %1041 : vector<4x128xf32> to vector<4x128xbf16>
    %c0_333 = arith.constant 0 : index
    %c0_334 = arith.constant 0 : index
    %1043 = vector.load %arg24[%c0_333, %c0_334] : memref<128x64xbf16, #tpu.memory_space<vmem>>, vector<128x64xbf16>
    %cst_335 = arith.constant dense<0.000000e+00> : vector<4x64xf32>
    %1044 = tpu.matmul %1042, %1043, %cst_335 {dimension_numbers = #tpu.dot_dimension_numbers<[1], [0], [0], [1], [0, 0, 1, 1], [], []>} : vector<4x128xbf16>, vector<128x64xbf16>, vector<4x64xf32> -> vector<4x64xf32>
    %c0_336 = arith.constant 0 : index
    %c0_337 = arith.constant 0 : index
    %1045 = vector.load %arg25[%c0_336, %c0_337] : memref<1x64xf32, #tpu.memory_space<vmem>>, vector<1x64xf32>
    %1046 = vector.broadcast %1045 : vector<1x64xf32> to vector<4x64xf32>
    %1047 = arith.addf %1044, %1046 : vector<4x64xf32>
    %cst_338 = arith.constant 0.000000e+00 : f32
    %1048 = vector.broadcast %cst_338 : f32 to vector<3x18x64xf32>
    %c0_339 = arith.constant 0 : index
    %c0_340 = arith.constant 0 : index
    %c0_341 = arith.constant 0 : index
    %1049 = vector.load %arg39[%c0_339, %c0_340, %c0_341] : memref<8x18x64xf32, #tpu.memory_space<vmem>>, vector<3x18x64xf32>
    tpu.vector_store %arg39[%c0_339, %c0_340, %c0_341], %1048 {strides = array<i32>} : memref<8x18x64xf32, #tpu.memory_space<vmem>>, vector<3x18x64xf32>,
    %cst_342 = arith.constant 0.000000e+00 : f32
    %1050 = vector.broadcast %cst_342 : f32 to vector<3x18x64xf32>
    %c5_343 = arith.constant 5 : index
    %c0_344 = arith.constant 0 : index
    %c0_345 = arith.constant 0 : index
    %1051 = vector.load %arg39[%c5_343, %c0_344, %c0_345] : memref<8x18x64xf32, #tpu.memory_space<vmem>>, vector<3x18x64xf32>
    tpu.vector_store %arg39[%c5_343, %c0_344, %c0_345], %1050 {strides = array<i32>} : memref<8x18x64xf32, #tpu.memory_space<vmem>>, vector<3x18x64xf32>,
    %cst_346 = arith.constant 0.000000e+00 : f32
    %1052 = vector.broadcast %cst_346 : f32 to vector<2x8x64xf32>
    %c3_347 = arith.constant 3 : index
    %c0_348 = arith.constant 0 : index
    %c0_349 = arith.constant 0 : index
    %1053 = vector.load %arg39[%c3_347, %c0_348, %c0_349] : memref<8x18x64xf32, #tpu.memory_space<vmem>>, vector<2x8x64xf32>
    tpu.vector_store %arg39[%c3_347, %c0_348, %c0_349], %1052 {strides = array<i32>} : memref<8x18x64xf32, #tpu.memory_space<vmem>>, vector<2x8x64xf32>,
    %cst_350 = arith.constant 0.000000e+00 : f32
    %1054 = vector.broadcast %cst_350 : f32 to vector<2x8x64xf32>
    %c3_351 = arith.constant 3 : index
    %c10_352 = arith.constant 10 : index
    %c0_353 = arith.constant 0 : index
    %1055 = vector.load %arg39[%c3_351, %c10_352, %c0_353] : memref<8x18x64xf32, #tpu.memory_space<vmem>>, vector<2x8x64xf32>
    tpu.vector_store %arg39[%c3_351, %c10_352, %c0_353], %1054 {strides = array<i32>} : memref<8x18x64xf32, #tpu.memory_space<vmem>>, vector<2x8x64xf32>,
    %1056 = vector.extract_strided_slice %1047 {offsets = [0, 0], sizes = [2, 64], strides = [1, 1]} : vector<4x64xf32> to vector<2x64xf32>
    %c3_354 = arith.constant 3 : index
    %c8_355 = arith.constant 8 : index
    %c0_356 = arith.constant 0 : index
    %1057 = vector.load %arg39[%c3_354, %c8_355, %c0_356] : memref<8x18x64xf32, #tpu.memory_space<vmem>>, vector<1x2x64xf32>
    %1058 = vector.shape_cast %1057 : vector<1x2x64xf32> to vector<2x64xf32>
    %1059 = vector.shape_cast %1056 : vector<2x64xf32> to vector<1x2x64xf32>
    tpu.vector_store %arg39[%c3_354, %c8_355, %c0_356], %1059 {strides = array<i32>} : memref<8x18x64xf32, #tpu.memory_space<vmem>>, vector<1x2x64xf32>,
    %1060 = vector.extract_strided_slice %1047 {offsets = [2, 0], sizes = [2, 64], strides = [1, 1]} : vector<4x64xf32> to vector<2x64xf32>
    %c4_357 = arith.constant 4 : index
    %c8_358 = arith.constant 8 : index
    %c0_359 = arith.constant 0 : index
    %1061 = vector.load %arg39[%c4_357, %c8_358, %c0_359] : memref<8x18x64xf32, #tpu.memory_space<vmem>>, vector<1x2x64xf32>
    %1062 = vector.shape_cast %1061 : vector<1x2x64xf32> to vector<2x64xf32>
    %1063 = vector.shape_cast %1060 : vector<2x64xf32> to vector<1x2x64xf32>
    tpu.vector_store %arg39[%c4_357, %c8_358, %c0_359], %1063 {strides = array<i32>} : memref<8x18x64xf32, #tpu.memory_space<vmem>>, vector<1x2x64xf32>,
    %c0_360 = arith.constant 0 : index
    %c0_361 = arith.constant 0 : index
    %c0_362 = arith.constant 0 : index
    %c0_363 = arith.constant 0 : index
    %1064 = vector.load %arg26[%c0_360, %c0_361, %c0_362, %c0_363] : memref<49x1x1x64xf32, #tpu.memory_space<vmem>>, vector<49x1x1x64xf32>
    %c0_364 = arith.constant 0 : index
    %c5_365 = arith.constant 5 : index
    %c0_366 = arith.constant 0 : index
    %1065 = vector.load %arg39[%c0_364, %c5_365, %c0_366] : memref<8x18x64xf32, #tpu.memory_space<vmem>>, vector<8x2x64xf32>
    %1066 = vector.extract_strided_slice %1065 {offsets = [0, 0, 0], sizes = [2, 2, 64], strides = [1, 1, 1]} : vector<8x2x64xf32> to vector<2x2x64xf32>
    %1067 = vector.extract_strided_slice %1064 {offsets = [0, 0, 0, 0], sizes = [1, 1, 1, 64], strides = [1, 1, 1, 1]} : vector<49x1x1x64xf32> to vector<1x1x1x64xf32>
    %1068 = vector.shape_cast %1067 : vector<1x1x1x64xf32> to vector<1x1x64xf32>
    %1069 = vector.broadcast %1068 : vector<1x1x64xf32> to vector<2x2x64xf32>
    %1070 = arith.mulf %1066, %1069 : vector<2x2x64xf32>
    %1071 = vector.extract_strided_slice %1065 {offsets = [1, 0, 0], sizes = [2, 2, 64], strides = [1, 1, 1]} : vector<8x2x64xf32> to vector<2x2x64xf32>
    %1072 = vector.extract_strided_slice %1064 {offsets = [7, 0, 0, 0], sizes = [1, 1, 1, 64], strides = [1, 1, 1, 1]} : vector<49x1x1x64xf32> to vector<1x1x1x64xf32>
    %1073 = vector.shape_cast %1072 : vector<1x1x1x64xf32> to vector<1x1x64xf32>
    %1074 = vector.broadcast %1073 : vector<1x1x64xf32> to vector<2x2x64xf32>
    %1075 = arith.mulf %1071, %1074 : vector<2x2x64xf32>
    %1076 = arith.addf %1070, %1075 : vector<2x2x64xf32>
    %1077 = vector.extract_strided_slice %1065 {offsets = [2, 0, 0], sizes = [2, 2, 64], strides = [1, 1, 1]} : vector<8x2x64xf32> to vector<2x2x64xf32>
    %1078 = vector.extract_strided_slice %1064 {offsets = [14, 0, 0, 0], sizes = [1, 1, 1, 64], strides = [1, 1, 1, 1]} : vector<49x1x1x64xf32> to vector<1x1x1x64xf32>
    %1079 = vector.shape_cast %1078 : vector<1x1x1x64xf32> to vector<1x1x64xf32>
    %1080 = vector.broadcast %1079 : vector<1x1x64xf32> to vector<2x2x64xf32>
    %1081 = arith.mulf %1077, %1080 : vector<2x2x64xf32>
    %1082 = arith.addf %1076, %1081 : vector<2x2x64xf32>
    %1083 = vector.extract_strided_slice %1065 {offsets = [3, 0, 0], sizes = [2, 2, 64], strides = [1, 1, 1]} : vector<8x2x64xf32> to vector<2x2x64xf32>
    %1084 = vector.extract_strided_slice %1064 {offsets = [21, 0, 0, 0], sizes = [1, 1, 1, 64], strides = [1, 1, 1, 1]} : vector<49x1x1x64xf32> to vector<1x1x1x64xf32>
    %1085 = vector.shape_cast %1084 : vector<1x1x1x64xf32> to vector<1x1x64xf32>
    %1086 = vector.broadcast %1085 : vector<1x1x64xf32> to vector<2x2x64xf32>
    %1087 = arith.mulf %1083, %1086 : vector<2x2x64xf32>
    %1088 = arith.addf %1082, %1087 : vector<2x2x64xf32>
    %1089 = vector.extract_strided_slice %1065 {offsets = [4, 0, 0], sizes = [2, 2, 64], strides = [1, 1, 1]} : vector<8x2x64xf32> to vector<2x2x64xf32>
    %1090 = vector.extract_strided_slice %1064 {offsets = [28, 0, 0, 0], sizes = [1, 1, 1, 64], strides = [1, 1, 1, 1]} : vector<49x1x1x64xf32> to vector<1x1x1x64xf32>
    %1091 = vector.shape_cast %1090 : vector<1x1x1x64xf32> to vector<1x1x64xf32>
    %1092 = vector.broadcast %1091 : vector<1x1x64xf32> to vector<2x2x64xf32>
    %1093 = arith.mulf %1089, %1092 : vector<2x2x64xf32>
    %1094 = arith.addf %1088, %1093 : vector<2x2x64xf32>
    %1095 = vector.extract_strided_slice %1065 {offsets = [5, 0, 0], sizes = [2, 2, 64], strides = [1, 1, 1]} : vector<8x2x64xf32> to vector<2x2x64xf32>
    %1096 = vector.extract_strided_slice %1064 {offsets = [35, 0, 0, 0], sizes = [1, 1, 1, 64], strides = [1, 1, 1, 1]} : vector<49x1x1x64xf32> to vector<1x1x1x64xf32>
    %1097 = vector.shape_cast %1096 : vector<1x1x1x64xf32> to vector<1x1x64xf32>
    %1098 = vector.broadcast %1097 : vector<1x1x64xf32> to vector<2x2x64xf32>
    %1099 = arith.mulf %1095, %1098 : vector<2x2x64xf32>
    %1100 = arith.addf %1094, %1099 : vector<2x2x64xf32>
    %1101 = vector.extract_strided_slice %1065 {offsets = [6, 0, 0], sizes = [2, 2, 64], strides = [1, 1, 1]} : vector<8x2x64xf32> to vector<2x2x64xf32>
    %1102 = vector.extract_strided_slice %1064 {offsets = [42, 0, 0, 0], sizes = [1, 1, 1, 64], strides = [1, 1, 1, 1]} : vector<49x1x1x64xf32> to vector<1x1x1x64xf32>
    %1103 = vector.shape_cast %1102 : vector<1x1x1x64xf32> to vector<1x1x64xf32>
    %1104 = vector.broadcast %1103 : vector<1x1x64xf32> to vector<2x2x64xf32>
    %1105 = arith.mulf %1101, %1104 : vector<2x2x64xf32>
    %1106 = arith.addf %1100, %1105 : vector<2x2x64xf32>
    %c0_367 = arith.constant 0 : index
    %c6_368 = arith.constant 6 : index
    %c0_369 = arith.constant 0 : index
    %1107 = vector.load %arg39[%c0_367, %c6_368, %c0_369] : memref<8x18x64xf32, #tpu.memory_space<vmem>>, vector<8x2x64xf32>
    %1108 = vector.extract_strided_slice %1107 {offsets = [0, 0, 0], sizes = [2, 2, 64], strides = [1, 1, 1]} : vector<8x2x64xf32> to vector<2x2x64xf32>
    %1109 = vector.extract_strided_slice %1064 {offsets = [1, 0, 0, 0], sizes = [1, 1, 1, 64], strides = [1, 1, 1, 1]} : vector<49x1x1x64xf32> to vector<1x1x1x64xf32>
    %1110 = vector.shape_cast %1109 : vector<1x1x1x64xf32> to vector<1x1x64xf32>
    %1111 = vector.broadcast %1110 : vector<1x1x64xf32> to vector<2x2x64xf32>
    %1112 = arith.mulf %1108, %1111 : vector<2x2x64xf32>
    %1113 = arith.addf %1106, %1112 : vector<2x2x64xf32>
    %1114 = vector.extract_strided_slice %1107 {offsets = [1, 0, 0], sizes = [2, 2, 64], strides = [1, 1, 1]} : vector<8x2x64xf32> to vector<2x2x64xf32>
    %1115 = vector.extract_strided_slice %1064 {offsets = [8, 0, 0, 0], sizes = [1, 1, 1, 64], strides = [1, 1, 1, 1]} : vector<49x1x1x64xf32> to vector<1x1x1x64xf32>
    %1116 = vector.shape_cast %1115 : vector<1x1x1x64xf32> to vector<1x1x64xf32>
    %1117 = vector.broadcast %1116 : vector<1x1x64xf32> to vector<2x2x64xf32>
    %1118 = arith.mulf %1114, %1117 : vector<2x2x64xf32>
    %1119 = arith.addf %1113, %1118 : vector<2x2x64xf32>
    %1120 = vector.extract_strided_slice %1107 {offsets = [2, 0, 0], sizes = [2, 2, 64], strides = [1, 1, 1]} : vector<8x2x64xf32> to vector<2x2x64xf32>
    %1121 = vector.extract_strided_slice %1064 {offsets = [15, 0, 0, 0], sizes = [1, 1, 1, 64], strides = [1, 1, 1, 1]} : vector<49x1x1x64xf32> to vector<1x1x1x64xf32>
    %1122 = vector.shape_cast %1121 : vector<1x1x1x64xf32> to vector<1x1x64xf32>
    %1123 = vector.broadcast %1122 : vector<1x1x64xf32> to vector<2x2x64xf32>
    %1124 = arith.mulf %1120, %1123 : vector<2x2x64xf32>
    %1125 = arith.addf %1119, %1124 : vector<2x2x64xf32>
    %1126 = vector.extract_strided_slice %1107 {offsets = [3, 0, 0], sizes = [2, 2, 64], strides = [1, 1, 1]} : vector<8x2x64xf32> to vector<2x2x64xf32>
    %1127 = vector.extract_strided_slice %1064 {offsets = [22, 0, 0, 0], sizes = [1, 1, 1, 64], strides = [1, 1, 1, 1]} : vector<49x1x1x64xf32> to vector<1x1x1x64xf32>
    %1128 = vector.shape_cast %1127 : vector<1x1x1x64xf32> to vector<1x1x64xf32>
    %1129 = vector.broadcast %1128 : vector<1x1x64xf32> to vector<2x2x64xf32>
    %1130 = arith.mulf %1126, %1129 : vector<2x2x64xf32>
    %1131 = arith.addf %1125, %1130 : vector<2x2x64xf32>
    %1132 = vector.extract_strided_slice %1107 {offsets = [4, 0, 0], sizes = [2, 2, 64], strides = [1, 1, 1]} : vector<8x2x64xf32> to vector<2x2x64xf32>
    %1133 = vector.extract_strided_slice %1064 {offsets = [29, 0, 0, 0], sizes = [1, 1, 1, 64], strides = [1, 1, 1, 1]} : vector<49x1x1x64xf32> to vector<1x1x1x64xf32>
    %1134 = vector.shape_cast %1133 : vector<1x1x1x64xf32> to vector<1x1x64xf32>
    %1135 = vector.broadcast %1134 : vector<1x1x64xf32> to vector<2x2x64xf32>
    %1136 = arith.mulf %1132, %1135 : vector<2x2x64xf32>
    %1137 = arith.addf %1131, %1136 : vector<2x2x64xf32>
    %1138 = vector.extract_strided_slice %1107 {offsets = [5, 0, 0], sizes = [2, 2, 64], strides = [1, 1, 1]} : vector<8x2x64xf32> to vector<2x2x64xf32>
    %1139 = vector.extract_strided_slice %1064 {offsets = [36, 0, 0, 0], sizes = [1, 1, 1, 64], strides = [1, 1, 1, 1]} : vector<49x1x1x64xf32> to vector<1x1x1x64xf32>
    %1140 = vector.shape_cast %1139 : vector<1x1x1x64xf32> to vector<1x1x64xf32>
    %1141 = vector.broadcast %1140 : vector<1x1x64xf32> to vector<2x2x64xf32>
    %1142 = arith.mulf %1138, %1141 : vector<2x2x64xf32>
    %1143 = arith.addf %1137, %1142 : vector<2x2x64xf32>
    %1144 = vector.extract_strided_slice %1107 {offsets = [6, 0, 0], sizes = [2, 2, 64], strides = [1, 1, 1]} : vector<8x2x64xf32> to vector<2x2x64xf32>
    %1145 = vector.extract_strided_slice %1064 {offsets = [43, 0, 0, 0], sizes = [1, 1, 1, 64], strides = [1, 1, 1, 1]} : vector<49x1x1x64xf32> to vector<1x1x1x64xf32>
    %1146 = vector.shape_cast %1145 : vector<1x1x1x64xf32> to vector<1x1x64xf32>
    %1147 = vector.broadcast %1146 : vector<1x1x64xf32> to vector<2x2x64xf32>
    %1148 = arith.mulf %1144, %1147 : vector<2x2x64xf32>
    %1149 = arith.addf %1143, %1148 : vector<2x2x64xf32>
    %c0_370 = arith.constant 0 : index
    %c7_371 = arith.constant 7 : index
    %c0_372 = arith.constant 0 : index
    %1150 = vector.load %arg39[%c0_370, %c7_371, %c0_372] : memref<8x18x64xf32, #tpu.memory_space<vmem>>, vector<8x2x64xf32>
    %1151 = vector.extract_strided_slice %1150 {offsets = [0, 0, 0], sizes = [2, 2, 64], strides = [1, 1, 1]} : vector<8x2x64xf32> to vector<2x2x64xf32>
    %1152 = vector.extract_strided_slice %1064 {offsets = [2, 0, 0, 0], sizes = [1, 1, 1, 64], strides = [1, 1, 1, 1]} : vector<49x1x1x64xf32> to vector<1x1x1x64xf32>
    %1153 = vector.shape_cast %1152 : vector<1x1x1x64xf32> to vector<1x1x64xf32>
    %1154 = vector.broadcast %1153 : vector<1x1x64xf32> to vector<2x2x64xf32>
    %1155 = arith.mulf %1151, %1154 : vector<2x2x64xf32>
    %1156 = arith.addf %1149, %1155 : vector<2x2x64xf32>
    %1157 = vector.extract_strided_slice %1150 {offsets = [1, 0, 0], sizes = [2, 2, 64], strides = [1, 1, 1]} : vector<8x2x64xf32> to vector<2x2x64xf32>
    %1158 = vector.extract_strided_slice %1064 {offsets = [9, 0, 0, 0], sizes = [1, 1, 1, 64], strides = [1, 1, 1, 1]} : vector<49x1x1x64xf32> to vector<1x1x1x64xf32>
    %1159 = vector.shape_cast %1158 : vector<1x1x1x64xf32> to vector<1x1x64xf32>
    %1160 = vector.broadcast %1159 : vector<1x1x64xf32> to vector<2x2x64xf32>
    %1161 = arith.mulf %1157, %1160 : vector<2x2x64xf32>
    %1162 = arith.addf %1156, %1161 : vector<2x2x64xf32>
    %1163 = vector.extract_strided_slice %1150 {offsets = [2, 0, 0], sizes = [2, 2, 64], strides = [1, 1, 1]} : vector<8x2x64xf32> to vector<2x2x64xf32>
    %1164 = vector.extract_strided_slice %1064 {offsets = [16, 0, 0, 0], sizes = [1, 1, 1, 64], strides = [1, 1, 1, 1]} : vector<49x1x1x64xf32> to vector<1x1x1x64xf32>
    %1165 = vector.shape_cast %1164 : vector<1x1x1x64xf32> to vector<1x1x64xf32>
    %1166 = vector.broadcast %1165 : vector<1x1x64xf32> to vector<2x2x64xf32>
    %1167 = arith.mulf %1163, %1166 : vector<2x2x64xf32>
    %1168 = arith.addf %1162, %1167 : vector<2x2x64xf32>
    %1169 = vector.extract_strided_slice %1150 {offsets = [3, 0, 0], sizes = [2, 2, 64], strides = [1, 1, 1]} : vector<8x2x64xf32> to vector<2x2x64xf32>
    %1170 = vector.extract_strided_slice %1064 {offsets = [23, 0, 0, 0], sizes = [1, 1, 1, 64], strides = [1, 1, 1, 1]} : vector<49x1x1x64xf32> to vector<1x1x1x64xf32>
    %1171 = vector.shape_cast %1170 : vector<1x1x1x64xf32> to vector<1x1x64xf32>
    %1172 = vector.broadcast %1171 : vector<1x1x64xf32> to vector<2x2x64xf32>
    %1173 = arith.mulf %1169, %1172 : vector<2x2x64xf32>
    %1174 = arith.addf %1168, %1173 : vector<2x2x64xf32>
    %1175 = vector.extract_strided_slice %1150 {offsets = [4, 0, 0], sizes = [2, 2, 64], strides = [1, 1, 1]} : vector<8x2x64xf32> to vector<2x2x64xf32>
    %1176 = vector.extract_strided_slice %1064 {offsets = [30, 0, 0, 0], sizes = [1, 1, 1, 64], strides = [1, 1, 1, 1]} : vector<49x1x1x64xf32> to vector<1x1x1x64xf32>
    %1177 = vector.shape_cast %1176 : vector<1x1x1x64xf32> to vector<1x1x64xf32>
    %1178 = vector.broadcast %1177 : vector<1x1x64xf32> to vector<2x2x64xf32>
    %1179 = arith.mulf %1175, %1178 : vector<2x2x64xf32>
    %1180 = arith.addf %1174, %1179 : vector<2x2x64xf32>
    %1181 = vector.extract_strided_slice %1150 {offsets = [5, 0, 0], sizes = [2, 2, 64], strides = [1, 1, 1]} : vector<8x2x64xf32> to vector<2x2x64xf32>
    %1182 = vector.extract_strided_slice %1064 {offsets = [37, 0, 0, 0], sizes = [1, 1, 1, 64], strides = [1, 1, 1, 1]} : vector<49x1x1x64xf32> to vector<1x1x1x64xf32>
    %1183 = vector.shape_cast %1182 : vector<1x1x1x64xf32> to vector<1x1x64xf32>
    %1184 = vector.broadcast %1183 : vector<1x1x64xf32> to vector<2x2x64xf32>
    %1185 = arith.mulf %1181, %1184 : vector<2x2x64xf32>
    %1186 = arith.addf %1180, %1185 : vector<2x2x64xf32>
    %1187 = vector.extract_strided_slice %1150 {offsets = [6, 0, 0], sizes = [2, 2, 64], strides = [1, 1, 1]} : vector<8x2x64xf32> to vector<2x2x64xf32>
    %1188 = vector.extract_strided_slice %1064 {offsets = [44, 0, 0, 0], sizes = [1, 1, 1, 64], strides = [1, 1, 1, 1]} : vector<49x1x1x64xf32> to vector<1x1x1x64xf32>
    %1189 = vector.shape_cast %1188 : vector<1x1x1x64xf32> to vector<1x1x64xf32>
    %1190 = vector.broadcast %1189 : vector<1x1x64xf32> to vector<2x2x64xf32>
    %1191 = arith.mulf %1187, %1190 : vector<2x2x64xf32>
    %1192 = arith.addf %1186, %1191 : vector<2x2x64xf32>
    %c0_373 = arith.constant 0 : index
    %c8_374 = arith.constant 8 : index
    %c0_375 = arith.constant 0 : index
    %1193 = vector.load %arg39[%c0_373, %c8_374, %c0_375] : memref<8x18x64xf32, #tpu.memory_space<vmem>>, vector<8x2x64xf32>
    %1194 = vector.extract_strided_slice %1193 {offsets = [0, 0, 0], sizes = [2, 2, 64], strides = [1, 1, 1]} : vector<8x2x64xf32> to vector<2x2x64xf32>
    %1195 = vector.extract_strided_slice %1064 {offsets = [3, 0, 0, 0], sizes = [1, 1, 1, 64], strides = [1, 1, 1, 1]} : vector<49x1x1x64xf32> to vector<1x1x1x64xf32>
    %1196 = vector.shape_cast %1195 : vector<1x1x1x64xf32> to vector<1x1x64xf32>
    %1197 = vector.broadcast %1196 : vector<1x1x64xf32> to vector<2x2x64xf32>
    %1198 = arith.mulf %1194, %1197 : vector<2x2x64xf32>
    %1199 = arith.addf %1192, %1198 : vector<2x2x64xf32>
    %1200 = vector.extract_strided_slice %1193 {offsets = [1, 0, 0], sizes = [2, 2, 64], strides = [1, 1, 1]} : vector<8x2x64xf32> to vector<2x2x64xf32>
    %1201 = vector.extract_strided_slice %1064 {offsets = [10, 0, 0, 0], sizes = [1, 1, 1, 64], strides = [1, 1, 1, 1]} : vector<49x1x1x64xf32> to vector<1x1x1x64xf32>
    %1202 = vector.shape_cast %1201 : vector<1x1x1x64xf32> to vector<1x1x64xf32>
    %1203 = vector.broadcast %1202 : vector<1x1x64xf32> to vector<2x2x64xf32>
    %1204 = arith.mulf %1200, %1203 : vector<2x2x64xf32>
    %1205 = arith.addf %1199, %1204 : vector<2x2x64xf32>
    %1206 = vector.extract_strided_slice %1193 {offsets = [2, 0, 0], sizes = [2, 2, 64], strides = [1, 1, 1]} : vector<8x2x64xf32> to vector<2x2x64xf32>
    %1207 = vector.extract_strided_slice %1064 {offsets = [17, 0, 0, 0], sizes = [1, 1, 1, 64], strides = [1, 1, 1, 1]} : vector<49x1x1x64xf32> to vector<1x1x1x64xf32>
    %1208 = vector.shape_cast %1207 : vector<1x1x1x64xf32> to vector<1x1x64xf32>
    %1209 = vector.broadcast %1208 : vector<1x1x64xf32> to vector<2x2x64xf32>
    %1210 = arith.mulf %1206, %1209 : vector<2x2x64xf32>
    %1211 = arith.addf %1205, %1210 : vector<2x2x64xf32>
    %1212 = vector.extract_strided_slice %1193 {offsets = [3, 0, 0], sizes = [2, 2, 64], strides = [1, 1, 1]} : vector<8x2x64xf32> to vector<2x2x64xf32>
    %1213 = vector.extract_strided_slice %1064 {offsets = [24, 0, 0, 0], sizes = [1, 1, 1, 64], strides = [1, 1, 1, 1]} : vector<49x1x1x64xf32> to vector<1x1x1x64xf32>
    %1214 = vector.shape_cast %1213 : vector<1x1x1x64xf32> to vector<1x1x64xf32>
    %1215 = vector.broadcast %1214 : vector<1x1x64xf32> to vector<2x2x64xf32>
    %1216 = arith.mulf %1212, %1215 : vector<2x2x64xf32>
    %1217 = arith.addf %1211, %1216 : vector<2x2x64xf32>
    %1218 = vector.extract_strided_slice %1193 {offsets = [4, 0, 0], sizes = [2, 2, 64], strides = [1, 1, 1]} : vector<8x2x64xf32> to vector<2x2x64xf32>
    %1219 = vector.extract_strided_slice %1064 {offsets = [31, 0, 0, 0], sizes = [1, 1, 1, 64], strides = [1, 1, 1, 1]} : vector<49x1x1x64xf32> to vector<1x1x1x64xf32>
    %1220 = vector.shape_cast %1219 : vector<1x1x1x64xf32> to vector<1x1x64xf32>
    %1221 = vector.broadcast %1220 : vector<1x1x64xf32> to vector<2x2x64xf32>
    %1222 = arith.mulf %1218, %1221 : vector<2x2x64xf32>
    %1223 = arith.addf %1217, %1222 : vector<2x2x64xf32>
    %1224 = vector.extract_strided_slice %1193 {offsets = [5, 0, 0], sizes = [2, 2, 64], strides = [1, 1, 1]} : vector<8x2x64xf32> to vector<2x2x64xf32>
    %1225 = vector.extract_strided_slice %1064 {offsets = [38, 0, 0, 0], sizes = [1, 1, 1, 64], strides = [1, 1, 1, 1]} : vector<49x1x1x64xf32> to vector<1x1x1x64xf32>
    %1226 = vector.shape_cast %1225 : vector<1x1x1x64xf32> to vector<1x1x64xf32>
    %1227 = vector.broadcast %1226 : vector<1x1x64xf32> to vector<2x2x64xf32>
    %1228 = arith.mulf %1224, %1227 : vector<2x2x64xf32>
    %1229 = arith.addf %1223, %1228 : vector<2x2x64xf32>
    %1230 = vector.extract_strided_slice %1193 {offsets = [6, 0, 0], sizes = [2, 2, 64], strides = [1, 1, 1]} : vector<8x2x64xf32> to vector<2x2x64xf32>
    %1231 = vector.extract_strided_slice %1064 {offsets = [45, 0, 0, 0], sizes = [1, 1, 1, 64], strides = [1, 1, 1, 1]} : vector<49x1x1x64xf32> to vector<1x1x1x64xf32>
    %1232 = vector.shape_cast %1231 : vector<1x1x1x64xf32> to vector<1x1x64xf32>
    %1233 = vector.broadcast %1232 : vector<1x1x64xf32> to vector<2x2x64xf32>
    %1234 = arith.mulf %1230, %1233 : vector<2x2x64xf32>
    %1235 = arith.addf %1229, %1234 : vector<2x2x64xf32>
    %c0_376 = arith.constant 0 : index
    %c9_377 = arith.constant 9 : index
    %c0_378 = arith.constant 0 : index
    %1236 = vector.load %arg39[%c0_376, %c9_377, %c0_378] : memref<8x18x64xf32, #tpu.memory_space<vmem>>, vector<8x2x64xf32>
    %1237 = vector.extract_strided_slice %1236 {offsets = [0, 0, 0], sizes = [2, 2, 64], strides = [1, 1, 1]} : vector<8x2x64xf32> to vector<2x2x64xf32>
    %1238 = vector.extract_strided_slice %1064 {offsets = [4, 0, 0, 0], sizes = [1, 1, 1, 64], strides = [1, 1, 1, 1]} : vector<49x1x1x64xf32> to vector<1x1x1x64xf32>
    %1239 = vector.shape_cast %1238 : vector<1x1x1x64xf32> to vector<1x1x64xf32>
    %1240 = vector.broadcast %1239 : vector<1x1x64xf32> to vector<2x2x64xf32>
    %1241 = arith.mulf %1237, %1240 : vector<2x2x64xf32>
    %1242 = arith.addf %1235, %1241 : vector<2x2x64xf32>
    %1243 = vector.extract_strided_slice %1236 {offsets = [1, 0, 0], sizes = [2, 2, 64], strides = [1, 1, 1]} : vector<8x2x64xf32> to vector<2x2x64xf32>
    %1244 = vector.extract_strided_slice %1064 {offsets = [11, 0, 0, 0], sizes = [1, 1, 1, 64], strides = [1, 1, 1, 1]} : vector<49x1x1x64xf32> to vector<1x1x1x64xf32>
    %1245 = vector.shape_cast %1244 : vector<1x1x1x64xf32> to vector<1x1x64xf32>
    %1246 = vector.broadcast %1245 : vector<1x1x64xf32> to vector<2x2x64xf32>
    %1247 = arith.mulf %1243, %1246 : vector<2x2x64xf32>
    %1248 = arith.addf %1242, %1247 : vector<2x2x64xf32>
    %1249 = vector.extract_strided_slice %1236 {offsets = [2, 0, 0], sizes = [2, 2, 64], strides = [1, 1, 1]} : vector<8x2x64xf32> to vector<2x2x64xf32>
    %1250 = vector.extract_strided_slice %1064 {offsets = [18, 0, 0, 0], sizes = [1, 1, 1, 64], strides = [1, 1, 1, 1]} : vector<49x1x1x64xf32> to vector<1x1x1x64xf32>
    %1251 = vector.shape_cast %1250 : vector<1x1x1x64xf32> to vector<1x1x64xf32>
    %1252 = vector.broadcast %1251 : vector<1x1x64xf32> to vector<2x2x64xf32>
    %1253 = arith.mulf %1249, %1252 : vector<2x2x64xf32>
    %1254 = arith.addf %1248, %1253 : vector<2x2x64xf32>
    %1255 = vector.extract_strided_slice %1236 {offsets = [3, 0, 0], sizes = [2, 2, 64], strides = [1, 1, 1]} : vector<8x2x64xf32> to vector<2x2x64xf32>
    %1256 = vector.extract_strided_slice %1064 {offsets = [25, 0, 0, 0], sizes = [1, 1, 1, 64], strides = [1, 1, 1, 1]} : vector<49x1x1x64xf32> to vector<1x1x1x64xf32>
    %1257 = vector.shape_cast %1256 : vector<1x1x1x64xf32> to vector<1x1x64xf32>
    %1258 = vector.broadcast %1257 : vector<1x1x64xf32> to vector<2x2x64xf32>
    %1259 = arith.mulf %1255, %1258 : vector<2x2x64xf32>
    %1260 = arith.addf %1254, %1259 : vector<2x2x64xf32>
    %1261 = vector.extract_strided_slice %1236 {offsets = [4, 0, 0], sizes = [2, 2, 64], strides = [1, 1, 1]} : vector<8x2x64xf32> to vector<2x2x64xf32>
    %1262 = vector.extract_strided_slice %1064 {offsets = [32, 0, 0, 0], sizes = [1, 1, 1, 64], strides = [1, 1, 1, 1]} : vector<49x1x1x64xf32> to vector<1x1x1x64xf32>
    %1263 = vector.shape_cast %1262 : vector<1x1x1x64xf32> to vector<1x1x64xf32>
    %1264 = vector.broadcast %1263 : vector<1x1x64xf32> to vector<2x2x64xf32>
    %1265 = arith.mulf %1261, %1264 : vector<2x2x64xf32>
    %1266 = arith.addf %1260, %1265 : vector<2x2x64xf32>
    %1267 = vector.extract_strided_slice %1236 {offsets = [5, 0, 0], sizes = [2, 2, 64], strides = [1, 1, 1]} : vector<8x2x64xf32> to vector<2x2x64xf32>
    %1268 = vector.extract_strided_slice %1064 {offsets = [39, 0, 0, 0], sizes = [1, 1, 1, 64], strides = [1, 1, 1, 1]} : vector<49x1x1x64xf32> to vector<1x1x1x64xf32>
    %1269 = vector.shape_cast %1268 : vector<1x1x1x64xf32> to vector<1x1x64xf32>
    %1270 = vector.broadcast %1269 : vector<1x1x64xf32> to vector<2x2x64xf32>
    %1271 = arith.mulf %1267, %1270 : vector<2x2x64xf32>
    %1272 = arith.addf %1266, %1271 : vector<2x2x64xf32>
    %1273 = vector.extract_strided_slice %1236 {offsets = [6, 0, 0], sizes = [2, 2, 64], strides = [1, 1, 1]} : vector<8x2x64xf32> to vector<2x2x64xf32>
    %1274 = vector.extract_strided_slice %1064 {offsets = [46, 0, 0, 0], sizes = [1, 1, 1, 64], strides = [1, 1, 1, 1]} : vector<49x1x1x64xf32> to vector<1x1x1x64xf32>
    %1275 = vector.shape_cast %1274 : vector<1x1x1x64xf32> to vector<1x1x64xf32>
    %1276 = vector.broadcast %1275 : vector<1x1x64xf32> to vector<2x2x64xf32>
    %1277 = arith.mulf %1273, %1276 : vector<2x2x64xf32>
    %1278 = arith.addf %1272, %1277 : vector<2x2x64xf32>
    %c0_379 = arith.constant 0 : index
    %c10_380 = arith.constant 10 : index
    %c0_381 = arith.constant 0 : index
    %1279 = vector.load %arg39[%c0_379, %c10_380, %c0_381] : memref<8x18x64xf32, #tpu.memory_space<vmem>>, vector<8x2x64xf32>
    %1280 = vector.extract_strided_slice %1279 {offsets = [0, 0, 0], sizes = [2, 2, 64], strides = [1, 1, 1]} : vector<8x2x64xf32> to vector<2x2x64xf32>
    %1281 = vector.extract_strided_slice %1064 {offsets = [5, 0, 0, 0], sizes = [1, 1, 1, 64], strides = [1, 1, 1, 1]} : vector<49x1x1x64xf32> to vector<1x1x1x64xf32>
    %1282 = vector.shape_cast %1281 : vector<1x1x1x64xf32> to vector<1x1x64xf32>
    %1283 = vector.broadcast %1282 : vector<1x1x64xf32> to vector<2x2x64xf32>
    %1284 = arith.mulf %1280, %1283 : vector<2x2x64xf32>
    %1285 = arith.addf %1278, %1284 : vector<2x2x64xf32>
    %1286 = vector.extract_strided_slice %1279 {offsets = [1, 0, 0], sizes = [2, 2, 64], strides = [1, 1, 1]} : vector<8x2x64xf32> to vector<2x2x64xf32>
    %1287 = vector.extract_strided_slice %1064 {offsets = [12, 0, 0, 0], sizes = [1, 1, 1, 64], strides = [1, 1, 1, 1]} : vector<49x1x1x64xf32> to vector<1x1x1x64xf32>
    %1288 = vector.shape_cast %1287 : vector<1x1x1x64xf32> to vector<1x1x64xf32>
    %1289 = vector.broadcast %1288 : vector<1x1x64xf32> to vector<2x2x64xf32>
    %1290 = arith.mulf %1286, %1289 : vector<2x2x64xf32>
    %1291 = arith.addf %1285, %1290 : vector<2x2x64xf32>
    %1292 = vector.extract_strided_slice %1279 {offsets = [2, 0, 0], sizes = [2, 2, 64], strides = [1, 1, 1]} : vector<8x2x64xf32> to vector<2x2x64xf32>
    %1293 = vector.extract_strided_slice %1064 {offsets = [19, 0, 0, 0], sizes = [1, 1, 1, 64], strides = [1, 1, 1, 1]} : vector<49x1x1x64xf32> to vector<1x1x1x64xf32>
    %1294 = vector.shape_cast %1293 : vector<1x1x1x64xf32> to vector<1x1x64xf32>
    %1295 = vector.broadcast %1294 : vector<1x1x64xf32> to vector<2x2x64xf32>
    %1296 = arith.mulf %1292, %1295 : vector<2x2x64xf32>
    %1297 = arith.addf %1291, %1296 : vector<2x2x64xf32>
    %1298 = vector.extract_strided_slice %1279 {offsets = [3, 0, 0], sizes = [2, 2, 64], strides = [1, 1, 1]} : vector<8x2x64xf32> to vector<2x2x64xf32>
    %1299 = vector.extract_strided_slice %1064 {offsets = [26, 0, 0, 0], sizes = [1, 1, 1, 64], strides = [1, 1, 1, 1]} : vector<49x1x1x64xf32> to vector<1x1x1x64xf32>
    %1300 = vector.shape_cast %1299 : vector<1x1x1x64xf32> to vector<1x1x64xf32>
    %1301 = vector.broadcast %1300 : vector<1x1x64xf32> to vector<2x2x64xf32>
    %1302 = arith.mulf %1298, %1301 : vector<2x2x64xf32>
    %1303 = arith.addf %1297, %1302 : vector<2x2x64xf32>
    %1304 = vector.extract_strided_slice %1279 {offsets = [4, 0, 0], sizes = [2, 2, 64], strides = [1, 1, 1]} : vector<8x2x64xf32> to vector<2x2x64xf32>
    %1305 = vector.extract_strided_slice %1064 {offsets = [33, 0, 0, 0], sizes = [1, 1, 1, 64], strides = [1, 1, 1, 1]} : vector<49x1x1x64xf32> to vector<1x1x1x64xf32>
    %1306 = vector.shape_cast %1305 : vector<1x1x1x64xf32> to vector<1x1x64xf32>
    %1307 = vector.broadcast %1306 : vector<1x1x64xf32> to vector<2x2x64xf32>
    %1308 = arith.mulf %1304, %1307 : vector<2x2x64xf32>
    %1309 = arith.addf %1303, %1308 : vector<2x2x64xf32>
    %1310 = vector.extract_strided_slice %1279 {offsets = [5, 0, 0], sizes = [2, 2, 64], strides = [1, 1, 1]} : vector<8x2x64xf32> to vector<2x2x64xf32>
    %1311 = vector.extract_strided_slice %1064 {offsets = [40, 0, 0, 0], sizes = [1, 1, 1, 64], strides = [1, 1, 1, 1]} : vector<49x1x1x64xf32> to vector<1x1x1x64xf32>
    %1312 = vector.shape_cast %1311 : vector<1x1x1x64xf32> to vector<1x1x64xf32>
    %1313 = vector.broadcast %1312 : vector<1x1x64xf32> to vector<2x2x64xf32>
    %1314 = arith.mulf %1310, %1313 : vector<2x2x64xf32>
    %1315 = arith.addf %1309, %1314 : vector<2x2x64xf32>
    %1316 = vector.extract_strided_slice %1279 {offsets = [6, 0, 0], sizes = [2, 2, 64], strides = [1, 1, 1]} : vector<8x2x64xf32> to vector<2x2x64xf32>
    %1317 = vector.extract_strided_slice %1064 {offsets = [47, 0, 0, 0], sizes = [1, 1, 1, 64], strides = [1, 1, 1, 1]} : vector<49x1x1x64xf32> to vector<1x1x1x64xf32>
    %1318 = vector.shape_cast %1317 : vector<1x1x1x64xf32> to vector<1x1x64xf32>
    %1319 = vector.broadcast %1318 : vector<1x1x64xf32> to vector<2x2x64xf32>
    %1320 = arith.mulf %1316, %1319 : vector<2x2x64xf32>
    %1321 = arith.addf %1315, %1320 : vector<2x2x64xf32>
    %c0_382 = arith.constant 0 : index
    %c11_383 = arith.constant 11 : index
    %c0_384 = arith.constant 0 : index
    %1322 = vector.load %arg39[%c0_382, %c11_383, %c0_384] : memref<8x18x64xf32, #tpu.memory_space<vmem>>, vector<8x2x64xf32>
    %1323 = vector.extract_strided_slice %1322 {offsets = [0, 0, 0], sizes = [2, 2, 64], strides = [1, 1, 1]} : vector<8x2x64xf32> to vector<2x2x64xf32>
    %1324 = vector.extract_strided_slice %1064 {offsets = [6, 0, 0, 0], sizes = [1, 1, 1, 64], strides = [1, 1, 1, 1]} : vector<49x1x1x64xf32> to vector<1x1x1x64xf32>
    %1325 = vector.shape_cast %1324 : vector<1x1x1x64xf32> to vector<1x1x64xf32>
    %1326 = vector.broadcast %1325 : vector<1x1x64xf32> to vector<2x2x64xf32>
    %1327 = arith.mulf %1323, %1326 : vector<2x2x64xf32>
    %1328 = arith.addf %1321, %1327 : vector<2x2x64xf32>
    %1329 = vector.extract_strided_slice %1322 {offsets = [1, 0, 0], sizes = [2, 2, 64], strides = [1, 1, 1]} : vector<8x2x64xf32> to vector<2x2x64xf32>
    %1330 = vector.extract_strided_slice %1064 {offsets = [13, 0, 0, 0], sizes = [1, 1, 1, 64], strides = [1, 1, 1, 1]} : vector<49x1x1x64xf32> to vector<1x1x1x64xf32>
    %1331 = vector.shape_cast %1330 : vector<1x1x1x64xf32> to vector<1x1x64xf32>
    %1332 = vector.broadcast %1331 : vector<1x1x64xf32> to vector<2x2x64xf32>
    %1333 = arith.mulf %1329, %1332 : vector<2x2x64xf32>
    %1334 = arith.addf %1328, %1333 : vector<2x2x64xf32>
    %1335 = vector.extract_strided_slice %1322 {offsets = [2, 0, 0], sizes = [2, 2, 64], strides = [1, 1, 1]} : vector<8x2x64xf32> to vector<2x2x64xf32>
    %1336 = vector.extract_strided_slice %1064 {offsets = [20, 0, 0, 0], sizes = [1, 1, 1, 64], strides = [1, 1, 1, 1]} : vector<49x1x1x64xf32> to vector<1x1x1x64xf32>
    %1337 = vector.shape_cast %1336 : vector<1x1x1x64xf32> to vector<1x1x64xf32>
    %1338 = vector.broadcast %1337 : vector<1x1x64xf32> to vector<2x2x64xf32>
    %1339 = arith.mulf %1335, %1338 : vector<2x2x64xf32>
    %1340 = arith.addf %1334, %1339 : vector<2x2x64xf32>
    %1341 = vector.extract_strided_slice %1322 {offsets = [3, 0, 0], sizes = [2, 2, 64], strides = [1, 1, 1]} : vector<8x2x64xf32> to vector<2x2x64xf32>
    %1342 = vector.extract_strided_slice %1064 {offsets = [27, 0, 0, 0], sizes = [1, 1, 1, 64], strides = [1, 1, 1, 1]} : vector<49x1x1x64xf32> to vector<1x1x1x64xf32>
    %1343 = vector.shape_cast %1342 : vector<1x1x1x64xf32> to vector<1x1x64xf32>
    %1344 = vector.broadcast %1343 : vector<1x1x64xf32> to vector<2x2x64xf32>
    %1345 = arith.mulf %1341, %1344 : vector<2x2x64xf32>
    %1346 = arith.addf %1340, %1345 : vector<2x2x64xf32>
    %1347 = vector.extract_strided_slice %1322 {offsets = [4, 0, 0], sizes = [2, 2, 64], strides = [1, 1, 1]} : vector<8x2x64xf32> to vector<2x2x64xf32>
    %1348 = vector.extract_strided_slice %1064 {offsets = [34, 0, 0, 0], sizes = [1, 1, 1, 64], strides = [1, 1, 1, 1]} : vector<49x1x1x64xf32> to vector<1x1x1x64xf32>
    %1349 = vector.shape_cast %1348 : vector<1x1x1x64xf32> to vector<1x1x64xf32>
    %1350 = vector.broadcast %1349 : vector<1x1x64xf32> to vector<2x2x64xf32>
    %1351 = arith.mulf %1347, %1350 : vector<2x2x64xf32>
    %1352 = arith.addf %1346, %1351 : vector<2x2x64xf32>
    %1353 = vector.extract_strided_slice %1322 {offsets = [5, 0, 0], sizes = [2, 2, 64], strides = [1, 1, 1]} : vector<8x2x64xf32> to vector<2x2x64xf32>
    %1354 = vector.extract_strided_slice %1064 {offsets = [41, 0, 0, 0], sizes = [1, 1, 1, 64], strides = [1, 1, 1, 1]} : vector<49x1x1x64xf32> to vector<1x1x1x64xf32>
    %1355 = vector.shape_cast %1354 : vector<1x1x1x64xf32> to vector<1x1x64xf32>
    %1356 = vector.broadcast %1355 : vector<1x1x64xf32> to vector<2x2x64xf32>
    %1357 = arith.mulf %1353, %1356 : vector<2x2x64xf32>
    %1358 = arith.addf %1352, %1357 : vector<2x2x64xf32>
    %1359 = vector.extract_strided_slice %1322 {offsets = [6, 0, 0], sizes = [2, 2, 64], strides = [1, 1, 1]} : vector<8x2x64xf32> to vector<2x2x64xf32>
    %1360 = vector.extract_strided_slice %1064 {offsets = [48, 0, 0, 0], sizes = [1, 1, 1, 64], strides = [1, 1, 1, 1]} : vector<49x1x1x64xf32> to vector<1x1x1x64xf32>
    %1361 = vector.shape_cast %1360 : vector<1x1x1x64xf32> to vector<1x1x64xf32>
    %1362 = vector.broadcast %1361 : vector<1x1x64xf32> to vector<2x2x64xf32>
    %1363 = arith.mulf %1359, %1362 : vector<2x2x64xf32>
    %1364 = arith.addf %1358, %1363 : vector<2x2x64xf32>
    %c0_385 = arith.constant 0 : index
    %c0_386 = arith.constant 0 : index
    %1365 = vector.load %arg27[%c0_385, %c0_386] : memref<1x64xf32, #tpu.memory_space<vmem>>, vector<1x64xf32>
    %1366 = vector.extract_strided_slice %1364 {offsets = [0, 0, 0], sizes = [1, 2, 64], strides = [1, 1, 1]} : vector<2x2x64xf32> to vector<1x2x64xf32>
    %1367 = vector.shape_cast %1366 : vector<1x2x64xf32> to vector<2x64xf32>
    %1368 = vector.broadcast %1365 : vector<1x64xf32> to vector<2x64xf32>
    %1369 = arith.addf %1367, %1368 : vector<2x64xf32>
    %c0_387 = arith.constant 0 : index
    %c0_388 = arith.constant 0 : index
    %1370 = vector.load %arg40[%c0_387, %c0_388] : memref<4x64xf32, #tpu.memory_space<vmem>>, vector<2x64xf32>
    tpu.vector_store %arg40[%c0_387, %c0_388], %1369 {strides = array<i32>} : memref<4x64xf32, #tpu.memory_space<vmem>>, vector<2x64xf32>,
    %1371 = vector.extract_strided_slice %1364 {offsets = [1, 0, 0], sizes = [1, 2, 64], strides = [1, 1, 1]} : vector<2x2x64xf32> to vector<1x2x64xf32>
    %1372 = vector.shape_cast %1371 : vector<1x2x64xf32> to vector<2x64xf32>
    %1373 = vector.broadcast %1365 : vector<1x64xf32> to vector<2x64xf32>
    %1374 = arith.addf %1372, %1373 : vector<2x64xf32>
    %c2_389 = arith.constant 2 : index
    %c0_390 = arith.constant 0 : index
    %1375 = vector.load %arg40[%c2_389, %c0_390] : memref<4x64xf32, #tpu.memory_space<vmem>>, vector<2x64xf32>
    tpu.vector_store %arg40[%c2_389, %c0_390], %1374 {strides = array<i32>} : memref<4x64xf32, #tpu.memory_space<vmem>>, vector<2x64xf32>,
    %c0_391 = arith.constant 0 : index
    %c0_392 = arith.constant 0 : index
    %1376 = vector.load %arg40[%c0_391, %c0_392] : memref<4x64xf32, #tpu.memory_space<vmem>>, vector<4x64xf32>
    %cst_393 = arith.constant dense<0.000000e+00> : vector<4xf32>
    %1377 = vector.multi_reduction <add>, %1376, %cst_393 [1] : vector<4x64xf32> to vector<4xf32>
    %1378 = vector.shape_cast %1377 : vector<4xf32> to vector<4x1xf32>
    %cst_394 = arith.constant 6.400000e+01 : f32
    %1379 = vector.broadcast %cst_394 : f32 to vector<4x1xf32>
    %1380 = arith.divf %1378, %1379 : vector<4x1xf32>
    %1381 = vector.broadcast %1380 : vector<4x1xf32> to vector<4x64xf32>
    %1382 = arith.subf %1376, %1381 : vector<4x64xf32>
    %1383 = arith.mulf %1382, %1382 : vector<4x64xf32>
    %cst_395 = arith.constant dense<0.000000e+00> : vector<4xf32>
    %1384 = vector.multi_reduction <add>, %1383, %cst_395 [1] : vector<4x64xf32> to vector<4xf32>
    %1385 = vector.shape_cast %1384 : vector<4xf32> to vector<4x1xf32>
    %cst_396 = arith.constant 6.400000e+01 : f32
    %1386 = vector.broadcast %cst_396 : f32 to vector<4x1xf32>
    %1387 = arith.divf %1385, %1386 : vector<4x1xf32>
    %1388 = vector.broadcast %1380 : vector<4x1xf32> to vector<4x64xf32>
    %1389 = arith.subf %1376, %1388 : vector<4x64xf32>
    %cst_397 = arith.constant 9.99999997E-7 : f32
    %1390 = vector.broadcast %cst_397 : f32 to vector<4x1xf32>
    %1391 = arith.addf %1387, %1390 : vector<4x1xf32>
    %1392 = math.rsqrt %1391 : vector<4x1xf32>
    %1393 = vector.broadcast %1392 : vector<4x1xf32> to vector<4x64xf32>
    %1394 = arith.mulf %1389, %1393 : vector<4x64xf32>
    %1395 = arith.truncf %1394 : vector<4x64xf32> to vector<4x64xbf16>
    %c0_398 = arith.constant 0 : index
    %c0_399 = arith.constant 0 : index
    %1396 = vector.load %arg28[%c0_398, %c0_399] : memref<64x256xbf16, #tpu.memory_space<vmem>>, vector<64x256xbf16>
    %cst_400 = arith.constant dense<0.000000e+00> : vector<4x256xf32>
    %1397 = tpu.matmul %1395, %1396, %cst_400 {dimension_numbers = #tpu.dot_dimension_numbers<[1], [0], [0], [1], [0, 0, 1, 1], [], []>} : vector<4x64xbf16>, vector<64x256xbf16>, vector<4x256xf32> -> vector<4x256xf32>
    %c0_401 = arith.constant 0 : index
    %c0_402 = arith.constant 0 : index
    %1398 = vector.load %arg29[%c0_401, %c0_402] : memref<1x256xf32, #tpu.memory_space<vmem>>, vector<1x256xf32>
    %1399 = vector.broadcast %1398 : vector<1x256xf32> to vector<4x256xf32>
    %1400 = arith.addf %1397, %1399 : vector<4x256xf32>
    %cst_403 = arith.constant 5.000000e-01 : f32
    %1401 = vector.broadcast %cst_403 : f32 to vector<4x256xf32>
    %1402 = arith.mulf %1401, %1400 : vector<4x256xf32>
    %cst_404 = arith.constant 0.707106769 : f32
    %1403 = vector.broadcast %cst_404 : f32 to vector<4x256xf32>
    %1404 = arith.mulf %1400, %1403 : vector<4x256xf32>
    %1405 = math.absf %1404 : vector<4x256xf32>
    %cst_405 = arith.constant 0.327591091 : f32
    %1406 = vector.broadcast %cst_405 : f32 to vector<4x256xf32>
    %1407 = arith.mulf %1406, %1405 : vector<4x256xf32>
    %cst_406 = arith.constant 1.000000e+00 : f32
    %1408 = vector.broadcast %cst_406 : f32 to vector<4x256xf32>
    %1409 = arith.addf %1408, %1407 : vector<4x256xf32>
    %cst_407 = arith.constant 1.000000e+00 : f32
    %1410 = vector.broadcast %cst_407 : f32 to vector<4x256xf32>
    %1411 = arith.divf %1410, %1409 : vector<4x256xf32>
    %cst_408 = arith.constant 1.06140542 : f32
    %1412 = vector.broadcast %cst_408 : f32 to vector<4x256xf32>
    %1413 = arith.mulf %1412, %1411 : vector<4x256xf32>
    %cst_409 = arith.constant -1.45315206 : f32
    %1414 = vector.broadcast %cst_409 : f32 to vector<4x256xf32>
    %1415 = arith.addf %1413, %1414 : vector<4x256xf32>
    %1416 = arith.mulf %1415, %1411 : vector<4x256xf32>
    %cst_410 = arith.constant 1.42141378 : f32
    %1417 = vector.broadcast %cst_410 : f32 to vector<4x256xf32>
    %1418 = arith.addf %1416, %1417 : vector<4x256xf32>
    %1419 = arith.mulf %1418, %1411 : vector<4x256xf32>
    %cst_411 = arith.constant -0.284496725 : f32
    %1420 = vector.broadcast %cst_411 : f32 to vector<4x256xf32>
    %1421 = arith.addf %1419, %1420 : vector<4x256xf32>
    %1422 = arith.mulf %1421, %1411 : vector<4x256xf32>
    %cst_412 = arith.constant 0.254829586 : f32
    %1423 = vector.broadcast %cst_412 : f32 to vector<4x256xf32>
    %1424 = arith.addf %1422, %1423 : vector<4x256xf32>
    %1425 = arith.mulf %1424, %1411 : vector<4x256xf32>
    %cst_413 = arith.constant 0.000000e+00 : f32
    %1426 = vector.broadcast %cst_413 : f32 to vector<4x256xf32>
    %1427 = arith.subf %1426, %1405 : vector<4x256xf32>
    %1428 = arith.mulf %1427, %1405 : vector<4x256xf32>
    %1429 = math.exp %1428 : vector<4x256xf32>
    %1430 = arith.mulf %1425, %1429 : vector<4x256xf32>
    %cst_414 = arith.constant 1.000000e+00 : f32
    %1431 = vector.broadcast %cst_414 : f32 to vector<4x256xf32>
    %1432 = arith.subf %1431, %1430 : vector<4x256xf32>
    %cst_415 = arith.constant 0.000000e+00 : f32
    %1433 = vector.broadcast %cst_415 : f32 to vector<4x256xf32>
    %1434 = arith.cmpf oge, %1404, %1433 : vector<4x256xf32>
    %cst_416 = arith.constant 0.000000e+00 : f32
    %1435 = vector.broadcast %cst_416 : f32 to vector<4x256xf32>
    %1436 = arith.subf %1435, %1432 : vector<4x256xf32>
    %1437 = arith.select %1434, %1432, %1436 : vector<4x256xi1>, vector<4x256xf32>
    %cst_417 = arith.constant 1.000000e+00 : f32
    %1438 = vector.broadcast %cst_417 : f32 to vector<4x256xf32>
    %1439 = arith.addf %1438, %1437 : vector<4x256xf32>
    %1440 = arith.mulf %1402, %1439 : vector<4x256xf32>
    %1441 = arith.mulf %1440, %1440 : vector<4x256xf32>
    %cst_418 = arith.constant dense<0.000000e+00> : vector<256xf32>
    %1442 = vector.multi_reduction <add>, %1441, %cst_418 [0] : vector<4x256xf32> to vector<256xf32>
    %1443 = vector.shape_cast %1442 : vector<256xf32> to vector<1x256xf32>
    %1444 = math.sqrt %1443 : vector<1x256xf32>
    %cst_419 = arith.constant dense<0.000000e+00> : vector<1xf32>
    %1445 = vector.multi_reduction <add>, %1444, %cst_419 [1] : vector<1x256xf32> to vector<1xf32>
    %1446 = vector.shape_cast %1445 : vector<1xf32> to vector<1x1xf32>
    %cst_420 = arith.constant 2.560000e+02 : f32
    %1447 = vector.broadcast %cst_420 : f32 to vector<1x1xf32>
    %1448 = arith.divf %1446, %1447 : vector<1x1xf32>
    %cst_421 = arith.constant 9.99999997E-7 : f32
    %1449 = vector.broadcast %cst_421 : f32 to vector<1x1xf32>
    %1450 = arith.addf %1448, %1449 : vector<1x1xf32>
    %1451 = tpu.reciprocal %1450 {approx = true} : vector<1x1xf32> -> vector<1x1xf32>
    %1452 = vector.broadcast %1451 : vector<1x1xf32> to vector<1x256xf32>
    %1453 = arith.mulf %1444, %1452 : vector<1x256xf32>
    %c0_422 = arith.constant 0 : index
    %c0_423 = arith.constant 0 : index
    %1454 = vector.load %arg30[%c0_422, %c0_423] : memref<1x256xf32, #tpu.memory_space<vmem>>, vector<1x256xf32>
    %1455 = vector.broadcast %1453 : vector<1x256xf32> to vector<4x256xf32>
    %1456 = arith.mulf %1440, %1455 : vector<4x256xf32>
    %1457 = vector.broadcast %1454 : vector<1x256xf32> to vector<4x256xf32>
    %1458 = arith.mulf %1457, %1456 : vector<4x256xf32>
    %c0_424 = arith.constant 0 : index
    %c0_425 = arith.constant 0 : index
    %1459 = vector.load %arg31[%c0_424, %c0_425] : memref<1x256xf32, #tpu.memory_space<vmem>>, vector<1x256xf32>
    %1460 = vector.broadcast %1459 : vector<1x256xf32> to vector<4x256xf32>
    %1461 = arith.addf %1458, %1460 : vector<4x256xf32>
    %1462 = arith.addf %1461, %1440 : vector<4x256xf32>
    %1463 = arith.truncf %1462 : vector<4x256xf32> to vector<4x256xbf16>
    %c0_426 = arith.constant 0 : index
    %c0_427 = arith.constant 0 : index
    %1464 = vector.load %arg32[%c0_426, %c0_427] : memref<256x64xbf16, #tpu.memory_space<vmem>>, vector<256x64xbf16>
    %cst_428 = arith.constant dense<0.000000e+00> : vector<4x64xf32>
    %1465 = tpu.matmul %1463, %1464, %cst_428 {dimension_numbers = #tpu.dot_dimension_numbers<[1], [0], [0], [1], [0, 0, 1, 1], [], []>} : vector<4x256xbf16>, vector<256x64xbf16>, vector<4x64xf32> -> vector<4x64xf32>
    %c0_429 = arith.constant 0 : index
    %c0_430 = arith.constant 0 : index
    %1466 = vector.load %arg33[%c0_429, %c0_430] : memref<1x64xf32, #tpu.memory_space<vmem>>, vector<1x64xf32>
    %1467 = vector.broadcast %1466 : vector<1x64xf32> to vector<4x64xf32>
    %1468 = arith.addf %1465, %1467 : vector<4x64xf32>
    %1469 = arith.addf %1468, %1047 : vector<4x64xf32>
    %c0_431 = arith.constant 0 : index
    %c0_432 = arith.constant 0 : index
    %c0_433 = arith.constant 0 : index
    %1470 = vector.load %arg34[%c0_431, %c0_432, %c0_433] : memref<1x4x64xf32, #tpu.memory_space<vmem>>, vector<1x4x64xf32>
    %1471 = vector.shape_cast %1470 : vector<1x4x64xf32> to vector<4x64xf32>
    %1472 = vector.shape_cast %1469 : vector<4x64xf32> to vector<1x4x64xf32>
    tpu.vector_store %arg34[%c0_431, %c0_432, %c0_433], %1472 {strides = array<i32>} : memref<1x4x64xf32, #tpu.memory_space<vmem>>, vector<1x4x64xf32>,
    return
  }
  func.func @transform_0(%arg0: i32) -> (i32, i32, i32) {
    %c0_i32 = arith.constant 0 : i32
    %c0_i32_0 = arith.constant 0 : i32
    %c0_i32_1 = arith.constant 0 : i32
    return %arg0, %c0_i32, %c0_i32_0 : i32, i32, i32
  }
  func.func @transform_1(%arg0: i32) -> (i32, i32) {
    %c0_i32 = arith.constant 0 : i32
    %c0_i32_0 = arith.constant 0 : i32
    %c0_i32_1 = arith.constant 0 : i32
    return %c0_i32, %c0_i32_0 : i32, i32
  }
  func.func @transform_2(%arg0: i32) -> (i32, i32) {
    %c0_i32 = arith.constant 0 : i32
    %c0_i32_0 = arith.constant 0 : i32
    %c0_i32_1 = arith.constant 0 : i32
    return %c0_i32, %c0_i32_0 : i32, i32
  }
  func.func @transform_3(%arg0: i32) -> (i32, i32) {
    %c0_i32 = arith.constant 0 : i32
    %c0_i32_0 = arith.constant 0 : i32
    %c0_i32_1 = arith.constant 0 : i32
    return %c0_i32, %c0_i32_0 : i32, i32
  }
  func.func @transform_4(%arg0: i32) -> (i32, i32) {
    %c0_i32 = arith.constant 0 : i32
    %c0_i32_0 = arith.constant 0 : i32
    %c0_i32_1 = arith.constant 0 : i32
    return %c0_i32, %c0_i32_0 : i32, i32
  }
  func.func @transform_5(%arg0: i32) -> (i32, i32, i32, i32) {
    %c0_i32 = arith.constant 0 : i32
    %c0_i32_0 = arith.constant 0 : i32
    %c0_i32_1 = arith.constant 0 : i32
    %c0_i32_2 = arith.constant 0 : i32
    %c0_i32_3 = arith.constant 0 : i32
    return %c0_i32, %c0_i32_0, %c0_i32_1, %c0_i32_2 : i32, i32, i32, i32
  }
  func.func @transform_6(%arg0: i32) -> (i32, i32) {
    %c0_i32 = arith.constant 0 : i32
    %c0_i32_0 = arith.constant 0 : i32
    %c0_i32_1 = arith.constant 0 : i32
    return %c0_i32, %c0_i32_0 : i32, i32
  }
  func.func @transform_7(%arg0: i32) -> (i32, i32) {
    %c0_i32 = arith.constant 0 : i32
    %c0_i32_0 = arith.constant 0 : i32
    %c0_i32_1 = arith.constant 0 : i32
    return %c0_i32, %c0_i32_0 : i32, i32
  }
  func.func @transform_8(%arg0: i32) -> (i32, i32) {
    %c0_i32 = arith.constant 0 : i32
    %c0_i32_0 = arith.constant 0 : i32
    %c0_i32_1 = arith.constant 0 : i32
    return %c0_i32, %c0_i32_0 : i32, i32
  }
  func.func @transform_9(%arg0: i32) -> (i32, i32) {
    %c0_i32 = arith.constant 0 : i32
    %c0_i32_0 = arith.constant 0 : i32
    %c0_i32_1 = arith.constant 0 : i32
    return %c0_i32, %c0_i32_0 : i32, i32
  }
  func.func @transform_10(%arg0: i32) -> (i32, i32) {
    %c0_i32 = arith.constant 0 : i32
    %c0_i32_0 = arith.constant 0 : i32
    %c0_i32_1 = arith.constant 0 : i32
    return %c0_i32, %c0_i32_0 : i32, i32
  }
  func.func @transform_11(%arg0: i32) -> (i32, i32) {
    %c0_i32 = arith.constant 0 : i32
    %c0_i32_0 = arith.constant 0 : i32
    %c0_i32_1 = arith.constant 0 : i32
    return %c0_i32, %c0_i32_0 : i32, i32
  }
  func.func @transform_12(%arg0: i32) -> (i32, i32) {
    %c0_i32 = arith.constant 0 : i32
    %c0_i32_0 = arith.constant 0 : i32
    %c0_i32_1 = arith.constant 0 : i32
    return %c0_i32, %c0_i32_0 : i32, i32
  }
  func.func @transform_13(%arg0: i32) -> (i32, i32) {
    %c0_i32 = arith.constant 0 : i32
    %c0_i32_0 = arith.constant 0 : i32
    %c0_i32_1 = arith.constant 0 : i32
    return %c0_i32, %c0_i32_0 : i32, i32
  }
  func.func @transform_14(%arg0: i32) -> (i32, i32) {
    %c0_i32 = arith.constant 0 : i32
    %c0_i32_0 = arith.constant 0 : i32
    %c0_i32_1 = arith.constant 0 : i32
    return %c0_i32, %c0_i32_0 : i32, i32
  }
  func.func @transform_15(%arg0: i32) -> (i32, i32, i32, i32) {
    %c0_i32 = arith.constant 0 : i32
    %c0_i32_0 = arith.constant 0 : i32
    %c0_i32_1 = arith.constant 0 : i32
    %c0_i32_2 = arith.constant 0 : i32
    %c0_i32_3 = arith.constant 0 : i32
    return %c0_i32, %c0_i32_0, %c0_i32_1, %c0_i32_2 : i32, i32, i32, i32
  }
  func.func @transform_16(%arg0: i32) -> (i32, i32) {
    %c0_i32 = arith.constant 0 : i32
    %c0_i32_0 = arith.constant 0 : i32
    %c0_i32_1 = arith.constant 0 : i32
    return %c0_i32, %c0_i32_0 : i32, i32
  }
  func.func @transform_17(%arg0: i32) -> (i32, i32) {
    %c0_i32 = arith.constant 0 : i32
    %c0_i32_0 = arith.constant 0 : i32
    %c0_i32_1 = arith.constant 0 : i32
    return %c0_i32, %c0_i32_0 : i32, i32
  }
  func.func @transform_18(%arg0: i32) -> (i32, i32) {
    %c0_i32 = arith.constant 0 : i32
    %c0_i32_0 = arith.constant 0 : i32
    %c0_i32_1 = arith.constant 0 : i32
    return %c0_i32, %c0_i32_0 : i32, i32
  }
  func.func @transform_19(%arg0: i32) -> (i32, i32) {
    %c0_i32 = arith.constant 0 : i32
    %c0_i32_0 = arith.constant 0 : i32
    %c0_i32_1 = arith.constant 0 : i32
    return %c0_i32, %c0_i32_0 : i32, i32
  }
  func.func @transform_20(%arg0: i32) -> (i32, i32) {
    %c0_i32 = arith.constant 0 : i32
    %c0_i32_0 = arith.constant 0 : i32
    %c0_i32_1 = arith.constant 0 : i32
    return %c0_i32, %c0_i32_0 : i32, i32
  }
  func.func @transform_21(%arg0: i32) -> (i32, i32) {
    %c0_i32 = arith.constant 0 : i32
    %c0_i32_0 = arith.constant 0 : i32
    %c0_i32_1 = arith.constant 0 : i32
    return %c0_i32, %c0_i32_0 : i32, i32
  }
  func.func @transform_22(%arg0: i32) -> (i32, i32) {
    %c0_i32 = arith.constant 0 : i32
    %c0_i32_0 = arith.constant 0 : i32
    %c0_i32_1 = arith.constant 0 : i32
    return %c0_i32, %c0_i32_0 : i32, i32
  }
  func.func @transform_23(%arg0: i32) -> (i32, i32) {
    %c0_i32 = arith.constant 0 : i32
    %c0_i32_0 = arith.constant 0 : i32
    %c0_i32_1 = arith.constant 0 : i32
    return %c0_i32, %c0_i32_0 : i32, i32
  }
  func.func @transform_24(%arg0: i32) -> (i32, i32) {
    %c0_i32 = arith.constant 0 : i32
    %c0_i32_0 = arith.constant 0 : i32
    %c0_i32_1 = arith.constant 0 : i32
    return %c0_i32, %c0_i32_0 : i32, i32
  }
  func.func @transform_25(%arg0: i32) -> (i32, i32, i32, i32) {
    %c0_i32 = arith.constant 0 : i32
    %c0_i32_0 = arith.constant 0 : i32
    %c0_i32_1 = arith.constant 0 : i32
    %c0_i32_2 = arith.constant 0 : i32
    %c0_i32_3 = arith.constant 0 : i32
    return %c0_i32, %c0_i32_0, %c0_i32_1, %c0_i32_2 : i32, i32, i32, i32
  }
  func.func @transform_26(%arg0: i32) -> (i32, i32) {
    %c0_i32 = arith.constant 0 : i32
    %c0_i32_0 = arith.constant 0 : i32
    %c0_i32_1 = arith.constant 0 : i32
    return %c0_i32, %c0_i32_0 : i32, i32
  }
  func.func @transform_27(%arg0: i32) -> (i32, i32) {
    %c0_i32 = arith.constant 0 : i32
    %c0_i32_0 = arith.constant 0 : i32
    %c0_i32_1 = arith.constant 0 : i32
    return %c0_i32, %c0_i32_0 : i32, i32
  }
  func.func @transform_28(%arg0: i32) -> (i32, i32) {
    %c0_i32 = arith.constant 0 : i32
    %c0_i32_0 = arith.constant 0 : i32
    %c0_i32_1 = arith.constant 0 : i32
    return %c0_i32, %c0_i32_0 : i32, i32
  }
  func.func @transform_29(%arg0: i32) -> (i32, i32) {
    %c0_i32 = arith.constant 0 : i32
    %c0_i32_0 = arith.constant 0 : i32
    %c0_i32_1 = arith.constant 0 : i32
    return %c0_i32, %c0_i32_0 : i32, i32
  }
  func.func @transform_30(%arg0: i32) -> (i32, i32) {
    %c0_i32 = arith.constant 0 : i32
    %c0_i32_0 = arith.constant 0 : i32
    %c0_i32_1 = arith.constant 0 : i32
    return %c0_i32, %c0_i32_0 : i32, i32
  }
  func.func @transform_31(%arg0: i32) -> (i32, i32) {
    %c0_i32 = arith.constant 0 : i32
    %c0_i32_0 = arith.constant 0 : i32
    %c0_i32_1 = arith.constant 0 : i32
    return %c0_i32, %c0_i32_0 : i32, i32
  }
  func.func @transform_32(%arg0: i32) -> (i32, i32) {
    %c0_i32 = arith.constant 0 : i32
    %c0_i32_0 = arith.constant 0 : i32
    %c0_i32_1 = arith.constant 0 : i32
    return %c0_i32, %c0_i32_0 : i32, i32
  }
  func.func @transform_33(%arg0: i32) -> (i32, i32, i32) {
    %c0_i32 = arith.constant 0 : i32
    %c0_i32_0 = arith.constant 0 : i32
    %c0_i32_1 = arith.constant 0 : i32
    return %arg0, %c0_i32, %c0_i32_0 : i32, i32, i32
  }
}

</mosaic_0001>

<bundles_post_ra>
// kernel: forward.1
= control target key start
LH: loop header
LB: loop body
LE: loop exit
PB: predicated region body
PF: predicated region fallthrough
CT: control target
= control target key end

     0   :  { %s6773_s6 = smov 1   ;;  %s6774_s10 = smov 2   ;;  %s9532_s0 = inlined_call_operand.smem [shape: u32[34], index: -1, kind: input, shape index: {}] }
   0x1   :  { %s6823_s5 = sld [smem:[%s9532_s0]]   ;;  %s6775_s14 = smov 3  }
   0x2   :  { %s6828_s9 = sld [smem:[%s9532_s0 + %s6773_s6]]   ;;  %s6776_s18 = smov 4  }
   0x3   :  { %s6833_s13 = sld [smem:[%s9532_s0 + %s6774_s10]]   ;;  %s6777_s22 = smov 5  }
   0x4   :  { %s6838_s17 = sld [smem:[%s9532_s0 + %s6775_s14]]   ;;  %s6778_s26 = smov 6  }
   0x5   :  { %s6843_s21 = sld [smem:[%s9532_s0 + %s6776_s18]]   ;;  %s6779_s30 = smov 7  }
   0x6   :  { %s6848_s25 = sld [smem:[%s9532_s0 + %s6777_s22]]   ;;  %s6780_s4 = smov 8  }
   0x7   :  { %9591 = sst [smem:[#allocation13_spill]] %s6823_s5  ;;  %s6781_s10 = smov 9  }
   0x8   :  { %9592 = sst [smem:[#allocation14_spill]] %s6828_s9  ;;  %s6782_s15 = smov 10  }
   0x9   :  { %9593 = sst [smem:[#allocation15_spill]] %s6833_s13  ;;  %s6783_s20 = smov 11  }
   0xa   :  { %s6853_s29 = sld [smem:[%s9532_s0 + %s6778_s26]]   ;;  %s6784_s26 = smov 12  }
   0xb   :  { %s6858_s3 = sld [smem:[%s9532_s0 + %s6779_s30]]   ;;  %s6785_s1 = smov 13  }
   0xc   :  { %s6863_s8 = sld [smem:[%s9532_s0 + %s6780_s4]]   ;;  %s6786_s7 = smov 14  }
   0xd   :  { %s6868_s14 = sld [smem:[%s9532_s0 + %s6781_s10]]   ;;  %s6788_s22 = smov 16  }
   0xe   :  { %s6873_s19 = sld [smem:[%s9532_s0 + %s6782_s15]]   ;;  %s6787_s15 = smov 15  }
   0xf   :  { %s6878_s24 = sld [smem:[%s9532_s0 + %s6783_s20]]   ;;  %s6789_s28 = smov 17  }
  0x10   :  { %s6883_s30 = sld [smem:[%s9532_s0 + %s6784_s26]]  }
  0x11   :  { %9594 = sst [smem:[#allocation16_spill]] %s6858_s3 }
  0x12   :  { %9595 = sst [smem:[#allocation17_spill]] %s6863_s8 }
  0x13   :  { %9596 = sst [smem:[#allocation18_spill]] %s6868_s14 }
  0x14   :  { %s6888_s6 = sld [smem:[%s9532_s0 + %s6785_s1]]  }
  0x15   :  { %s6893_s12 = sld [smem:[%s9532_s0 + %s6786_s7]]   ;;  %s6790_s7 = smov 18  }
  0x16   :  { %s6898_s20 = sld [smem:[%s9532_s0 + %s6787_s15]]   ;;  %s6791_s15 = smov 19  }
  0x17   :  { %s6903_s27 = sld [smem:[%s9532_s0 + %s6788_s22]]   ;;  %s6792_s22 = smov 20  }
  0x18   :  { %s6908_s4 = sld [smem:[%s9532_s0 + %s6789_s28]]   ;;  %s6793_s28 = smov 21  }
  0x1a   :  { %9597 = sst [smem:[#allocation19_spill]] %s6888_s6 }
  0x1b   :  { %9598 = sst [smem:[#allocation20_spill]] %s6893_s12 }
  0x1c   :  { %9599 = sst [smem:[#allocation21_spill]] %s6898_s20 }
  0x1d   :  { %9600 = sst [smem:[#allocation22_spill]] %s6903_s27 }
  0x1e   :  { %9601 = sst [smem:[#allocation23_spill]] %s6908_s4 }
  0x1f   :  { %s6913_s12 = sld [smem:[%s9532_s0 + %s6790_s7]]   ;;  %s6794_s7 = smov 22  }
  0x20   :  { %s6918_s20 = sld [smem:[%s9532_s0 + %s6791_s15]]   ;;  %s6795_s15 = smov 23  }
  0x21   :  { %s6923_s27 = sld [smem:[%s9532_s0 + %s6792_s22]]   ;;  %s6796_s22 = smov 24  }
  0x22   :  { %s6928_s4 = sld [smem:[%s9532_s0 + %s6793_s28]]   ;;  %s6797_s28 = smov 25  }
  0x25   :  { %9602 = sst [smem:[#allocation24_spill]] %s6913_s12 }
  0x26   :  { %9603 = sst [smem:[#allocation25_spill]] %s6918_s20 }
  0x27   :  { %9604 = sst [smem:[#allocation26_spill]] %s6923_s27 }
  0x28   :  { %9605 = sst [smem:[#allocation27_spill]] %s6928_s4 }
  0x29   :  { %s6933_s12 = sld [smem:[%s9532_s0 + %s6794_s7]]   ;;  %s6798_s7 = smov 26  }
  0x2a   :  { %s6938_s20 = sld [smem:[%s9532_s0 + %s6795_s15]]   ;;  %s6799_s15 = smov 27  }
  0x2b   :  { %s6943_s27 = sld [smem:[%s9532_s0 + %s6796_s22]]   ;;  %s6800_s22 = smov 28  }
  0x2c   :  { %s6948_s4 = sld [smem:[%s9532_s0 + %s6797_s28]]   ;;  %s6801_s28 = smov 29  }
  0x2f   :  { %9606 = sst [smem:[#allocation28_spill]] %s6933_s12 }
  0x30   :  { %9607 = sst [smem:[#allocation29_spill]] %s6938_s20 }
  0x31   :  { %9608 = sst [smem:[#allocation30_spill]] %s6943_s27 }
  0x32   :  { %9609 = sst [smem:[#allocation31_spill]] %s6948_s4 }
  0x33   :  { %s6953_s12 = sld [smem:[%s9532_s0 + %s6798_s7]]   ;;  %s6802_s7 = smov 30  }
  0x34   :  { %s6958_s20 = sld [smem:[%s9532_s0 + %s6799_s15]]   ;;  %s6803_s15 = smov 31  }
  0x35   :  { %s6963_s27 = sld [smem:[%s9532_s0 + %s6800_s22]]   ;;  %s6804_s22 = smov 32  }
  0x36   :  { %s6968_s4 = sld [smem:[%s9532_s0 + %s6801_s28]]   ;;  %s6805_s28 = smov 33  }
  0x39   :  { %9610 = sst [smem:[#allocation32_spill]] %s6953_s12 }
  0x3a   :  { %9611 = sst [smem:[#allocation33_spill]] %s6958_s20 }
  0x3b   :  { %9612 = sst [smem:[#allocation34_spill]] %s6963_s27 }
  0x3c   :  { %9613 = sst [smem:[#allocation35_spill]] %s6968_s4 }
  0x3d   :  { %s6973_s12 = sld [smem:[%s9532_s0 + %s6802_s7]]  }
  0x3e   :  { %s6978_s20 = sld [smem:[%s9532_s0 + %s6803_s15]]  }
  0x3f   :  { %s6983_s27 = sld [smem:[%s9532_s0 + %s6804_s22]]  }
  0x40   :  { %s6988_s4 = sld [smem:[%s9532_s0 + %s6805_s28]]  }
  0x43   :  { %9614 = sst [smem:[#allocation36_spill]] %s6973_s12 }
  0x44   :  { %72 = vsyncpa [#allocation11], 0 }
  0x45   :  { %74 = vsyncpa [#allocation11 + $0x1], 0  ;;  %s6990_s7 = smov 0   ;;  %s6992_s10 = smov 0  }
  0x46   :  { %s6994_s11 = smov 0   ;;  %s6996_s15 = smov 0  }
  0x47 LB: > { %s9615_s9 = sld [smem:[#allocation14_spill]]  ;;  %s9616_s6 = sld [smem:[#allocation19_spill]]  ;;  %s6763_s10 = sphi %s6992_s10, %s10111_s10   ;;  %s6759_s7 = sphi %s6990_s7, %s10110_s7   ;;  %s6771_s15 = sphi %s6996_s15, %s10113_s15   ;;  %s6767_s11 = sphi %s6994_s11, %s10112_s11  }
  0x48   : > { %s7011_s0 = sadd.s32 4294967295, %s6771_s15   ;;  %s6023_s16 = sadd.s32 4294967294, %s6771_s15  }
  0x49   : > { %s7015_s18 = sadd.s32 1, %s6771_s15   ;;  %s785_s22 = sadd.s32 1, %s6767_s11 }
  0x4a   : > { %s782_s23 = ssub.s32 %s6771_s15, %s7015_s18  ;;  %p795_p0 = scmp.ne.s32.totalorder %s6767_s11, %s6763_s10 }
  0x4b   : > { %p783_p1 = scmp.eq.s32.totalorder %s782_s23, 0  ;;  %p796_p2 = scmp.eq.s32.totalorder %s7011_s0, 1 }
  0x4c   : > { %p801_p3 = scmp.ne.s32.totalorder %s6763_s10, %s6759_s7  ;;  %p802_p4 = scmp.eq.s32.totalorder %s6023_s16, 1 }
  0x4d   : > { %s7026_s26 = scalar_select %p783_p1, %s6767_s11, %s785_s22  }
  0x4e   : > { %p7028_p5 = por %p796_p2, %p795_p0  ;;  %p7032_p6 = por %p802_p4, %p801_p3 }
  0x4f   : > { %p6026_p7 = scmp.ge.s32.totalorder %s6771_s15, 1  ;;  %p924_p8 = scmp.lt.s32.totalorder %s6771_s15, 3 }
  0x51   : > { %p925_p9 = pnand %p6026_p7, %p924_p8 }
  0x53   : > { %928 = sbr.rel (%p925_p9) target bundleno = 5435 (0x153b), region = 152 }
  0x5a   : > { %s9619_s5 = sld [smem:[#allocation13_spill]]  ;;  %v6516_v0 = vld [vmem:[%s9615_s9] sm:$0xff]   ;;  %p1008_p10 = scmp.lt.s32.totalorder %s7011_s0, 1  ;;  %v6517_v1 = vld [vmem:[%s9615_s9 + $0x8] sm:$0xff]   ;;  %v6518_v2 = vld [vmem:[%s9615_s9 + $0x10] sm:$0xff]   ;;  %vm1057_vm0 = vcmask 392192  }
  0x5b   : > { %6336 = vmatprep.subr.bf16.mxu1 %v6516_v0  ;;  %s9620_s13 = sld [smem:[#allocation15_spill]]  ;;  %vm1135_vm1 = vcmask 130048   ;;  %v9539_v40 = vmov 0.0   ;;  %s10080_s3 = sld [smem:[#allocation16_spill]]  ;;  %vm2994_vm2 = vcmask 523264   ;;  %vm3318_vm13 = vcmask 125952  }
  0x5c   : > { %s1009_s2 = scalar_select %p1008_p10, %s7011_s0, 1  ;;  %6337 = vmatpush3.bf16.msra.mxu1 %v6516_v0  ;;  %1271 = vst.msk [vmem:[#allocation2] sm:$0xff] %vm1135_vm1, %v9539_v40  ;;  %1272 = vst.msk [vmem:[#allocation2 + $0x8] sm:$0xff] %vm1135_vm1, %v9539_v40  ;;  %6376 = vmatprep.subr.bf16.mxu0 %v9539_v40  ;;  %vm6810_vm14 = vmmov 0   ;;  %vm3326_vm15 = vcmask 257152  }
  0x5d   : > { %6338 = vmatprep.subr.bf16.mxu1 %v6517_v1  ;;  %1274 = vst.msk [vmem:[#allocation2 + $0x18] sm:$0xff] %vm1135_vm1, %v9539_v40  ;;  %1275 = vst.msk [vmem:[#allocation2 + $0x20] sm:$0xff] %vm1135_vm1, %v9539_v40  ;;  %s10082_s8 = sld [smem:[#allocation17_spill]]  ;;  %s10083_s14 = sld [smem:[#allocation18_spill]] }
  0x5e   : > { %s6267_s16 = sshll.u32 %s1009_s2, 6  ;;  %1277 = vst.msk [vmem:[#allocation2 + $0x30] sm:$0xff] %vm1135_vm1, %v9539_v40  ;;  %1278 = vst.msk [vmem:[#allocation2 + $0x38] sm:$0xff] %vm1135_vm1, %v9539_v40  ;;  %s6807_s23 = smov 16  }
  0x5f   : > { %1291 = vst.msk [vmem:[#allocation2 + $0x48] sm:$0xff] %vm1135_vm1, %v9539_v40  ;;  %1299 = vst.msk [vmem:[#allocation2 + $0x58] sm:$0xff] %vm1135_vm1, %v9539_v40  ;;  %s9584_s2 = smov 32   ;;  %s10109_s12 = sld [smem:[#allocation36_spill]] }
  0x60   : > { %s1012_s22 = scalar_lea.vmem %s9619_s5, %s6267_s16  ;;  %6339 = vmatpush3.bf16.msra.mxu1 %v6517_v1  ;;  %1273 = vst.msk [vmem:[#allocation2 + $0x10] sm:$0xff] %vm1135_vm1, %v9539_v40  ;;  %1276 = vst.msk [vmem:[#allocation2 + $0x28] sm:$0xff] %vm1135_vm1, %v9539_v40  ;;  %s6809_s16 = smov 48  }
  0x61   : > { %v1014_v3 = vld [vmem:[%s1012_s22] sm:$0xff]  ;;  %v1015_v4 = vld [vmem:[%s1012_s22 + $0x8] sm:$0xff]  ;;  %v1016_v6 = vld [vmem:[%s1012_s22 + $0x10] sm:$0xff]  ;;  %6340 = vmatprep.subr.bf16.mxu1 %v6518_v2  ;;  %1279 = vst.msk [vmem:[#allocation2 + $0x40] sm:$0xff] %vm1135_vm1, %v9539_v40  ;;  %s10100_s5 = sld [smem:[#allocation28_spill]] }
  0x62   : > { %v1022_v5 = vpack.c.bf16 %v1015_v4, %v1014_v3  ;;  %v1017_v7 = vld [vmem:[%s1012_s22 + $0x18] sm:$0xff]  ;;  %v1018_v8 = vld [vmem:[%s1012_s22 + $0x20] sm:$0xff]  ;;  %v1019_v9 = vld [vmem:[%s1012_s22 + $0x28] sm:$0xff]  ;;  %1281 = vst.msk [vmem:[#allocation2 + $0x108] sm:$0xff] %vm1135_vm1, %v9539_v40 }
  0x63   : > { %v1023_v10 = vpack.c.bf16 %v1017_v7, %v1016_v6  ;;  %v1024_v11 = vpack.c.bf16 %v1019_v9, %v1018_v8  ;;  %v1020_v12 = vld [vmem:[%s1012_s22 + $0x30] sm:$0xff]  ;;  %v1021_v13 = vld [vmem:[%s1012_s22 + $0x38] sm:$0xff]  ;;  %v6030_v15 = vld [vmem:[%s9620_s13] ss:$0 sm:$0xff]  ;;  %1282 = vst.msk [vmem:[#allocation2 + $0x110] sm:$0xff] %vm1135_vm1, %v9539_v40  ;;  %s10092_s22 = sld [smem:[#allocation20_spill]] }
  0x64   : > { %6342 = vmatprep.mubr.msk.bf16.mxu1 %vm1057_vm0, %v1022_v5  ;;  %6341 = vmatpush3.bf16.msra.mxu1 %v6518_v2  ;;  %v1025_v14 = vpack.c.bf16 %v1021_v13, %v1020_v12  ;;  %1283 = vst.msk [vmem:[#allocation2 + $0x118] sm:$0xff] %vm1135_vm1, %v9539_v40  ;;  %1284 = vst.msk [vmem:[#allocation2 + $0x120] sm:$0xff] %vm1135_vm1, %v9539_v40 }
  0x65   : > { %1285 = vst.msk [vmem:[#allocation2 + $0x128] sm:$0xff] %vm1135_vm1, %v9539_v40  ;;  %1286 = vst.msk [vmem:[#allocation2 + $0x130] sm:$0xff] %vm1135_vm1, %v9539_v40 }
  0x66   : > { %1287 = vst.msk [vmem:[#allocation2 + $0x138] sm:$0xff] %vm1135_vm1, %v9539_v40  ;;  %1288 = vst.msk [vmem:[#allocation2 + $0x140] sm:$0xff] %vm1135_vm1, %v9539_v40 }
  0x67   : > { %6343 = vmatmul.mubr.msk.bf16.vlgmr.msra.gmra.mrb[0].mxu1 %vm1057_vm0, %v1023_v10  ;;  %1289 = vst.msk [vmem:[#allocation2 + $0x148] sm:$0xff] %vm1135_vm1, %v9539_v40  ;;  %1292 = vst.msk [vmem:[#allocation2 + $0x60] sm:$0xff] %vm1135_vm1, %v9539_v40 }
  0x68   : > { %6346 = vmatprep.mubr.msk.bf16.mxu1 %vm1057_vm0, %v1024_v11  ;;  %1293 = vst.msk [vmem:[#allocation2 + $0x78] sm:$0xff] %vm1135_vm1, %v9539_v40  ;;  %1294 = vst.msk [vmem:[#allocation2 + $0x90] sm:$0xff] %vm1135_vm1, %v9539_v40 }
  0x69   : > { %1295 = vst.msk [vmem:[#allocation2 + $0xa8] sm:$0xff] %vm1135_vm1, %v9539_v40  ;;  %1296 = vst.msk [vmem:[#allocation2 + $0xc0] sm:$0xff] %vm1135_vm1, %v9539_v40 }
  0x6a   : > { %1297 = vst.msk [vmem:[#allocation2 + $0xd8] sm:$0xff] %vm1135_vm1, %v9539_v40  ;;  %1298 = vst.msk [vmem:[#allocation2 + $0xf0] sm:$0xff] %vm1135_vm1, %v9539_v40 }
  0x6b   : > { %1300 = vst.msk [vmem:[#allocation2 + $0x70] sm:$0xff] %vm1135_vm1, %v9539_v40  ;;  %1301 = vst.msk [vmem:[#allocation2 + $0x88] sm:$0xff] %vm1135_vm1, %v9539_v40 }
  0x6c   : > { %1302 = vst.msk [vmem:[#allocation2 + $0xa0] sm:$0xff] %vm1135_vm1, %v9539_v40  ;;  %1303 = vst.msk [vmem:[#allocation2 + $0xb8] sm:$0xff] %vm1135_vm1, %v9539_v40 }
  0x6d   : > { %1304 = vst.msk [vmem:[#allocation2 + $0xd0] sm:$0xff] %vm1135_vm1, %v9539_v40  ;;  %1305 = vst.msk [vmem:[#allocation2 + $0xe8] sm:$0xff] %vm1135_vm1, %v9539_v40 }
  0x6e   : > { %1306 = vst.msk [vmem:[#allocation2 + $0x100] sm:$0xff] %vm1135_vm1, %v9539_v40  ;;  %v7356_v40 = vld [vmem:[%s6848_s25 + $0x5] ss:$0 sm:$0xff] }
  0x6f   : > { %6347 = vmatmul.mubr.msk.bf16.gmra.mrb[4].mxu1 %vm1057_vm0, %v1025_v14  ;;  %vm3334_vm0 = vcmask 388352  }
 0x13a   : > { %v6344_v16 = vpop.f32.mrb[0].mxu1 }
 0x13b   : > { %v7049_v17 = vadd.f32 %v6344_v16, %v6030_v15  ;;  %v1104_v18 = vpop.f32.mrb[1].mxu1 }
 0x13c   : > { %v7051_v19 = vadd.f32 %v6030_v15, %v1104_v18  ;;  %v6345_v20 = vpop.f32.mrb[2].mxu1 }
 0x13d   : > { %v7053_v21 = vadd.f32 %v6345_v20, %v6030_v15  ;;  %v1107_v22 = vpop.f32.mrb[3].mxu1  ;;  %v1142_v23 = vsel %vm1135_vm1, %v7049_v17, 0.0 }
 0x13e   : > { %v7057_v24 = vadd.f32 %v6030_v15, %v1107_v22  ;;  %1143 = vadd.xlane.f32.xlu1 %v1142_v23  ;;  %v1136_v25 = vsel %vm1135_vm1, %v7051_v19, 0.0  ;;  %v7199_v22 = vld [vmem:[%s6848_s25] ss:$0 sm:$0xff]  ;;  %v1371_v23 = vld [vmem:[#allocation2 + $0x5] sm:$0xff] }
 0x13f   : > { %1137 = vadd.xlane.f32.xlu0 %v1136_v25  ;;  %v1145_v26 = vsel %vm1135_vm1, %v7053_v21, 0.0  ;;  %9622 = vst [vmem:[#allocation38_spill] sm:$0xff] %v7199_v22 }
 0x140   : > { %v1139_v28 = vsel %vm1135_vm1, %v7057_v24, 0.0 }
 0x142   : > { %1146 = vadd.xlane.f32.xlu1 %v1145_v26  ;;  %v6348_v27 = vpop.f32.mrb[4].mxu1  ;;  %v7202_v26 = vld [vmem:[%s6848_s25 + $0x7] ss:$0 sm:$0xff] }
 0x143   : > { %v1120_v29 = vpop.f32.mrb[5].mxu1  ;;  %1140 = vadd.xlane.f32.xlu0 %v1139_v28  ;;  %v7067_v33 = vadd.f32 %v6348_v27, %v6030_v15  ;;  %v1372_v27 = vld [vmem:[#allocation2 + $0x1d] sm:$0xff] }
 0x144   : > { %v7065_v30 = vadd.f32 %v6030_v15, %v1120_v29  ;;  %v6349_v31 = vpop.f32.mrb[6].mxu1 }
 0x145   : > { %v1123_v32 = vpop.f32.mrb[7].mxu1  ;;  %v7073_v36 = vadd.f32 %v6349_v31, %v6030_v15  ;;  %v1154_v38 = vsel %vm1135_vm1, %v7067_v33, 0.0 }
 0x146   : > { %v7069_v34 = vadd.f32 %v6030_v15, %v1123_v32  ;;  %v1148_v35 = vsel %vm1135_vm1, %v7065_v30, 0.0 }
 0x147   : > { %1149 = vadd.xlane.f32.xlu0 %v1148_v35  ;;  %v1157_v39 = vsel %vm1135_vm1, %v7073_v36, 0.0  ;;  %v1405_v35 = vmul.f32 %v7202_v26, %v1372_v27 }
 0x148   : > { %v1151_v37 = vsel %vm1135_vm1, %v7069_v34, 0.0 }
 0x149   : > { %1152 = vadd.xlane.f32.xlu1 %v1151_v37 }
 0x14b   : > { %1155 = vadd.xlane.f32.xlu0 %v1154_v38 }
 0x14d   : > { %1158 = vadd.xlane.f32.xlu1 %v1157_v39 }
 0x1cb   : > { %v1144_v41 = vpop.xlane.xlu1 %1143 }
 0x1cc   : > { %v1163_v42 = vmul.f32 0.0625, %v1144_v41  ;;  %v1138_v43 = vpop.xlane.xlu0 %1137  ;;  %v1392_v41 = vmul.f32 %v7199_v22, %v1372_v27 }
 0x1cd   : > { %v1161_v44 = vmul.f32 0.0625, %v1138_v43 }
 0x1ce   : > { %v7151_v45 = vsub.f32 %v7049_v17, %v1163_v42 }
 0x1cf   : > { %v7154_v46 = vsub.f32 %v7051_v19, %v1161_v44  ;;  %v1147_v47 = vpop.xlane.xlu1 %1146 }
 0x1d0   : > { %v1164_v48 = vmul.f32 0.0625, %v1147_v47  ;;  %v1141_v49 = vpop.xlane.xlu0 %1140  ;;  %v1179_v55 = vmul.f32 %v7151_v45, %v7151_v45 }
 0x1d1   : > { %v1162_v50 = vmul.f32 0.0625, %v1141_v49  ;;  %v1177_v51 = vmul.f32 %v7154_v46, %v7154_v46 }
 0x1d2   : > { %v7159_v52 = vsub.f32 %v7053_v21, %v1164_v48  ;;  %v1191_v63 = vsel %vm1135_vm1, %v1179_v55, 0.0  ;;  %v7213_v48 = vld [vmem:[%s6838_s17] ss:$0 sm:$0xff]  ;;  %v7219_v55 = vld [vmem:[%s6848_s25 + $0x8] ss:$0 sm:$0xff] }
 0x1d3   : > { %v7162_v53 = vsub.f32 %v7057_v24, %v1162_v50  ;;  %v1185_v54 = vsel %vm1135_vm1, %v1177_v51, 0.0  ;;  %9623 = vst [vmem:[#allocation39_spill] sm:$0xff] %v7213_v48 }
 0x1d4   : > { %1186 = vadd.xlane.f32.xlu0 %v1185_v54  ;;  %v1150_v56 = vpop.xlane.xlu0 %1149  ;;  %v1180_v60 = vmul.f32 %v7159_v52, %v7159_v52  ;;  %v7216_v54 = vld [vmem:[%s6848_s25 + $0x1] ss:$0 sm:$0xff] }
 0x1d5   : > { %v1165_v57 = vmul.f32 0.0625, %v1150_v56  ;;  %v1178_v58 = vmul.f32 %v7162_v53, %v7162_v53  ;;  %v7222_v56 = vld [vmem:[%s6848_s25 + $0xf] ss:$0 sm:$0xff] }
 0x1d6   : > { %v1153_v59 = vpop.xlane.xlu1 %1152  ;;  %v1194_v6 = vsel %vm1135_vm1, %v1180_v60, 0.0 }
 0x1d7   : > { %v7172_v61 = vsub.f32 %v7065_v30, %v1165_v57  ;;  %v1166_v62 = vmul.f32 0.0625, %v1153_v59  ;;  %v1188_v0 = vsel %vm1135_vm1, %v1178_v58, 0.0  ;;  %v1391_v30 = vmul.f32 %v7199_v22, %v1371_v23  ;;  %v1531_v57 = vld [vmem:[#allocation2 + $0x6] sm:$0xff]  ;;  %v1532_v58 = vld [vmem:[#allocation2 + $0x1e] sm:$0xff]  ;;  %v1533_v59 = vld [vmem:[#allocation2 + $0x36] sm:$0xff] }
 0x1d8   : > { %1192 = vadd.xlane.f32.xlu0 %v1191_v63  ;;  %1189 = vadd.xlane.f32.xlu1 %v1188_v0  ;;  %v1156_v1 = vpop.xlane.xlu0 %1155  ;;  %v7228_v63 = vld [vmem:[%s6848_s25 + $0x2] ss:$0 sm:$0xff]  ;;  %v7231_v0 = vld [vmem:[%s6848_s25 + $0x9] ss:$0 sm:$0xff]  ;;  %v7260_v23 = vld [vmem:[%s6848_s25 + $0x11] ss:$0 sm:$0xff] }
 0x1d9   : > { %v7177_v2 = vsub.f32 %v7069_v34, %v1166_v62  ;;  %v1167_v3 = vmul.f32 0.0625, %v1156_v1  ;;  %v1181_v4 = vmul.f32 %v7172_v61, %v7172_v61  ;;  %v1373_v34 = vld [vmem:[#allocation2 + $0x35] sm:$0xff]  ;;  %v1413_v49 = vadd.f32 %v1405_v35, %v1391_v30  ;;  %v7225_v62 = vld [vmem:[%s6843_s21] ss:$0 sm:$0xff]  ;;  %v1699_v1 = vld [vmem:[#allocation2 + $0x7] sm:$0xff] }
 0x1da   : > { %v1159_v5 = vpop.xlane.xlu1 %1158  ;;  %v1406_v42 = vmul.f32 %v7202_v26, %v1373_v34  ;;  %9624 = vst [vmem:[#allocation40_spill] sm:$0xff] %v7225_v62  ;;  %v7272_v30 = vld [vmem:[#allocation2 + $0x39] sm:$0xff] }
 0x1db   : > { %v7183_v7 = vsub.f32 %v7067_v33, %v1167_v3  ;;  %v1168_v8 = vmul.f32 0.0625, %v1159_v5  ;;  %v1197_v9 = vsel %vm1135_vm1, %v1181_v4, 0.0  ;;  %v1182_v10 = vmul.f32 %v7177_v2, %v7177_v2  ;;  %v7206_v33 = vld [vmem:[%s6848_s25 + $0xe] ss:$0 sm:$0xff]  ;;  %v1700_v3 = vld [vmem:[#allocation2 + $0x1f] sm:$0xff]  ;;  %v1701_v4 = vld [vmem:[#allocation2 + $0x37] sm:$0xff] }
 0x1dc   : > { %1195 = vadd.xlane.f32.xlu1 %v1194_v6  ;;  %1198 = vadd.xlane.f32.xlu0 %v1197_v9  ;;  %v1427_v43 = vmul.f32 %v7206_v33, %v1373_v34  ;;  %v7234_v6 = vld [vmem:[%s6848_s25 + $0x3] ss:$0 sm:$0xff]  ;;  %v7239_v9 = vadd.f32 %v1406_v42, %v1392_v41  ;;  %v7267_v27 = vmul.f32 %v7231_v0, %v1700_v3 }
 0x1dd   : > { %v7189_v11 = vsub.f32 %v7073_v36, %v1168_v8  ;;  %v1183_v12 = vmul.f32 %v7183_v7, %v7183_v7  ;;  %v1200_v13 = vsel %vm1135_vm1, %v1182_v10, 0.0  ;;  %v7237_v8 = vmul.f32 %v7199_v22, %v1373_v34 }
 0x1de   : > { %9626 = vst [vmem:[#allocation42_spill] sm:$0xff] %v7267_v27 }
 0x1df   : > { %9621 = vst [vmem:[#allocation37_spill] sm:$0xff] %v7189_v11  ;;  %v1203_v14 = vsel %vm1135_vm1, %v1183_v12, 0.0  ;;  %v1184_v15 = vmul.f32 %v7189_v11, %v7189_v11  ;;  %v1867_v12 = vld [vmem:[#allocation2 + $0x8] sm:$0xff] }
 0x1e0   : > { %1201 = vadd.xlane.f32.xlu1 %v1200_v13  ;;  %1204 = vadd.xlane.f32.xlu0 %v1203_v14  ;;  %v1868_v13 = vld [vmem:[#allocation2 + $0x20] sm:$0xff]  ;;  %v1869_v14 = vld [vmem:[#allocation2 + $0x38] sm:$0xff]  ;;  %v7278_v34 = vmul.f32 %v7234_v6, %v1867_v12  ;;  %v7330_v12 = vmul.f32 %v7228_v63, %v1701_v4 }
 0x1e1   : > { %v1206_v16 = vsel %vm1135_vm1, %v1184_v15, 0.0 }
 0x1e2   : > { %9628 = vst [vmem:[#allocation44_spill] sm:$0xff] %v7278_v34  ;;  %9639 = vst [vmem:[#allocation55_spill] sm:$0xff] %v7330_v12  ;;  %v1543_v12 = vld [vmem:[#allocation2 + $0x126] sm:$0xff]  ;;  %v7504_v34 = vld [vmem:[%s6848_s25 + $0x19] ss:$0 sm:$0xff] }
 0x1e4   : > { %1207 = vadd.xlane.f32.xlu1 %v1206_v16  ;;  %v7243_v16 = vld [vmem:[%s6848_s25 + $0xa] ss:$0 sm:$0xff] }
 0x1e5   : > { %v7281_v35 = vmul.f32 %v7243_v16, %v1868_v13 }
 0x1e7   : > { %9629 = vst [vmem:[#allocation45_spill] sm:$0xff] %v7281_v35 }
 0x261   : > { %v1187_v17 = vpop.xlane.xlu0 %1186 }
 0x262   : > { %v1209_v18 = vmul.f32 0.0625, %v1187_v17  ;;  %v7246_v17 = vld [vmem:[%s6848_s25 + $0x10] ss:$0 sm:$0xff] }
 0x264   : > { %v1217_v19 = vadd.f32 1e-06, %v1209_v18  ;;  %v7248_v18 = vadd.f32 %v1427_v43, %v1413_v49 }
 0x265   : > { %v1190_v20 = vpop.xlane.xlu1 %1189  ;;  %v1193_v21 = vpop.xlane.xlu0 %1192 }
 0x266   : > { %6574 = vrsqrt.f32 %v1217_v19  ;;  %v1210_v24 = vmul.f32 0.0625, %v1190_v20  ;;  %v1211_v25 = vmul.f32 0.0625, %v1193_v21  ;;  %v7251_v19 = vmul.f32 %v7216_v54, %v1531_v57 }
 0x267   : > { %v7254_v20 = vmul.f32 %v7219_v55, %v1532_v58  ;;  %v7257_v21 = vmul.f32 %v7222_v56, %v1533_v59  ;;  %v7314_v57 = vmul.f32 %v7219_v55, %v1533_v59 }
 0x268   : > { %v1218_v28 = vadd.f32 1e-06, %v1210_v24  ;;  %v1219_v29 = vadd.f32 1e-06, %v1211_v25  ;;  %v7264_v25 = vmul.f32 %v7228_v63, %v1699_v1 }
 0x269   : > { %v1196_v31 = vpop.xlane.xlu1 %1195  ;;  %v1199_v32 = vpop.xlane.xlu0 %1198 }
 0x26a   : > { %6576 = vrsqrt.f32 %v1218_v28  ;;  %v1212_v36 = vmul.f32 0.0625, %v1196_v31  ;;  %v1213_v37 = vmul.f32 0.0625, %v1199_v32  ;;  %9625 = vst [vmem:[#allocation41_spill] sm:$0xff] %v7264_v25  ;;  %v7270_v28 = vmul.f32 %v7246_v17, %v1701_v4  ;;  %v7275_v32 = vld [vmem:[%s6848_s25 + $0x4] ss:$0 sm:$0xff] }
 0x26b   : > { %6578 = vrsqrt.f32 %v1219_v29  ;;  %v2036_v29 = vld [vmem:[#allocation2 + $0x21] sm:$0xff] }
 0x26c   : > { %v1220_v38 = vadd.f32 1e-06, %v1212_v36  ;;  %v1221_v39 = vadd.f32 1e-06, %v1213_v37  ;;  %9627 = vst [vmem:[#allocation43_spill] sm:$0xff] %v7270_v28  ;;  %v7284_v36 = vmul.f32 %v7260_v23, %v1869_v14 }
 0x26d   : > { %v1202_v44 = vpop.xlane.xlu1 %1201  ;;  %v1205_v47 = vpop.xlane.xlu0 %1204 }
 0x26e   : > { %6580 = vrsqrt.f32 %v1220_v38  ;;  %v1214_v50 = vmul.f32 0.0625, %v1202_v44  ;;  %v1215_v51 = vmul.f32 0.0625, %v1205_v47  ;;  %9630 = vst [vmem:[#allocation46_spill] sm:$0xff] %v7284_v36  ;;  %v7287_v38 = vld [vmem:[%s6848_s25 + $0xb] ss:$0 sm:$0xff] }
 0x26f   : > { %6582 = vrsqrt.f32 %v1221_v39  ;;  %v7290_v39 = vld [vmem:[%s6848_s25 + $0x12] ss:$0 sm:$0xff]  ;;  %v7301_v47 = vmul.f32 %v7287_v38, %v2036_v29 }
 0x270   : > { %v6575_v60 = vpop.eup %6574  ;;  %v1222_v5 = vadd.f32 1e-06, %v1214_v50  ;;  %v1223_v15 = vadd.f32 1e-06, %v1215_v51  ;;  %v7305_v49 = vmul.f32 %v7290_v39, %v7272_v30  ;;  %v7308_v50 = vmul.f32 %v7216_v54, %v1532_v58 }
 0x271   : > { %v1233_v10 = vmul.f32 %v6575_v60, %v7154_v46  ;;  %v2035_v46 = vld [vmem:[#allocation2 + $0x9] sm:$0xff]  ;;  %9633 = vst [vmem:[#allocation49_spill] sm:$0xff] %v7301_v47  ;;  %v1208_v51 = vpop.xlane.xlu1 %1207  ;;  %v7320_v60 = vmul.f32 %v7216_v54, %v1533_v59 }
 0x272   : > { %6584 = vrsqrt.f32 %v1222_v5  ;;  %v7297_v43 = vmul.f32 %v7275_v32, %v2035_v46  ;;  %9634 = vst [vmem:[#allocation50_spill] sm:$0xff] %v7305_v49  ;;  %v7324_v5 = vmul.f32 %v7231_v0, %v1701_v4  ;;  %v7395_v49 = vld [vmem:[%s6848_s25 + $0x24] ss:$0 sm:$0xff] }
 0x273   : > { %v1248_v24 = vmul.f32 %v7213_v48, %v1233_v10  ;;  %6586 = vrsqrt.f32 %v1223_v15  ;;  %9636 = vst [vmem:[#allocation52_spill] sm:$0xff] %v7320_v60  ;;  %v7327_v10 = vmul.f32 %v7234_v6, %v1868_v13  ;;  %v1382_v15 = vld [vmem:[#allocation2 + $0x10d] sm:$0xff]  ;;  %v7340_v13 = vld [vmem:[%s6848_s25 + $0x1c] ss:$0 sm:$0xff] }
 0x274   : > { %v6577_v31 = vpop.eup %6576  ;;  %9632 = vst [vmem:[#allocation48_spill] sm:$0xff] %v7297_v43  ;;  %9637 = vst [vmem:[#allocation53_spill] sm:$0xff] %v7324_v5 }
 0x275   : > { %v6579_v37 = vpop.eup %6578  ;;  %v7293_v41 = vadd.f32 %v7225_v62, %v1248_v24  ;;  %v1234_v42 = vmul.f32 %v6577_v31, %v7162_v53  ;;  %9638 = vst [vmem:[#allocation54_spill] sm:$0xff] %v7327_v10  ;;  %v7337_v24 = vmul.f32 %v7243_v16, %v1869_v14  ;;  %v1383_v31 = vld [vmem:[#allocation2 + $0x125] sm:$0xff]  ;;  %9642 = vst [vmem:[#allocation58_spill] sm:$0xff] %v7340_v13 }
 0x276   : > { %v1235_v44 = vmul.f32 %v6579_v37, %v7151_v45  ;;  %v7317_v45 = vmul.f32 %v7228_v63, %v1700_v3  ;;  %v1216_v37 = vmul.f32 0.0625, %v1208_v51  ;;  %v7359_v51 = vld [vmem:[%s6848_s25 + $0x15] ss:$0 sm:$0xff] }
 0x277   : > { %9631 = vst [vmem:[#allocation47_spill] sm:$0xff] %v7293_v41  ;;  %1307 = vst.msk [vmem:[#allocation2 + $0x50] sm:$0xff] %vm1135_vm1, %v7293_v41  ;;  %v1249_v53 = vmul.f32 %v7213_v48, %v1234_v42  ;;  %v7343_v42 = vld [vmem:[%s6848_s25 + $0x23] ss:$0 sm:$0xff]  ;;  %v7364_v41 = vld [vmem:[%s6848_s25 + $0x2a] ss:$0 sm:$0xff] }
 0x278   : > { %9635 = vst [vmem:[#allocation51_spill] sm:$0xff] %v7317_v45  ;;  %v6581_v1 = vpop.eup %6580  ;;  %v1250_v58 = vmul.f32 %v7213_v48, %v1235_v44  ;;  %9641 = vst [vmem:[#allocation57_spill] sm:$0xff] %v7337_v24  ;;  %v7349_v44 = vmul.f32 %v7275_v32, %v2036_v29  ;;  %v7369_v29 = vmul.f32 %v7287_v38, %v7272_v30  ;;  %v1712_v24 = vld [vmem:[#allocation2 + $0x13f] sm:$0xff] }
 0x279   : > { %v6583_v3 = vpop.eup %6582  ;;  %v7333_v59 = vadd.f32 %v7225_v62, %v1249_v53  ;;  %v1236_v46 = vmul.f32 %v6581_v1, %v7159_v52  ;;  %9643 = vst [vmem:[#allocation59_spill] sm:$0xff] %v7343_v42  ;;  %v7353_v52 = vmul.f32 %v7234_v6, %v1869_v14  ;;  %v1384_v1 = vld [vmem:[#allocation2 + $0x13d] sm:$0xff]  ;;  %9647 = vst [vmem:[#allocation63_spill] sm:$0xff] %v7359_v51 }
 0x27a   : > { %v7346_v4 = vadd.f32 %v7225_v62, %v1250_v58  ;;  %9645 = vst [vmem:[#allocation61_spill] sm:$0xff] %v7349_v44  ;;  %v1237_v53 = vmul.f32 %v6583_v3, %v7172_v61  ;;  %9648 = vst [vmem:[#allocation64_spill] sm:$0xff] %v7369_v29  ;;  %v7371_v61 = vld [vmem:[#allocation2 + $0x3a] sm:$0xff]  ;;  %v7374_v14 = vmul.f32 %v7340_v13, %v1382_v15 }
 0x27b   : > { %9640 = vst [vmem:[#allocation56_spill] sm:$0xff] %v7333_v59  ;;  %9646 = vst [vmem:[#allocation62_spill] sm:$0xff] %v7353_v52  ;;  %v1251_v58 = vmul.f32 %v7213_v48, %v1236_v46  ;;  %v7377_v3 = vmul.f32 %v7343_v42, %v1382_v15  ;;  %v1542_v52 = vld [vmem:[#allocation2 + $0x10e] sm:$0xff]  ;;  %v7380_v44 = vld [vmem:[%s6848_s25 + $0x1d] ss:$0 sm:$0xff]  ;;  %v7389_v29 = vmul.f32 %v7364_v41, %v1382_v15 }
 0x27c   : > { %9644 = vst [vmem:[#allocation60_spill] sm:$0xff] %v7346_v4  ;;  %1309 = vst.msk [vmem:[#allocation2 + $0x68] sm:$0xff] %vm1135_vm1, %v7333_v59  ;;  %v1252_v46 = vmul.f32 %v7213_v48, %v1237_v53  ;;  %v7386_v59 = vmul.f32 %v7343_v42, %v1383_v31  ;;  %v7402_v53 = vmul.f32 %v7275_v32, %v7272_v30  ;;  %v1710_v15 = vld [vmem:[#allocation2 + $0x10f] sm:$0xff] }
 0x27d   : > { %9649 = vst [vmem:[#allocation65_spill] sm:$0xff] %v7371_v61  ;;  %9650 = vst [vmem:[#allocation66_spill] sm:$0xff] %v7374_v14  ;;  %v7392_v14 = vmul.f32 %v7364_v41, %v1383_v31  ;;  %v7398_v47 = vadd.f32 %v7225_v62, %v1251_v58  ;;  %v7415_v58 = vmul.f32 %v7356_v40, %v7371_v61  ;;  %v7467_v61 = vld [vmem:[%s6848_s25 + $0x17] ss:$0 sm:$0xff] }
 0x27e   : > { %9651 = vst [vmem:[#allocation67_spill] sm:$0xff] %v7377_v3  ;;  %1311 = vst.msk [vmem:[#allocation2 + $0x80] sm:$0xff] %vm1135_vm1, %v7346_v4  ;;  %v1544_v3 = vld [vmem:[#allocation2 + $0x13e] sm:$0xff]  ;;  %v7405_v4 = vmul.f32 %v7364_v41, %v1384_v1  ;;  %v1374_v31 = vld [vmem:[#allocation2 + $0x4d] sm:$0xff]  ;;  %v7411_v43 = vadd.f32 %v7225_v62, %v1252_v46  ;;  %v7418_v30 = vmul.f32 %v7380_v44, %v1542_v52 }
 0x27f   : > { %9652 = vst [vmem:[#allocation68_spill] sm:$0xff] %v7386_v59  ;;  %9653 = vst [vmem:[#allocation69_spill] sm:$0xff] %v7389_v29  ;;  %v1224_v29 = vadd.f32 1e-06, %v1216_v37  ;;  %v6585_v59 = vpop.eup %6584  ;;  %v7421_v1 = vmul.f32 %v7395_v49, %v1542_v52  ;;  %v1711_v37 = vld [vmem:[#allocation2 + $0x127] sm:$0xff]  ;;  %v7429_v46 = vmul.f32 %v7395_v49, %v1543_v12  ;;  %v1407_v10 = vmul.f32 %v7202_v26, %v1374_v31  ;;  %v1702_v35 = vld [vmem:[#allocation2 + $0x4f] sm:$0xff] }
 0x280   : > { %9654 = vst [vmem:[#allocation70_spill] sm:$0xff] %v7392_v14  ;;  %9655 = vst [vmem:[#allocation71_spill] sm:$0xff] %v7398_v47  ;;  %v7408_v14 = vld [vmem:[%s6848_s25 + $0x2b] ss:$0 sm:$0xff]  ;;  %v1428_v60 = vmul.f32 %v7206_v33, %v1374_v31  ;;  %v1534_v36 = vld [vmem:[#allocation2 + $0x4e] sm:$0xff]  ;;  %v7510_v5 = vmul.f32 %v7231_v0, %v1702_v35 }
 0x281   : > { %9656 = vst [vmem:[#allocation72_spill] sm:$0xff] %v7402_v53  ;;  %9657 = vst [vmem:[#allocation73_spill] sm:$0xff] %v7405_v4  ;;  %v6587_v53 = vpop.eup %6586  ;;  %v7424_v4 = vld [vmem:[%s6848_s25 + $0x1e] ss:$0 sm:$0xff]  ;;  %6588 = vrsqrt.f32 %v1224_v29  ;;  %v1394_v29 = vmul.f32 %v7199_v22, %v1374_v31 }
 0x282   : > { %9658 = vst [vmem:[#allocation74_spill] sm:$0xff] %v7411_v43  ;;  %9659 = vst [vmem:[#allocation75_spill] sm:$0xff] %v7415_v58  ;;  %v7432_v58 = vmul.f32 %v7408_v14, %v1542_v52  ;;  %v7447_v52 = vld [vmem:[%s6848_s25 + $0x2c] ss:$0 sm:$0xff] }
 0x283   : > { %9660 = vst [vmem:[#allocation76_spill] sm:$0xff] %v7418_v30  ;;  %9661 = vst [vmem:[#allocation77_spill] sm:$0xff] %v7421_v1  ;;  %v7435_v30 = vmul.f32 %v7408_v14, %v1543_v12  ;;  %v7438_v1 = vmul.f32 %v7408_v14, %v1544_v3  ;;  %v7452_v12 = vmul.f32 %v7424_v4, %v1710_v15  ;;  %v7455_v3 = vld [vmem:[%s6848_s25 + $0x16] ss:$0 sm:$0xff] }
 0x284   : > { %1313 = vst.msk [vmem:[#allocation2 + $0x98] sm:$0xff] %vm1135_vm1, %v7398_v47  ;;  %9662 = vst [vmem:[#allocation78_spill] sm:$0xff] %v7429_v46  ;;  %v1449_v47 = vmul.f32 %v7359_v51, %v1374_v31  ;;  %v7444_v46 = vld [vmem:[%s6848_s25 + $0x25] ss:$0 sm:$0xff]  ;;  %v7498_v31 = vmul.f32 %v7455_v3, %v1534_v36 }
 0x285   : > { %9663 = vst [vmem:[#allocation79_spill] sm:$0xff] %v7432_v58  ;;  %9664 = vst [vmem:[#allocation80_spill] sm:$0xff] %v7435_v30  ;;  %v7461_v30 = vmul.f32 %v7444_v46, %v1711_v37  ;;  %v7464_v58 = vmul.f32 %v7447_v52, %v1710_v15  ;;  %v1376_v27 = vld [vmem:[#allocation2 + $0x7d] sm:$0xff] }
 0x286   : > { %9665 = vst [vmem:[#allocation81_spill] sm:$0xff] %v7438_v1  ;;  %1315 = vst.msk [vmem:[#allocation2 + $0xb0] sm:$0xff] %vm1135_vm1, %v7411_v43  ;;  %v7458_v1 = vmul.f32 %v7444_v46, %v1710_v15  ;;  %v7470_v43 = vmul.f32 %v6585_v59, %v7177_v2  ;;  %v7482_v15 = vld [vmem:[%s6848_s25 + $0x18] ss:$0 sm:$0xff]  ;;  %v7489_v2 = vmul.f32 %v7219_v55, %v1534_v36  ;;  %v1870_v59 = vld [vmem:[#allocation2 + $0x50] sm:$0xff] }
 0x287   : > { %9666 = vst [vmem:[#allocation82_spill] sm:$0xff] %v7452_v12  ;;  %9668 = vst [vmem:[#allocation84_spill] sm:$0xff] %v7461_v30  ;;  %v7473_v12 = vmul.f32 %v6587_v53, %v7183_v7  ;;  %v7479_v30 = vmul.f32 %v7447_v52, %v1712_v24  ;;  %v7492_v7 = vmul.f32 %v7222_v56, %v1534_v36  ;;  %v1872_v25 = vld [vmem:[#allocation2 + $0x80] sm:$0xff] }
 0x288   : > { %9667 = vst [vmem:[#allocation83_spill] sm:$0xff] %v7458_v1  ;;  %9669 = vst [vmem:[#allocation85_spill] sm:$0xff] %v7464_v58  ;;  %v7476_v1 = vmul.f32 %v7447_v52, %v1711_v37  ;;  %v7486_v58 = vmul.f32 %v7216_v54, %v1534_v36  ;;  %v1415_v53 = vadd.f32 %v1407_v10, %v7237_v8  ;;  %v7522_v36 = vld [vmem:[%s6848_s25 + $0x1a] ss:$0 sm:$0xff] }
 0x289   : > { %9670 = vst [vmem:[#allocation86_spill] sm:$0xff] %v7470_v43  ;;  %9671 = vst [vmem:[#allocation87_spill] sm:$0xff] %v7473_v12  ;;  %v1436_v24 = vadd.f32 %v1428_v60, %v7239_v9  ;;  %v1457_v37 = vadd.f32 %v1449_v47, %v7248_v18  ;;  %v7513_v8 = vmul.f32 %v7246_v17, %v1702_v35  ;;  %v7519_v18 = vld [vmem:[%s6848_s25 + $0x13] ss:$0 sm:$0xff] }
 0x28a   : > { %9672 = vst [vmem:[#allocation88_spill] sm:$0xff] %v7476_v1  ;;  %9673 = vst [vmem:[#allocation89_spill] sm:$0xff] %v7479_v30  ;;  %v2038_v30 = vld [vmem:[#allocation2 + $0x51] sm:$0xff]  ;;  %v1375_v1 = vld [vmem:[#allocation2 + $0x65] sm:$0xff]  ;;  %v7516_v9 = vmul.f32 %v7467_v61, %v1702_v35  ;;  %v7525_v47 = vmul.f32 %v7234_v6, %v1870_v59  ;;  %v7528_v60 = vmul.f32 %v7243_v16, %v1870_v59 }
 0x28b   : > { %9674 = vst [vmem:[#allocation90_spill] sm:$0xff] %v7482_v15  ;;  %9675 = vst [vmem:[#allocation91_spill] sm:$0xff] %v7486_v58  ;;  %v7501_v58 = vld [vmem:[%s6848_s25 + $0xc] ss:$0 sm:$0xff]  ;;  %v7531_v10 = vmul.f32 %v7260_v23, %v1870_v59  ;;  %v1429_v45 = vmul.f32 %v7206_v33, %v1375_v1  ;;  %v1450_v11 = vmul.f32 %v7359_v51, %v1375_v1  ;;  %v7574_v28 = vpop.eup %6588 }
 0x28c   : > { %9676 = vst [vmem:[#allocation92_spill] sm:$0xff] %v7489_v2  ;;  %9677 = vst [vmem:[#allocation93_spill] sm:$0xff] %v7492_v7  ;;  %v7507_v2 = vmul.f32 %v7228_v63, %v1702_v35  ;;  %v7537_v35 = vmul.f32 %v7275_v32, %v2038_v30  ;;  %v7592_v7 = vld [vmem:[%s6848_s25 + $0x20] ss:$0 sm:$0xff] }
 0x28d   : > { %9679 = vst [vmem:[#allocation95_spill] sm:$0xff] %v7510_v5  ;;  %9680 = vst [vmem:[#allocation96_spill] sm:$0xff] %v7513_v8  ;;  %v2206_v5 = vld [vmem:[#allocation2 + $0x52] sm:$0xff]  ;;  %v1408_v8 = vmul.f32 %v7202_v26, %v1375_v1  ;;  %v1458_v48 = vadd.f32 %v1450_v11, %v1436_v24  ;;  %v6079_v24 = vld [vmem:[%s6848_s25 + $0x21] ss:$0 sm:$0xff] }
 0x28e   : > { %9678 = vst [vmem:[#allocation94_spill] sm:$0xff] %v7507_v2  ;;  %9681 = vst [vmem:[#allocation97_spill] sm:$0xff] %v7516_v9  ;;  %v7534_v2 = vmul.f32 %v7482_v15, %v1870_v59  ;;  %v7549_v59 = vmul.f32 %v7504_v34, %v2038_v30  ;;  %v7556_v9 = vmul.f32 %v7501_v58, %v2206_v5 }
 0x28f   : > { %9682 = vst [vmem:[#allocation98_spill] sm:$0xff] %v7519_v18  ;;  %9683 = vst [vmem:[#allocation99_spill] sm:$0xff] %v7525_v47  ;;  %v1535_v47 = vld [vmem:[#allocation2 + $0x66] sm:$0xff]  ;;  %v7559_v62 = vmul.f32 %v7519_v18, %v2206_v5  ;;  %v7562_v12 = vmul.f32 %v7522_v36, %v2206_v5 }
 0x290   : > { %9684 = vst [vmem:[#allocation100_spill] sm:$0xff] %v7528_v60  ;;  %9685 = vst [vmem:[#allocation101_spill] sm:$0xff] %v7531_v10  ;;  %v7543_v60 = vmul.f32 %v7287_v38, %v2038_v30  ;;  %v7546_v10 = vmul.f32 %v7290_v39, %v2038_v30  ;;  %v7566_v30 = vmul.f32 %v7216_v54, %v1535_v47 }
 0x291   : > { %9686 = vst [vmem:[#allocation102_spill] sm:$0xff] %v7534_v2  ;;  %9687 = vst [vmem:[#allocation103_spill] sm:$0xff] %v7537_v35  ;;  %v1471_v2 = vmul.f32 %v7340_v13, %v1375_v1  ;;  %v7553_v35 = vmul.f32 %v7356_v40, %v2206_v5  ;;  %v1416_v5 = vadd.f32 %v1408_v8, %v1394_v29 }
 0x292   : > { %9688 = vst [vmem:[#allocation104_spill] sm:$0xff] %v7543_v60  ;;  %9689 = vst [vmem:[#allocation105_spill] sm:$0xff] %v7546_v10  ;;  %v1703_v60 = vld [vmem:[#allocation2 + $0x67] sm:$0xff]  ;;  %v1395_v10 = vmul.f32 %v7199_v22, %v1375_v1  ;;  %v7580_v1 = vmul.f32 %v7455_v3, %v1535_v47  ;;  %v7583_v43 = vmul.f32 %v7380_v44, %v1535_v47 }
 0x293   : > { %9690 = vst [vmem:[#allocation106_spill] sm:$0xff] %v7549_v59  ;;  %9691 = vst [vmem:[#allocation107_spill] sm:$0xff] %v7553_v35  ;;  %v7569_v59 = vmul.f32 %v7219_v55, %v1535_v47  ;;  %v7572_v35 = vmul.f32 %v7222_v56, %v1535_v47  ;;  %v7598_v11 = vmul.f32 %v7467_v61, %v1703_v60 }
 0x294   : > { %9692 = vst [vmem:[#allocation108_spill] sm:$0xff] %v7556_v9  ;;  %9693 = vst [vmem:[#allocation109_spill] sm:$0xff] %v7559_v62  ;;  %v1871_v9 = vld [vmem:[#allocation2 + $0x68] sm:$0xff]  ;;  %v7577_v62 = vld [vmem:[%s6848_s25 + $0x1f] ss:$0 sm:$0xff]  ;;  %v7601_v29 = vmul.f32 %v7424_v4, %v1703_v60 }
 0x295   : > { %9694 = vst [vmem:[#allocation110_spill] sm:$0xff] %v7562_v12  ;;  %9695 = vst [vmem:[#allocation111_spill] sm:$0xff] %v7566_v30  ;;  %v1437_v12 = vadd.f32 %v1429_v45, %v1415_v53  ;;  %v1479_v30 = vadd.f32 %v1471_v2, %v1457_v37  ;;  %v7595_v45 = vmul.f32 %v7246_v17, %v1703_v60  ;;  %v2207_v53 = vld [vmem:[#allocation2 + $0x6a] sm:$0xff] }
 0x296   : > { %9696 = vst [vmem:[#allocation112_spill] sm:$0xff] %v7569_v59  ;;  %9697 = vst [vmem:[#allocation113_spill] sm:$0xff] %v7572_v35  ;;  %v7586_v59 = vmul.f32 %v7228_v63, %v1703_v60  ;;  %v7589_v35 = vmul.f32 %v7231_v0, %v1703_v60  ;;  %v7604_v2 = vmul.f32 %v7234_v6, %v1871_v9 }
 0x297   : > { %9698 = vst [vmem:[#allocation114_spill] sm:$0xff] %v7574_v28  ;;  %9699 = vst [vmem:[#allocation115_spill] sm:$0xff] %v7580_v1  ;;  %v2039_v28 = vld [vmem:[#allocation2 + $0x69] sm:$0xff]  ;;  %v7608_v37 = vmul.f32 %v7243_v16, %v1871_v9  ;;  %v7611_v8 = vmul.f32 %v7260_v23, %v1871_v9  ;;  %v7614_v47 = vmul.f32 %v7482_v15, %v1871_v9 }
 0x298   : > { %9700 = vst [vmem:[#allocation116_spill] sm:$0xff] %v7586_v59  ;;  %9701 = vst [vmem:[#allocation117_spill] sm:$0xff] %v7589_v35  ;;  %v7617_v59 = vmul.f32 %v7577_v62, %v1871_v9  ;;  %v7620_v60 = vmul.f32 %v7275_v32, %v2039_v28  ;;  %v7623_v35 = vmul.f32 %v7287_v38, %v2039_v28 }
 0x299   : > { %9702 = vst [vmem:[#allocation118_spill] sm:$0xff] %v7595_v45  ;;  %9703 = vst [vmem:[#allocation119_spill] sm:$0xff] %v7598_v11  ;;  %v7630_v45 = vmul.f32 %v7504_v34, %v2039_v28  ;;  %v7636_v9 = vmul.f32 %v7356_v40, %v2207_v53  ;;  %v1704_v11 = vld [vmem:[#allocation2 + $0x7f] sm:$0xff] }
 0x29a   : > { %9704 = vst [vmem:[#allocation120_spill] sm:$0xff] %v7601_v29  ;;  %9705 = vst [vmem:[#allocation121_spill] sm:$0xff] %v7604_v2  ;;  %v7626_v2 = vmul.f32 %v7290_v39, %v2039_v28 }
 0x29b   : > { %9706 = vst [vmem:[#allocation122_spill] sm:$0xff] %v7608_v37  ;;  %9707 = vst [vmem:[#allocation123_spill] sm:$0xff] %v7611_v8  ;;  %v1409_v37 = vmul.f32 %v7202_v26, %v1376_v27  ;;  %v7633_v8 = vmul.f32 %v7592_v7, %v2039_v28  ;;  %v7651_v28 = vmul.f32 %v7199_v22, %v1376_v27 }
 0x29c   : > { %9708 = vst [vmem:[#allocation124_spill] sm:$0xff] %v7614_v47  ;;  %9709 = vst [vmem:[#allocation125_spill] sm:$0xff] %v7617_v59  ;;  %v7639_v47 = vmul.f32 %v7501_v58, %v2207_v53  ;;  %v7647_v59 = vmul.f32 %v6079_v24, %v2207_v53 }
 0x29d   : > { %9710 = vst [vmem:[#allocation126_spill] sm:$0xff] %v7620_v60  ;;  %9711 = vst [vmem:[#allocation127_spill] sm:$0xff] %v7623_v35  ;;  %v1536_v60 = vld [vmem:[#allocation2 + $0x7e] sm:$0xff]  ;;  %v7642_v35 = vmul.f32 %v7519_v18, %v2207_v53  ;;  %v7656_v29 = vadd.f32 %v1409_v37, %v1395_v10  ;;  %v7688_v37 = vmul.f32 %v7246_v17, %v1704_v11 }
 0x29e   : > { %9712 = vst [vmem:[#allocation128_spill] sm:$0xff] %v7626_v2  ;;  %9713 = vst [vmem:[#allocation129_spill] sm:$0xff] %v7630_v45  ;;  %v7645_v2 = vmul.f32 %v7522_v36, %v2207_v53  ;;  %v1430_v45 = vmul.f32 %v7206_v33, %v1376_v27  ;;  %v7661_v53 = vmul.f32 %v7216_v54, %v1536_v60 }
 0x29f   : > { %9714 = vst [vmem:[#allocation130_spill] sm:$0xff] %v7633_v8  ;;  %9715 = vst [vmem:[#allocation131_spill] sm:$0xff] %v7636_v9  ;;  %v1451_v9 = vmul.f32 %v7359_v51, %v1376_v27  ;;  %v1472_v8 = vmul.f32 %v7340_v13, %v1376_v27  ;;  %v7664_v24 = vmul.f32 %v7219_v55, %v1536_v60 }
 0x2a0   : > { %9716 = vst [vmem:[#allocation132_spill] sm:$0xff] %v7639_v47  ;;  %9717 = vst [vmem:[#allocation133_spill] sm:$0xff] %v7642_v35  ;;  %v1493_v47 = vmul.f32 %v7343_v42, %v1376_v27  ;;  %v7658_v35 = vadd.f32 %v1430_v45, %v1416_v5  ;;  %v7667_v1 = vmul.f32 %v7222_v56, %v1536_v60  ;;  %v7670_v27 = vld [vmem:[%s6848_s25 + $0x26] ss:$0 sm:$0xff] }
 0x2a1   : > { %9718 = vst [vmem:[#allocation134_spill] sm:$0xff] %v7645_v2  ;;  %9719 = vst [vmem:[#allocation135_spill] sm:$0xff] %v7647_v59  ;;  %v1459_v2 = vadd.f32 %v1451_v9, %v1437_v12  ;;  %v1480_v59 = vadd.f32 %v1472_v8, %v1458_v48  ;;  %v7673_v10 = vmul.f32 %v7455_v3, %v1536_v60  ;;  %v2040_v48 = vld [vmem:[#allocation2 + $0x81] sm:$0xff]  ;;  %v1377_v9 = vld [vmem:[#allocation2 + $0x95] sm:$0xff] }
 0x2a2   : > { %9720 = vst [vmem:[#allocation136_spill] sm:$0xff] %v7651_v28  ;;  %9721 = vst [vmem:[#allocation137_spill] sm:$0xff] %v7661_v53  ;;  %v1501_v28 = vadd.f32 %v1493_v47, %v1479_v30  ;;  %v7676_v5 = vmul.f32 %v7380_v44, %v1536_v60  ;;  %v7679_v45 = vmul.f32 %v7395_v49, %v1536_v60 }
 0x2a3   : > { %9722 = vst [vmem:[#allocation138_spill] sm:$0xff] %v7664_v24  ;;  %9723 = vst [vmem:[#allocation139_spill] sm:$0xff] %v7667_v1  ;;  %v7682_v12 = vmul.f32 %v7228_v63, %v1704_v11  ;;  %v7685_v30 = vmul.f32 %v7231_v0, %v1704_v11  ;;  %v7691_v8 = vmul.f32 %v7467_v61, %v1704_v11  ;;  %v7697_v24 = vld [vmem:[%s6848_s25 + $0x27] ss:$0 sm:$0xff] }
 0x2a4   : > { %9724 = vst [vmem:[#allocation140_spill] sm:$0xff] %v7673_v10  ;;  %9727 = vst [vmem:[#allocation143_spill] sm:$0xff] %v7688_v37  ;;  %v7694_v47 = vmul.f32 %v7424_v4, %v1704_v11  ;;  %v7700_v60 = vmul.f32 %v7444_v46, %v1704_v11  ;;  %v7709_v53 = vmul.f32 %v7260_v23, %v1872_v25  ;;  %v7711_v37 = vld [vmem:[#allocation2 + $0x82] sm:$0xff] }
 0x2a5   : > { %9725 = vst [vmem:[#allocation141_spill] sm:$0xff] %v7682_v12  ;;  %9726 = vst [vmem:[#allocation142_spill] sm:$0xff] %v7685_v30  ;;  %v7703_v12 = vmul.f32 %v7234_v6, %v1872_v25  ;;  %v7706_v30 = vmul.f32 %v7243_v16, %v1872_v25  ;;  %v7717_v1 = vmul.f32 %v7577_v62, %v1872_v25 }
 0x2a6   : > { %9728 = vst [vmem:[#allocation144_spill] sm:$0xff] %v7691_v8  ;;  %9729 = vst [vmem:[#allocation145_spill] sm:$0xff] %v7694_v47  ;;  %v7714_v8 = vmul.f32 %v7482_v15, %v1872_v25  ;;  %v7720_v11 = vmul.f32 %v7670_v27, %v1872_v25  ;;  %v7723_v10 = vmul.f32 %v7275_v32, %v2040_v48 }
 0x2a7   : > { %9730 = vst [vmem:[#allocation146_spill] sm:$0xff] %v7703_v12  ;;  %9731 = vst [vmem:[#allocation147_spill] sm:$0xff] %v7706_v30  ;;  %v7726_v12 = vmul.f32 %v7287_v38, %v2040_v48  ;;  %v7729_v30 = vmul.f32 %v7290_v39, %v2040_v48  ;;  %v7736_v47 = vmul.f32 %v7592_v7, %v2040_v48 }
 0x2a8   : > { %9732 = vst [vmem:[#allocation148_spill] sm:$0xff] %v7709_v53  ;;  %9733 = vst [vmem:[#allocation149_spill] sm:$0xff] %v7711_v37  ;;  %v7732_v53 = vmul.f32 %v7504_v34, %v2040_v48  ;;  %v7739_v25 = vmul.f32 %v7697_v24, %v2040_v48  ;;  %v7757_v48 = vmul.f32 %v7522_v36, %v7711_v37 }
 0x2a9   : > { %9734 = vst [vmem:[#allocation150_spill] sm:$0xff] %v7714_v8  ;;  %9735 = vst [vmem:[#allocation151_spill] sm:$0xff] %v7717_v1  ;;  %v1515_v8 = vmul.f32 %v7364_v41, %v1377_v9  ;;  %v1537_v1 = vld [vmem:[#allocation2 + $0x96] sm:$0xff] }
 0x2aa   : > { %9736 = vst [vmem:[#allocation152_spill] sm:$0xff] %v7720_v11  ;;  %9737 = vst [vmem:[#allocation153_spill] sm:$0xff] %v7723_v10  ;;  %v7743_v10 = vmul.f32 %v7356_v40, %v7711_v37  ;;  %v7776_v36 = vmul.f32 %v7219_v55, %v1537_v1 }
 0x2ab   : > { %9738 = vst [vmem:[#allocation154_spill] sm:$0xff] %v7726_v12  ;;  %9739 = vst [vmem:[#allocation155_spill] sm:$0xff] %v7729_v30  ;;  %v1473_v12 = vmul.f32 %v7340_v13, %v1377_v9  ;;  %v7748_v30 = vmul.f32 %v7501_v58, %v7711_v37  ;;  %v1523_v11 = vadd.f32 %v1515_v8, %v1501_v28  ;;  %v1705_v8 = vld [vmem:[#allocation2 + $0x97] sm:$0xff] }
 0x2ac   : > { %9740 = vst [vmem:[#allocation156_spill] sm:$0xff] %v7732_v53  ;;  %9741 = vst [vmem:[#allocation157_spill] sm:$0xff] %v7736_v47  ;;  %v7752_v53 = vmul.f32 %v7519_v18, %v7711_v37  ;;  %v1494_v47 = vmul.f32 %v7343_v42, %v1377_v9  ;;  %v7769_v18 = vmul.f32 %v7359_v51, %v1377_v9 }
 0x2ad   : > { %9742 = vst [vmem:[#allocation158_spill] sm:$0xff] %v7739_v25  ;;  %9743 = vst [vmem:[#allocation159_spill] sm:$0xff] %v7743_v10  ;;  %v7760_v10 = vmul.f32 %v7199_v22, %v1377_v9  ;;  %v7763_v25 = vmul.f32 %v7202_v26, %v1377_v9  ;;  %v1559_v28 = vadd.f32 %v7251_v19, %v1523_v11 }
 0x2ae   : > { %9744 = vst [vmem:[#allocation160_spill] sm:$0xff] %v7748_v30  ;;  %9745 = vst [vmem:[#allocation161_spill] sm:$0xff] %v7752_v53  ;;  %v7766_v30 = vmul.f32 %v7206_v33, %v1377_v9  ;;  %v7772_v53 = vmul.f32 %v7216_v54, %v1537_v1  ;;  %v7781_v37 = vmul.f32 %v7222_v56, %v1537_v1 }
 0x2af   : > { %9746 = vst [vmem:[#allocation162_spill] sm:$0xff] %v7757_v48  ;;  %9747 = vst [vmem:[#allocation163_spill] sm:$0xff] %v7760_v10  ;;  %v7778_v48 = vadd.f32 %v1473_v12, %v1459_v2  ;;  %v7784_v10 = vmul.f32 %v7455_v3, %v1537_v1  ;;  %v7787_v9 = vmul.f32 %v7380_v44, %v1537_v1  ;;  %v7795_v2 = vld [vmem:[%s6848_s25 + $0x2d] ss:$0 sm:$0xff] }
 0x2b0   : > { %9748 = vst [vmem:[#allocation164_spill] sm:$0xff] %v7766_v30  ;;  %9749 = vst [vmem:[#allocation165_spill] sm:$0xff] %v7772_v53  ;;  %v1502_v22 = vadd.f32 %v1494_v47, %v1480_v59  ;;  %v1581_v53 = vadd.f32 %v7254_v20, %v1559_v28  ;;  %v7791_v19 = vmul.f32 %v7395_v49, %v1537_v1 }
 0x2b1   : > { %9750 = vst [vmem:[#allocation166_spill] sm:$0xff] %v7776_v36  ;;  %9751 = vst [vmem:[#allocation167_spill] sm:$0xff] %v7781_v37  ;;  %v1683_v11 = vmul.f32 %v7408_v14, %v1537_v1  ;;  %v1873_v36 = vld [vmem:[#allocation2 + $0x98] sm:$0xff]  ;;  %v7798_v12 = vmul.f32 %v7228_v63, %v1705_v8  ;;  %v7801_v37 = vmul.f32 %v7231_v0, %v1705_v8 }
 0x2b2   : > { %9752 = vst [vmem:[#allocation168_spill] sm:$0xff] %v7784_v10  ;;  %9753 = vst [vmem:[#allocation169_spill] sm:$0xff] %v7787_v9  ;;  %v7804_v10 = vmul.f32 %v7246_v17, %v1705_v8  ;;  %v7807_v20 = vmul.f32 %v7467_v61, %v1705_v8  ;;  %v1603_v59 = vadd.f32 %v7257_v21, %v1581_v53  ;;  %v7819_v9 = vld [vmem:[#allocation2 + $0xad] sm:$0xff] }
 0x2b3   : > { %9754 = vst [vmem:[#allocation170_spill] sm:$0xff] %v7798_v12  ;;  %9755 = vst [vmem:[#allocation171_spill] sm:$0xff] %v7801_v37  ;;  %v7811_v1 = vmul.f32 %v7424_v4, %v1705_v8  ;;  %v7814_v47 = vmul.f32 %v7444_v46, %v1705_v8  ;;  %v7817_v28 = vmul.f32 %v7447_v52, %v1705_v8  ;;  %v2041_v12 = vld [vmem:[#allocation2 + $0x99] sm:$0xff] }
 0x2b4   : > { %9756 = vst [vmem:[#allocation172_spill] sm:$0xff] %v7804_v10  ;;  %9757 = vst [vmem:[#allocation173_spill] sm:$0xff] %v7807_v20  ;;  %v7822_v37 = vmul.f32 %v7234_v6, %v1873_v36  ;;  %v7825_v10 = vmul.f32 %v7243_v16, %v1873_v36  ;;  %v7828_v21 = vmul.f32 %v7260_v23, %v1873_v36  ;;  %v7834_v20 = vld [vmem:[%s6848_s25 + $0x2e] ss:$0 sm:$0xff] }
 0x2b5   : > { %9758 = vst [vmem:[#allocation174_spill] sm:$0xff] %v7811_v1  ;;  %9759 = vst [vmem:[#allocation175_spill] sm:$0xff] %v7814_v47  ;;  %v7831_v53 = vmul.f32 %v7482_v15, %v1873_v36  ;;  %v1625_v8 = vadd.f32 %v7498_v31, %v1603_v59  ;;  %v7838_v1 = vmul.f32 %v7577_v62, %v1873_v36 }
 0x2b6   : > { %9760 = vst [vmem:[#allocation176_spill] sm:$0xff] %v7822_v37  ;;  %9761 = vst [vmem:[#allocation177_spill] sm:$0xff] %v7825_v10  ;;  %v7841_v47 = vmul.f32 %v7670_v27, %v1873_v36  ;;  %v7844_v37 = vmul.f32 %v7795_v2, %v1873_v36  ;;  %v7846_v10 = vld [vmem:[#allocation2 + $0x9a] sm:$0xff]  ;;  %v7855_v30 = vmul.f32 %v7290_v39, %v2041_v12 }
 0x2b7   : > { %9762 = vst [vmem:[#allocation178_spill] sm:$0xff] %v7828_v21  ;;  %9763 = vst [vmem:[#allocation179_spill] sm:$0xff] %v7831_v53  ;;  %v7849_v21 = vmul.f32 %v7275_v32, %v2041_v12  ;;  %v7852_v53 = vmul.f32 %v7287_v38, %v2041_v12  ;;  %v1516_v31 = vmul.f32 %v7364_v41, %v7819_v9 }
 0x2b8   : > { %9764 = vst [vmem:[#allocation180_spill] sm:$0xff] %v7838_v1  ;;  %9765 = vst [vmem:[#allocation181_spill] sm:$0xff] %v7841_v47  ;;  %v1647_v59 = vadd.f32 %v7583_v43, %v1625_v8  ;;  %v7861_v1 = vmul.f32 %v7504_v34, %v2041_v12  ;;  %v7864_v36 = vmul.f32 %v7592_v7, %v2041_v12 }
 0x2b9   : > { %9766 = vst [vmem:[#allocation182_spill] sm:$0xff] %v7844_v37  ;;  %9767 = vst [vmem:[#allocation183_spill] sm:$0xff] %v7846_v10  ;;  %v7867_v47 = vmul.f32 %v7697_v24, %v2041_v12  ;;  %v7878_v43 = vmul.f32 %v7501_v58, %v7846_v10  ;;  %v1524_v8 = vadd.f32 %v1516_v31, %v1502_v22 }
 0x2ba   : > { %9768 = vst [vmem:[#allocation184_spill] sm:$0xff] %v7849_v21  ;;  %9769 = vst [vmem:[#allocation185_spill] sm:$0xff] %v7852_v53  ;;  %v1538_v21 = vld [vmem:[#allocation2 + $0xae] sm:$0xff]  ;;  %v7870_v53 = vmul.f32 %v7834_v20, %v2041_v12  ;;  %v7891_v12 = vmul.f32 %v7359_v51, %v7819_v9  ;;  %v1495_v22 = vmul.f32 %v7343_v42, %v7819_v9 }
 0x2bb   : > { %9770 = vst [vmem:[#allocation186_spill] sm:$0xff] %v7855_v30  ;;  %9771 = vst [vmem:[#allocation187_spill] sm:$0xff] %v7861_v1  ;;  %v7874_v30 = vmul.f32 %v7356_v40, %v7846_v10  ;;  %v1669_v1 = vadd.f32 %v7679_v45, %v1647_v59  ;;  %v7900_v45 = vmul.f32 %v7216_v54, %v1538_v21  ;;  %v1706_v59 = vld [vmem:[#allocation2 + $0xaf] sm:$0xff] }
 0x2bc   : > { %9772 = vst [vmem:[#allocation188_spill] sm:$0xff] %v7864_v36  ;;  %9773 = vst [vmem:[#allocation189_spill] sm:$0xff] %v7867_v47  ;;  %v7883_v36 = vmul.f32 %v7202_v26, %v7819_v9  ;;  %v7887_v47 = vmul.f32 %v7206_v33, %v7819_v9  ;;  %v1560_v31 = vadd.f32 %v7308_v50, %v1524_v8 }
 0x2bd   : > { %9774 = vst [vmem:[#allocation190_spill] sm:$0xff] %v7870_v53  ;;  %9775 = vst [vmem:[#allocation191_spill] sm:$0xff] %v7874_v30  ;;  %v7895_v30 = vmul.f32 %v7340_v13, %v7819_v9  ;;  %v7904_v53 = vmul.f32 %v7219_v55, %v1538_v21  ;;  %v7907_v37 = vmul.f32 %v7222_v56, %v1538_v21 }
 0x2be   : > { %9776 = vst [vmem:[#allocation192_spill] sm:$0xff] %v7878_v43  ;;  %9777 = vst [vmem:[#allocation193_spill] sm:$0xff] %v7900_v45  ;;  %v1691_v43 = vadd.f32 %v1683_v11, %v1669_v1  ;;  %v7910_v51 = vmul.f32 %v7455_v3, %v1538_v21  ;;  %v1582_v13 = vadd.f32 %v7314_v57, %v1560_v31  ;;  %v1874_v11 = vld [vmem:[#allocation2 + $0xb0] sm:$0xff] }
 0x2bf   : > { %9778 = vst [vmem:[#allocation194_spill] sm:$0xff] %v7904_v53  ;;  %9779 = vst [vmem:[#allocation195_spill] sm:$0xff] %v7907_v37  ;;  %v7914_v42 = vmul.f32 %v7380_v44, %v1538_v21  ;;  %v7917_v54 = vmul.f32 %v7395_v49, %v1538_v21  ;;  %v1684_v50 = vmul.f32 %v7408_v14, %v1538_v21  ;;  %v9783_v1 = vld [vmem:[#allocation41_spill] sm:$0xff] }
 0x2c0   : > { %9780 = vst [vmem:[#allocation196_spill] sm:$0xff] %v7910_v51  ;;  %v1727_v8 = vadd.f32 %v9783_v1, %v1691_v43  ;;  %v7922_v53 = vmul.f32 %v7228_v63, %v1706_v59  ;;  %v7925_v37 = vmul.f32 %v7231_v0, %v1706_v59  ;;  %v7928_v51 = vmul.f32 %v7246_v17, %v1706_v59  ;;  %v9787_v57 = vld [vmem:[#allocation93_spill] sm:$0xff]  ;;  %v9791_v43 = vld [vmem:[#allocation42_spill] sm:$0xff] }
 0x2c1   : > { %9781 = vst [vmem:[#allocation197_spill] sm:$0xff] %v7914_v42  ;;  %9782 = vst [vmem:[#allocation198_spill] sm:$0xff] %v7917_v54  ;;  %v1604_v31 = vadd.f32 %v9787_v57, %v1582_v13  ;;  %v7932_v45 = vmul.f32 %v7467_v61, %v1706_v59  ;;  %v7935_v42 = vmul.f32 %v7424_v4, %v1706_v59  ;;  %v2042_v13 = vld [vmem:[#allocation2 + $0xb1] sm:$0xff]  ;;  %v9794_v57 = vld [vmem:[#allocation115_spill] sm:$0xff] }
 0x2c2   : > { %9784 = vst [vmem:[#allocation41_spill] sm:$0xff] %v7922_v53  ;;  %9785 = vst [vmem:[#allocation199_spill] sm:$0xff] %v7925_v37  ;;  %v7938_v21 = vmul.f32 %v7444_v46, %v1706_v59  ;;  %v1749_v63 = vadd.f32 %v9791_v43, %v1727_v8  ;;  %v7942_v1 = vmul.f32 %v7447_v52, %v1706_v59  ;;  %v9798_v8 = vld [vmem:[#allocation39_spill] sm:$0xff] }
 0x2c3   : > { %9786 = vst [vmem:[#allocation200_spill] sm:$0xff] %v7928_v51  ;;  %9788 = vst [vmem:[#allocation93_spill] sm:$0xff] %v7932_v45  ;;  %v7945_v37 = vmul.f32 %v7234_v6, %v1874_v11  ;;  %v7948_v51 = vmul.f32 %v7243_v16, %v1874_v11  ;;  %v1626_v45 = vadd.f32 %v9794_v57, %v1604_v31  ;;  %v9799_v59 = vld [vmem:[#allocation43_spill] sm:$0xff] }
 0x2c4   : > { %9789 = vst [vmem:[#allocation201_spill] sm:$0xff] %v7935_v42  ;;  %9790 = vst [vmem:[#allocation202_spill] sm:$0xff] %v7938_v21  ;;  %v7952_v53 = vmul.f32 %v7260_v23, %v1874_v11  ;;  %v7955_v42 = vmul.f32 %v7482_v15, %v1874_v11  ;;  %v9797_v21 = vld [vmem:[#allocation86_spill] sm:$0xff]  ;;  %v1771_v54 = vadd.f32 %v9799_v59, %v1749_v63  ;;  %v9805_v63 = vld [vmem:[#allocation40_spill] sm:$0xff] }
 0x2c5   : > { %9792 = vst [vmem:[#allocation42_spill] sm:$0xff] %v7945_v37  ;;  %9793 = vst [vmem:[#allocation203_spill] sm:$0xff] %v7948_v51  ;;  %v1253_v43 = vmul.f32 %v9798_v8, %v9797_v21  ;;  %v7961_v6 = vmul.f32 %v7577_v62, %v1874_v11  ;;  %v7964_v37 = vmul.f32 %v7670_v27, %v1874_v11  ;;  %v9802_v51 = vld [vmem:[#allocation87_spill] sm:$0xff]  ;;  %v7975_v21 = vld [vmem:[#allocation2 + $0xb2] sm:$0xff] }
 0x2c6   : > { %9795 = vst [vmem:[#allocation115_spill] sm:$0xff] %v7952_v53  ;;  %9796 = vst [vmem:[#allocation204_spill] sm:$0xff] %v7955_v42  ;;  %v1254_v31 = vmul.f32 %v9798_v8, %v9802_v51  ;;  %v1648_v57 = vadd.f32 %v7676_v5, %v1626_v45  ;;  %v7970_v53 = vmul.f32 %v7795_v2, %v1874_v11 }
 0x2c7   : > { %9800 = vst [vmem:[#allocation86_spill] sm:$0xff] %v7961_v6  ;;  %9801 = vst [vmem:[#allocation39_spill] sm:$0xff] %v7964_v37  ;;  %v7973_v42 = vmul.f32 %v7275_v32, %v2042_v13  ;;  %v7978_v59 = vadd.f32 %v9805_v63, %v1253_v43  ;;  %v9807_v6 = vld [vmem:[#allocation97_spill] sm:$0xff]  ;;  %v7982_v37 = vmul.f32 %v7287_v38, %v2042_v13 }
 0x2c8   : > { %9804 = vst [vmem:[#allocation87_spill] sm:$0xff] %v7975_v21  ;;  %v1793_v15 = vadd.f32 %v9807_v6, %v1771_v54  ;;  %v7985_v51 = vmul.f32 %v7290_v39, %v2042_v13  ;;  %v7988_v5 = vadd.f32 %v9805_v63, %v1254_v31  ;;  %v1670_v45 = vadd.f32 %v7791_v19, %v1648_v57  ;;  %v1878_v43 = vld [vmem:[#allocation2 + $0x110] sm:$0xff]  ;;  %v1879_v6 = vld [vmem:[#allocation2 + $0x128] sm:$0xff] }
 0x2c9   : > { %9803 = vst [vmem:[#allocation43_spill] sm:$0xff] %v7973_v42  ;;  %9806 = vst [vmem:[#allocation40_spill] sm:$0xff] %v7978_v59  ;;  %v7992_v32 = vmul.f32 %v7504_v34, %v2042_v13  ;;  %v7995_v11 = vmul.f32 %v7592_v7, %v2042_v13  ;;  %v1460_v54 = vadd.f32 %v7769_v18, %v7658_v35  ;;  %v1880_v35 = vld [vmem:[#allocation2 + $0x140] sm:$0xff]  ;;  %v9819_v42 = vld [vmem:[#allocation114_spill] sm:$0xff] }
 0x2ca   : > { %9808 = vst [vmem:[#allocation97_spill] sm:$0xff] %v7982_v37  ;;  %9809 = vst [vmem:[#allocation205_spill] sm:$0xff] %v7985_v51  ;;  %v9813_v51 = vld [vmem:[#allocation120_spill] sm:$0xff]  ;;  %v8003_v31 = vmul.f32 %v7697_v24, %v2042_v13  ;;  %v8006_v19 = vmul.f32 %v7834_v20, %v2042_v13  ;;  %v8010_v57 = vmul.f32 %v7356_v40, %v7975_v21 }
 0x2cb   : > { %9810 = vst [vmem:[#allocation206_spill] sm:$0xff] %v7988_v5  ;;  %9811 = vst [vmem:[#allocation207_spill] sm:$0xff] %v7992_v32  ;;  %v1815_v37 = vadd.f32 %v9813_v51, %v1793_v15  ;;  %v8016_v18 = vmul.f32 %v7501_v58, %v7975_v21  ;;  %v1503_v15 = vadd.f32 %v1495_v22, %v7778_v48  ;;  %v2046_v51 = vld [vmem:[#allocation2 + $0x111] sm:$0xff] }
 0x2cc   : > { %9812 = vst [vmem:[#allocation208_spill] sm:$0xff] %v7995_v11  ;;  %1317 = vst.msk [vmem:[#allocation2 + $0xc8] sm:$0xff] %vm1135_vm1, %v7978_v59  ;;  %v1692_v59 = vadd.f32 %v1684_v50, %v1670_v45  ;;  %v9818_v32 = vld [vmem:[#allocation37_spill] sm:$0xff]  ;;  %v8029_v50 = vmul.f32 %v7670_v27, %v1879_v6  ;;  %v9823_v45 = vld [vmem:[#allocation51_spill] sm:$0xff]  ;;  %v8033_v48 = vadd.f32 %v7895_v30, %v1460_v54 }
 0x2cd   : > { %9814 = vst [vmem:[#allocation120_spill] sm:$0xff] %v8003_v31  ;;  %9815 = vst [vmem:[#allocation209_spill] sm:$0xff] %v8006_v19  ;;  %v1240_v13 = vmul.f32 %v9819_v42, %v9818_v32  ;;  %v1837_v11 = vadd.f32 %v7700_v60, %v1815_v37  ;;  %v8023_v31 = vmul.f32 %v7577_v62, %v1878_v43  ;;  %v2047_v42 = vld [vmem:[#allocation2 + $0x129] sm:$0xff] }
 0x2ce   : > { %9816 = vst [vmem:[#allocation210_spill] sm:$0xff] %v8010_v57  ;;  %1319 = vst.msk [vmem:[#allocation2 + $0xe0] sm:$0xff] %vm1135_vm1, %v7988_v5  ;;  %v8026_v57 = vmul.f32 %v7670_v27, %v1878_v43  ;;  %v1728_v5 = vadd.f32 %v9823_v45, %v1692_v59  ;;  %v8036_v22 = vmul.f32 %v7795_v2, %v1878_v43  ;;  %v9828_v30 = vld [vmem:[#allocation53_spill] sm:$0xff] }
 0x2cf   : > { %9817 = vst [vmem:[#allocation211_spill] sm:$0xff] %v8016_v18  ;;  %9820 = vst [vmem:[#allocation37_spill] sm:$0xff] %v8023_v31  ;;  %v1255_v37 = vmul.f32 %v9798_v8, %v1240_v13  ;;  %v1859_v60 = vadd.f32 %v7817_v28, %v1837_v11  ;;  %v8041_v32 = vmul.f32 %v7795_v2, %v1879_v6  ;;  %v9831_v28 = vld [vmem:[#allocation136_spill] sm:$0xff]  ;;  %v9863_v31 = vld [vmem:[#allocation175_spill] sm:$0xff] }
 0x2d0   : > { %9821 = vst [vmem:[#allocation114_spill] sm:$0xff] %v8026_v57  ;;  %9822 = vst [vmem:[#allocation212_spill] sm:$0xff] %v8029_v50  ;;  %v8044_v18 = vmul.f32 %v7795_v2, %v1880_v35  ;;  %v2048_v50 = vld [vmem:[#allocation2 + $0x141] sm:$0xff]  ;;  %v8047_v59 = vmul.f32 %v7592_v7, %v2046_v51  ;;  %v1750_v54 = vadd.f32 %v9828_v30, %v1728_v5  ;;  %v2203_v6 = vld [vmem:[#allocation2 + $0xa] sm:$0xff] }
 0x2d1   : > { %9824 = vst [vmem:[#allocation51_spill] sm:$0xff] %v8036_v22  ;;  %9825 = vst [vmem:[#allocation213_spill] sm:$0xff] %v8041_v32  ;;  %v8051_v43 = vmul.f32 %v7697_v24, %v2046_v51  ;;  %v8054_v8 = vadd.f32 %v9805_v63, %v1255_v37  ;;  %v1418_v11 = vadd.f32 %v7763_v25, %v9831_v28  ;;  %v9832_v13 = vld [vmem:[#allocation44_spill] sm:$0xff]  ;;  %v8116_v22 = vld [vmem:[%s6848_s25 + $0x6] ss:$0 sm:$0xff] }
 0x2d2   : > { %9826 = vst [vmem:[#allocation214_spill] sm:$0xff] %v8044_v18  ;;  %9827 = vst [vmem:[#allocation215_spill] sm:$0xff] %v8047_v59  ;;  %v1895_v35 = vadd.f32 %v9832_v13, %v1859_v60  ;;  %v8060_v18 = vmul.f32 %v7697_v24, %v2047_v42  ;;  %v8063_v59 = vmul.f32 %v7834_v20, %v2046_v51  ;;  %v9835_v5 = vld [vmem:[#allocation164_spill] sm:$0xff]  ;;  %v9841_v51 = vld [vmem:[#allocation38_spill] sm:$0xff] }
 0x2d3   : > { %9829 = vst [vmem:[#allocation53_spill] sm:$0xff] %v8051_v43  ;;  %9830 = vst [vmem:[#allocation216_spill] sm:$0xff] %v8054_v8  ;;  %v1379_v45 = vld [vmem:[#allocation2 + $0xc5] sm:$0xff]  ;;  %v1439_v30 = vadd.f32 %v9835_v5, %v7656_v29  ;;  %v8074_v25 = vmul.f32 %v7834_v20, %v2047_v42  ;;  %v8077_v60 = vmul.f32 %v7834_v20, %v2048_v50  ;;  %v9842_v29 = vld [vmem:[#allocation45_spill] sm:$0xff] }
 0x2d4   : > { %9833 = vst [vmem:[#allocation136_spill] sm:$0xff] %v8060_v18  ;;  %9834 = vst [vmem:[#allocation44_spill] sm:$0xff] %v8063_v59  ;;  %v8067_v43 = vld [vmem:[#allocation2 + $0x22] sm:$0xff]  ;;  %v8083_v28 = vmul.f32 %v9841_v51, %v7819_v9  ;;  %v1917_v13 = vadd.f32 %v9842_v29, %v1895_v35  ;;  %v8088_v5 = vld [vmem:[%s6848_s25 + $0x2f] ss:$0 sm:$0xff]  ;;  %v8095_v50 = vmul.f32 %v7356_v40, %v2203_v6 }
 0x2d5   : > { %9836 = vst [vmem:[#allocation164_spill] sm:$0xff] %v8067_v43  ;;  %v9837_v63 = vld [vmem:[#allocation96_spill] sm:$0xff]  ;;  %9839 = vst [vmem:[#allocation217_spill] sm:$0xff] %v8074_v25  ;;  %v9844_v42 = vld [vmem:[#allocation163_spill] sm:$0xff]  ;;  %v8101_v51 = vadd.f32 %v7887_v47, %v1418_v11  ;;  %v8105_v35 = vmul.f32 %v7501_v58, %v8067_v43  ;;  %v8113_v6 = vadd.f32 %v7891_v12, %v1439_v30 }
 0x2d6   : > { %v1772_v37 = vadd.f32 %v9837_v63, %v1750_v54  ;;  %v8071_v32 = vld [vmem:[%s6848_s25 + $0x28] ss:$0 sm:$0xff]  ;;  %9840 = vst [vmem:[#allocation218_spill] sm:$0xff] %v8077_v60  ;;  %1321 = vst.msk [vmem:[#allocation2 + $0xf8] sm:$0xff] %vm1135_vm1, %v8054_v8  ;;  %v1517_v54 = vmul.f32 %v7364_v41, %v1379_v45  ;;  %v8092_v63 = vadd.f32 %v7883_v36, %v9844_v42  ;;  %v2371_v8 = vld [vmem:[#allocation2 + $0xb] sm:$0xff] }
 0x2d7   : > { %9838 = vst [vmem:[#allocation96_spill] sm:$0xff] %v8071_v32  ;;  %9843 = vst [vmem:[#allocation38_spill] sm:$0xff] %v8088_v5  ;;  %v8097_v59 = vld [vmem:[#allocation2 + $0x23] sm:$0xff]  ;;  %v9849_v29 = vld [vmem:[#allocation65_spill] sm:$0xff] }
 0x2d8   : > { %9845 = vst [vmem:[#allocation45_spill] sm:$0xff] %v8095_v50  ;;  %9846 = vst [vmem:[#allocation163_spill] sm:$0xff] %v8097_v59  ;;  %v9847_v60 = vld [vmem:[#allocation119_spill] sm:$0xff]  ;;  %v9850_v25 = vld [vmem:[#allocation98_spill] sm:$0xff]  ;;  %v1525_v40 = vadd.f32 %v1517_v54, %v1503_v15  ;;  %v8131_v15 = vmul.f32 %v8116_v22, %v2371_v8  ;;  %v8139_v54 = vmul.f32 %v7202_v26, %v1379_v45 }
 0x2d9   : > { %v1794_v9 = vadd.f32 %v9847_v60, %v1772_v37  ;;  %9848 = vst [vmem:[#allocation119_spill] sm:$0xff] %v8105_v35  ;;  %v8109_v18 = vmul.f32 %v9850_v25, %v9849_v29  ;;  %v9852_v36 = vld [vmem:[#allocation46_spill] sm:$0xff]  ;;  %9853 = vst [vmem:[#allocation98_spill] sm:$0xff] %v8116_v22  ;;  %v8119_v37 = vld [vmem:[%s6848_s25 + $0xd] ss:$0 sm:$0xff]  ;;  %v8128_v29 = vmul.f32 %v8088_v5, %v7846_v10 }
 0x2da   : > { %v1939_v42 = vadd.f32 %v9852_v36, %v1917_v13  ;;  %9854 = vst [vmem:[#allocation46_spill] sm:$0xff] %v8119_v37  ;;  %v9855_v47 = vld [vmem:[#allocation149_spill] sm:$0xff]  ;;  %v1539_v21 = vld [vmem:[#allocation2 + $0xc6] sm:$0xff]  ;;  %9859 = vst [vmem:[#allocation220_spill] sm:$0xff] %v8131_v15  ;;  %v8135_v12 = vmul.f32 %v8119_v37, %v8097_v59  ;;  %v8142_v36 = vmul.f32 %v7206_v33, %v1379_v45 }
 0x2db   : > { %9851 = vst [vmem:[#allocation65_spill] sm:$0xff] %v8109_v18  ;;  %v8123_v11 = vmul.f32 %v8071_v32, %v9855_v47  ;;  %v9857_v60 = vld [vmem:[#allocation145_spill] sm:$0xff]  ;;  %v9861_v30 = vld [vmem:[#allocation102_spill] sm:$0xff]  ;;  %v9864_v32 = vld [vmem:[#allocation63_spill] sm:$0xff]  ;;  %v8155_v26 = vmul.f32 %v7219_v55, %v1539_v21 }
 0x2dc   : > { %v1816_v57 = vadd.f32 %v9857_v60, %v1794_v9  ;;  %9858 = vst [vmem:[#allocation145_spill] sm:$0xff] %v8128_v29  ;;  %9860 = vst [vmem:[#allocation221_spill] sm:$0xff] %v8135_v12  ;;  %v1961_v13 = vadd.f32 %v9861_v30, %v1939_v42  ;;  %v9862_v9 = vld [vmem:[#allocation52_spill] sm:$0xff]  ;;  %v8147_v10 = vmul.f32 %v9864_v32, %v1379_v45  ;;  %v9865_v8 = vld [vmem:[#allocation58_spill] sm:$0xff] }
 0x2dd   : > { %9856 = vst [vmem:[#allocation219_spill] sm:$0xff] %v8123_v11  ;;  %v1561_v60 = vadd.f32 %v9862_v9, %v1525_v40  ;;  %v8150_v22 = vmul.f32 %v9865_v8, %v1379_v45  ;;  %v9866_v37 = vld [vmem:[#allocation59_spill] sm:$0xff]  ;;  %v9867_v42 = vld [vmem:[#allocation125_spill] sm:$0xff]  ;;  %v9868_v33 = vld [vmem:[#allocation92_spill] sm:$0xff]  ;;  %v8159_v40 = vmul.f32 %v7222_v56, %v1539_v21  ;;  %v8166_v9 = vmul.f32 %v7380_v44, %v1539_v21 }
 0x2de   : > { %v1838_v5 = vadd.f32 %v9863_v31, %v1816_v57  ;;  %v1496_v59 = vmul.f32 %v9866_v37, %v1379_v45  ;;  %v1707_v47 = vld [vmem:[#allocation2 + $0xc7] sm:$0xff]  ;;  %v1983_v30 = vadd.f32 %v9867_v42, %v1961_v13  ;;  %v8163_v57 = vmul.f32 %v7455_v3, %v1539_v21  ;;  %v9870_v55 = vld [vmem:[#allocation113_spill] sm:$0xff] }
 0x2df   : > { %v1583_v12 = vadd.f32 %v9868_v33, %v1561_v60  ;;  %v8169_v45 = vmul.f32 %v7395_v49, %v1539_v21  ;;  %v9869_v13 = vld [vmem:[#allocation152_spill] sm:$0xff]  ;;  %v1685_v60 = vmul.f32 %v7408_v14, %v1539_v21  ;;  %v8175_v33 = vmul.f32 %v7231_v0, %v1707_v47 }
 0x2e0   : > { %v1860_v31 = vadd.f32 %v7942_v1, %v1838_v5  ;;  %v2005_v42 = vadd.f32 %v9869_v13, %v1983_v30  ;;  %v1875_v29 = vld [vmem:[#allocation2 + $0xc8] sm:$0xff]  ;;  %v9872_v1 = vld [vmem:[#allocation54_spill] sm:$0xff]  ;;  %v8179_v11 = vmul.f32 %v7246_v17, %v1707_v47  ;;  %v8182_v43 = vmul.f32 %v7467_v61, %v1707_v47 }
 0x2e1   : > { %v1605_v15 = vadd.f32 %v9870_v55, %v1583_v12  ;;  %9871 = vst [vmem:[#allocation102_spill] sm:$0xff] %v8175_v33  ;;  %v8185_v18 = vmul.f32 %v7424_v4, %v1707_v47  ;;  %v9876_v30 = vld [vmem:[#allocation182_spill] sm:$0xff]  ;;  %v9877_v12 = vld [vmem:[#allocation140_spill] sm:$0xff]  ;;  %v8190_v21 = vmul.f32 %v7444_v46, %v1707_v47  ;;  %v8193_v0 = vmul.f32 %v7447_v52, %v1707_v47 }
 0x2e2   : > { %v1896_v5 = vadd.f32 %v9872_v1, %v1860_v31  ;;  %9873 = vst [vmem:[#allocation52_spill] sm:$0xff] %v8179_v11  ;;  %9874 = vst [vmem:[#allocation175_spill] sm:$0xff] %v8182_v43  ;;  %v2027_v13 = vadd.f32 %v9876_v30, %v2005_v42  ;;  %v1380_v31 = vld [vmem:[#allocation2 + $0xdd] sm:$0xff]  ;;  %v9878_v1 = vld [vmem:[#allocation57_spill] sm:$0xff]  ;;  %v8197_v50 = vmul.f32 %v7243_v16, %v1875_v29 }
 0x2e3   : > { %9875 = vst [vmem:[#allocation63_spill] sm:$0xff] %v8185_v18  ;;  %v1627_v55 = vadd.f32 %v9877_v12, %v1605_v15  ;;  %v8200_v43 = vmul.f32 %v7260_v23, %v1875_v29  ;;  %v2043_v18 = vld [vmem:[#allocation2 + $0xc9] sm:$0xff]  ;;  %v1504_v42 = vadd.f32 %v1496_v59, %v8033_v48  ;;  %v9883_v33 = vld [vmem:[#allocation90_spill] sm:$0xff]  ;;  %v8209_v47 = vmul.f32 %v7577_v62, %v1875_v29 }
 0x2e4   : > { %v1918_v35 = vadd.f32 %v9878_v1, %v1896_v5  ;;  %9879 = vst [vmem:[#allocation58_spill] sm:$0xff] %v8197_v50  ;;  %v9881_v30 = vld [vmem:[#allocation48_spill] sm:$0xff]  ;;  %v9882_v12 = vld [vmem:[#allocation169_spill] sm:$0xff]  ;;  %v8206_v19 = vmul.f32 %v9883_v33, %v1875_v29  ;;  %v8213_v16 = vmul.f32 %v7670_v27, %v1875_v29  ;;  %v1518_v48 = vmul.f32 %v7364_v41, %v1380_v31 }
 0x2e5   : > { %9880 = vst [vmem:[#allocation59_spill] sm:$0xff] %v8200_v43  ;;  %v2063_v15 = vadd.f32 %v9881_v30, %v2027_v13  ;;  %v1649_v11 = vadd.f32 %v9882_v12, %v1627_v55  ;;  %9885 = vst [vmem:[#allocation92_spill] sm:$0xff] %v8209_v47  ;;  %v9886_v5 = vld [vmem:[#allocation101_spill] sm:$0xff]  ;;  %v8216_v43 = vmul.f32 %v7795_v2, %v1875_v29  ;;  %v9889_v30 = vld [vmem:[#allocation198_spill] sm:$0xff] }
 0x2e6   : > { %9884 = vst [vmem:[#allocation125_spill] sm:$0xff] %v8206_v19  ;;  %v1940_v1 = vadd.f32 %v9886_v5, %v1918_v35  ;;  %9887 = vst [vmem:[#allocation152_spill] sm:$0xff] %v8213_v16  ;;  %v9888_v59 = vld [vmem:[#allocation49_spill] sm:$0xff]  ;;  %v8222_v12 = vmul.f32 %v7287_v38, %v2043_v18  ;;  %v8225_v19 = vmul.f32 %v7290_v39, %v2043_v18  ;;  %v9893_v5 = vld [vmem:[#allocation124_spill] sm:$0xff] }
 0x2e7   : > { %v2085_v13 = vadd.f32 %v9888_v59, %v2063_v15  ;;  %v1671_v55 = vadd.f32 %v9889_v30, %v1649_v11  ;;  %v8227_v35 = vld [vmem:[#allocation2 + $0xca] sm:$0xff]  ;;  %v8231_v29 = vmul.f32 %v7504_v34, %v2043_v18  ;;  %v8234_v50 = vmul.f32 %v7592_v7, %v2043_v18  ;;  %v9896_v59 = vld [vmem:[#allocation50_spill] sm:$0xff] }
 0x2e8   : > { %9890 = vst [vmem:[#allocation113_spill] sm:$0xff] %v8222_v12  ;;  %9891 = vst [vmem:[#allocation54_spill] sm:$0xff] %v8225_v19  ;;  %v1962_v47 = vadd.f32 %v9893_v5, %v1940_v1  ;;  %v1526_v15 = vadd.f32 %v1518_v48, %v1504_v42  ;;  %v8238_v38 = vmul.f32 %v7697_v24, %v2043_v18  ;;  %v1540_v19 = vld [vmem:[#allocation2 + $0xde] sm:$0xff] }
 0x2e9   : > { %9892 = vst [vmem:[#allocation182_spill] sm:$0xff] %v8227_v35  ;;  %9894 = vst [vmem:[#allocation140_spill] sm:$0xff] %v8231_v29  ;;  %v2107_v11 = vadd.f32 %v9896_v59, %v2085_v13  ;;  %v1693_v30 = vadd.f32 %v1685_v60, %v1671_v55  ;;  %v8241_v39 = vmul.f32 %v7834_v20, %v2043_v18  ;;  %v9899_v12 = vld [vmem:[#allocation151_spill] sm:$0xff]  ;;  %v6694_v55 = vld [vmem:[%s6848_s25 + $0xe] ss:$0 sm:$0xff] }
 0x2ea   : > { %9895 = vst [vmem:[#allocation57_spill] sm:$0xff] %v8234_v50  ;;  %9897 = vst [vmem:[#allocation48_spill] sm:$0xff] %v8238_v38  ;;  %v1984_v16 = vadd.f32 %v9899_v12, %v1962_v47  ;;  %v8246_v1 = vmul.f32 %v7501_v58, %v8227_v35  ;;  %v8250_v5 = vmul.f32 %v9850_v25, %v8227_v35  ;;  %v9902_v42 = vld [vmem:[#allocation91_spill] sm:$0xff]  ;;  %v9904_v29 = vld [vmem:[#allocation181_spill] sm:$0xff] }
 0x2eb   : > { %9898 = vst [vmem:[#allocation169_spill] sm:$0xff] %v8241_v39  ;;  %v1562_v48 = vadd.f32 %v9902_v42, %v1526_v15  ;;  %v9903_v60 = vld [vmem:[#allocation55_spill] sm:$0xff]  ;;  %v1434_v59 = vmul.f32 %v6694_v55, %v1380_v31  ;;  %v1455_v18 = vmul.f32 %v9864_v32, %v1380_v31  ;;  %v1476_v50 = vmul.f32 %v9865_v8, %v1380_v31  ;;  %v9905_v58 = vld [vmem:[#allocation112_spill] sm:$0xff]  ;;  %v9909_v35 = vld [vmem:[#allocation118_spill] sm:$0xff] }
 0x2ec   : > { %9900 = vst [vmem:[#allocation90_spill] sm:$0xff] %v8246_v1  ;;  %9901 = vst [vmem:[#allocation101_spill] sm:$0xff] %v8250_v5  ;;  %v1729_v13 = vadd.f32 %v9903_v60, %v1693_v30  ;;  %v2006_v47 = vadd.f32 %v9904_v29, %v1984_v16  ;;  %v1497_v12 = vmul.f32 %v9866_v37, %v1380_v31  ;;  %v1708_v25 = vld [vmem:[#allocation2 + $0xdf] sm:$0xff]  ;;  %v9916_v39 = vld [vmem:[#allocation144_spill] sm:$0xff] }
 0x2ed   : > { %v1584_v1 = vadd.f32 %v9905_v58, %v1562_v48  ;;  %v8261_v38 = vmul.f32 %v7222_v56, %v1540_v19  ;;  %v9906_v5 = vld [vmem:[#allocation106_spill] sm:$0xff]  ;;  %v9907_v42 = vld [vmem:[#allocation95_spill] sm:$0xff]  ;;  %v8266_v60 = vmul.f32 %v7455_v3, %v1540_v19  ;;  %v8269_v55 = vmul.f32 %v7380_v44, %v1540_v19 }
 0x2ee   : > { %v2129_v15 = vadd.f32 %v9906_v5, %v2107_v11  ;;  %v1751_v30 = vadd.f32 %v9907_v42, %v1729_v13  ;;  %v2028_v16 = vadd.f32 %v7970_v53, %v2006_v47  ;;  %v9908_v29 = vld [vmem:[#allocation139_spill] sm:$0xff]  ;;  %v8274_v48 = vmul.f32 %v7395_v49, %v1540_v19  ;;  %v9912_v53 = vld [vmem:[#allocation61_spill] sm:$0xff] }
 0x2ef   : > { %v1606_v31 = vadd.f32 %v9908_v29, %v1584_v1  ;;  %v1686_v56 = vmul.f32 %v7408_v14, %v1540_v19  ;;  %v1876_v58 = vld [vmem:[#allocation2 + $0xe0] sm:$0xff]  ;;  %v8279_v5 = vmul.f32 %v7246_v17, %v1708_v25  ;;  %v8282_v13 = vmul.f32 %v7467_v61, %v1708_v25  ;;  %v9913_v1 = vld [vmem:[#allocation168_spill] sm:$0xff] }
 0x2f0   : > { %v1773_v11 = vadd.f32 %v9909_v35, %v1751_v30  ;;  %v8285_v44 = vmul.f32 %v7424_v4, %v1708_v25  ;;  %v2064_v47 = vadd.f32 %v9912_v53, %v2028_v16  ;;  %v8290_v29 = vmul.f32 %v7444_v46, %v1708_v25  ;;  %v1381_v35 = vld [vmem:[#allocation2 + $0xf5] sm:$0xff]  ;;  %v9917_v16 = vld [vmem:[#allocation64_spill] sm:$0xff] }
 0x2f1   : > { %9910 = vst [vmem:[#allocation49_spill] sm:$0xff] %v8279_v5  ;;  %9911 = vst [vmem:[#allocation198_spill] sm:$0xff] %v8282_v13  ;;  %v1628_v42 = vadd.f32 %v9913_v1, %v1606_v31  ;;  %v8293_v19 = vmul.f32 %v7447_v52, %v1708_v25  ;;  %v9915_v30 = vld [vmem:[#allocation130_spill] sm:$0xff]  ;;  %v8298_v13 = vmul.f32 %v7260_v23, %v1876_v58  ;;  %v9918_v31 = vld [vmem:[#allocation197_spill] sm:$0xff] }
 0x2f2   : > { %9914 = vst [vmem:[#allocation124_spill] sm:$0xff] %v8290_v29  ;;  %v2151_v17 = vadd.f32 %v9915_v30, %v2129_v15  ;;  %v1795_v5 = vadd.f32 %v9916_v39, %v1773_v11  ;;  %v8301_v4 = vmul.f32 %v9883_v33, %v1876_v58  ;;  %v2086_v53 = vadd.f32 %v9917_v16, %v2064_v47  ;;  %v9919_v25 = vld [vmem:[#allocation174_spill] sm:$0xff] }
 0x2f3   : > { %v1650_v1 = vadd.f32 %v9918_v31, %v1628_v42  ;;  %v8306_v29 = vmul.f32 %v7577_v62, %v1876_v58  ;;  %v1420_v52 = vadd.f32 %v8139_v54, %v8083_v28  ;;  %v1441_v39 = vadd.f32 %v8142_v36, %v8092_v63  ;;  %v9920_v31 = vld [vmem:[#allocation202_spill] sm:$0xff] }
 0x2f4   : > { %v1817_v15 = vadd.f32 %v9919_v25, %v1795_v5  ;;  %v1456_v23 = vmul.f32 %v9864_v32, %v1381_v35  ;;  %v1462_v11 = vadd.f32 %v8147_v10, %v8101_v51  ;;  %v8318_v42 = vmul.f32 %v7670_v27, %v1876_v58  ;;  %v9921_v32 = vld [vmem:[#allocation105_spill] sm:$0xff]  ;;  %v2044_v10 = vld [vmem:[#allocation2 + $0xe1] sm:$0xff] }
 0x2f5   : > { %v1672_v47 = vadd.f32 %v8169_v45, %v1650_v1  ;;  %v1442_v30 = vadd.f32 %v1434_v59, %v1420_v52  ;;  %v1477_v16 = vmul.f32 %v9865_v8, %v1381_v35  ;;  %v1463_v54 = vadd.f32 %v1455_v18, %v1441_v39 }
 0x2f6   : > { %v1839_v28 = vadd.f32 %v9920_v31, %v1817_v15  ;;  %v1483_v5 = vadd.f32 %v8150_v22, %v8113_v6  ;;  %v1484_v63 = vadd.f32 %v1476_v50, %v1462_v11  ;;  %v2108_v36 = vadd.f32 %v9921_v32, %v2086_v53  ;;  %v9922_v15 = vld [vmem:[#allocation94_spill] sm:$0xff]  ;;  %v6695_v11 = vld [vmem:[%s6848_s25 + $0x12] ss:$0 sm:$0xff]  ;;  %v9931_v32 = vld [vmem:[#allocation100_spill] sm:$0xff] }
 0x2f7   : > { %v1694_v25 = vadd.f32 %v1686_v56, %v1672_v47  ;;  %v1464_v51 = vadd.f32 %v1456_v23, %v1442_v30  ;;  %v1498_v45 = vmul.f32 %v9866_v37, %v1381_v35  ;;  %v1485_v59 = vadd.f32 %v1477_v16, %v1463_v54  ;;  %v9923_v22 = vld [vmem:[#allocation66_spill] sm:$0xff]  ;;  %v9925_v37 = vld [vmem:[#allocation67_spill] sm:$0xff]  ;;  %v9926_v30 = vld [vmem:[#allocation129_spill] sm:$0xff] }
 0x2f8   : > { %v1861_v1 = vadd.f32 %v8193_v0, %v1839_v28  ;;  %v1505_v52 = vadd.f32 %v1497_v12, %v1483_v5  ;;  %v1519_v8 = vmul.f32 %v7364_v41, %v1381_v35  ;;  %v8330_v39 = vmul.f32 %v7795_v2, %v1876_v58  ;;  %v9924_v53 = vld [vmem:[#allocation62_spill] sm:$0xff]  ;;  %v9927_v16 = vld [vmem:[#allocation117_spill] sm:$0xff]  ;;  %v9928_v35 = vld [vmem:[#allocation68_spill] sm:$0xff] }
 0x2f9   : > { %v1730_v18 = vadd.f32 %v9922_v15, %v1694_v25  ;;  %v1486_v50 = vadd.f32 %v9923_v22, %v1464_v51  ;;  %v1506_v6 = vadd.f32 %v1498_v45, %v1484_v63  ;;  %v8335_v23 = vmul.f32 %v6695_v11, %v2044_v10  ;;  %v9929_v28 = vld [vmem:[#allocation69_spill] sm:$0xff]  ;;  %v9930_v54 = vld [vmem:[#allocation158_spill] sm:$0xff]  ;;  %v9933_v45 = vld [vmem:[#allocation111_spill] sm:$0xff] }
 0x2fa   : > { %v1897_v56 = vadd.f32 %v9924_v53, %v1861_v1  ;;  %v1507_v47 = vadd.f32 %v9925_v37, %v1485_v59  ;;  %v1527_v0 = vadd.f32 %v1519_v8, %v1505_v52  ;;  %v2130_v12 = vadd.f32 %v9926_v30, %v2108_v36  ;;  %v9932_v25 = vld [vmem:[#allocation70_spill] sm:$0xff]  ;;  %v9934_v15 = vld [vmem:[#allocation143_spill] sm:$0xff]  ;;  %v9935_v36 = vld [vmem:[#allocation73_spill] sm:$0xff] }
 0x2fb   : > { %v1752_v41 = vadd.f32 %v9927_v16, %v1730_v18  ;;  %v1508_v31 = vadd.f32 %v9928_v35, %v1486_v50  ;;  %v1528_v58 = vadd.f32 %v9929_v28, %v1506_v6  ;;  %v2173_v5 = vadd.f32 %v9930_v54, %v2151_v17  ;;  %v9936_v8 = vld [vmem:[#allocation137_spill] sm:$0xff]  ;;  %v9937_v50 = vld [vmem:[#allocation123_spill] sm:$0xff]  ;;  %v9939_v11 = vld [vmem:[#allocation138_spill] sm:$0xff] }
 0x2fc   : > { %v1919_v63 = vadd.f32 %v9931_v32, %v1897_v56  ;;  %v1529_v51 = vadd.f32 %v9932_v25, %v1507_v47  ;;  %v1563_v1 = vadd.f32 %v9933_v45, %v1527_v0  ;;  %v8348_v59 = vmul.f32 %v7504_v34, %v2044_v10  ;;  %v9938_v17 = vld [vmem:[#allocation165_spill] sm:$0xff]  ;;  %v9943_v54 = vld [vmem:[#allocation166_spill] sm:$0xff] }
 0x2fd   : > { %v1774_v22 = vadd.f32 %v9934_v15, %v1752_v41  ;;  %v1530_v52 = vadd.f32 %v9935_v36, %v1508_v31  ;;  %v1564_v18 = vadd.f32 %v9936_v8, %v1528_v58  ;;  %v8354_v6 = vmul.f32 %v7592_v7, %v2044_v10  ;;  %v9940_v47 = vld [vmem:[#allocation157_spill] sm:$0xff]  ;;  %v9944_v32 = vld [vmem:[#allocation150_spill] sm:$0xff]  ;;  %v9946_v15 = vld [vmem:[#allocation167_spill] sm:$0xff] }
 0x2fe   : > { %v1941_v53 = vadd.f32 %v9937_v50, %v1919_v63  ;;  %v1565_v56 = vadd.f32 %v9938_v17, %v1529_v51  ;;  %v1585_v37 = vadd.f32 %v9939_v11, %v1563_v1  ;;  %v2152_v0 = vadd.f32 %v9940_v47, %v2130_v12  ;;  %v9941_v30 = vld [vmem:[#allocation173_spill] sm:$0xff]  ;;  %v9945_v25 = vld [vmem:[#allocation194_spill] sm:$0xff]  ;;  %v9950_v11 = vld [vmem:[#allocation196_spill] sm:$0xff] }
 0x2ff   : > { %v1796_v16 = vadd.f32 %v9941_v30, %v1774_v22  ;;  %v1541_v41 = vld [vmem:[#allocation2 + $0xf6] sm:$0xff]  ;;  %v1586_v31 = vadd.f32 %v9943_v54, %v1564_v18  ;;  %v8364_v63 = vmul.f32 %v7697_v24, %v2044_v10  ;;  %v8370_v12 = vmul.f32 %v7834_v20, %v2044_v10  ;;  %v9949_v18 = vld [vmem:[#allocation180_spill] sm:$0xff] }
 0x300   : > { %v9942_v35 = vld [vmem:[#allocation193_spill] sm:$0xff]  ;;  %v1963_v58 = vadd.f32 %v9944_v32, %v1941_v53  ;;  %v1587_v45 = vadd.f32 %v9945_v25, %v1565_v56  ;;  %v1607_v51 = vadd.f32 %v9946_v15, %v1585_v37  ;;  %v1624_v17 = vmul.f32 %v7455_v3, %v1541_v41  ;;  %v6696_v54 = vld [vmem:[%s6848_s25 + $0x1d] ss:$0 sm:$0xff] }
 0x301   : > { %v1566_v28 = vadd.f32 %v9942_v35, %v1530_v52  ;;  %v9947_v1 = vld [vmem:[#allocation201_spill] sm:$0xff]  ;;  %v9948_v52 = vld [vmem:[#allocation195_spill] sm:$0xff]  ;;  %v1687_v25 = vmul.f32 %v7408_v14, %v1541_v41  ;;  %v9960_v14 = vld [vmem:[#allocation78_spill] sm:$0xff] }
 0x302   : > { %v1818_v36 = vadd.f32 %v9947_v1, %v1796_v16  ;;  %v1608_v8 = vadd.f32 %v9948_v52, %v1586_v31  ;;  %v1985_v50 = vadd.f32 %v9949_v18, %v1963_v58  ;;  %v1609_v53 = vadd.f32 %v8159_v40, %v1587_v45  ;;  %v9951_v47 = vld [vmem:[#allocation189_spill] sm:$0xff]  ;;  %v9952_v35 = vld [vmem:[#allocation39_spill] sm:$0xff]  ;;  %v9955_v1 = vld [vmem:[#allocation76_spill] sm:$0xff] }
 0x303   : > { %v1588_v22 = vadd.f32 %v8155_v26, %v1566_v28  ;;  %v1629_v56 = vadd.f32 %v9950_v11, %v1607_v51  ;;  %v2174_v30 = vadd.f32 %v9951_v47, %v2152_v0  ;;  %v1645_v31 = vmul.f32 %v6696_v54, %v1541_v41  ;;  %v1709_v45 = vld [vmem:[#allocation2 + $0xf7] sm:$0xff]  ;;  %v9954_v51 = vld [vmem:[#allocation99_spill] sm:$0xff]  ;;  %v9962_v11 = vld [vmem:[#allocation104_spill] sm:$0xff] }
 0x304   : > { %v1840_v37 = vadd.f32 %v8190_v21, %v1818_v36  ;;  %v1630_v10 = vadd.f32 %v8163_v57, %v1608_v8  ;;  %v2007_v26 = vadd.f32 %v9952_v35, %v1985_v50  ;;  %v1631_v28 = vadd.f32 %v8266_v60, %v1609_v53  ;;  %v9953_v60 = vld [vmem:[#allocation190_spill] sm:$0xff]  ;;  %v9961_v53 = vld [vmem:[#allocation79_spill] sm:$0xff]  ;;  %v9963_v47 = vld [vmem:[#allocation80_spill] sm:$0xff] }
 0x305   : > { %v1610_v16 = vadd.f32 %v8261_v38, %v1588_v22  ;;  %v1651_v40 = vadd.f32 %v8166_v9, %v1629_v56  ;;  %v1666_v0 = vmul.f32 %v7395_v49, %v1541_v41  ;;  %v2195_v15 = vadd.f32 %v9953_v60, %v2173_v5  ;;  %v9956_v22 = vld [vmem:[#allocation209_spill] sm:$0xff]  ;;  %v9957_v49 = vld [vmem:[#allocation72_spill] sm:$0xff] }
 0x306   : > { %v1862_v3 = vadd.f32 %v8293_v19, %v1840_v37  ;;  %v1652_v58 = vadd.f32 %v8269_v55, %v1630_v10  ;;  %v2029_v21 = vadd.f32 %v8216_v43, %v2007_v26  ;;  %v1653_v38 = vadd.f32 %v1645_v31, %v1631_v28  ;;  %v9958_v43 = vld [vmem:[#allocation77_spill] sm:$0xff]  ;;  %v6697_v10 = vld [vmem:[%s6848_s25 + $0x1e] ss:$0 sm:$0xff]  ;;  %v9965_v28 = vld [vmem:[#allocation148_spill] sm:$0xff] }
 0x307   : > { %v1632_v32 = vadd.f32 %v1624_v17, %v1610_v16  ;;  %v1673_v57 = vadd.f32 %v8274_v48, %v1651_v40  ;;  %v8396_v55 = vadd.f32 %v9956_v22, %v2174_v30  ;;  %v9959_v48 = vld [vmem:[#allocation122_spill] sm:$0xff]  ;;  %v1792_v17 = vmul.f32 %v7467_v61, %v1709_v45  ;;  %v9964_v30 = vld [vmem:[#allocation116_spill] sm:$0xff]  ;;  %v9966_v31 = vld [vmem:[#allocation81_spill] sm:$0xff] }
 0x308   : > { %v1898_v9 = vadd.f32 %v9954_v51, %v1862_v3  ;;  %v1674_v36 = vadd.f32 %v1666_v0, %v1652_v58  ;;  %v2065_v52 = vadd.f32 %v9957_v49, %v2029_v21  ;;  %v1675_v8 = vadd.f32 %v9958_v43, %v1653_v38  ;;  %v1877_v26 = vld [vmem:[#allocation2 + $0xf8] sm:$0xff]  ;;  %v9967_v3 = vld [vmem:[#allocation141_spill] sm:$0xff]  ;;  %v9968_v0 = vld [vmem:[#allocation128_spill] sm:$0xff] }
 0x309   : > { %v1654_v19 = vadd.f32 %v9955_v1, %v1632_v32  ;;  %v1695_v18 = vadd.f32 %v1687_v25, %v1673_v57  ;;  %v1813_v35 = vmul.f32 %v6697_v10, %v1709_v45  ;;  %v1834_v58 = vmul.f32 %v7444_v46, %v1709_v45  ;;  %v9969_v61 = vld [vmem:[#allocation170_spill] sm:$0xff]  ;;  %v6698_v60 = vld [vmem:[%s6848_s25 + $0x2c] ss:$0 sm:$0xff]  ;;  %v9973_v22 = vld [vmem:[#allocation171_spill] sm:$0xff] }
 0x30a   : > { %v1920_v50 = vadd.f32 %v9959_v48, %v1898_v9  ;;  %v1696_v5 = vadd.f32 %v9961_v53, %v1674_v36  ;;  %v2087_v56 = vadd.f32 %v9962_v11, %v2065_v52  ;;  %v1697_v37 = vadd.f32 %v9963_v47, %v1675_v8  ;;  %v9970_v57 = vld [vmem:[#allocation142_spill] sm:$0xff]  ;;  %v9971_v9 = vld [vmem:[#allocation179_spill] sm:$0xff]  ;;  %v9974_v43 = vld [vmem:[#allocation156_spill] sm:$0xff] }
 0x30b   : > { %v1676_v41 = vadd.f32 %v9960_v14, %v1654_v19  ;;  %v1731_v16 = vadd.f32 %v9964_v30, %v1695_v18  ;;  %v1855_v51 = vmul.f32 %v6698_v60, %v1709_v45  ;;  %v9972_v19 = vld [vmem:[#allocation41_spill] sm:$0xff]  ;;  %v8420_v52 = vmul.f32 %v9883_v33, %v1877_v26  ;;  %v9975_v46 = vld [vmem:[#allocation199_spill] sm:$0xff]  ;;  %v9976_v48 = vld [vmem:[#allocation172_spill] sm:$0xff] }
 0x30c   : > { %v1942_v54 = vadd.f32 %v9965_v28, %v1920_v50  ;;  %v1732_v32 = vadd.f32 %v9967_v3, %v1696_v5  ;;  %v2109_v21 = vadd.f32 %v9968_v0, %v2087_v56  ;;  %v1733_v38 = vadd.f32 %v9969_v61, %v1697_v37  ;;  %v9978_v53 = vld [vmem:[#allocation102_spill] sm:$0xff]  ;;  %v9979_v11 = vld [vmem:[#allocation200_spill] sm:$0xff]  ;;  %v9982_v28 = vld [vmem:[#allocation93_spill] sm:$0xff] }
 0x30d   : > { %v1698_v40 = vadd.f32 %v9966_v31, %v1676_v41  ;;  %v1753_v25 = vadd.f32 %v9970_v57, %v1731_v16  ;;  %v8426_v14 = vmul.f32 %v7577_v62, %v1877_v26  ;;  %v9977_v41 = vld [vmem:[#allocation86_spill] sm:$0xff]  ;;  %v8432_v47 = vmul.f32 %v7670_v27, %v1877_v26  ;;  %v9980_v37 = vld [vmem:[#allocation188_spill] sm:$0xff]  ;;  %v9983_v31 = vld [vmem:[#allocation45_spill] sm:$0xff] }
 0x30e   : > { %v1964_v1 = vadd.f32 %v9971_v9, %v1942_v54  ;;  %v1754_v49 = vadd.f32 %v9973_v22, %v1732_v32  ;;  %v2131_v8 = vadd.f32 %v9974_v43, %v2109_v21  ;;  %v1755_v18 = vadd.f32 %v9975_v46, %v1733_v38  ;;  %v2045_v33 = vld [vmem:[#allocation2 + $0xf9] sm:$0xff]  ;;  %v9981_v16 = vld [vmem:[#allocation52_spill] sm:$0xff]  ;;  %v9985_v32 = vld [vmem:[#allocation49_spill] sm:$0xff] }
 0x30f   : > { %v1734_v36 = vadd.f32 %v9972_v19, %v1698_v40  ;;  %v1775_v50 = vadd.f32 %v9976_v48, %v1753_v25  ;;  %v2231_v40 = vadd.f32 %v9983_v31, %v2195_v15  ;;  %v9984_v62 = vld [vmem:[#allocation152_spill] sm:$0xff]  ;;  %v9986_v21 = vld [vmem:[#allocation175_spill] sm:$0xff]  ;;  %v8442_v38 = vmul.f32 %v7795_v2, %v1877_v26  ;;  %v9987_v27 = vld [vmem:[#allocation198_spill] sm:$0xff] }
 0x310   : > { %v1986_v45 = vadd.f32 %v9977_v41, %v1964_v1  ;;  %v1776_v56 = vadd.f32 %v9979_v11, %v1754_v49  ;;  %v2153_v30 = vadd.f32 %v9980_v37, %v2131_v8  ;;  %v1777_v10 = vadd.f32 %v9981_v16, %v1755_v18  ;;  %v9988_v25 = vld [vmem:[#allocation63_spill] sm:$0xff]  ;;  %v9990_v2 = vld [vmem:[#allocation120_spill] sm:$0xff]  ;;  %v9992_v18 = vld [vmem:[#allocation65_spill] sm:$0xff] }
 0x311   : > { %v1756_v5 = vadd.f32 %v9978_v53, %v1734_v36  ;;  %v1797_v54 = vadd.f32 %v9982_v28, %v1775_v50  ;;  %v8447_v9 = vmul.f32 %v7504_v34, %v2045_v33  ;;  %v9989_v1 = vld [vmem:[#allocation119_spill] sm:$0xff]  ;;  %v8453_v49 = vmul.f32 %v7592_v7, %v2045_v33  ;;  %v9991_v8 = vld [vmem:[#allocation124_spill] sm:$0xff]  ;;  %v8470_v11 = vld [vmem:[%s6848_s25 + $0x14] ss:$0 sm:$0xff] }
 0x312   : > { %v2008_v3 = vadd.f32 %v9984_v62, %v1986_v45  ;;  %v1798_v61 = vadd.f32 %v9986_v21, %v1776_v56  ;;  %v1799_v57 = vadd.f32 %v9987_v27, %v1777_v10  ;;  %v2253_v19 = vadd.f32 %v9989_v1, %v2231_v40  ;;  %v8458_v34 = vld [vmem:[#allocation2 + $0x3b] sm:$0xff]  ;;  %v9998_v10 = vld [vmem:[#allocation84_spill] sm:$0xff]  ;;  %v10000_v31 = vld [vmem:[#allocation169_spill] sm:$0xff] }
 0x313   : > { %v1778_v0 = vadd.f32 %v9985_v32, %v1756_v5  ;;  %v1819_v60 = vadd.f32 %v9988_v25, %v1797_v54  ;;  %v2175_v26 = vadd.f32 %v9990_v2, %v2153_v30  ;;  %v9993_v50 = vld [vmem:[#allocation103_spill] sm:$0xff]  ;;  %v9994_v45 = vld [vmem:[#allocation82_spill] sm:$0xff]  ;;  %v10001_v40 = vld [vmem:[#allocation88_spill] sm:$0xff] }
 0x314   : > { %v2030_v15 = vadd.f32 %v8330_v39, %v2008_v3  ;;  %v1820_v22 = vadd.f32 %v8285_v44, %v1798_v61  ;;  %v1821_v43 = vadd.f32 %v1813_v35, %v1799_v57  ;;  %v2275_v48 = vadd.f32 %v9992_v18, %v2253_v19  ;;  %v9995_v44 = vld [vmem:[#allocation83_spill] sm:$0xff]  ;;  %v9996_v56 = vld [vmem:[#allocation110_spill] sm:$0xff]  ;;  %v10005_v27 = vld [vmem:[#allocation89_spill] sm:$0xff] }
 0x315   : > { %v1800_v36 = vadd.f32 %v1792_v17, %v1778_v0  ;;  %v1841_v46 = vadd.f32 %v9991_v8, %v1819_v60  ;;  %v8463_v17 = vmul.f32 %v7697_v24, %v2045_v33  ;;  %v8467_v35 = vmul.f32 %v7834_v20, %v2045_v33  ;;  %v9997_v30 = vld [vmem:[#allocation127_spill] sm:$0xff]  ;;  %v10002_v33 = vld [vmem:[#allocation121_spill] sm:$0xff]  ;;  %v10006_v25 = vld [vmem:[#allocation146_spill] sm:$0xff] }
 0x316   : > { %v2066_v41 = vadd.f32 %v9993_v50, %v2030_v15  ;;  %v1842_v53 = vadd.f32 %v1834_v58, %v1820_v22  ;;  %v1843_v7 = vadd.f32 %v9995_v44, %v1821_v43  ;;  %v2297_v37 = vadd.f32 %v9996_v56, %v2275_v48  ;;  %v9999_v58 = vld [vmem:[#allocation85_spill] sm:$0xff]  ;;  %v10003_v3 = vld [vmem:[#allocation135_spill] sm:$0xff]  ;;  %v8488_v1 = vld [vmem:[%s6848_s25 + $0x1b] ss:$0 sm:$0xff] }
 0x317   : > { %v1822_v39 = vadd.f32 %v9994_v45, %v1800_v36  ;;  %v1863_v5 = vadd.f32 %v1855_v51, %v1841_v46  ;;  %v2435_v24 = vmul.f32 %v8470_v11, %v8458_v34  ;;  %v2197_v51 = vadd.f32 %v10000_v31, %v2175_v26  ;;  %v8482_v0 = vld [vmem:[#allocation2 + $0x53] sm:$0xff]  ;;  %v10004_v21 = vld [vmem:[#allocation155_spill] sm:$0xff]  ;;  %v10007_v15 = vld [vmem:[#allocation164_spill] sm:$0xff] }
 0x318   : > { %v2088_v16 = vadd.f32 %v9997_v30, %v2066_v41  ;;  %v1864_v54 = vadd.f32 %v9999_v58, %v1842_v53  ;;  %v1865_v20 = vadd.f32 %v10001_v40, %v1843_v7  ;;  %v2319_v32 = vadd.f32 %v10003_v3, %v2297_v37  ;;  %v6699_v19 = vld [vmem:[%s6848_s25 + $0x5] ss:$0 sm:$0xff]  ;;  %v10008_v22 = vld [vmem:[#allocation176_spill] sm:$0xff]  ;;  %v6700_v18 = vld [vmem:[#allocation2 + $0x3a] sm:$0xff] }
 0x319   : > { %v1844_v28 = vadd.f32 %v9998_v10, %v1822_v39  ;;  %v1899_v62 = vadd.f32 %v10002_v33, %v1863_v5  ;;  %v2224_v36 = vmul.f32 %v6699_v19, %v10007_v15  ;;  %v10009_v26 = vld [vmem:[#allocation147_spill] sm:$0xff]  ;;  %v6701_v48 = vld [vmem:[%s6848_s25 + $0xc] ss:$0 sm:$0xff]  ;;  %v10012_v53 = vld [vmem:[#allocation42_spill] sm:$0xff]  ;;  %v2457_v31 = vmul.f32 %v8488_v1, %v8482_v0 }
 0x31a   : > { %v2110_v61 = vadd.f32 %v10004_v21, %v2088_v16  ;;  %v1900_v60 = vadd.f32 %v10006_v25, %v1864_v54  ;;  %v1901_v2 = vadd.f32 %v10008_v22, %v1865_v20  ;;  %v10010_v8 = vld [vmem:[#allocation219_spill] sm:$0xff]  ;;  %v2246_v50 = vmul.f32 %v6701_v48, %v6700_v18  ;;  %v8496_v41 = vld [vmem:[#allocation2 + $0x6b] sm:$0xff]  ;;  %v10015_v10 = vld [vmem:[#allocation178_spill] sm:$0xff] }
 0x31b   : > { %v1866_v57 = vadd.f32 %v10005_v27, %v1844_v28  ;;  %v1921_v43 = vadd.f32 %v10009_v26, %v1899_v62  ;;  %v2341_v46 = vadd.f32 %v10010_v8, %v2319_v32  ;;  %v10011_v45 = vld [vmem:[#allocation187_spill] sm:$0xff]  ;;  %v10013_v7 = vld [vmem:[#allocation177_spill] sm:$0xff]  ;;  %v2232_v37 = vadd.f32 %v2224_v36, %v8396_v55  ;;  %v10017_v40 = vld [vmem:[#allocation208_spill] sm:$0xff] }
 0x31c   : > { %v2132_v39 = vadd.f32 %v10011_v45, %v2110_v61  ;;  %v1922_v5 = vadd.f32 %v10013_v7, %v1900_v60  ;;  %v8502_v56 = vld [vmem:[%s6848_s25 + $0x22] ss:$0 sm:$0xff]  ;;  %v10016_v58 = vld [vmem:[#allocation145_spill] sm:$0xff]  ;;  %v10018_v33 = vld [vmem:[#allocation58_spill] sm:$0xff] }
 0x31d   : > { %v1902_v44 = vadd.f32 %v10012_v53, %v1866_v57  ;;  %v10014_v30 = vld [vmem:[#allocation203_spill] sm:$0xff]  ;;  %v1943_v28 = vadd.f32 %v10015_v10, %v1921_v43  ;;  %v2363_v54 = vadd.f32 %v10016_v58, %v2341_v46  ;;  %v2254_v21 = vadd.f32 %v2246_v50, %v2232_v37  ;;  %v10021_v55 = vld [vmem:[#allocation204_spill] sm:$0xff]  ;;  %v10025_v43 = vld [vmem:[#allocation109_spill] sm:$0xff] }
 0x31e   : > { %v1923_v16 = vadd.f32 %v10014_v30, %v1901_v2  ;;  %v2154_v20 = vadd.f32 %v10017_v40, %v2132_v39  ;;  %v10019_v3 = vld [vmem:[#allocation115_spill] sm:$0xff]  ;;  %v10022_v25 = vld [vmem:[#allocation220_spill] sm:$0xff]  ;;  %v2479_v19 = vmul.f32 %v8502_v56, %v8496_v41  ;;  %v10024_v2 = vld [vmem:[#allocation125_spill] sm:$0xff] }
 0x31f   : > { %v1924_v62 = vadd.f32 %v10018_v33, %v1902_v44  ;;  %v1944_v32 = vadd.f32 %v10019_v3, %v1922_v5  ;;  %v10020_v61 = vld [vmem:[#allocation59_spill] sm:$0xff]  ;;  %v1965_v57 = vadd.f32 %v10021_v55, %v1943_v28  ;;  %v2399_v60 = vadd.f32 %v10022_v25, %v2363_v54  ;;  %v10026_v46 = vld [vmem:[#allocation48_spill] sm:$0xff]  ;;  %v10028_v39 = vld [vmem:[#allocation221_spill] sm:$0xff] }
 0x320   : > { %v1945_v27 = vadd.f32 %v10020_v61, %v1923_v16  ;;  %v10023_v15 = vld [vmem:[#allocation75_spill] sm:$0xff]  ;;  %v2276_v8 = vadd.f32 %v10025_v43, %v2254_v21  ;;  %v2176_v18 = vadd.f32 %v10026_v46, %v2154_v20  ;;  %v10027_v50 = vld [vmem:[#allocation92_spill] sm:$0xff]  ;;  %v10030_v37 = vld [vmem:[#allocation149_spill] sm:$0xff] }
 0x321   : > { %v2233_v36 = vadd.f32 %v10023_v15, %v2197_v51  ;;  %v1946_v22 = vadd.f32 %v8298_v13, %v1924_v62  ;;  %v1966_v26 = vadd.f32 %v10024_v2, %v1944_v32  ;;  %v1987_v45 = vadd.f32 %v10027_v50, %v1965_v57  ;;  %v10029_v51 = vld [vmem:[#allocation134_spill] sm:$0xff]  ;;  %v8530_v13 = vld [vmem:[%s6848_s25 + $0x21] ss:$0 sm:$0xff]  ;;  %v10032_v58 = vld [vmem:[#allocation96_spill] sm:$0xff] }
 0x322   : > { %v1967_v48 = vadd.f32 %v8301_v4, %v1945_v27  ;;  %v2421_v53 = vadd.f32 %v10028_v39, %v2399_v60  ;;  %v2298_v5 = vadd.f32 %v10029_v51, %v2276_v8  ;;  %v2312_v30 = vmul.f32 %v8530_v13, %v10030_v37  ;;  %v10031_v28 = vld [vmem:[#allocation183_spill] sm:$0xff]  ;;  %v8543_v33 = vld [vmem:[%s6848_s25 + $0x29] ss:$0 sm:$0xff]  ;;  %v10035_v32 = vld [vmem:[#allocation38_spill] sm:$0xff] }
 0x323   : > { %v1968_v44 = vadd.f32 %v8420_v52, %v1946_v22  ;;  %v1988_v7 = vadd.f32 %v8306_v29, %v1966_v26  ;;  %v2009_v10 = vadd.f32 %v8318_v42, %v1987_v45  ;;  %v2334_v54 = vmul.f32 %v10032_v58, %v10031_v28  ;;  %v8538_v40 = vld [vmem:[#allocation2 + $0x83] sm:$0xff]  ;;  %v10033_v52 = vld [vmem:[#allocation37_spill] sm:$0xff]  ;;  %v10036_v42 = vld [vmem:[#allocation114_spill] sm:$0xff] }
 0x324   : > { %v1989_v16 = vadd.f32 %v8426_v14, %v1967_v48  ;;  %v2443_v4 = vadd.f32 %v2435_v24, %v2421_v53  ;;  %v2320_v62 = vadd.f32 %v2312_v30, %v2298_v5  ;;  %v10034_v3 = vld [vmem:[#allocation87_spill] sm:$0xff]  ;;  %v2198_v14 = vadd.f32 %v8370_v12, %v2176_v18  ;;  %v10037_v57 = vld [vmem:[#allocation212_spill] sm:$0xff]  ;;  %v10040_v26 = vld [vmem:[#allocation98_spill] sm:$0xff] }
 0x325   : > { %v1990_v29 = vadd.f32 %v10033_v52, %v1968_v44  ;;  %v2010_v20 = vadd.f32 %v8432_v47, %v1988_v7  ;;  %v2356_v21 = vmul.f32 %v10035_v32, %v10034_v3  ;;  %v2031_v24 = vadd.f32 %v8442_v38, %v2009_v10  ;;  %v8550_v55 = vld [vmem:[#allocation2 + $0x9b] sm:$0xff]  ;;  %v8555_v47 = vld [vmem:[%s6848_s25 + $0x30] ss:$0 sm:$0xff]  ;;  %v10046_v51 = vld [vmem:[#allocation184_spill] sm:$0xff] }
 0x326   : > { %v2011_v61 = vadd.f32 %v10036_v42, %v1989_v16  ;;  %v2465_v27 = vadd.f32 %v2457_v31, %v2443_v4  ;;  %v10038_v60 = vld [vmem:[#allocation51_spill] sm:$0xff]  ;;  %v2342_v22 = vadd.f32 %v2334_v54, %v2320_v62  ;;  %v10041_v8 = vld [vmem:[#allocation213_spill] sm:$0xff]  ;;  %v10042_v46 = vld [vmem:[#allocation126_spill] sm:$0xff]  ;;  %v2501_v38 = vmul.f32 %v8543_v33, %v8538_v40 }
 0x327   : > { %v2012_v25 = vadd.f32 %v10037_v57, %v1990_v29  ;;  %v2032_v15 = vadd.f32 %v10038_v60, %v2010_v20  ;;  %v10039_v2 = vld [vmem:[#allocation163_spill] sm:$0xff]  ;;  %v2067_v18 = vadd.f32 %v10042_v46, %v2031_v24  ;;  %v10043_v31 = vld [vmem:[#allocation214_spill] sm:$0xff]  ;;  %v10044_v45 = vld [vmem:[#allocation153_spill] sm:$0xff]  ;;  %v2523_v10 = vmul.f32 %v8555_v47, %v8550_v55 }
 0x328   : > { %v2392_v43 = vmul.f32 %v10040_v26, %v10039_v2  ;;  %v2033_v12 = vadd.f32 %v10041_v8, %v2011_v61  ;;  %v2487_v48 = vadd.f32 %v2479_v19, %v2465_v27  ;;  %v2364_v53 = vadd.f32 %v2356_v21, %v2342_v22  ;;  %v10045_v44 = vld [vmem:[#allocation46_spill] sm:$0xff]  ;;  %v10048_v19 = vld [vmem:[#allocation107_spill] sm:$0xff]  ;;  %v10050_v29 = vld [vmem:[#allocation185_spill] sm:$0xff] }
 0x329   : > { %v2034_v50 = vadd.f32 %v10043_v31, %v2012_v25  ;;  %v2068_v39 = vadd.f32 %v10044_v45, %v2032_v15  ;;  %v2414_v7 = vmul.f32 %v10045_v44, %v8458_v34  ;;  %v10047_v37 = vld [vmem:[#allocation154_spill] sm:$0xff]  ;;  %v8572_v4 = vadd.f32 %v10048_v19, %v2198_v14  ;;  %v10049_v54 = vld [vmem:[#allocation43_spill] sm:$0xff]  ;;  %v10051_v42 = vld [vmem:[#allocation97_spill] sm:$0xff] }
 0x32a   : > { %v2069_v5 = vadd.f32 %v10046_v51, %v2033_v12  ;;  %v2089_v30 = vadd.f32 %v10047_v37, %v2067_v18  ;;  %v2509_v16 = vadd.f32 %v2501_v38, %v2487_v48  ;;  %v8577_v62 = vld [vmem:[%s6853_s29] ss:$0 sm:$0xff]  ;;  %v2400_v21 = vadd.f32 %v2392_v43, %v2364_v53  ;;  %v10052_v24 = vld [vmem:[#allocation186_spill] sm:$0xff]  ;;  %v10053_v25 = vld [vmem:[#allocation108_spill] sm:$0xff] }
 0x32b   : > { %v2070_v52 = vadd.f32 %v10049_v54, %v2034_v50  ;;  %v2090_v20 = vadd.f32 %v10050_v29, %v2068_v39  ;;  %v2255_v60 = vadd.f32 %v10053_v25, %v2233_v36  ;;  %v10054_v15 = vld [vmem:[#allocation113_spill] sm:$0xff]  ;;  %v2436_v12 = vmul.f32 %v8470_v11, %v8482_v0  ;;  %v10056_v46 = vld [vmem:[#allocation54_spill] sm:$0xff]  ;;  %v10057_v48 = vld [vmem:[#allocation207_spill] sm:$0xff] }
 0x32c   : > { %v2091_v61 = vadd.f32 %v10051_v42, %v2069_v5  ;;  %v2111_v27 = vadd.f32 %v10052_v24, %v2089_v30  ;;  %v2531_v57 = vadd.f32 %v2523_v10, %v2509_v16  ;;  %v10055_v2 = vld [vmem:[#allocation205_spill] sm:$0xff]  ;;  %v2422_v14 = vadd.f32 %v2414_v7, %v2400_v21  ;;  %v10059_v39 = vld [vmem:[#allocation140_spill] sm:$0xff]  ;;  %v10061_v30 = vld [vmem:[#allocation162_spill] sm:$0xff] }
 0x32d   : > { %v2092_v22 = vadd.f32 %v10054_v15, %v2070_v52  ;;  %v2112_v8 = vadd.f32 %v10055_v2, %v2090_v20  ;;  %v10058_v31 = vld [vmem:[#allocation133_spill] sm:$0xff]  ;;  %v2458_v51 = vmul.f32 %v8488_v1, %v8496_v41  ;;  %v2313_v10 = vmul.f32 %v8530_v13, %v10031_v28  ;;  %v8610_v28 = vld [vmem:[#allocation2 + $0xe2] sm:$0xff] }
 0x32e   : > { %v2113_v18 = vadd.f32 %v10056_v46, %v2091_v61  ;;  %v2133_v38 = vadd.f32 %v10057_v48, %v2111_v27  ;;  %v2546_v43 = vadd.f32 %v8577_v62, %v2531_v57  ;;  %v2277_v50 = vadd.f32 %v10058_v31, %v2255_v60  ;;  %v10060_v5 = vld [vmem:[#allocation57_spill] sm:$0xff]  ;;  %v10063_v27 = vld [vmem:[#allocation182_spill] sm:$0xff] }
 0x32f   : > { %v2114_v45 = vadd.f32 %v8335_v23, %v2092_v22  ;;  %v2134_v36 = vadd.f32 %v10059_v39, %v2112_v8  ;;  %v2444_v53 = vadd.f32 %v2436_v12, %v2422_v14  ;;  %v2480_v52 = vmul.f32 %v8502_v56, %v8538_v40  ;;  %v8604_v29 = vld [vmem:[#allocation2 + $0xb3] sm:$0xff]  ;;  %v10065_v22 = vld [vmem:[#allocation136_spill] sm:$0xff] }
 0x330   : > { %v2135_v7 = vadd.f32 %v8348_v59, %v2113_v18  ;;  %v2155_v37 = vadd.f32 %v10060_v5, %v2133_v38  ;;  %2547 = vst.msk [vmem:[#allocation3] sm:$0xff] %vm1135_vm1, %v2546_v43  ;;  %v2299_v16 = vadd.f32 %v10061_v30, %v2277_v50  ;;  %v2335_v42 = vmul.f32 %v10032_v58, %v10034_v3  ;;  %v6703_v46 = vld [vmem:[%s6848_s25 + $0x1a] ss:$0 sm:$0xff]  ;;  %v8630_v48 = vld [vmem:[%s6848_s25 + $0x13] ss:$0 sm:$0xff]  ;;  %v10069_v5 = vld [vmem:[#allocation191_spill] sm:$0xff] }
 0x331   : > { %v2136_v19 = vadd.f32 %v8447_v9, %v2114_v45  ;;  %v2156_v23 = vadd.f32 %v8354_v6, %v2134_v36  ;;  %v2466_v54 = vadd.f32 %v2458_v51, %v2444_v53  ;;  %v10062_v9 = vld [vmem:[#allocation215_spill] sm:$0xff]  ;;  %v2502_v24 = vmul.f32 %v8543_v33, %v8550_v55  ;;  %v10066_v38 = vld [vmem:[#allocation217_spill] sm:$0xff]  ;;  %v10067_v50 = vld [vmem:[#allocation218_spill] sm:$0xff] }
 0x332   : > { %v2157_v59 = vadd.f32 %v8453_v49, %v2135_v7  ;;  %v2177_v20 = vadd.f32 %v8364_v63, %v2155_v37  ;;  %v2321_v21 = vadd.f32 %v2313_v10, %v2299_v16  ;;  %v2357_v57 = vmul.f32 %v10035_v32, %v10063_v27  ;;  %v10064_v63 = vld [vmem:[#allocation53_spill] sm:$0xff]  ;;  %v10068_v53 = vld [vmem:[#allocation44_spill] sm:$0xff]  ;;  %v2213_v7 = vld [vmem:[#allocation2 + $0xfa] sm:$0xff] }
 0x333   : > { %v2158_v6 = vadd.f32 %v10062_v9, %v2136_v19  ;;  %v2488_v61 = vadd.f32 %v2480_v52, %v2466_v54  ;;  %v2178_v49 = vadd.f32 %v8463_v17, %v2156_v23  ;;  %v2393_v15 = vmul.f32 %v10040_v26, %v8458_v34  ;;  %v10070_v19 = vld [vmem:[#allocation131_spill] sm:$0xff]  ;;  %v10071_v52 = vld [vmem:[#allocation132_spill] sm:$0xff] }
 0x334   : > { %v2179_v25 = vadd.f32 %v10064_v63, %v2157_v59  ;;  %v2343_v60 = vadd.f32 %v2335_v42, %v2321_v21  ;;  %v2199_v8 = vadd.f32 %v8467_v35, %v2177_v20  ;;  %v2524_v12 = vmul.f32 %v8555_v47, %v8604_v29  ;;  %v10072_v20 = vld [vmem:[#allocation210_spill] sm:$0xff]  ;;  %v10073_v42 = vld [vmem:[#allocation211_spill] sm:$0xff] }
 0x335   : > { %v2180_v2 = vadd.f32 %v10065_v22, %v2158_v6  ;;  %v2510_v14 = vadd.f32 %v2502_v24, %v2488_v61  ;;  %v8627_v18 = vmul.f32 %v6703_v46, %v10063_v27  ;;  %v2274_v17 = vmul.f32 %v8630_v48, %v8610_v28 }
 0x336   : > { %v2201_v43 = vadd.f32 %v10066_v38, %v2179_v25  ;;  %v2365_v34 = vadd.f32 %v2357_v57, %v2343_v60  ;;  %v2295_v31 = vmul.f32 %v6703_v46, %v8610_v28  ;;  %v2415_v36 = vmul.f32 %v10045_v44, %v8482_v0  ;;  %v6705_v25 = vld [vmem:[#allocation2 + $0x9a] sm:$0xff] }
 0x337   : > { %v2202_v35 = vadd.f32 %v10067_v50, %v2180_v2  ;;  %v8637_v45 = vld [vmem:[#allocation3] sm:$0xff]  ;;  %v2532_v39 = vadd.f32 %v2524_v12, %v2510_v14  ;;  %v2200_v51 = vadd.f32 %v10068_v53, %v2178_v49  ;;  %v8647_v10 = vmul.f32 %v8530_v13, %v8610_v28  ;;  %v10076_v14 = vld [vmem:[#allocation160_spill] sm:$0xff] }
 0x338   : > { %v2237_v37 = vadd.f32 %v10069_v5, %v2201_v43  ;;  %v2570_v30 = vsel %vm1135_vm1, %v8637_v45, 0.0  ;;  %v2401_v16 = vadd.f32 %v2393_v15, %v2365_v34  ;;  %v2235_v23 = vadd.f32 %v10070_v19, %v2199_v8  ;;  %v10074_v49 = vld [vmem:[#allocation161_spill] sm:$0xff]  ;;  %v10075_v15 = vld [vmem:[#allocation159_spill] sm:$0xff]  ;;  %v10079_v19 = vld [vmem:[#allocation192_spill] sm:$0xff] }
 0x339   : > { %2571 = vadd.xlane.f32.xlu0 %v2570_v30  ;;  %v2548_v54 = vadd.f32 %v8577_v62, %v2532_v39  ;;  %v2256_v59 = vadd.f32 %v10071_v52, %v8572_v4  ;;  %v2238_v21 = vadd.f32 %v10072_v20, %v2202_v35  ;;  %v2437_v61 = vmul.f32 %v8470_v11, %v8496_v41  ;;  %v8668_v43 = vld [vmem:[#allocation2 + $0xcb] sm:$0xff]  ;;  %v10077_v35 = vld [vmem:[#allocation90_spill] sm:$0xff] }
 0x33a   : > { %v2259_v9 = vadd.f32 %v10073_v42, %v2237_v37  ;;  %v2423_v6 = vadd.f32 %v2415_v36, %v2401_v16  ;;  %v2296_v24 = vmul.f32 %v6703_v46, %v2213_v7  ;;  %v2317_v57 = vmul.f32 %v8530_v13, %v2213_v7  ;;  %v10078_v36 = vld [vmem:[#allocation101_spill] sm:$0xff] }
 0x33b   : > { %2549 = vst.msk [vmem:[#allocation3 + $0x8] sm:$0xff] %vm1135_vm1, %v2548_v54  ;;  %v2278_v63 = vadd.f32 %v10074_v49, %v2256_v59  ;;  %v2292_v60 = vmul.f32 %v6705_v25, %v6703_v46  ;;  %v2236_v22 = vadd.f32 %v10075_v15, %v2200_v51  ;;  %v8662_v4 = vmul.f32 %v10032_v58, %v2213_v7 }
 0x33c   : > { %v2445_v2 = vadd.f32 %v2437_v61, %v2423_v6  ;;  %v2459_v8 = vmul.f32 %v8488_v1, %v8538_v40  ;;  %v2257_v12 = vadd.f32 %v10076_v14, %v2235_v23  ;;  %v2359_v38 = vmul.f32 %v10035_v32, %v2213_v7 }
 0x33d   : > { %v2300_v34 = vadd.f32 %v2292_v60, %v2278_v63  ;;  %v2314_v50 = vmul.f32 %v8530_v13, %v10034_v3  ;;  %v2260_v39 = vadd.f32 %v10077_v35, %v2238_v21  ;;  %v2281_v53 = vadd.f32 %v10078_v36, %v2259_v9 }
 0x33e   : > { %v2467_v51 = vadd.f32 %v2459_v8, %v2445_v2  ;;  %v2481_v5 = vmul.f32 %v8502_v56, %v8550_v55  ;;  %v2503_v37 = vmul.f32 %v8543_v33, %v8604_v29  ;;  %v2336_v7 = vmul.f32 %v10032_v58, %v10063_v27  ;;  %v8697_v8 = vld [vmem:[#allocation2 + $0xe3] sm:$0xff] }
 0x33f   : > { %v2322_v30 = vadd.f32 %v2314_v50, %v2300_v34  ;;  %v2271_v16 = vmul.f32 %v6705_v25, %v8630_v48  ;;  %v2258_v23 = vadd.f32 %v10079_v19, %v2236_v22  ;;  %v2525_v52 = vmul.f32 %v8555_v47, %v8668_v43  ;;  %v2214_v50 = vld [vmem:[#allocation2 + $0x112] sm:$0xff] }
 0x340   : > { %v2489_v54 = vadd.f32 %v2481_v5, %v2467_v51  ;;  %v2358_v59 = vmul.f32 %v10035_v32, %v8610_v28  ;;  %v2394_v21 = vmul.f32 %v10040_v26, %v8482_v0  ;;  %v2293_v9 = vmul.f32 %v6703_v46, %v10034_v3  ;;  %v2215_v51 = vld [vmem:[#allocation2 + $0x12a] sm:$0xff] }
 0x341   : > { %v2344_v20 = vadd.f32 %v2336_v7, %v2322_v30  ;;  %v2279_v42 = vadd.f32 %v2271_v16, %v2257_v12  ;;  %v2282_v6 = vadd.f32 %v2274_v17, %v2260_v39  ;;  %v2303_v61 = vadd.f32 %v2295_v31, %v2281_v53  ;;  %v6706_v17 = vld [vmem:[#allocation2 + $0xb2] sm:$0xff] }
 0x342   : > { %v8689_v49 = vld [vmem:[#allocation3 + $0x8] sm:$0xff]  ;;  %v2511_v63 = vadd.f32 %v2503_v37, %v2489_v54  ;;  %v2416_v25 = vmul.f32 %v10045_v44, %v8496_v41  ;;  %v2315_v2 = vmul.f32 %v8530_v13, %v10063_v27  ;;  %v2438_v3 = vmul.f32 %v8470_v11, %v8538_v40 }
 0x343   : > { %v2573_v60 = vsel %vm1135_vm1, %v8689_v49, 0.0  ;;  %v2366_v15 = vadd.f32 %v2358_v59, %v2344_v20  ;;  %v2301_v22 = vadd.f32 %v2293_v9, %v2279_v42  ;;  %v2460_v46 = vmul.f32 %v8488_v1, %v8550_v55 }
 0x344   : > { %2574 = vadd.xlane.f32.xlu1 %v2573_v60  ;;  %v2533_v0 = vadd.f32 %v2525_v52, %v2511_v63  ;;  %v2272_v31 = vmul.f32 %v6706_v17, %v8630_v48  ;;  %v2482_v12 = vmul.f32 %v8502_v56, %v8604_v29  ;;  %v2337_v27 = vmul.f32 %v10032_v58, %v8610_v28  ;;  %v2216_v63 = vld [vmem:[#allocation2 + $0x142] sm:$0xff] }
 0x345   : > { %v2402_v14 = vadd.f32 %v2394_v21, %v2366_v15  ;;  %v2323_v34 = vadd.f32 %v2315_v2, %v2301_v22  ;;  %v2325_v35 = vadd.f32 %v2317_v57, %v2303_v61  ;;  %v2504_v36 = vmul.f32 %v8543_v33, %v8668_v43 }
 0x346   : > { %v2550_v39 = vadd.f32 %v8577_v62, %v2533_v0  ;;  %v2280_v53 = vadd.f32 %v2272_v31, %v2258_v23  ;;  %v2304_v5 = vadd.f32 %v2296_v24, %v2282_v6  ;;  %v2526_v48 = vmul.f32 %v8555_v47, %v8697_v8 }
 0x347   : > { %v2424_v37 = vadd.f32 %v2416_v25, %v2402_v14  ;;  %v2345_v30 = vadd.f32 %v2337_v27, %v2323_v34  ;;  %v2395_v28 = vmul.f32 %v10040_v26, %v8496_v41  ;;  %v2417_v57 = vmul.f32 %v10045_v44, %v8538_v40  ;;  %v2381_v34 = vld [vmem:[#allocation2 + $0xfb] sm:$0xff]  ;;  %v2382_v27 = vld [vmem:[#allocation2 + $0x113] sm:$0xff] }
 0x348   : > { %2551 = vst.msk [vmem:[#allocation3 + $0x10] sm:$0xff] %vm1135_vm1, %v2550_v39  ;;  %v2302_v7 = vadd.f32 %v8627_v18, %v2280_v53  ;;  %v2339_v16 = vmul.f32 %v10032_v58, %v2214_v50  ;;  %v2439_v24 = vmul.f32 %v8470_v11, %v8550_v55  ;;  %v2361_v54 = vmul.f32 %v10035_v32, %v2215_v51 }
 0x349   : > { %v2446_v19 = vadd.f32 %v2438_v3, %v2424_v37  ;;  %v2367_v23 = vadd.f32 %v2359_v38, %v2345_v30  ;;  %v2461_v52 = vmul.f32 %v8488_v1, %v8604_v29  ;;  %v2360_v41 = vmul.f32 %v10035_v32, %v2214_v50  ;;  %v2383_v37 = vld [vmem:[#allocation2 + $0x12b] sm:$0xff]  ;;  %v6707_v30 = vld [vmem:[%s6848_s25 + $0x6] ss:$0 sm:$0xff] }
 0x34a   : > { %v2324_v59 = vadd.f32 %v8647_v10, %v2302_v7  ;;  %v2347_v20 = vadd.f32 %v2339_v16, %v2325_v35  ;;  %v2483_v18 = vmul.f32 %v8502_v56, %v8668_v43  ;;  %v2505_v38 = vmul.f32 %v8543_v33, %v8697_v8 }
 0x34b   : > { %v2468_v21 = vadd.f32 %v2460_v46, %v2446_v19  ;;  %v2403_v42 = vadd.f32 %v2395_v28, %v2367_v23  ;;  %v2396_v6 = vmul.f32 %v10040_v26, %v8538_v40  ;;  %v2397_v10 = vmul.f32 %v10040_v26, %v8550_v55 }
 0x34c   : > { %v2346_v9 = vadd.f32 %v8662_v4, %v2324_v59  ;;  %v2369_v61 = vadd.f32 %v2361_v54, %v2347_v20  ;;  %v2318_v15 = vmul.f32 %v8530_v13, %v2214_v50  ;;  %v2340_v22 = vmul.f32 %v10032_v58, %v2215_v51 }
 0x34d   : > { %v2490_v25 = vadd.f32 %v2482_v12, %v2468_v21  ;;  %v2425_v60 = vadd.f32 %v2417_v57, %v2403_v42  ;;  %v2418_v0 = vmul.f32 %v10045_v44, %v8550_v55  ;;  %v2419_v4 = vmul.f32 %v10045_v44, %v8604_v29 }
 0x34e   : > { %v2368_v2 = vadd.f32 %v2360_v41, %v2346_v9  ;;  %v2405_v3 = vadd.f32 %v2397_v10, %v2369_v61  ;;  %v2326_v26 = vadd.f32 %v2318_v15, %v2304_v5  ;;  %v2362_v31 = vmul.f32 %v10035_v32, %v2216_v63 }
 0x34f   : > { %v8742_v40 = vld [vmem:[#allocation3 + $0x10] sm:$0xff]  ;;  %v2512_v46 = vadd.f32 %v2504_v36, %v2490_v25  ;;  %v2447_v17 = vadd.f32 %v2439_v24, %v2425_v60  ;;  %v2441_v12 = vmul.f32 %v8470_v11, %v8668_v43  ;;  %v2440_v50 = vmul.f32 %v8470_v11, %v8604_v29 }
 0x350   : > { %v2576_v13 = vsel %vm1135_vm1, %v8742_v40, 0.0  ;;  %v2404_v14 = vadd.f32 %v2396_v6, %v2368_v2  ;;  %v2427_v58 = vadd.f32 %v2419_v4, %v2405_v3  ;;  %v2348_v35 = vadd.f32 %v2340_v22, %v2326_v26  ;;  %v2384_v2 = vld [vmem:[#allocation2 + $0x143] sm:$0xff] }
 0x351   : > { %2577 = vadd.xlane.f32.xlu0 %v2576_v13  ;;  %v2534_v55 = vadd.f32 %v2526_v48, %v2512_v46  ;;  %v2469_v44 = vadd.f32 %v2461_v52, %v2447_v17  ;;  %v2462_v32 = vmul.f32 %v8488_v1, %v8668_v43  ;;  %v2463_v53 = vmul.f32 %v8488_v1, %v8697_v8  ;;  %v6708_v52 = vld [vmem:[%s6848_s25 + $0xd] ss:$0 sm:$0xff] }
 0x352   : > { %v2426_v39 = vadd.f32 %v2418_v0, %v2404_v14  ;;  %v2449_v36 = vadd.f32 %v2441_v12, %v2427_v58  ;;  %v2370_v48 = vadd.f32 %v2362_v31, %v2348_v35  ;;  %v2398_v28 = vmul.f32 %v6707_v30, %v8604_v29 }
 0x353   : > { %v2552_v51 = vadd.f32 %v8577_v62, %v2534_v55  ;;  %v2491_v5 = vadd.f32 %v2483_v18, %v2469_v44  ;;  %v2485_v16 = vmul.f32 %v8502_v56, %v2381_v34  ;;  %v2507_v19 = vmul.f32 %v8543_v33, %v2382_v27 }
 0x354   : > { %v2448_v57 = vadd.f32 %v2440_v50, %v2426_v39  ;;  %v2471_v7 = vadd.f32 %v2463_v53, %v2449_v36  ;;  %v2527_v24 = vmul.f32 %v8555_v47, %v2381_v34  ;;  %v2406_v54 = vadd.f32 %v2398_v28, %v2370_v48 }
 0x355   : > { %2553 = vst.msk [vmem:[#allocation3 + $0x18] sm:$0xff] %vm1135_vm1, %v2552_v51  ;;  %v2513_v23 = vadd.f32 %v2505_v38, %v2491_v5  ;;  %v2420_v59 = vmul.f32 %v6708_v52, %v8668_v43  ;;  %v2484_v20 = vmul.f32 %v8502_v56, %v8697_v8  ;;  %v2529_v21 = vmul.f32 %v8555_v47, %v2383_v37 }
 0x356   : > { %v2470_v41 = vadd.f32 %v2462_v32, %v2448_v57  ;;  %v2493_v29 = vadd.f32 %v2485_v16, %v2471_v7  ;;  %v2442_v9 = vmul.f32 %v8470_v11, %v8697_v8  ;;  %v2506_v38 = vmul.f32 %v8543_v33, %v2381_v34 }
 0x357   : > { %v2535_v42 = vadd.f32 %v2527_v24, %v2513_v23  ;;  %v2428_v18 = vadd.f32 %v2420_v59, %v2406_v54  ;;  %v2528_v61 = vmul.f32 %v8555_v47, %v2382_v27  ;;  %v2464_v25 = vmul.f32 %v8488_v1, %v2381_v34 }
 0x358   : > { %v2492_v6 = vadd.f32 %v2484_v20, %v2470_v41  ;;  %v2515_v10 = vadd.f32 %v2507_v19, %v2493_v29  ;;  %v2486_v60 = vmul.f32 %v8502_v56, %v2382_v27  ;;  %v2508_v11 = vmul.f32 %v8543_v33, %v2383_v37 }
 0x359   : > { %v2554_v43 = vadd.f32 %v8577_v62, %v2535_v42  ;;  %v2450_v63 = vadd.f32 %v2442_v9, %v2428_v18  ;;  %v2530_v26 = vmul.f32 %v8555_v47, %v2384_v2 }
 0x35a   : > { %v2514_v15 = vadd.f32 %v2506_v38, %v2492_v6  ;;  %v2537_v22 = vadd.f32 %v2529_v21, %v2515_v10 }
 0x35b   : > { %2555 = vst.msk [vmem:[#allocation3 + $0x20] sm:$0xff] %vm1135_vm1, %v2554_v43  ;;  %v2472_v0 = vadd.f32 %v2464_v25, %v2450_v63 }
 0x35c   : > { %v2565_v8 = vld [vmem:[#allocation3 + $0x18] sm:$0xff]  ;;  %v2536_v3 = vadd.f32 %v2528_v61, %v2514_v15  ;;  %v2558_v4 = vadd.f32 %v8577_v62, %v2537_v22 }
 0x35d   : > { %v2579_v46 = vsel %vm1135_vm1, %v2565_v8, 0.0  ;;  %v2494_v17 = vadd.f32 %v2486_v60, %v2472_v0  ;;  %v6519_v60 = vld [vmem:[%s10080_s3] sm:$0xff]   ;;  %s10099_s3 = sld [smem:[#allocation26_spill]] }
 0x35e   : > { %2580 = vadd.xlane.f32.xlu1 %v2579_v46  ;;  %v2556_v1 = vadd.f32 %v8577_v62, %v2536_v3  ;;  %2559 = vst.msk [vmem:[#allocation3 + $0x30] sm:$0xff] %vm1135_vm1, %v2558_v4  ;;  %6350 = vmatprep.subr.bf16.mxu1 %v6519_v60 }
 0x35f   : > { %v2516_v56 = vadd.f32 %v2508_v11, %v2494_v17  ;;  %6351 = vmatpush3.bf16.msra.mxu1 %v6519_v60 }
 0x360   : > { %2557 = vst.msk [vmem:[#allocation3 + $0x28] sm:$0xff] %vm1135_vm1, %v2556_v1 }
 0x361   : > { %v2538_v31 = vadd.f32 %v2530_v26, %v2516_v56 }
 0x362   : > { %v2566_v13 = vld [vmem:[#allocation3 + $0x20] sm:$0xff] }
 0x363   : > { %v2582_v33 = vsel %vm1135_vm1, %v2566_v13, 0.0  ;;  %v2560_v14 = vadd.f32 %v8577_v62, %v2538_v31 }
 0x364   : > { %2583 = vadd.xlane.f32.xlu0 %v2582_v33 }
 0x365   : > { %v2568_v58 = vld [vmem:[#allocation3 + $0x30] sm:$0xff]  ;;  %2561 = vst.msk [vmem:[#allocation3 + $0x38] sm:$0xff] %vm1135_vm1, %v2560_v14 }
 0x366   : > { %v2588_v47 = vsel %vm1135_vm1, %v2568_v58, 0.0 }
 0x367   : > { %v2567_v12 = vld [vmem:[#allocation3 + $0x28] sm:$0xff] }
 0x368   : > { %v2585_v55 = vsel %vm1135_vm1, %v2567_v12, 0.0  ;;  %2589 = vadd.xlane.f32.xlu0 %v2588_v47 }
 0x369   : > { %2586 = vadd.xlane.f32.xlu1 %v2585_v55 }
 0x36c   : > { %v2569_v34 = vld [vmem:[#allocation3 + $0x38] sm:$0xff] }
 0x36d   : > { %v2591_v44 = vsel %vm1135_vm1, %v2569_v34, 0.0 }
 0x36e   : > { %2592 = vadd.xlane.f32.xlu1 %v2591_v44 }
 0x3c6   : > { %v2572_v27 = vpop.xlane.xlu0 %2571 }
 0x3c7   : > { %v2594_v50 = vmul.f32 0.0625, %v2572_v27 }
 0x3c9   : > { %v2602_v35 = vsub.f32 %v8637_v45, %v2594_v50 }
 0x3cb   : > { %v2610_v62 = vmul.f32 %v2602_v35, %v2602_v35 }
 0x3cd   : > { %v2618_v39 = vsel %vm1135_vm1, %v2610_v62, 0.0 }
 0x3ce   : > { %2619 = vadd.xlane.f32.xlu0 %v2618_v39 }
 0x3d1   : > { %v2575_v32 = vpop.xlane.xlu1 %2574 }
 0x3d2   : > { %v2595_v36 = vmul.f32 0.0625, %v2575_v32 }
 0x3d4   : > { %v2603_v53 = vsub.f32 %v8689_v49, %v2595_v36 }
 0x3d6   : > { %v2611_v51 = vmul.f32 %v2603_v53, %v2603_v53 }
 0x3d8   : > { %v2621_v5 = vsel %vm1135_vm1, %v2611_v51, 0.0 }
 0x3d9   : > { %2622 = vadd.xlane.f32.xlu1 %v2621_v5 }
 0x3de   : > { %v2578_v37 = vpop.xlane.xlu0 %2577 }
 0x3df   : > { %v2596_v48 = vmul.f32 0.0625, %v2578_v37 }
 0x3e1   : > { %v8793_v30 = vsub.f32 %v8742_v40, %v2596_v48 }
 0x3e3   : > { %v2612_v45 = vmul.f32 %v8793_v30, %v8793_v30 }
 0x3e5   : > { %v2624_v28 = vsel %vm1135_vm1, %v2612_v45, 0.0 }
 0x3e6   : > { %2625 = vadd.xlane.f32.xlu0 %v2624_v28 }
 0x3eb   : > { %v2581_v57 = vpop.xlane.xlu1 %2580 }
 0x3ec   : > { %v2597_v7 = vmul.f32 0.0625, %v2581_v57 }
 0x3ee   : > { %v8798_v16 = vsub.f32 %v2565_v8, %v2597_v7 }
 0x3f0   : > { %v2613_v49 = vmul.f32 %v8798_v16, %v8798_v16 }
 0x3f1   : > { %v2584_v19 = vpop.xlane.xlu0 %2583 }
 0x3f2   : > { %v2598_v23 = vmul.f32 0.0625, %v2584_v19  ;;  %v2627_v24 = vsel %vm1135_vm1, %v2613_v49, 0.0 }
 0x3f3   : > { %2628 = vadd.xlane.f32.xlu1 %v2627_v24  ;;  %v10081_v24 = vmov 0.0  }
 0x3f4   : > { %v8803_v40 = vsub.f32 %v2566_v13, %v2598_v23  ;;  %4859 = vst.msk [vmem:[#allocation6] sm:$0xff] %vm2994_vm2, %v10081_v24  ;;  %4860 = vst.msk [vmem:[#allocation6 + $0x8] sm:$0xff] %vm2994_vm2, %v10081_v24  ;;  %6384 = vmatprep.mubr.msk.bf16.mxu0 %vm6810_vm14, %v10081_v24 }
 0x3f5   : > { %v2590_v54 = vpop.xlane.xlu0 %2589  ;;  %4863 = vst.msk [vmem:[#allocation6 + $0x18] sm:$0xff] %vm2994_vm2, %v10081_v24  ;;  %4864 = vst.msk [vmem:[#allocation6 + $0x20] sm:$0xff] %vm2994_vm2, %v10081_v24 }
 0x3f6   : > { %v2587_v52 = vpop.xlane.xlu1 %2586  ;;  %v2600_v59 = vmul.f32 0.0625, %v2590_v54  ;;  %v2614_v41 = vmul.f32 %v8803_v40, %v8803_v40  ;;  %4866 = vst.msk [vmem:[#allocation6 + $0x30] sm:$0xff] %vm2994_vm2, %v10081_v24  ;;  %4867 = vst.msk [vmem:[#allocation6 + $0x38] sm:$0xff] %vm2994_vm2, %v10081_v24 }
 0x3f7   : > { %v2599_v20 = vmul.f32 0.0625, %v2587_v52  ;;  %4870 = vst.msk [vmem:[#allocation6 + $0x78] sm:$0xff] %vm2994_vm2, %v10081_v24  ;;  %4871 = vst.msk [vmem:[#allocation6 + $0x80] sm:$0xff] %vm2994_vm2, %v10081_v24 }
 0x3f8   : > { %v8807_v29 = vsub.f32 %v2568_v58, %v2600_v59  ;;  %v2630_v21 = vsel %vm1135_vm1, %v2614_v41, 0.0  ;;  %4873 = vst.msk [vmem:[#allocation6 + $0x90] sm:$0xff] %vm2994_vm2, %v10081_v24  ;;  %4874 = vst.msk [vmem:[#allocation6 + $0x98] sm:$0xff] %vm2994_vm2, %v10081_v24 }
 0x3f9   : > { %v8810_v42 = vsub.f32 %v2567_v12, %v2599_v20  ;;  %2631 = vadd.xlane.f32.xlu0 %v2630_v21  ;;  %4876 = vst.msk [vmem:[#allocation6 + $0xa8] sm:$0xff] %vm2994_vm2, %v10081_v24  ;;  %4877 = vst.msk [vmem:[#allocation6 + $0xb0] sm:$0xff] %vm2994_vm2, %v10081_v24 }
 0x3fa   : > { %v2616_v18 = vmul.f32 %v8807_v29, %v8807_v29  ;;  %4880 = vst.msk [vmem:[#allocation6 + $0x48] sm:$0xff] %vm2994_vm2, %v10081_v24  ;;  %4881 = vst.msk [vmem:[#allocation6 + $0x60] sm:$0xff] %vm2994_vm2, %v10081_v24 }
 0x3fb   : > { %v2593_v9 = vpop.xlane.xlu1 %2592  ;;  %v2615_v6 = vmul.f32 %v8810_v42, %v8810_v42  ;;  %4882 = vst.msk [vmem:[#allocation6 + $0x52] sm:$0xff] %vm2994_vm2, %v10081_v24  ;;  %4883 = vst.msk [vmem:[#allocation6 + $0x6a] sm:$0xff] %vm2994_vm2, %v10081_v24 }
 0x3fc   : > { %v2601_v38 = vmul.f32 0.0625, %v2593_v9  ;;  %v2636_v61 = vsel %vm1135_vm1, %v2616_v18, 0.0 }
 0x3fd   : > { %v2633_v10 = vsel %vm1135_vm1, %v2615_v6, 0.0  ;;  %2637 = vadd.xlane.f32.xlu0 %v2636_v61 }
 0x3fe   : > { %v2609_v43 = vsub.f32 %v2569_v34, %v2601_v38  ;;  %2634 = vadd.xlane.f32.xlu1 %v2633_v10 }
 0x400   : > { %v2617_v63 = vmul.f32 %v2609_v43, %v2609_v43 }
 0x402   : > { %v2639_v25 = vsel %vm1135_vm1, %v2617_v63, 0.0 }
 0x403   : > { %2640 = vadd.xlane.f32.xlu1 %v2639_v25 }
 0x45b   : > { %v2620_v15 = vpop.xlane.xlu0 %2619 }
 0x45c   : > { %v2642_v22 = vmul.f32 0.0625, %v2620_v15 }
 0x45e   : > { %v2650_v2 = vadd.f32 1e-06, %v2642_v22 }
 0x460   : > { %6590 = vrsqrt.f32 %v2650_v2 }
 0x466   : > { %v2623_v0 = vpop.xlane.xlu1 %2622 }
 0x467   : > { %v2643_v11 = vmul.f32 0.0625, %v2623_v0 }
 0x469   : > { %v2651_v8 = vadd.f32 1e-06, %v2643_v11 }
 0x46a   : > { %v6591_v3 = vpop.eup %6590 }
 0x46b   : > { %6592 = vrsqrt.f32 %v2651_v8  ;;  %v2666_v46 = vmul.f32 %v6591_v3, %v2602_v35 }
 0x473   : > { %v2626_v26 = vpop.xlane.xlu0 %2625 }
 0x474   : > { %v2644_v56 = vmul.f32 0.0625, %v2626_v26 }
 0x475   : > { %v6593_v4 = vpop.eup %6592 }
 0x476   : > { %v2667_v17 = vmul.f32 %v6593_v4, %v2603_v53  ;;  %v2652_v31 = vadd.f32 1e-06, %v2644_v56 }
 0x478   : > { %v2674_v1 = vpack.c.bf16 %v2667_v17, %v2666_v46  ;;  %6594 = vrsqrt.f32 %v2652_v31 }
 0x47a   : > { %6352 = vmatprep.mubr.msk.bf16.mxu1 %vm1135_vm1, %v2674_v1 }
 0x480   : > { %v2629_v13 = vpop.xlane.xlu1 %2628 }
 0x481   : > { %v2645_v33 = vmul.f32 0.0625, %v2629_v13 }
 0x482   : > { %v6595_v50 = vpop.eup %6594 }
 0x483   : > { %v2653_v14 = vadd.f32 1e-06, %v2645_v33  ;;  %v2668_v32 = vmul.f32 %v6595_v50, %v8793_v30 }
 0x485   : > { %6596 = vrsqrt.f32 %v2653_v14 }
 0x486   : > { %v2632_v58 = vpop.xlane.xlu0 %2631 }
 0x487   : > { %v2646_v47 = vmul.f32 0.0625, %v2632_v58 }
 0x489   : > { %v2654_v12 = vadd.f32 1e-06, %v2646_v47 }
 0x48a   : > { %v2638_v55 = vpop.xlane.xlu0 %2637 }
 0x48b   : > { %v2635_v34 = vpop.xlane.xlu1 %2634  ;;  %v2648_v44 = vmul.f32 0.0625, %v2638_v55  ;;  %6598 = vrsqrt.f32 %v2654_v12 }
 0x48c   : > { %v2647_v27 = vmul.f32 0.0625, %v2635_v34 }
 0x48d   : > { %v2656_v39 = vadd.f32 1e-06, %v2648_v44 }
 0x48e   : > { %v2655_v35 = vadd.f32 1e-06, %v2647_v27 }
 0x48f   : > { %v6597_v62 = vpop.eup %6596 }
 0x490   : > { %v2669_v36 = vmul.f32 %v6597_v62, %v8798_v16  ;;  %6600 = vrsqrt.f32 %v2655_v35  ;;  %v2641_v53 = vpop.xlane.xlu1 %2640 }
 0x491   : > { %v2649_v51 = vmul.f32 0.0625, %v2641_v53  ;;  %6602 = vrsqrt.f32 %v2656_v39 }
 0x492   : > { %v2675_v5 = vpack.c.bf16 %v2669_v36, %v2668_v32 }
 0x493   : > { %v2657_v37 = vadd.f32 1e-06, %v2649_v51 }
 0x494   : > { %6353 = vmatmul.mubr.msk.bf16.vlgmr.msra.gmra.mrb[8].mxu1 %vm1135_vm1, %v2675_v5 }
 0x495   : > { %6604 = vrsqrt.f32 %v2657_v37  ;;  %v6599_v48 = vpop.eup %6598 }
 0x496   : > { %v2670_v28 = vmul.f32 %v6599_v48, %v8803_v40  ;;  %v8862_v40 = vld [vmem:[%s10082_s8] ss:$0 sm:$0xff]  ;;  %s10103_s8 = sld [smem:[#allocation31_spill]] }
 0x49a   : > { %v6601_v45 = vpop.eup %6600 }
 0x49b   : > { %v2671_v57 = vmul.f32 %v6601_v45, %v8810_v42  ;;  %v6603_v7 = vpop.eup %6602 }
 0x49c   : > { %v2672_v16 = vmul.f32 %v6603_v7, %v8807_v29 }
 0x49d   : > { %v2676_v49 = vpack.c.bf16 %v2671_v57, %v2670_v28 }
 0x49f   : > { %v6605_v30 = vpop.eup %6604  ;;  %6356 = vmatprep.mubr.msk.bf16.mxu1 %vm1135_vm1, %v2676_v49 }
 0x4a0   : > { %v2673_v19 = vmul.f32 %v6605_v30, %v2609_v43 }
 0x4a2   : > { %v2677_v23 = vpack.c.bf16 %v2673_v19, %v2672_v16 }
 0x4a4   : > { %6357 = vmatmul.mubr.msk.bf16.gmra.mrb[12].mxu1 %vm1135_vm1, %v2677_v23 }
 0x567   : > { %v6354_v54 = vpop.f32.mrb[8].mxu1 }
 0x568   : > { %v8865_v52 = vadd.f32 %v6354_v54, %v8862_v40  ;;  %v2739_v59 = vpop.f32.mrb[9].mxu1 }
 0x569   : > { %v8868_v41 = vadd.f32 %v8862_v40, %v2739_v59  ;;  %v6355_v20 = vpop.f32.mrb[10].mxu1 }
 0x56a   : > { %v8871_v29 = vmul.f32 0.70710677, %v8865_v52  ;;  %v8874_v21 = vadd.f32 %v6355_v20, %v8862_v40  ;;  %v2742_v42 = vpop.f32.mrb[11].mxu1 }
 0x56b   : > { %v8877_v18 = vmul.f32 0.70710677, %v8868_v41  ;;  %v8880_v9 = vadd.f32 %v8862_v40, %v2742_v42 }
 0x56c   : > { %v2788_v6 = vand.u32 2147483647, %v8871_v29  ;;  %v8884_v38 = vmul.f32 0.70710677, %v8874_v21  ;;  %vm2948_vm5 = vcmp.ge.f32.partialorder %v8871_v29, 0.0 }
 0x56d   : > { %v2786_v61 = vand.u32 2147483647, %v8877_v18  ;;  %v8888_v10 = vmul.f32 0.70710677, %v8880_v9  ;;  %vm2946_vm3 = vcmp.ge.f32.partialorder %v8877_v18, 0.0 }
 0x56e   : > { %v2796_v43 = vmul.f32 0.3275911, %v2788_v6  ;;  %v2789_v63 = vand.u32 2147483647, %v8884_v38  ;;  %v2900_v3 = vsub.f32 0.0, %v2788_v6  ;;  %vm2949_vm6 = vcmp.ge.f32.partialorder %v8884_v38, 0.0 }
 0x56f   : > { %v2794_v25 = vmul.f32 0.3275911, %v2786_v61  ;;  %v2787_v60 = vand.u32 2147483647, %v8888_v10  ;;  %v2898_v4 = vsub.f32 0.0, %v2786_v61  ;;  %vm2947_vm4 = vcmp.ge.f32.partialorder %v8888_v10, 0.0 }
 0x570   : > { %v2804_v15 = vadd.f32 1.0, %v2796_v43  ;;  %v2797_v22 = vmul.f32 0.3275911, %v2789_v63  ;;  %v2908_v31 = vmul.f32 %v2900_v3, %v2788_v6  ;;  %v2901_v55 = vsub.f32 0.0, %v2789_v63 }
 0x571   : > { %v2802_v2 = vadd.f32 1.0, %v2794_v25  ;;  %v2795_v0 = vmul.f32 0.3275911, %v2787_v60  ;;  %v2906_v58 = vmul.f32 %v2898_v4, %v2786_v61  ;;  %v2899_v35 = vsub.f32 0.0, %v2787_v60 }
 0x572   : > { %6606 = vrcp.f32 %v2804_v15  ;;  %v2805_v11 = vadd.f32 1.0, %v2797_v22  ;;  %v2918_v39 = vmul.f32 1.442695, %v2908_v31  ;;  %v2909_v45 = vmul.f32 %v2901_v55, %v2789_v63 }
 0x573   : > { %6608 = vrcp.f32 %v2802_v2  ;;  %v2803_v8 = vadd.f32 1.0, %v2795_v0  ;;  %v2914_v51 = vmul.f32 1.442695, %v2906_v58  ;;  %v2907_v30 = vmul.f32 %v2899_v35, %v2787_v60 }
 0x574   : > { %6610 = vrcp.f32 %v2805_v11  ;;  %v2920_v43 = vmul.f32 1.442695, %v2909_v45 }
 0x575   : > { %6612 = vrcp.f32 %v2803_v8  ;;  %v2916_v2 = vmul.f32 1.442695, %v2907_v30 }
 0x577   : > { %v6358_v46 = vpop.f32.mrb[12].mxu1 }
 0x578   : > { %v8893_v17 = vadd.f32 %v6358_v46, %v8862_v40  ;;  %v2755_v26 = vpop.f32.mrb[13].mxu1 }
 0x579   : > { %v8896_v1 = vadd.f32 %v8862_v40, %v2755_v26  ;;  %v6359_v56 = vpop.f32.mrb[14].mxu1 }
 0x57a   : > { %v8899_v13 = vmul.f32 0.70710677, %v8893_v17  ;;  %v8902_v33 = vadd.f32 %v6359_v56, %v8862_v40  ;;  %v2758_v14 = vpop.f32.mrb[15].mxu1 }
 0x57b   : > { %v8905_v47 = vmul.f32 0.70710677, %v8896_v1  ;;  %v8930_v59 = vadd.f32 %v8862_v40, %v2758_v14 }
 0x57c   : > { %v8907_v12 = vpop.eup %6606  ;;  %v2792_v34 = vand.u32 2147483647, %v8899_v13  ;;  %v8911_v44 = vmul.f32 0.70710677, %v8902_v33  ;;  %vm2952_vm8 = vcmp.ge.f32.partialorder %v8899_v13, 0.0 }
 0x57d   : > { %v8913_v27 = vpop.eup %6608  ;;  %v2828_v50 = vmul.f32 1.0614054, %v8907_v12  ;;  %v2790_v62 = vand.u32 2147483647, %v8905_v47  ;;  %v8937_v0 = vmul.f32 0.70710677, %v8930_v59 }
 0x57e   : > { %v2826_v32 = vmul.f32 1.0614054, %v8913_v27  ;;  %v2800_v36 = vmul.f32 0.3275911, %v2792_v34  ;;  %v8918_v37 = vpop.eup %6610  ;;  %v8921_v57 = vand.u32 2147483647, %v8911_v44 }
 0x57f   : > { %v2836_v53 = vadd.f32 -1.4531521, %v2828_v50  ;;  %v2798_v5 = vmul.f32 0.3275911, %v2790_v62  ;;  %v2829_v49 = vmul.f32 1.0614054, %v8918_v37  ;;  %v8925_v19 = vpop.eup %6612 }
 0x580   : > { %v2834_v48 = vadd.f32 -1.4531521, %v2826_v32  ;;  %v2808_v28 = vadd.f32 1.0, %v2800_v36  ;;  %v2801_v54 = vmul.f32 0.3275911, %v8921_v57  ;;  %v2904_v40 = vsub.f32 0.0, %v2792_v34 }
 0x581   : > { %v2844_v7 = vmul.f32 %v8907_v12, %v2836_v53  ;;  %v2806_v16 = vadd.f32 1.0, %v2798_v5  ;;  %v2837_v42 = vadd.f32 -1.4531521, %v2829_v49  ;;  %v2827_v6 = vmul.f32 1.0614054, %v8925_v19 }
 0x582   : > { %v2842_v23 = vmul.f32 %v8913_v27, %v2834_v48  ;;  %6614 = vrcp.f32 %v2808_v28  ;;  %v2809_v63 = vadd.f32 1.0, %v2801_v54  ;;  %v2902_v46 = vsub.f32 0.0, %v2790_v62 }
 0x583   : > { %v2852_v20 = vadd.f32 1.4214138, %v2844_v7  ;;  %6616 = vrcp.f32 %v2806_v16  ;;  %v2845_v60 = vmul.f32 %v8918_v37, %v2837_v42  ;;  %v2835_v15 = vadd.f32 -1.4531521, %v2827_v6 }
 0x584   : > { %6618 = vpow2.f32 %v2918_v39  ;;  %v2850_v61 = vadd.f32 1.4214138, %v2842_v23  ;;  %v8941_v26 = vand.u32 2147483647, %v8937_v0  ;;  %v2912_v32 = vmul.f32 %v2904_v40, %v2792_v34 }
 0x585   : > { %v2860_v25 = vmul.f32 %v8907_v12, %v2852_v20  ;;  %6620 = vpow2.f32 %v2914_v51  ;;  %v2853_v8 = vadd.f32 1.4214138, %v2845_v60  ;;  %v2843_v3 = vmul.f32 %v8925_v19, %v2835_v15 }
 0x586   : > { %v2858_v22 = vmul.f32 %v8913_v27, %v2850_v61  ;;  %6622 = vrcp.f32 %v2809_v63  ;;  %v2799_v55 = vmul.f32 0.3275911, %v8941_v26  ;;  %v2910_v51 = vmul.f32 %v2902_v46, %v2790_v62 }
 0x587   : > { %v2868_v11 = vadd.f32 -0.28449672, %v2860_v25  ;;  %v2861_v31 = vmul.f32 %v8918_v37, %v2853_v8  ;;  %6624 = vpow2.f32 %v2920_v43  ;;  %v2851_v14 = vadd.f32 1.4214138, %v2843_v3 }
 0x588   : > { %v2866_v4 = vadd.f32 -0.28449672, %v2858_v22  ;;  %6626 = vpow2.f32 %v2916_v2  ;;  %v2807_v5 = vadd.f32 1.0, %v2799_v55  ;;  %v2905_v49 = vsub.f32 0.0, %v8921_v57 }
 0x589   : > { %v2876_v56 = vmul.f32 %v8907_v12, %v2868_v11  ;;  %v2869_v35 = vadd.f32 -0.28449672, %v2861_v31  ;;  %v2859_v39 = vmul.f32 %v8925_v19, %v2851_v14  ;;  %v2926_v6 = vmul.f32 1.442695, %v2912_v32 }
 0x58a   : > { %v2874_v58 = vmul.f32 %v8913_v27, %v2866_v4  ;;  %6628 = vrcp.f32 %v2807_v5  ;;  %v2922_v63 = vmul.f32 1.442695, %v2910_v51  ;;  %vm2950_vm7 = vcmp.ge.f32.partialorder %v8905_v47, 0.0 }
 0x58b   : > { %v2884_v50 = vadd.f32 0.2548296, %v2876_v56  ;;  %v2877_v45 = vmul.f32 %v8918_v37, %v2869_v35  ;;  %v2867_v28 = vadd.f32 -0.28449672, %v2859_v39  ;;  %6630 = vpow2.f32 %v2926_v6 }
 0x58c   : > { %v8948_v36 = vpop.eup %6614  ;;  %v2882_v53 = vadd.f32 0.2548296, %v2874_v58  ;;  %6632 = vpow2.f32 %v2922_v63  ;;  %vm2953_vm9 = vcmp.ge.f32.partialorder %v8911_v44, 0.0  ;;  %vm2951_vm10 = vcmp.ge.f32.partialorder %v8937_v0, 0.0 }
 0x58d   : > { %v8950_v48 = vpop.eup %6616  ;;  %v2832_v7 = vmul.f32 1.0614054, %v8948_v36  ;;  %v2892_v16 = vmul.f32 %v8907_v12, %v2884_v50  ;;  %v2885_v62 = vadd.f32 0.2548296, %v2877_v45  ;;  %v2875_v20 = vmul.f32 %v8925_v19, %v2867_v28 }
 0x58e   : > { %v6619_v30 = vpop.eup %6618  ;;  %v2890_v23 = vmul.f32 %v8913_v27, %v2882_v53  ;;  %v2830_v34 = vmul.f32 1.0614054, %v8950_v48  ;;  %v2913_v12 = vmul.f32 %v2905_v49, %v8921_v57 }
 0x58f   : > { %v6621_v54 = vpop.eup %6620  ;;  %v2840_v42 = vadd.f32 -1.4531521, %v2832_v7  ;;  %v2883_v60 = vadd.f32 0.2548296, %v2875_v20  ;;  %v2932_v27 = vmul.f32 %v6619_v30, %v2892_v16  ;;  %v2893_v22 = vmul.f32 %v8918_v37, %v2885_v62 }
 0x590   : > { %v2930_v61 = vmul.f32 %v6621_v54, %v2890_v23  ;;  %v2838_v43 = vadd.f32 -1.4531521, %v2830_v34  ;;  %v8959_v25 = vpop.eup %6622  ;;  %v2928_v58 = vmul.f32 1.442695, %v2913_v12  ;;  %v2903_v37 = vsub.f32 0.0, %v8941_v26 }
 0x591   : > { %v2848_v15 = vmul.f32 %v8948_v36, %v2840_v42  ;;  %v2833_v40 = vmul.f32 1.0614054, %v8959_v25  ;;  %v6625_v11 = vpop.eup %6624  ;;  %v2891_v3 = vmul.f32 %v8925_v19, %v2883_v60  ;;  %v2940_v55 = vsub.f32 1.0, %v2932_v27 }
 0x592   : > { %v2846_v2 = vmul.f32 %v8950_v48, %v2838_v43  ;;  %v2938_v8 = vsub.f32 1.0, %v2930_v61  ;;  %v6627_v46 = vpop.eup %6626  ;;  %v2933_v50 = vmul.f32 %v6625_v11, %v2893_v22  ;;  %6634 = vpow2.f32 %v2928_v58 }
 0x593   : > { %v2856_v4 = vadd.f32 1.4214138, %v2848_v15  ;;  %v2841_v31 = vadd.f32 -1.4531521, %v2833_v40  ;;  %v2931_v14 = vmul.f32 %v6627_v46, %v2891_v3  ;;  %v2911_v49 = vmul.f32 %v2903_v37, %v8941_v26 }
 0x594   : > { %v2854_v56 = vadd.f32 1.4214138, %v2846_v2  ;;  %v2954_v32 = vsub.f32 0.0, %v2938_v8  ;;  %v8971_v51 = vpop.eup %6628  ;;  %v2956_v30 = vsub.f32 0.0, %v2940_v55  ;;  %v2941_v16 = vsub.f32 1.0, %v2933_v50 }
 0x595   : > { %v2864_v57 = vmul.f32 %v8948_v36, %v2856_v4  ;;  %v2849_v39 = vmul.f32 %v8959_v25, %v2841_v31  ;;  %v2939_v19 = vsub.f32 1.0, %v2931_v14  ;;  %v2831_v18 = vmul.f32 1.0614054, %v8971_v51  ;;  %v6631_v6 = vpop.eup %6630 }
 0x596   : > { %v2862_v35 = vmul.f32 %v8950_v48, %v2854_v56  ;;  %v2962_v54 = vsel %vm2946_vm3, %v2938_v8, %v2954_v32  ;;  %v6633_v63 = vpop.eup %6632  ;;  %v2771_v15 = vmul.f32 0.5, %v8880_v9  ;;  %v2924_v27 = vmul.f32 1.442695, %v2911_v49 }
 0x597   : > { %v2872_v53 = vadd.f32 -0.28449672, %v2864_v57  ;;  %v2857_v45 = vadd.f32 1.4214138, %v2849_v39  ;;  %v2955_v28 = vsub.f32 0.0, %v2939_v19  ;;  %v2970_v60 = vadd.f32 1.0, %v2962_v54 }
 0x598   : > { %v2870_v5 = vadd.f32 -0.28449672, %v2862_v35  ;;  %v2839_v26 = vadd.f32 -1.4531521, %v2831_v18  ;;  %v2964_v22 = vsel %vm2948_vm5, %v2940_v55, %v2956_v30  ;;  %v2957_v2 = vsub.f32 0.0, %v2941_v16 }
 0x599   : > { %v2880_v7 = vmul.f32 %v8948_v36, %v2872_v53  ;;  %v2865_v34 = vmul.f32 %v8959_v25, %v2857_v45  ;;  %v2963_v62 = vsel %vm2947_vm4, %v2939_v19, %v2955_v28  ;;  %v2770_v8 = vmul.f32 0.5, %v8868_v41 }
 0x59a   : > { %v2878_v23 = vmul.f32 %v8950_v48, %v2870_v5  ;;  %v2971_v10 = vadd.f32 1.0, %v2963_v62  ;;  %v2847_v11 = vmul.f32 %v8971_v51, %v2839_v26  ;;  %v2972_v9 = vadd.f32 1.0, %v2964_v22 }
 0x59b   : > { %v2888_v20 = vadd.f32 0.2548296, %v2880_v7  ;;  %v2873_v43 = vadd.f32 -0.28449672, %v2865_v34  ;;  %v8990_v56 = vmul.f32 %v2970_v60, %v2770_v8  ;;  %6636 = vpow2.f32 %v2924_v27 }
 0x59c   : > { %v2886_v42 = vadd.f32 0.2548296, %v2878_v23  ;;  %v8987_v29 = vmul.f32 %v2971_v10, %v2771_v15  ;;  %v2855_v46 = vadd.f32 1.4214138, %v2847_v11  ;;  %v6635_v31 = vpop.eup %6634  ;;  %v2965_v14 = vsel %vm2949_vm6, %v2941_v16, %v2957_v2 }
 0x59d   : > { %v2896_v61 = vmul.f32 %v8948_v36, %v2888_v20  ;;  %v2881_v40 = vmul.f32 %v8959_v25, %v2873_v43  ;;  %v2772_v41 = vmul.f32 0.5, %v8865_v52  ;;  %v2986_v32 = vmul.f32 %v8990_v56, %v8990_v56 }
 0x59e   : > { %v2894_v12 = vmul.f32 %v8950_v48, %v2886_v42  ;;  %v2863_v58 = vmul.f32 %v8971_v51, %v2855_v46  ;;  %v2987_v37 = vmul.f32 %v8987_v29, %v8987_v29  ;;  %v2973_v19 = vadd.f32 1.0, %v2965_v14 }
 0x59f   : > { %v2936_v3 = vmul.f32 %v6631_v6, %v2896_v61  ;;  %v2889_v4 = vadd.f32 0.2548296, %v2881_v40  ;;  %v8998_v39 = vmul.f32 %v2972_v9, %v2772_v41  ;;  %v2773_v52 = vmul.f32 0.5, %v8874_v21 }
 0x5a0   : > { %v2934_v36 = vmul.f32 %v6633_v63, %v2894_v12  ;;  %v2871_v35 = vadd.f32 -0.28449672, %v2863_v58  ;;  %v2996_v45 = vsel %vm2994_vm2, %v2987_v37, 0.0  ;;  %v2995_v30 = vsel %vm2994_vm2, %v2986_v32, 0.0 }
 0x5a1   : > { %v2897_v57 = vmul.f32 %v8959_v25, %v2889_v4  ;;  %v2944_v55 = vsub.f32 1.0, %v2936_v3  ;;  %v2988_v47 = vmul.f32 %v8998_v39, %v8998_v39  ;;  %v9008_v16 = vmul.f32 %v2973_v19, %v2773_v52  ;;  %v6522_v52 = vld [vmem:[%s6878_s24 + $0x10] sm:$0xff]  }
 0x5a2   : > { %v2942_v48 = vsub.f32 1.0, %v2934_v36  ;;  %v2879_v5 = vmul.f32 %v8971_v51, %v2871_v35  ;;  %v2774_v23 = vmul.f32 0.5, %v8896_v1  ;;  %v2997_v34 = vadd.f32 %v2996_v45, %v2995_v30  ;;  %v6523_v45 = vld [vmem:[%s6878_s24 + $0x18] sm:$0xff]  }
 0x5a3   : > { %v2937_v50 = vmul.f32 %v6635_v31, %v2897_v57  ;;  %v2960_v7 = vsub.f32 0.0, %v2944_v55  ;;  %v2998_v42 = vsel %vm2994_vm2, %v2988_v47, 0.0  ;;  %v2989_v6 = vmul.f32 %v9008_v16, %v9008_v16 }
 0x5a4   : > { %v2958_v38 = vsub.f32 0.0, %v2942_v48  ;;  %v2887_v49 = vadd.f32 0.2548296, %v2879_v5  ;;  %v2999_v61 = vadd.f32 %v2998_v42, %v2997_v34  ;;  %v2776_v60 = vmul.f32 0.5, %v8893_v17  ;;  %v6521_v5 = vld [vmem:[%s6878_s24 + $0x8] sm:$0xff]  }
 0x5a5   : > { %v2945_v53 = vsub.f32 1.0, %v2937_v50  ;;  %v6637_v20 = vpop.eup %6636  ;;  %v2968_v18 = vsel %vm2952_vm8, %v2944_v55, %v2960_v7  ;;  %v3000_v13 = vsel %vm2994_vm2, %v2989_v6, 0.0  ;;  %v2777_v27 = vmul.f32 0.5, %v8902_v33 }
 0x5a6   : > { %v2966_v25 = vsel %vm2950_vm7, %v2942_v48, %v2958_v38  ;;  %v2895_v62 = vmul.f32 %v8971_v51, %v2887_v49  ;;  %v2976_v26 = vadd.f32 1.0, %v2968_v18  ;;  %v3001_v12 = vadd.f32 %v3000_v13, %v2999_v61  ;;  %v6097_v18 = vld [vmem:[%s6873_s19] ss:$0 sm:$0xff] }
 0x5a7   : > { %v2974_v28 = vadd.f32 1.0, %v2966_v25  ;;  %v2961_v54 = vsub.f32 0.0, %v2945_v53  ;;  %v2775_v40 = vmul.f32 0.5, %v8930_v59  ;;  %vm3502_vm3 = vcmask 261120  }
 0x5a8   : > { %v2935_v10 = vmul.f32 %v6637_v20, %v2895_v62  ;;  %v9025_v44 = vmul.f32 %v2976_v26, %v2776_v60  ;;  %vm3505_vm4 = vcmask 257024   ;;  %3503 = vst.msk [vmem:[#allocation4] sm:$0xff] %vm3502_vm3, %v10081_v24  ;;  %3504 = vst.msk [vmem:[#allocation4 + $0x8] sm:$0xff] %vm3502_vm3, %v10081_v24  ;;  %vm3534_vm5 = vcmask 261124  }
 0x5a9   : > { %v9013_v21 = vmul.f32 %v2974_v28, %v2774_v23  ;;  %v2969_v1 = vsel %vm2953_vm9, %v2945_v53, %v2961_v54  ;;  %v6520_v53 = vld [vmem:[%s6878_s24] sm:$0xff]   ;;  %3507 = vst.msk [vmem:[#allocation4 + $0x18] sm:$0xff] %vm3502_vm3, %v10081_v24  ;;  %3508 = vst.msk [vmem:[#allocation4 + $0x20] sm:$0xff] %vm3502_vm3, %v10081_v24 }
 0x5aa   : > { %v2943_v43 = vsub.f32 1.0, %v2935_v10  ;;  %v2977_v15 = vadd.f32 1.0, %v2969_v1  ;;  %v2992_v17 = vmul.f32 %v9025_v44, %v9025_v44  ;;  %6360 = vmatprep.subr.bf16.mxu1 %v6520_v53  ;;  %v6096_v23 = vld [vmem:[%s10083_s14] ss:$0 sm:$0xff]  ;;  %3510 = vst.msk [vmem:[#allocation4 + $0x30] sm:$0xff] %vm3502_vm3, %v10081_v24  ;;  %3511 = vst.msk [vmem:[#allocation4 + $0x38] sm:$0xff] %vm3502_vm3, %v10081_v24 }
 0x5ab   : > { %v2990_v51 = vmul.f32 %v9013_v21, %v9013_v21  ;;  %6361 = vmatpush3.bf16.msra.mxu1 %v6520_v53  ;;  %3524 = vst.msk [vmem:[#allocation4 + $0x48] sm:$0xff] %vm3502_vm3, %v10081_v24  ;;  %3525 = vst.msk [vmem:[#allocation4 + $0x60] sm:$0xff] %vm3502_vm3, %v10081_v24 }
 0x5ac   : > { %v2959_v63 = vsub.f32 0.0, %v2943_v43  ;;  %v9029_v8 = vmul.f32 %v2977_v15, %v2777_v27  ;;  %v3006_v59 = vsel %vm2994_vm2, %v2992_v17, 0.0  ;;  %6362 = vmatprep.subr.bf16.mxu1 %v6521_v5  ;;  %3528 = vst.msk [vmem:[#allocation4 + $0x54] sm:$0xff] %vm3502_vm3, %v10081_v24  ;;  %3529 = vst.msk [vmem:[#allocation4 + $0x6c] sm:$0xff] %vm3502_vm3, %v10081_v24 }
 0x5ad   : > { %v3002_v2 = vsel %vm2994_vm2, %v2990_v51, 0.0  ;;  %3514 = vst.msk [vmem:[#allocation4 + $0xa8] sm:$0xff] %vm3502_vm3, %v10081_v24  ;;  %3515 = vst.msk [vmem:[#allocation4 + $0xb0] sm:$0xff] %vm3502_vm3, %v10081_v24 }
 0x5ae   : > { %v2967_v22 = vsel %vm2951_vm10, %v2943_v43, %v2959_v63  ;;  %v3003_v3 = vadd.f32 %v3002_v2, %v3001_v12  ;;  %v2993_v33 = vmul.f32 %v9029_v8, %v9029_v8  ;;  %3517 = vst.msk [vmem:[#allocation4 + $0xc0] sm:$0xff] %vm3502_vm3, %v10081_v24  ;;  %3518 = vst.msk [vmem:[#allocation4 + $0xc8] sm:$0xff] %vm3502_vm3, %v10081_v24  ;;  %vm4696_vm10 = vcmask 254976  }
 0x5af   : > { %v2975_v11 = vadd.f32 1.0, %v2967_v22  ;;  %6363 = vmatpush3.bf16.msra.mxu1 %v6521_v5  ;;  %v10087_v5 = vld [vmem:[#allocation56_spill] sm:$0xff]  ;;  %3520 = vst.msk [vmem:[#allocation4 + $0xd8] sm:$0xff] %vm3502_vm3, %v10081_v24  ;;  %3521 = vst.msk [vmem:[#allocation4 + $0xe0] sm:$0xff] %vm3502_vm3, %v10081_v24 }
 0x5b0   : > { %v3008_v48 = vsel %vm2994_vm2, %v2993_v33, 0.0  ;;  %6364 = vmatprep.subr.bf16.mxu1 %v6522_v52  ;;  %3526 = vst.msk [vmem:[#allocation4 + $0x78] sm:$0xff] %vm3502_vm3, %v10081_v24  ;;  %3527 = vst.msk [vmem:[#allocation4 + $0x90] sm:$0xff] %vm3502_vm3, %v10081_v24 }
 0x5b1   : > { %v9031_v36 = vmul.f32 %v2975_v11, %v2775_v40  ;;  %3530 = vst.msk [vmem:[#allocation4 + $0x84] sm:$0xff] %vm3502_vm3, %v10081_v24  ;;  %3531 = vst.msk [vmem:[#allocation4 + $0x9c] sm:$0xff] %vm3502_vm3, %v10081_v24 }
 0x5b3   : > { %v2991_v0 = vmul.f32 %v9031_v36, %v9031_v36  ;;  %6365 = vmatpush3.bf16.msra.mxu1 %v6522_v52 }
 0x5b4   : > { %6366 = vmatprep.subr.bf16.mxu1 %v6523_v45 }
 0x5b5   : > { %v3004_v4 = vsel %vm2994_vm2, %v2991_v0, 0.0 }
 0x5b6   : > { %v3005_v46 = vadd.f32 %v3004_v4, %v3003_v3 }
 0x5b7   : > { %6367 = vmatpush3.bf16.msra.mxu1 %v6523_v45 }
 0x5b8   : > { %v3007_v9 = vadd.f32 %v3006_v59, %v3005_v46  ;;  %6396 = vmatprep.subr.bf16.mxu1 %v10081_v24 }
 0x5ba   : > { %v3009_v31 = vadd.f32 %v3008_v48, %v3007_v9 }
 0x5bc   : > { %v3010_v14 = vrot.slane %v3009_v31, 4 }
 0x5be   : > { %v3011_v57 = vadd.f32 %v3010_v14, %v3009_v31 }
 0x5c0   : > { %v3012_v58 = vrot.slane %v3011_v57, 2 }
 0x5c2   : > { %v3013_v41 = vadd.f32 %v3012_v58, %v3011_v57 }
 0x5c4   : > { %v3014_v37 = vrot.slane %v3013_v41, 1 }
 0x5c6   : > { %v3015_v38 = vadd.f32 %v3014_v37, %v3013_v41 }
 0x5c8   : > { %6638 = vrsqrt.f32 %v3015_v38  ;;  %vm3018_vm11 = vcmp.eq.f32.partialorder %v3015_v38, inf  ;;  %v3021_v35 = vand.u32 2147483648, %v3015_v38  ;;  %vm3020_vm12 = vcmp.eq.f32.partialorder %v3015_v38, 0.0 }
 0x5d2   : > { %v6639_v55 = vpop.eup %6638 }
 0x5d3   : > { %v3017_v50 = vmul.f32 %v6639_v55, %v3015_v38  ;;  %v10084_v55 = vld [vmem:[#allocation60_spill] sm:$0xff] }
 0x5d5   : > { %v3019_v32 = vsel %vm3018_vm11, %v3015_v38, %v3017_v50  ;;  %vm4704_vm11 = vcmask 517376  }
 0x5d6   : > { %v3022_v19 = vsel %vm3020_vm12, %v3021_v35, %v3019_v32  ;;  %v10085_v32 = vld [vmem:[#allocation47_spill] sm:$0xff]  ;;  %vm4712_vm12 = vcmask 779776  }
 0x5d7   : > { %v3023_v25 = vsel %vm2994_vm2, %v3022_v19, 0.0 }
 0x5d8   : > { %3024 = vadd.xlane.f32.xlu0 %v3023_v25  ;;  %v10086_v25 = vld [vmem:[#allocation71_spill] sm:$0xff] }
 0x665   : > { %v3025_v28 = vpop.xlane.xlu0 %3024 }
 0x666   : > { %v3027_v7 = vmul.f32 0.015625, %v3025_v28 }
 0x668   : > { %v3028_v49 = vadd.f32 1e-06, %v3027_v7 }
 0x66a   : > { %6640 = vrcp.f32 %v3028_v49 }
 0x674   : > { %v6641_v47 = vpop.eup %6640 }
 0x675   : > { %v3030_v30 = vmul.f32 %v6641_v47, %v3022_v19 }
 0x677   : > { %v3032_v34 = vmul.f32 %v3030_v30, %v8990_v56  ;;  %v3033_v54 = vmul.f32 %v3030_v30, %v8987_v29  ;;  %v3034_v62 = vmul.f32 %v3030_v30, %v8998_v39  ;;  %v3035_v20 = vmul.f32 %v3030_v30, %v9008_v16 }
 0x678   : > { %v3036_v10 = vmul.f32 %v3030_v30, %v9013_v21  ;;  %v3037_v42 = vmul.f32 %v3030_v30, %v9031_v36  ;;  %v3038_v6 = vmul.f32 %v3030_v30, %v9025_v44  ;;  %v3039_v61 = vmul.f32 %v3030_v30, %v9029_v8 }
 0x679   : > { %v3046_v1 = vmul.f32 %v6096_v23, %v3032_v34  ;;  %v3047_v43 = vmul.f32 %v6096_v23, %v3033_v54  ;;  %v3048_v26 = vmul.f32 %v6096_v23, %v3034_v62  ;;  %v3049_v51 = vmul.f32 %v6096_v23, %v3035_v20  ;;  %v10088_v62 = vld [vmem:[#allocation206_spill] sm:$0xff] }
 0x67a   : > { %v3050_v63 = vmul.f32 %v6096_v23, %v3036_v10  ;;  %v3051_v13 = vmul.f32 %v6096_v23, %v3037_v42  ;;  %v3052_v40 = vmul.f32 %v6096_v23, %v3038_v6  ;;  %v3053_v11 = vmul.f32 %v6096_v23, %v3039_v61  ;;  %v10089_v10 = vld [vmem:[#allocation74_spill] sm:$0xff]  ;;  %v10090_v61 = vld [vmem:[#allocation216_spill] sm:$0xff] }
 0x67b   : > { %v3061_v60 = vadd.f32 %v6097_v18, %v3046_v1  ;;  %v3062_v15 = vadd.f32 %v6097_v18, %v3047_v43  ;;  %v3063_v12 = vadd.f32 %v6097_v18, %v3048_v26  ;;  %v3064_v27 = vadd.f32 %v6097_v18, %v3049_v51  ;;  %v10091_v26 = vld [vmem:[#allocation40_spill] sm:$0xff] }
 0x67c   : > { %v3065_v22 = vadd.f32 %v6097_v18, %v3050_v63  ;;  %v3066_v2 = vadd.f32 %v6097_v18, %v3051_v13  ;;  %v3067_v48 = vadd.f32 %v6097_v18, %v3052_v40  ;;  %v3068_v31 = vadd.f32 %v6097_v18, %v3053_v11 }
 0x67d   : > { %v3069_v3 = vadd.f32 %v3061_v60, %v8990_v56  ;;  %v3070_v17 = vadd.f32 %v3062_v15, %v8987_v29  ;;  %v3071_v0 = vadd.f32 %v3063_v12, %v8998_v39  ;;  %v3072_v33 = vadd.f32 %v3064_v27, %v9008_v16  ;;  %v6098_v16 = vld [vmem:[%s6883_s30] ss:$0 sm:$0xff] }
 0x67e   : > { %v3073_v4 = vadd.f32 %v3065_v22, %v9013_v21  ;;  %v3074_v46 = vadd.f32 %v3066_v2, %v9031_v36  ;;  %v3075_v29 = vadd.f32 %v3067_v48, %v9025_v44  ;;  %v3076_v56 = vadd.f32 %v3068_v31, %v9029_v8 }
 0x67f   : > { %v3077_v59 = vpack.c.bf16 %v3070_v17, %v3069_v3  ;;  %v3078_v9 = vpack.c.bf16 %v3072_v33, %v3071_v0 }
 0x680   : > { %v3079_v14 = vpack.c.bf16 %v3074_v46, %v3073_v4  ;;  %v3080_v39 = vpack.c.bf16 %v3076_v56, %v3075_v29 }
 0x681   : > { %6368 = vmatprep.mubr.msk.bf16.mxu1 %vm2994_vm2, %v3077_v59 }
 0x682   : > { %6369 = vmatmul.mubr.msk.bf16.vlgmr.msra.gmra.mrb[16].mxu1 %vm2994_vm2, %v3078_v9 }
 0x683   : > { %6372 = vmatprep.mubr.msk.bf16.mxu1 %vm2994_vm2, %v3079_v14 }
 0x68a   : > { %6373 = vmatmul.mubr.msk.bf16.gmra.mrb[20].mxu1 %vm2994_vm2, %v3080_v39 }
 0x68b   : > { %6412 = vmatprep.mubr.msk.bf16.mxu1 %vm6810_vm14, %v10081_v24 }
 0x755   : > { %v6370_v21 = vpop.f32.mrb[16].mxu1 }
 0x756   : > { %v3175_v36 = vadd.f32 %v6370_v21, %v6098_v16  ;;  %v3166_v57 = vpop.f32.mrb[17].mxu1 }
 0x757   : > { %v3167_v58 = vadd.f32 %v6098_v16, %v3166_v57  ;;  %v6371_v41 = vpop.f32.mrb[18].mxu1 }
 0x758   : > { %v3178_v37 = vadd.f32 %v6371_v41, %v6098_v16  ;;  %v3169_v38 = vpop.f32.mrb[19].mxu1  ;;  %v3199_v50 = vadd.f32 %v3175_v36, %v10084_v55 }
 0x759   : > { %v3170_v35 = vadd.f32 %v6098_v16, %v3169_v38  ;;  %v3197_v19 = vadd.f32 %v3167_v58, %v10085_v32 }
 0x75a   : > { %v3211_v44 = vsel %vm1135_vm1, %v3199_v50, 0.0  ;;  %v3200_v8 = vadd.f32 %v3178_v37, %v10086_v25 }
 0x75b   : > { %3212 = vadd.xlane.f32.xlu0 %v3211_v44  ;;  %v3205_v53 = vsel %vm1135_vm1, %v3197_v19, 0.0  ;;  %v3198_v52 = vadd.f32 %v3170_v35, %v10087_v5 }
 0x75c   : > { %3206 = vadd.xlane.f32.xlu1 %v3205_v53  ;;  %v3214_v49 = vsel %vm1135_vm1, %v3200_v8, 0.0 }
 0x75d   : > { %v6374_v45 = vpop.f32.mrb[20].mxu1  ;;  %v3208_v23 = vsel %vm1135_vm1, %v3198_v52, 0.0 }
 0x75e   : > { %v3191_v28 = vadd.f32 %v6374_v45, %v6098_v16  ;;  %v3182_v7 = vpop.f32.mrb[21].mxu1 }
 0x75f   : > { %v3183_v47 = vadd.f32 %v6098_v16, %v3182_v7  ;;  %3215 = vadd.xlane.f32.xlu0 %v3214_v49  ;;  %v6375_v30 = vpop.f32.mrb[22].mxu1 }
 0x760   : > { %v3194_v34 = vadd.f32 %v6375_v30, %v6098_v16  ;;  %v3185_v54 = vpop.f32.mrb[23].mxu1  ;;  %3209 = vadd.xlane.f32.xlu1 %v3208_v23  ;;  %v3203_v20 = vadd.f32 %v3191_v28, %v10088_v62 }
 0x761   : > { %v3186_v18 = vadd.f32 %v6098_v16, %v3185_v54  ;;  %v3201_v42 = vadd.f32 %v3183_v47, %v10089_v10 }
 0x762   : > { %v3223_v6 = vsel %vm1135_vm1, %v3203_v20, 0.0  ;;  %v3204_v1 = vadd.f32 %v3194_v34, %v10090_v61 }
 0x763   : > { %3224 = vadd.xlane.f32.xlu0 %v3223_v6  ;;  %v3217_v43 = vsel %vm1135_vm1, %v3201_v42, 0.0  ;;  %v3202_v51 = vadd.f32 %v3186_v18, %v10091_v26 }
 0x764   : > { %3218 = vadd.xlane.f32.xlu1 %v3217_v43  ;;  %v3226_v63 = vsel %vm1135_vm1, %v3204_v1, 0.0 }
 0x765   : > { %v3220_v13 = vsel %vm1135_vm1, %v3202_v51, 0.0 }
 0x767   : > { %3227 = vadd.xlane.f32.xlu0 %v3226_v63 }
 0x768   : > { %3221 = vadd.xlane.f32.xlu1 %v3220_v13 }
 0x7e8   : > { %v3213_v60 = vpop.xlane.xlu0 %3212 }
 0x7e9   : > { %v3231_v15 = vmul.f32 0.0625, %v3213_v60  ;;  %v3207_v12 = vpop.xlane.xlu1 %3206 }
 0x7ea   : > { %v3229_v27 = vmul.f32 0.0625, %v3207_v12 }
 0x7eb   : > { %v9087_v22 = vsub.f32 %v3199_v50, %v3231_v15 }
 0x7ec   : > { %v9089_v2 = vsub.f32 %v3197_v19, %v3229_v27  ;;  %v3216_v40 = vpop.xlane.xlu0 %3215 }
 0x7ed   : > { %v3232_v11 = vmul.f32 0.0625, %v3216_v40  ;;  %v3210_v3 = vpop.xlane.xlu1 %3209  ;;  %v3247_v17 = vmul.f32 %v9087_v22, %v9087_v22 }
 0x7ee   : > { %v3230_v0 = vmul.f32 0.0625, %v3210_v3  ;;  %v3245_v33 = vmul.f32 %v9089_v2, %v9089_v2 }
 0x7ef   : > { %v9095_v4 = vsub.f32 %v3200_v8, %v3232_v11  ;;  %v3259_v46 = vsel %vm1135_vm1, %v3247_v17, 0.0 }
 0x7f0   : > { %v9098_v59 = vsub.f32 %v3198_v52, %v3230_v0  ;;  %v3225_v9 = vpop.xlane.xlu0 %3224  ;;  %3260 = vadd.xlane.f32.xlu0 %v3259_v46  ;;  %v3253_v48 = vsel %vm1135_vm1, %v3245_v33, 0.0 }
 0x7f1   : > { %v3235_v31 = vmul.f32 0.0625, %v3225_v9  ;;  %3254 = vadd.xlane.f32.xlu1 %v3253_v48  ;;  %v3219_v14 = vpop.xlane.xlu1 %3218  ;;  %v3248_v29 = vmul.f32 %v9095_v4, %v9095_v4 }
 0x7f2   : > { %v3233_v56 = vmul.f32 0.0625, %v3219_v14  ;;  %v3246_v39 = vmul.f32 %v9098_v59, %v9098_v59 }
 0x7f3   : > { %v9105_v16 = vsub.f32 %v3203_v20, %v3235_v31  ;;  %v3262_v21 = vsel %vm1135_vm1, %v3248_v29, 0.0 }
 0x7f4   : > { %v9108_v36 = vsub.f32 %v3201_v42, %v3233_v56  ;;  %3263 = vadd.xlane.f32.xlu0 %v3262_v21  ;;  %v3228_v57 = vpop.xlane.xlu0 %3227  ;;  %v3256_v58 = vsel %vm1135_vm1, %v3246_v39, 0.0  ;;  %v6524_v21 = vld [vmem:[%s9616_s6] sm:$0xff]  }
 0x7f5   : > { %v3236_v41 = vmul.f32 0.0625, %v3228_v57  ;;  %3257 = vadd.xlane.f32.xlu1 %v3256_v58  ;;  %v3222_v37 = vpop.xlane.xlu1 %3221  ;;  %v3251_v38 = vmul.f32 %v9105_v16, %v9105_v16  ;;  %6377 = vmatpush3.bf16.msra.mxu0 %v6524_v21 }
 0x7f6   : > { %v3234_v55 = vmul.f32 0.0625, %v3222_v37  ;;  %v3249_v50 = vmul.f32 %v9108_v36, %v9108_v36  ;;  %6378 = vmatprep.subr.bf16.mxu0 %v10081_v24  ;;  %v6525_v37 = vld [vmem:[%s9616_s6 + $0x8] sm:$0xff]  }
 0x7f7   : > { %v9115_v35 = vsub.f32 %v3204_v1, %v3236_v41  ;;  %v3271_v32 = vsel %vm1135_vm1, %v3251_v38, 0.0 }
 0x7f8   : > { %v9118_v19 = vsub.f32 %v3202_v51, %v3234_v55  ;;  %3272 = vadd.xlane.f32.xlu0 %v3271_v32  ;;  %v3265_v44 = vsel %vm1135_vm1, %v3249_v50, 0.0  ;;  %v6526_v50 = vld [vmem:[%s9616_s6 + $0x10] sm:$0xff]   ;;  %v6527_v32 = vld [vmem:[%s9616_s6 + $0x18] sm:$0xff]   ;;  %s6812_s6 = smov 96  }
 0x7f9   : > { %3266 = vadd.xlane.f32.xlu1 %v3265_v44  ;;  %v3252_v25 = vmul.f32 %v9115_v35, %v9115_v35  ;;  %6379 = vmatpush3.bf16.msra.mxu0 %v6525_v37 }
 0x7fa   : > { %v3250_v8 = vmul.f32 %v9118_v19, %v9118_v19  ;;  %6380 = vmatprep.subr.bf16.mxu0 %v10081_v24 }
 0x7fb   : > { %v3274_v53 = vsel %vm1135_vm1, %v3252_v25, 0.0 }
 0x7fc   : > { %3275 = vadd.xlane.f32.xlu0 %v3274_v53  ;;  %v3268_v5 = vsel %vm1135_vm1, %v3250_v8, 0.0 }
 0x7fd   : > { %3269 = vadd.xlane.f32.xlu1 %v3268_v5  ;;  %6381 = vmatpush3.bf16.msra.mxu0 %v6526_v50 }
 0x7fe   : > { %6382 = vmatprep.subr.bf16.mxu0 %v10081_v24 }
 0x801   : > { %6383 = vmatpush3.bf16.msra.mxu0 %v6527_v32 }
 0x802   : > { %6388 = vmatprep.subr.bf16.mxu0 %v10081_v24 }
 0x87d   : > { %v3261_v52 = vpop.xlane.xlu0 %3260 }
 0x87e   : > { %v3279_v45 = vmul.f32 0.0625, %v3261_v52  ;;  %v3255_v28 = vpop.xlane.xlu1 %3254 }
 0x87f   : > { %v3277_v7 = vmul.f32 0.0625, %v3255_v28 }
 0x880   : > { %v3287_v49 = vadd.f32 1e-06, %v3279_v45 }
 0x881   : > { %v3285_v47 = vadd.f32 1e-06, %v3277_v7  ;;  %v3264_v30 = vpop.xlane.xlu0 %3263 }
 0x882   : > { %6642 = vrsqrt.f32 %v3287_v49  ;;  %v3280_v23 = vmul.f32 0.0625, %v3264_v30  ;;  %v3258_v34 = vpop.xlane.xlu1 %3257 }
 0x883   : > { %6644 = vrsqrt.f32 %v3285_v47  ;;  %v3278_v54 = vmul.f32 0.0625, %v3258_v34 }
 0x884   : > { %v3288_v62 = vadd.f32 1e-06, %v3280_v23 }
 0x885   : > { %v3286_v20 = vadd.f32 1e-06, %v3278_v54  ;;  %v3273_v18 = vpop.xlane.xlu0 %3272 }
 0x886   : > { %6646 = vrsqrt.f32 %v3288_v62  ;;  %v3283_v10 = vmul.f32 0.0625, %v3273_v18  ;;  %v3267_v42 = vpop.xlane.xlu1 %3266  ;;  %v6107_v18 = vld [vmem:[%s10092_s22] ss:$0 sm:$0xff]  ;;  %s10095_s22 = sld [smem:[#allocation23_spill]] }
 0x887   : > { %6648 = vrsqrt.f32 %v3286_v20  ;;  %v3281_v6 = vmul.f32 0.0625, %v3267_v42 }
 0x888   : > { %v3291_v61 = vadd.f32 1e-06, %v3283_v10 }
 0x889   : > { %v3289_v1 = vadd.f32 1e-06, %v3281_v6  ;;  %v3276_v43 = vpop.xlane.xlu0 %3275 }
 0x88a   : > { %6650 = vrsqrt.f32 %v3291_v61  ;;  %v3284_v26 = vmul.f32 0.0625, %v3276_v43  ;;  %v3270_v51 = vpop.xlane.xlu1 %3269 }
 0x88b   : > { %6652 = vrsqrt.f32 %v3289_v1  ;;  %v3282_v63 = vmul.f32 0.0625, %v3270_v51 }
 0x88c   : > { %v6643_v13 = vpop.eup %6642  ;;  %v3292_v60 = vadd.f32 1e-06, %v3284_v26 }
 0x88d   : > { %v6645_v15 = vpop.eup %6644  ;;  %v3303_v12 = vmul.f32 %v6643_v13, %v9087_v22  ;;  %v3290_v27 = vadd.f32 1e-06, %v3282_v63  ;;  %v3589_v63 = vld [vmem:[#allocation4 + $0x5] sm:$0xf]  ;;  %v3590_v13 = vld [vmem:[#allocation4 + $0x1d] sm:$0xf] }
 0x88e   : > { %v3301_v40 = vmul.f32 %v6645_v15, %v9089_v2  ;;  %6654 = vrsqrt.f32 %v3292_v60  ;;  %v3591_v60 = vld [vmem:[#allocation4 + $0x35] sm:$0xf] }
 0x88f   : > { %3311 = vst.msk [vmem:[#allocation3 + $0x10] sm:$0xff] %vm1135_vm1, %v3303_v12  ;;  %6656 = vrsqrt.f32 %v3290_v27 }
 0x890   : > { %v6647_v11 = vpop.eup %6646  ;;  %3309 = vst.msk [vmem:[#allocation3] sm:$0xff] %vm1135_vm1, %v3301_v40 }
 0x891   : > { %v6649_v3 = vpop.eup %6648  ;;  %v3304_v17 = vmul.f32 %v6647_v11, %v9095_v4 }
 0x892   : > { %v3302_v0 = vmul.f32 %v6649_v3, %v9098_v59 }
 0x893   : > { %3312 = vst.msk [vmem:[#allocation3 + $0x18] sm:$0xff] %vm1135_vm1, %v3304_v17 }
 0x894   : > { %v6651_v33 = vpop.eup %6650  ;;  %3310 = vst.msk [vmem:[#allocation3 + $0x8] sm:$0xff] %vm1135_vm1, %v3302_v0 }
 0x895   : > { %v6653_v22 = vpop.eup %6652  ;;  %v3307_v2 = vmul.f32 %v6651_v33, %v9105_v16 }
 0x896   : > { %v3305_v46 = vmul.f32 %v6653_v22, %v9108_v36  ;;  %v3348_v9 = vld [vmem:[#allocation3 + $0x11] ss:$2 sm:$0xf]  ;;  %v3345_v48 = vld [vmem:[#allocation3 + $0x10] ss:$2 sm:$0xf] }
 0x897   : > { %3315 = vst.msk [vmem:[#allocation3 + $0x30] sm:$0xff] %vm1135_vm1, %v3307_v2  ;;  %3350 = vrot.lane.b32.xlu0 %v3348_v9, %s6807_s23  ;;  %v3321_v4 = vld [vmem:[#allocation3 + $0x1] ss:$2 sm:$0xf] }
 0x898   : > { %3346 = vst.msk [vmem:[#allocation8 + $0x4] sm:$0xf] %vm3318_vm13, %v3345_v48  ;;  %v3317_v59 = vld [vmem:[#allocation3] ss:$2 sm:$0xf]  ;;  %v6655_v31 = vpop.eup %6654  ;;  %3323 = vrot.lane.b32.xlu1 %v3321_v4, %s6807_s23 }
 0x899   : > { %3313 = vst.msk [vmem:[#allocation3 + $0x20] sm:$0xff] %vm1135_vm1, %v3305_v46  ;;  %v6657_v14 = vpop.eup %6656  ;;  %v3308_v29 = vmul.f32 %v6655_v31, %v9115_v35 }
 0x89a   : > { %3319 = vst.msk [vmem:[#allocation8] sm:$0xf] %vm3318_vm13, %v3317_v59  ;;  %v3306_v56 = vmul.f32 %v6657_v14, %v9118_v19  ;;  %v3355_v39 = vld [vmem:[#allocation3 + $0x18] ss:$2 sm:$0xf] }
 0x89b   : > { %3316 = vst.msk [vmem:[#allocation3 + $0x38] sm:$0xff] %vm1135_vm1, %v3308_v29  ;;  %3357 = vrot.lane.b32.xlu0 %v3355_v39, %s9584_s2  ;;  %v3329_v16 = vld [vmem:[#allocation3 + $0x8] ss:$2 sm:$0xf] }
 0x89c   : > { %3314 = vst.msk [vmem:[#allocation3 + $0x28] sm:$0xff] %vm1135_vm1, %v3306_v56  ;;  %3331 = vrot.lane.b32.xlu1 %v3329_v16, %s9584_s2  ;;  %v3362_v36 = vld [vmem:[#allocation3 + $0x19] ss:$2 sm:$0xf]  ;;  %vm3342_vm1 = vcmask 519552  }
 0x89d   : > { %v3337_v58 = vld [vmem:[#allocation3 + $0x9] ss:$2 sm:$0xf] }
 0x89e   : > { %v3393_v57 = vld [vmem:[#allocation3 + $0x30] ss:$2 sm:$0xf]  ;;  %v3396_v55 = vld [vmem:[#allocation3 + $0x31] ss:$2 sm:$0xf] }
 0x89f   : > { %3364 = vrot.lane.b32.xlu0 %v3362_v36, %s6809_s16  ;;  %3394 = vst.msk [vmem:[#allocation8 + $0xc] sm:$0xf] %vm3318_vm13, %v3393_v57 }
 0x8a0   : > { %v3369_v41 = vld [vmem:[#allocation3 + $0x20] ss:$2 sm:$0xf]  ;;  %3339 = vrot.lane.b32.xlu1 %v3337_v58, %s6809_s16  ;;  %v3372_v19 = vld [vmem:[#allocation3 + $0x21] ss:$2 sm:$0xf] }
 0x8a1   : > { %3370 = vst.msk [vmem:[#allocation8 + $0x8] sm:$0xf] %vm3318_vm13, %v3369_v41  ;;  %v3596_v58 = vld [vmem:[#allocation4 + $0xad] sm:$0xf]  ;;  %vm4720_vm13 = vcmask 1042176  }
 0x8a2   : > { %v3403_v38 = vld [vmem:[#allocation3 + $0x38] ss:$2 sm:$0xf]  ;;  %v3410_v35 = vld [vmem:[#allocation3 + $0x39] ss:$2 sm:$0xf] }
 0x8a3   : > { %3405 = vrot.lane.b32.xlu0 %v3403_v38, %s9584_s2  ;;  %v3379_v44 = vld [vmem:[#allocation3 + $0x28] ss:$2 sm:$0xf]  ;;  %v3386_v25 = vld [vmem:[#allocation3 + $0x29] ss:$2 sm:$0xf] }
 0x8a4   : > { %3398 = vrot.lane.b32.xlu1 %v3396_v55, %s6807_s23  ;;  %v3597_v38 = vld [vmem:[#allocation4 + $0xc5] sm:$0xf] }
 0x8a7   : > { %3412 = vrot.lane.b32.xlu0 %v3410_v35, %s6809_s16 }
 0x8a8   : > { %3374 = vrot.lane.b32.xlu1 %v3372_v19, %s6807_s23  ;;  %s10093_s23 = sld [smem:[#allocation21_spill]] }
 0x8ac   : > { %3381 = vrot.lane.b32.xlu1 %v3379_v44, %s9584_s2  ;;  %s10097_s2 = sld [smem:[#allocation24_spill]] }
 0x8ae   : > { %v6113_v26 = vld [vmem:[%s10093_s23] ss:$0 sm:$0xff]  ;;  %v6114_v51 = vld [vmem:[%s10093_s23 + $0x7] ss:$0 sm:$0xff]  ;;  %v6115_v27 = vld [vmem:[%s10093_s23 + $0xe] ss:$0 sm:$0xff] }
 0x8af   : > { %v3605_v15 = vmul.f32 %v6113_v26, %v3589_v63  ;;  %v3615_v12 = vmul.f32 %v6114_v51, %v3590_v13  ;;  %v3606_v40 = vmul.f32 %v6113_v26, %v3590_v13  ;;  %v3616_v11 = vmul.f32 %v6114_v51, %v3591_v60  ;;  %v6116_v33 = vld [vmem:[%s10093_s23 + $0x15] ss:$0 sm:$0xff]  ;;  %v6117_v29 = vld [vmem:[%s10093_s23 + $0x1c] ss:$0 sm:$0xff]  ;;  %v6118_v35 = vld [vmem:[%s10093_s23 + $0x23] ss:$0 sm:$0xff] }
 0x8b0   : > { %3388 = vrot.lane.b32.xlu1 %v3386_v25, %s6809_s16  ;;  %v3629_v0 = vmul.f32 %v6115_v27, %v3591_v60  ;;  %v3607_v2 = vmul.f32 %v6113_v26, %v3591_v60  ;;  %v3660_v25 = vmul.f32 %v6117_v29, %v3596_v58  ;;  %v6121_v63 = vld [vmem:[%s10093_s23 + $0x8] ss:$0 sm:$0xff]  ;;  %s10094_s16 = sld [smem:[#allocation22_spill]] }
 0x8b1   : > { %v3619_v17 = vadd.f32 %v3615_v12, %v3605_v15  ;;  %v3620_v9 = vadd.f32 %v3616_v11, %v3606_v40  ;;  %v3700_v12 = vld [vmem:[#allocation4 + $0xae] sm:$0xf] }
 0x8b3   : > { %v3633_v4 = vadd.f32 %v3629_v0, %v3619_v17  ;;  %v9246_v17 = vld [vmem:[#allocation4 + $0xc6] sm:$0xf] }
 0x909   : > { %v3351_v8 = vpop.permute.xlu0 %3350 }
 0x90a   : > { %3353 = vst.msk [vmem:[#allocation8 + $0x4] sm:$0xf] %vm3326_vm15, %v3351_v8  ;;  %v3324_v53 = vpop.permute.xlu1 %3323  ;;  %v6119_v8 = vld [vmem:[%s10093_s23 + $0x2a] ss:$0 sm:$0xff] }
 0x90b   : > { %3327 = vst.msk [vmem:[#allocation8] sm:$0xf] %vm3326_vm15, %v3324_v53  ;;  %v3687_v15 = vmul.f32 %v6119_v8, %v3597_v38 }
 0x90d   : > { %v3358_v5 = vpop.permute.xlu0 %3357 }
 0x90e   : > { %3360 = vst.msk [vmem:[#allocation8 + $0x4] sm:$0xf] %vm3334_vm0, %v3358_v5  ;;  %v3332_v52 = vpop.permute.xlu1 %3331 }
 0x90f   : > { %3335 = vst.msk [vmem:[#allocation8] sm:$0xf] %vm3334_vm0, %v3332_v52  ;;  %v3673_v52 = vmul.f32 %v6118_v35, %v3596_v58 }
 0x911   : > { %v3365_v45 = vpop.permute.xlu0 %3364 }
 0x912   : > { %3367 = vst.msk [vmem:[#allocation8 + $0x4] sm:$0xf] %vm3342_vm1, %v3365_v45  ;;  %v3340_v28 = vpop.permute.xlu1 %3339  ;;  %v3674_v45 = vmul.f32 %v6118_v35, %v3597_v38 }
 0x913   : > { %3343 = vst.msk [vmem:[#allocation8] sm:$0xf] %vm3342_vm1, %v3340_v28  ;;  %v3693_v28 = vld [vmem:[#allocation4 + $0x6] sm:$0xf] }
 0x915   : > { %v3406_v7 = vpop.permute.xlu0 %3405 }
 0x916   : > { %v3399_v49 = vpop.permute.xlu1 %3398 }
 0x917   : > { %3401 = vst.msk [vmem:[#allocation8 + $0xc] sm:$0xf] %vm3326_vm15, %v3399_v49 }
 0x918   : > { %3408 = vst.msk [vmem:[#allocation8 + $0xc] sm:$0xf] %vm3334_vm0, %v3406_v7 }
 0x919   : > { %v3413_v47 = vpop.permute.xlu0 %3412 }
 0x91a   : > { %3415 = vst.msk [vmem:[#allocation8 + $0xc] sm:$0xf] %vm3342_vm1, %v3413_v47  ;;  %v3375_v30 = vpop.permute.xlu1 %3374  ;;  %v3416_v54 = vld [vmem:[#allocation8] sm:$0xff] }
 0x91b   : > { %3377 = vst.msk [vmem:[#allocation8 + $0x8] sm:$0xf] %vm3326_vm15, %v3375_v30  ;;  %v3686_v30 = vmul.f32 %v6119_v8, %v3596_v58  ;;  %vm4886_vm15 = vcmask 519170  }
 0x91e   : > { %v3382_v23 = vpop.permute.xlu1 %3381 }
 0x91f   : > { %3384 = vst.msk [vmem:[#allocation8 + $0x8] sm:$0xf] %vm3334_vm0, %v3382_v23  ;;  %v3694_v23 = vld [vmem:[#allocation4 + $0x1e] sm:$0xf]  ;;  %vm5493_vm0 = vcmask 519168  }
 0x920   : > { %v3723_v0 = vmul.f32 %v6121_v63, %v3694_v23 }
 0x922   : > { %v3389_v34 = vpop.permute.xlu1 %3388 }
 0x923   : > { %3391 = vst.msk [vmem:[#allocation8 + $0x8] sm:$0xf] %vm3342_vm1, %v3389_v34  ;;  %v6120_v34 = vld [vmem:[%s10093_s23 + $0x1] ss:$0 sm:$0xff] }
 0x92a   : > { %v3417_v62 = vld [vmem:[#allocation8 + $0x8] sm:$0xff] }
 0x92b   : > { %v3418_v20 = vpack.c.bf16 %v3417_v62, %v3416_v54  ;;  %v3598_v54 = vld [vmem:[#allocation4 + $0xdd] sm:$0xf] }
 0x92c   : > { %v3688_v11 = vmul.f32 %v6119_v8, %v3598_v54 }
 0x92d   : > { %6385 = vmatmul.mubr.msk.bf16.vlgmr.msra.gmra.mrb[0].mxu0 %vm2994_vm2, %v3418_v20 }
 0x92e   : > { %6392 = vmatprep.mubr.msk.bf16.mxu0 %vm6810_vm14, %v10081_v24 }
 0xa00   : > { %v3495_v10 = vpop.f32.mrb[0].mxu0 }
 0xa01   : > { %v9227_v42 = vadd.f32 %v6107_v18, %v3495_v10  ;;  %v6386_v6 = vpop.f32.mrb[1].mxu0 }
 0xa02   : > { %v3498_v61 = vpop.f32.mrb[2].mxu0  ;;  %v3695_v6 = vld [vmem:[#allocation4 + $0x36] sm:$0xf] }
 0xa03   : > { %3532 = vst.msk [vmem:[#allocation4 + $0x50] sm:$0xf] %vm3505_vm4, %v9227_v42  ;;  %v9232_v1 = vadd.f32 %v6107_v18, %v3498_v61  ;;  %v6387_v43 = vpop.f32.mrb[3].mxu0 }
 0xa04   : > { %3535 = vst.msk [vmem:[#allocation4 + $0x64] sm:$0xf0] %vm3534_vm5, %v9227_v42 }
 0xa05   : > { %3537 = vst.msk [vmem:[#allocation4 + $0x80] sm:$0xf] %vm3505_vm4, %v9232_v1 }
 0xa06   : > { %3539 = vst.msk [vmem:[#allocation4 + $0x94] sm:$0xf0] %vm3534_vm5, %v9232_v1 }
 0xa0a   : > { %v3592_v3 = vld [vmem:[#allocation4 + $0x4d] sm:$0xf] }
 0xa0b   : > { %v3593_v22 = vld [vmem:[#allocation4 + $0x65] sm:$0xf]  ;;  %v3617_v46 = vmul.f32 %v6114_v51, %v3592_v3  ;;  %v3630_v48 = vmul.f32 %v6115_v27, %v3592_v3  ;;  %v3643_v59 = vmul.f32 %v6116_v33, %v3592_v3  ;;  %v3608_v31 = vmul.f32 %v6113_v26, %v3592_v3 }
 0xa0c   : > { %v3618_v14 = vmul.f32 %v6114_v51, %v3593_v22  ;;  %v3631_v21 = vmul.f32 %v6115_v27, %v3593_v22  ;;  %v3644_v36 = vmul.f32 %v6116_v33, %v3593_v22  ;;  %v3594_v57 = vld [vmem:[#allocation4 + $0x7d] sm:$0xf]  ;;  %v3657_v37 = vmul.f32 %v6117_v29, %v3593_v22  ;;  %v6124_v22 = vld [vmem:[%s10093_s23 + $0x1d] ss:$0 sm:$0xff] }
 0xa0d   : > { %v3621_v56 = vadd.f32 %v3617_v46, %v3607_v2  ;;  %v3634_v39 = vadd.f32 %v3630_v48, %v3620_v9  ;;  %v3647_v16 = vadd.f32 %v3643_v59, %v3633_v4  ;;  %v3595_v32 = vld [vmem:[#allocation4 + $0x95] sm:$0xf]  ;;  %v3632_v44 = vmul.f32 %v6115_v27, %v3594_v57  ;;  %v3696_v2 = vld [vmem:[#allocation4 + $0x4e] sm:$0xf] }
 0xa0e   : > { %v3622_v41 = vadd.f32 %v3618_v14, %v3608_v31  ;;  %v3645_v53 = vmul.f32 %v6116_v33, %v3594_v57  ;;  %v3658_v5 = vmul.f32 %v6117_v29, %v3594_v57  ;;  %v3646_v49 = vmul.f32 %v6116_v33, %v3595_v32  ;;  %v6122_v33 = vld [vmem:[%s10093_s23 + $0xf] ss:$0 sm:$0xff]  ;;  %v6125_v31 = vld [vmem:[%s10093_s23 + $0x24] ss:$0 sm:$0xff] }
 0xa0f   : > { %v3635_v55 = vadd.f32 %v3631_v21, %v3621_v56  ;;  %v3648_v50 = vadd.f32 %v3644_v36, %v3634_v39  ;;  %v3661_v19 = vadd.f32 %v3657_v37, %v3647_v16  ;;  %v3671_v47 = vmul.f32 %v6118_v35, %v3594_v57  ;;  %v6123_v39 = vld [vmem:[%s10093_s23 + $0x16] ss:$0 sm:$0xff]  ;;  %v6126_v21 = vld [vmem:[%s10093_s23 + $0x2b] ss:$0 sm:$0xff] }
 0xa10   : > { %v3636_v7 = vadd.f32 %v3632_v44, %v3622_v41  ;;  %v3659_v20 = vmul.f32 %v6117_v29, %v3595_v32  ;;  %v3672_v10 = vmul.f32 %v6118_v35, %v3595_v32  ;;  %v3685_v26 = vmul.f32 %v6119_v8, %v3595_v32  ;;  %v3697_v16 = vld [vmem:[#allocation4 + $0x66] sm:$0xf] }
 0xa11   : > { %v3649_v62 = vadd.f32 %v3645_v53, %v3635_v55  ;;  %v3662_v18 = vadd.f32 %v3658_v5, %v3648_v50  ;;  %v3675_v43 = vadd.f32 %v3671_v47, %v3661_v19  ;;  %v3709_v51 = vmul.f32 %v6120_v34, %v3693_v28  ;;  %v3698_v19 = vld [vmem:[#allocation4 + $0x7e] sm:$0xf] }
 0xa12   : > { %v3650_v61 = vadd.f32 %v3646_v49, %v3636_v7  ;;  %v3710_v27 = vmul.f32 %v6120_v34, %v3694_v23  ;;  %v3724_v46 = vmul.f32 %v6121_v63, %v3695_v6  ;;  %v3711_v4 = vmul.f32 %v6120_v34, %v3695_v6  ;;  %v3699_v7 = vld [vmem:[#allocation4 + $0x96] sm:$0xf] }
 0xa13   : > { %v3663_v13 = vadd.f32 %v3659_v20, %v3649_v62  ;;  %v3676_v60 = vadd.f32 %v3672_v10, %v3662_v18  ;;  %v3689_v3 = vadd.f32 %v3685_v26, %v3675_v43  ;;  %v3737_v59 = vmul.f32 %v6122_v33, %v3695_v6  ;;  %v3801_v6 = vld [vmem:[#allocation4 + $0x7] sm:$0xf] }
 0xa14   : > { %v3664_v40 = vadd.f32 %v3660_v25, %v3650_v61  ;;  %v3768_v56 = vmul.f32 %v6124_v22, %v3700_v12  ;;  %v3781_v58 = vmul.f32 %v6125_v31, %v3700_v12  ;;  %v9254_v41 = vmul.f32 %v6125_v31, %v9246_v17 }
 0xa15   : > { %v3677_v9 = vadd.f32 %v3673_v52, %v3663_v13  ;;  %v3690_v48 = vadd.f32 %v3686_v30, %v3676_v60  ;;  %v3713_v29 = vadd.f32 %v3709_v51, %v3689_v3  ;;  %v3712_v37 = vmul.f32 %v6120_v34, %v3696_v2  ;;  %v6127_v13 = vld [vmem:[%s10093_s23 + $0x2] ss:$0 sm:$0xff]  ;;  %v3702_v60 = vld [vmem:[#allocation4 + $0xde] sm:$0xf] }
 0xa16   : > { %v3678_v14 = vadd.f32 %v3674_v45, %v3664_v40  ;;  %v3794_v50 = vmul.f32 %v6126_v21, %v3700_v12  ;;  %v3725_v35 = vmul.f32 %v6121_v63, %v3696_v2  ;;  %v3738_v32 = vmul.f32 %v6122_v33, %v3696_v2 }
 0xa17   : > { %v3691_v36 = vadd.f32 %v3687_v15, %v3677_v9  ;;  %v3714_v57 = vadd.f32 %v3710_v27, %v3690_v48  ;;  %v3727_v55 = vadd.f32 %v3723_v0, %v3713_v29  ;;  %v3726_v8 = vmul.f32 %v6121_v63, %v3697_v16  ;;  %v3802_v63 = vld [vmem:[#allocation4 + $0x1f] sm:$0xf] }
 0xa18   : > { %v3692_v38 = vadd.f32 %v3688_v11, %v3678_v14  ;;  %v3751_v53 = vmul.f32 %v6123_v39, %v3696_v2  ;;  %v3739_v45 = vmul.f32 %v6122_v33, %v3697_v16  ;;  %v3752_v28 = vmul.f32 %v6123_v39, %v3697_v16  ;;  %v3803_v11 = vld [vmem:[#allocation4 + $0x37] sm:$0xf] }
 0xa19   : > { %v3715_v44 = vadd.f32 %v3711_v4, %v3691_v36  ;;  %v3728_v25 = vadd.f32 %v3724_v46, %v3714_v57  ;;  %v3741_v52 = vadd.f32 %v3737_v59, %v3727_v55  ;;  %v3765_v30 = vmul.f32 %v6124_v22, %v3697_v16  ;;  %v6128_v46 = vld [vmem:[%s10093_s23 + $0x9] ss:$0 sm:$0xff]  ;;  %v3808_v59 = vld [vmem:[#allocation4 + $0xaf] sm:$0xf]  ;;  %v6129_v36 = vld [vmem:[%s10093_s23 + $0x10] ss:$0 sm:$0xff] }
 0xa1a   : > { %v3716_v5 = vadd.f32 %v3712_v37, %v3692_v38  ;;  %v3740_v34 = vmul.f32 %v6122_v33, %v3698_v19  ;;  %v3753_v20 = vmul.f32 %v6123_v39, %v3698_v19  ;;  %v3766_v10 = vmul.f32 %v6124_v22, %v3698_v19  ;;  %v6131_v57 = vld [vmem:[%s10093_s23 + $0x1e] ss:$0 sm:$0xff]  ;;  %v3804_v37 = vld [vmem:[#allocation4 + $0x4f] sm:$0xf] }
 0xa1b   : > { %v3729_v49 = vadd.f32 %v3725_v35, %v3715_v44  ;;  %v3742_v47 = vadd.f32 %v3738_v32, %v3728_v25  ;;  %v3755_v54 = vadd.f32 %v3751_v53, %v3741_v52  ;;  %v3754_v43 = vmul.f32 %v6123_v39, %v3699_v7  ;;  %v6133_v53 = vld [vmem:[%s10093_s23 + $0x2c] ss:$0 sm:$0xff] }
 0xa1c   : > { %v3730_v23 = vadd.f32 %v3726_v8, %v3716_v5  ;;  %v3779_v51 = vmul.f32 %v6125_v31, %v3698_v19  ;;  %v3767_v12 = vmul.f32 %v6124_v22, %v3699_v7  ;;  %v3780_v40 = vmul.f32 %v6125_v31, %v3699_v7  ;;  %v9259_v31 = vld [vmem:[#allocation4 + $0xc7] sm:$0xf] }
 0xa1d   : > { %v3743_v62 = vadd.f32 %v3739_v45, %v3729_v49  ;;  %v3756_v18 = vadd.f32 %v3752_v28, %v3742_v47  ;;  %v3769_v26 = vadd.f32 %v3765_v30, %v3755_v54  ;;  %v3793_v33 = vmul.f32 %v6126_v21, %v3699_v7  ;;  %v3805_v8 = vld [vmem:[#allocation4 + $0x67] sm:$0xf] }
 0xa1e   : > { %v3744_v61 = vadd.f32 %v3740_v34, %v3730_v23  ;;  %v3817_v2 = vmul.f32 %v6127_v13, %v3801_v6  ;;  %v3795_v4 = vmul.f32 %v6126_v21, %v9246_v17  ;;  %v3818_v14 = vmul.f32 %v6127_v13, %v3802_v63  ;;  %v6132_v17 = vld [vmem:[%s10093_s23 + $0x25] ss:$0 sm:$0xff]  ;;  %v3806_v23 = vld [vmem:[#allocation4 + $0x7f] sm:$0xf] }
 0xa1f   : > { %v3757_v15 = vadd.f32 %v3753_v20, %v3743_v62  ;;  %v3770_v27 = vadd.f32 %v3766_v10, %v3756_v18  ;;  %v3783_v0 = vadd.f32 %v3779_v51, %v3769_v26  ;;  %v3796_v39 = vmul.f32 %v6126_v21, %v3702_v60  ;;  %v6130_v21 = vld [vmem:[%s10093_s23 + $0x17] ss:$0 sm:$0xff] }
 0xa20   : > { %v3758_v3 = vadd.f32 %v3754_v43, %v3744_v61  ;;  %v3831_v16 = vmul.f32 %v6128_v46, %v3802_v63  ;;  %v3832_v38 = vmul.f32 %v6128_v46, %v3803_v11  ;;  %v3819_v32 = vmul.f32 %v6127_v13, %v3803_v11  ;;  %v3807_v61 = vld [vmem:[#allocation4 + $0x97] sm:$0xf] }
 0xa21   : > { %v3771_v9 = vadd.f32 %v3767_v12, %v3757_v15  ;;  %v3784_v48 = vadd.f32 %v3780_v40, %v3770_v27  ;;  %v3797_v22 = vadd.f32 %v3793_v33, %v3783_v0  ;;  %v3845_v19 = vmul.f32 %v6129_v36, %v3803_v11  ;;  %v3909_v11 = vld [vmem:[#allocation4 + $0x8] sm:$0xf] }
 0xa22   : > { %v3772_v29 = vadd.f32 %v3768_v56, %v3758_v3  ;;  %v3876_v56 = vmul.f32 %v6131_v57, %v3808_v59  ;;  %v3889_v45 = vmul.f32 %v6132_v17, %v3808_v59  ;;  %v9268_v28 = vmul.f32 %v6132_v17, %v9259_v31 }
 0xa23   : > { %v3785_v55 = vadd.f32 %v3781_v58, %v3771_v9  ;;  %v3798_v35 = vadd.f32 %v3794_v50, %v3784_v48  ;;  %v3821_v25 = vadd.f32 %v3817_v2, %v3797_v22  ;;  %v3820_v7 = vmul.f32 %v6127_v13, %v3804_v37  ;;  %v6134_v9 = vld [vmem:[%s10093_s23 + $0x3] ss:$0 sm:$0xff]  ;;  %v3810_v48 = vld [vmem:[#allocation4 + $0xdf] sm:$0xf] }
 0xa24   : > { %v3786_v44 = vadd.f32 %v9254_v41, %v3772_v29  ;;  %v3902_v50 = vmul.f32 %v6133_v53, %v3808_v59  ;;  %v3833_v47 = vmul.f32 %v6128_v46, %v3804_v37  ;;  %v3846_v30 = vmul.f32 %v6129_v36, %v3804_v37 }
 0xa25   : > { %v3799_v5 = vadd.f32 %v3795_v4, %v3785_v55  ;;  %v3822_v52 = vadd.f32 %v3818_v14, %v3798_v35  ;;  %v3835_v58 = vadd.f32 %v3831_v16, %v3821_v25  ;;  %v3834_v54 = vmul.f32 %v6128_v46, %v3805_v8  ;;  %v3910_v46 = vld [vmem:[#allocation4 + $0x20] sm:$0xf] }
 0xa26   : > { %v3800_v49 = vadd.f32 %v3796_v39, %v3786_v44  ;;  %v3859_v62 = vmul.f32 %v6130_v21, %v3804_v37  ;;  %v3847_v10 = vmul.f32 %v6129_v36, %v3805_v8  ;;  %v3860_v6 = vmul.f32 %v6130_v21, %v3805_v8  ;;  %v3911_v39 = vld [vmem:[#allocation4 + $0x38] sm:$0xf] }
 0xa27   : > { %v3823_v34 = vadd.f32 %v3819_v32, %v3799_v5  ;;  %v3836_v41 = vadd.f32 %v3832_v38, %v3822_v52  ;;  %v3849_v18 = vadd.f32 %v3845_v19, %v3835_v58  ;;  %v3873_v51 = vmul.f32 %v6131_v57, %v3805_v8  ;;  %v6135_v38 = vld [vmem:[%s10093_s23 + $0xa] ss:$0 sm:$0xff]  ;;  %v3916_v19 = vld [vmem:[#allocation4 + $0xb0] sm:$0xf]  ;;  %v6136_v5 = vld [vmem:[%s10093_s23 + $0x11] ss:$0 sm:$0xff] }
 0xa28   : > { %v3824_v20 = vadd.f32 %v3820_v7, %v3800_v49  ;;  %v3848_v13 = vmul.f32 %v6129_v36, %v3806_v23  ;;  %v3861_v12 = vmul.f32 %v6130_v21, %v3806_v23  ;;  %v3874_v40 = vmul.f32 %v6131_v57, %v3806_v23  ;;  %v6138_v52 = vld [vmem:[%s10093_s23 + $0x1f] ss:$0 sm:$0xff]  ;;  %v3912_v7 = vld [vmem:[#allocation4 + $0x50] sm:$0xf] }
 0xa29   : > { %v3837_v43 = vadd.f32 %v3833_v47, %v3823_v34  ;;  %v3850_v26 = vadd.f32 %v3846_v30, %v3836_v41  ;;  %v3863_v60 = vadd.f32 %v3859_v62, %v3849_v18  ;;  %v3862_v0 = vmul.f32 %v6130_v21, %v3807_v61  ;;  %v6140_v62 = vld [vmem:[%s10093_s23 + $0x2d] ss:$0 sm:$0xff] }
 0xa2a   : > { %v3838_v63 = vadd.f32 %v3834_v54, %v3824_v20  ;;  %v3887_v2 = vmul.f32 %v6132_v17, %v3806_v23  ;;  %v3875_v59 = vmul.f32 %v6131_v57, %v3807_v61  ;;  %v3888_v29 = vmul.f32 %v6132_v17, %v3807_v61  ;;  %v9273_v17 = vld [vmem:[#allocation4 + $0xc8] sm:$0xf] }
 0xa2b   : > { %v3851_v15 = vadd.f32 %v3847_v10, %v3837_v43  ;;  %v3864_v27 = vadd.f32 %v3860_v6, %v3850_v26  ;;  %v3877_v33 = vadd.f32 %v3873_v51, %v3863_v60  ;;  %v3901_v36 = vmul.f32 %v6133_v53, %v3807_v61  ;;  %v3913_v54 = vld [vmem:[#allocation4 + $0x68] sm:$0xf] }
 0xa2c   : > { %v3852_v3 = vadd.f32 %v3848_v13, %v3838_v63  ;;  %v3925_v37 = vmul.f32 %v6134_v9, %v3909_v11  ;;  %v3903_v32 = vmul.f32 %v6133_v53, %v9259_v31  ;;  %v3926_v44 = vmul.f32 %v6134_v9, %v3910_v46  ;;  %v6139_v31 = vld [vmem:[%s10093_s23 + $0x26] ss:$0 sm:$0xff]  ;;  %v3914_v63 = vld [vmem:[#allocation4 + $0x80] sm:$0xf] }
 0xa2d   : > { %v3865_v4 = vadd.f32 %v3861_v12, %v3851_v15  ;;  %v3878_v14 = vadd.f32 %v3874_v40, %v3864_v27  ;;  %v3891_v16 = vadd.f32 %v3887_v2, %v3877_v33  ;;  %v3904_v21 = vmul.f32 %v6133_v53, %v3810_v48  ;;  %v6137_v53 = vld [vmem:[%s10093_s23 + $0x18] ss:$0 sm:$0xff] }
 0xa2e   : > { %v3866_v22 = vadd.f32 %v3862_v0, %v3852_v3  ;;  %v3939_v8 = vmul.f32 %v6135_v38, %v3910_v46  ;;  %v3927_v49 = vmul.f32 %v6134_v9, %v3911_v39  ;;  %v3940_v58 = vmul.f32 %v6135_v38, %v3911_v39  ;;  %v3915_v3 = vld [vmem:[#allocation4 + $0x98] sm:$0xf] }
 0xa2f   : > { %v3879_v55 = vadd.f32 %v3875_v59, %v3865_v4  ;;  %v3892_v35 = vadd.f32 %v3888_v29, %v3878_v14  ;;  %v3905_v57 = vadd.f32 %v3901_v36, %v3891_v16  ;;  %v3953_v23 = vmul.f32 %v6136_v5, %v3911_v39  ;;  %v4017_v39 = vld [vmem:[#allocation4 + $0x9] sm:$0xf] }
 0xa30   : > { %v3880_v25 = vadd.f32 %v3876_v56, %v3866_v22  ;;  %v3984_v56 = vmul.f32 %v6138_v52, %v3916_v19  ;;  %v3997_v10 = vmul.f32 %v6139_v31, %v3916_v19  ;;  %v9282_v6 = vmul.f32 %v6139_v31, %v9273_v17 }
 0xa31   : > { %v3893_v47 = vadd.f32 %v3889_v45, %v3879_v55  ;;  %v3906_v30 = vadd.f32 %v3902_v50, %v3892_v35  ;;  %v3929_v41 = vadd.f32 %v3925_v37, %v3905_v57  ;;  %v3928_v61 = vmul.f32 %v6134_v9, %v3912_v7  ;;  %v6141_v55 = vld [vmem:[%s10093_s23 + $0x4] ss:$0 sm:$0xff]  ;;  %v3918_v35 = vld [vmem:[#allocation4 + $0xe0] sm:$0xf] }
 0xa32   : > { %v3894_v34 = vadd.f32 %v9268_v28, %v3880_v25  ;;  %v4010_v45 = vmul.f32 %v6140_v62, %v3916_v19  ;;  %v3941_v50 = vmul.f32 %v6135_v38, %v3912_v7  ;;  %v3954_v51 = vmul.f32 %v6136_v5, %v3912_v7 }
 0xa33   : > { %v3907_v20 = vadd.f32 %v3903_v32, %v3893_v47  ;;  %v3930_v18 = vadd.f32 %v3926_v44, %v3906_v30  ;;  %v3943_v26 = vadd.f32 %v3939_v8, %v3929_v41  ;;  %v3942_v60 = vmul.f32 %v6135_v38, %v3913_v54  ;;  %v4018_v38 = vld [vmem:[#allocation4 + $0x21] sm:$0xf] }
 0xa34   : > { %v3908_v43 = vadd.f32 %v3904_v21, %v3894_v34  ;;  %v3967_v15 = vmul.f32 %v6137_v53, %v3912_v7  ;;  %v3955_v40 = vmul.f32 %v6136_v5, %v3913_v54  ;;  %v3968_v11 = vmul.f32 %v6137_v53, %v3913_v54  ;;  %v4019_v21 = vld [vmem:[#allocation4 + $0x39] sm:$0xf] }
 0xa35   : > { %v3931_v13 = vadd.f32 %v3927_v49, %v3907_v20  ;;  %v3944_v28 = vadd.f32 %v3940_v58, %v3930_v18  ;;  %v3957_v27 = vadd.f32 %v3953_v23, %v3943_v26  ;;  %v3981_v2 = vmul.f32 %v6138_v52, %v3913_v54  ;;  %v6142_v49 = vld [vmem:[%s10093_s23 + $0xb] ss:$0 sm:$0xff]  ;;  %v4024_v23 = vld [vmem:[#allocation4 + $0xb1] sm:$0xf]  ;;  %v6143_v20 = vld [vmem:[%s10093_s23 + $0x12] ss:$0 sm:$0xff] }
 0xa36   : > { %v3932_v12 = vadd.f32 %v3928_v61, %v3908_v43  ;;  %v3956_v9 = vmul.f32 %v6136_v5, %v3914_v63  ;;  %v3969_v59 = vmul.f32 %v6137_v53, %v3914_v63  ;;  %v3982_v29 = vmul.f32 %v6138_v52, %v3914_v63  ;;  %v6145_v18 = vld [vmem:[%s10093_s23 + $0x20] ss:$0 sm:$0xff]  ;;  %v4020_v61 = vld [vmem:[#allocation4 + $0x51] sm:$0xf] }
 0xa37   : > { %v3945_v0 = vadd.f32 %v3941_v50, %v3931_v13  ;;  %v3958_v33 = vadd.f32 %v3954_v51, %v3944_v28  ;;  %v3971_v48 = vadd.f32 %v3967_v15, %v3957_v27  ;;  %v3970_v16 = vmul.f32 %v6137_v53, %v3915_v3  ;;  %v6147_v15 = vld [vmem:[%s10093_s23 + $0x2e] ss:$0 sm:$0xff] }
 0xa38   : > { %v3946_v46 = vadd.f32 %v3942_v60, %v3932_v12  ;;  %v3995_v37 = vmul.f32 %v6139_v31, %v3914_v63  ;;  %v3983_v19 = vmul.f32 %v6138_v52, %v3915_v3  ;;  %v3996_v25 = vmul.f32 %v6139_v31, %v3915_v3  ;;  %v9287_v31 = vld [vmem:[#allocation4 + $0xc9] sm:$0xf] }
 0xa39   : > { %v3959_v4 = vadd.f32 %v3955_v40, %v3945_v0  ;;  %v3972_v14 = vadd.f32 %v3968_v11, %v3958_v33  ;;  %v3985_v36 = vadd.f32 %v3981_v2, %v3971_v48  ;;  %v4009_v5 = vmul.f32 %v6140_v62, %v3915_v3  ;;  %v4021_v60 = vld [vmem:[#allocation4 + $0x69] sm:$0xf] }
 0xa3a   : > { %v3960_v22 = vadd.f32 %v3956_v9, %v3946_v46  ;;  %v4033_v7 = vmul.f32 %v6141_v55, %v4017_v39  ;;  %v4011_v30 = vmul.f32 %v6140_v62, %v9273_v17  ;;  %v4034_v34 = vmul.f32 %v6141_v55, %v4018_v38  ;;  %v6146_v17 = vld [vmem:[%s10093_s23 + $0x27] ss:$0 sm:$0xff]  ;;  %v4022_v46 = vld [vmem:[#allocation4 + $0x81] sm:$0xf] }
 0xa3b   : > { %v3973_v32 = vadd.f32 %v3969_v59, %v3959_v4  ;;  %v3986_v44 = vadd.f32 %v3982_v29, %v3972_v14  ;;  %v3999_v8 = vadd.f32 %v3995_v37, %v3985_v36  ;;  %v4012_v53 = vmul.f32 %v6140_v62, %v3918_v35  ;;  %v6144_v62 = vld [vmem:[%s10093_s23 + $0x19] ss:$0 sm:$0xff] }
 0xa3c   : > { %v3974_v57 = vadd.f32 %v3970_v16, %v3960_v22  ;;  %v4047_v54 = vmul.f32 %v6142_v49, %v4018_v38  ;;  %v4035_v43 = vmul.f32 %v6141_v55, %v4019_v21  ;;  %v4048_v26 = vmul.f32 %v6142_v49, %v4019_v21  ;;  %v4023_v22 = vld [vmem:[#allocation4 + $0x99] sm:$0xf] }
 0xa3d   : > { %v3987_v58 = vadd.f32 %v3983_v19, %v3973_v32  ;;  %v4000_v47 = vadd.f32 %v3996_v25, %v3986_v44  ;;  %v4013_v52 = vadd.f32 %v4009_v5, %v3999_v8  ;;  %v4061_v63 = vmul.f32 %v6143_v20, %v4019_v21  ;;  %v4125_v21 = vld [vmem:[#allocation4 + $0xa] sm:$0xf] }
 0xa3e   : > { %v3988_v41 = vadd.f32 %v3984_v56, %v3974_v57  ;;  %v4092_v56 = vmul.f32 %v6145_v18, %v4024_v23  ;;  %v4105_v40 = vmul.f32 %v6146_v17, %v4024_v23  ;;  %v9296_v11 = vmul.f32 %v6146_v17, %v9287_v31 }
 0xa3f   : > { %v4001_v50 = vadd.f32 %v3997_v10, %v3987_v58  ;;  %v4014_v51 = vadd.f32 %v4010_v45, %v4000_v47  ;;  %v4037_v28 = vadd.f32 %v4033_v7, %v4013_v52  ;;  %v4036_v3 = vmul.f32 %v6141_v55, %v4020_v61  ;;  %v6148_v58 = vld [vmem:[%s10093_s23 + $0x5] ss:$0 sm:$0xff]  ;;  %v4026_v47 = vld [vmem:[#allocation4 + $0xe1] sm:$0xf] }
 0xa40   : > { %v4002_v13 = vadd.f32 %v9282_v6, %v3988_v41  ;;  %v4118_v10 = vmul.f32 %v6147_v15, %v4024_v23  ;;  %v4049_v45 = vmul.f32 %v6142_v49, %v4020_v61  ;;  %v4062_v2 = vmul.f32 %v6143_v20, %v4020_v61 }
 0xa41   : > { %v4015_v12 = vadd.f32 %v4011_v30, %v4001_v50  ;;  %v4038_v27 = vadd.f32 %v4034_v34, %v4014_v51  ;;  %v4051_v33 = vadd.f32 %v4047_v54, %v4037_v28  ;;  %v4050_v48 = vmul.f32 %v6142_v49, %v4021_v60  ;;  %v4126_v49 = vld [vmem:[#allocation4 + $0x22] sm:$0xf] }
 0xa42   : > { %v4016_v0 = vadd.f32 %v4012_v53, %v4002_v13  ;;  %v4075_v4 = vmul.f32 %v6144_v62, %v4020_v61  ;;  %v4063_v29 = vmul.f32 %v6143_v20, %v4021_v60  ;;  %v4076_v39 = vmul.f32 %v6144_v62, %v4021_v60  ;;  %v4127_v53 = vld [vmem:[#allocation4 + $0x3a] sm:$0xf] }
 0xa43   : > { %v4039_v9 = vadd.f32 %v4035_v43, %v4015_v12  ;;  %v4052_v6 = vadd.f32 %v4048_v26, %v4038_v27  ;;  %v4065_v14 = vadd.f32 %v4061_v63, %v4051_v33  ;;  %v4089_v37 = vmul.f32 %v6145_v18, %v4021_v60  ;;  %v6149_v43 = vld [vmem:[%s10093_s23 + $0xc] ss:$0 sm:$0xff]  ;;  %v4132_v63 = vld [vmem:[#allocation4 + $0xb2] sm:$0xf]  ;;  %v6150_v12 = vld [vmem:[%s10093_s23 + $0x13] ss:$0 sm:$0xff] }
 0xa44   : > { %v4040_v59 = vadd.f32 %v4036_v3, %v4016_v0  ;;  %v4064_v55 = vmul.f32 %v6143_v20, %v4022_v46  ;;  %v4077_v19 = vmul.f32 %v6144_v62, %v4022_v46  ;;  %v4090_v25 = vmul.f32 %v6145_v18, %v4022_v46  ;;  %v6152_v27 = vld [vmem:[%s10093_s23 + $0x21] ss:$0 sm:$0xff]  ;;  %v4128_v3 = vld [vmem:[#allocation4 + $0x52] sm:$0xf] }
 0xa45   : > { %v4053_v16 = vadd.f32 %v4049_v45, %v4039_v9  ;;  %v4066_v36 = vadd.f32 %v4062_v2, %v4052_v6  ;;  %v4079_v35 = vadd.f32 %v4075_v4, %v4065_v14  ;;  %v4078_v8 = vmul.f32 %v6144_v62, %v4023_v22  ;;  %v6154_v4 = vld [vmem:[%s10093_s23 + $0x2f] ss:$0 sm:$0xff] }
 0xa46   : > { %v4054_v38 = vadd.f32 %v4050_v48, %v4040_v59  ;;  %v4103_v7 = vmul.f32 %v6146_v17, %v4022_v46  ;;  %v4091_v23 = vmul.f32 %v6145_v18, %v4023_v22  ;;  %v4104_v41 = vmul.f32 %v6146_v17, %v4023_v22  ;;  %v9301_v17 = vld [vmem:[#allocation4 + $0xca] sm:$0xf] }
 0xa47   : > { %v4067_v32 = vadd.f32 %v4063_v29, %v4053_v16  ;;  %v4080_v44 = vadd.f32 %v4076_v39, %v4066_v36  ;;  %v4093_v5 = vadd.f32 %v4089_v37, %v4079_v35  ;;  %v4117_v20 = vmul.f32 %v6147_v15, %v4023_v22  ;;  %v4129_v48 = vld [vmem:[#allocation4 + $0x6a] sm:$0xf] }
 0xa48   : > { %v4068_v57 = vadd.f32 %v4064_v55, %v4054_v38  ;;  %v4141_v61 = vmul.f32 %v6148_v58, %v4125_v21  ;;  %v4119_v51 = vmul.f32 %v6147_v15, %v9287_v31  ;;  %v4142_v13 = vmul.f32 %v6148_v58, %v4126_v49  ;;  %v6153_v31 = vld [vmem:[%s10093_s23 + $0x28] ss:$0 sm:$0xff]  ;;  %v4130_v38 = vld [vmem:[#allocation4 + $0x82] sm:$0xf] }
 0xa49   : > { %v4081_v30 = vadd.f32 %v4077_v19, %v4067_v32  ;;  %v4094_v34 = vadd.f32 %v4090_v25, %v4080_v44  ;;  %v4107_v54 = vadd.f32 %v4103_v7, %v4093_v5  ;;  %v4120_v62 = vmul.f32 %v6147_v15, %v4026_v47  ;;  %v6151_v15 = vld [vmem:[%s10093_s23 + $0x1a] ss:$0 sm:$0xff] }
 0xa4a   : > { %v4082_v52 = vadd.f32 %v4078_v8, %v4068_v57  ;;  %v4155_v60 = vmul.f32 %v6149_v43, %v4126_v49  ;;  %v4143_v0 = vmul.f32 %v6148_v58, %v4127_v53  ;;  %v4156_v33 = vmul.f32 %v6149_v43, %v4127_v53  ;;  %v4131_v57 = vld [vmem:[#allocation4 + $0x9a] sm:$0xf] }
 0xa4b   : > { %v4095_v26 = vadd.f32 %v4091_v23, %v4081_v30  ;;  %v4108_v50 = vadd.f32 %v4104_v41, %v4094_v34  ;;  %v4121_v18 = vadd.f32 %v4117_v20, %v4107_v54  ;;  %v4169_v46 = vmul.f32 %v6150_v12, %v4127_v53  ;;  %v4233_v53 = vld [vmem:[#allocation4 + $0xb] sm:$0xf] }
 0xa4c   : > { %v4096_v28 = vadd.f32 %v4092_v56, %v4082_v52  ;;  %v4200_v56 = vmul.f32 %v6152_v27, %v4132_v63  ;;  %v4213_v29 = vmul.f32 %v6153_v31, %v4132_v63  ;;  %v4214_v39 = vmul.f32 %v6153_v31, %v9301_v17 }
 0xa4d   : > { %v4109_v45 = vadd.f32 %v4105_v40, %v4095_v26  ;;  %v4122_v2 = vadd.f32 %v4118_v10, %v4108_v50  ;;  %v4145_v6 = vadd.f32 %v4141_v61, %v4121_v18  ;;  %v4144_v22 = vmul.f32 %v6148_v58, %v4128_v3  ;;  %v6155_v26 = vld [vmem:[%s10093_s23 + $0x6] ss:$0 sm:$0xff]  ;;  %v4134_v50 = vld [vmem:[#allocation4 + $0xe2] sm:$0xf] }
 0xa4e   : > { %v4110_v9 = vadd.f32 %v9296_v11, %v4096_v28  ;;  %v4226_v37 = vmul.f32 %v6154_v4, %v4132_v63  ;;  %v4157_v40 = vmul.f32 %v6149_v43, %v4128_v3  ;;  %v4170_v10 = vmul.f32 %v6150_v12, %v4128_v3 }
 0xa4f   : > { %v4123_v59 = vadd.f32 %v4119_v51, %v4109_v45  ;;  %v4146_v14 = vadd.f32 %v4142_v13, %v4122_v2  ;;  %v4159_v36 = vadd.f32 %v4155_v60, %v4145_v6  ;;  %v4158_v11 = vmul.f32 %v6149_v43, %v4129_v48  ;;  %v4234_v43 = vld [vmem:[#allocation4 + $0x23] sm:$0xf] }
 0xa50   : > { %v4124_v16 = vadd.f32 %v4120_v62, %v4110_v9  ;;  %v4183_v32 = vmul.f32 %v6151_v15, %v4128_v3  ;;  %v4171_v25 = vmul.f32 %v6150_v12, %v4129_v48  ;;  %v4184_v21 = vmul.f32 %v6151_v15, %v4129_v48  ;;  %v4235_v62 = vld [vmem:[#allocation4 + $0x3b] sm:$0xf] }
 0xa51   : > { %v4147_v55 = vadd.f32 %v4143_v0, %v4123_v59  ;;  %v4160_v35 = vadd.f32 %v4156_v33, %v4146_v14  ;;  %v4173_v44 = vadd.f32 %v4169_v46, %v4159_v36  ;;  %v4197_v7 = vmul.f32 %v6152_v27, %v4129_v48  ;;  %v6156_v0 = vld [vmem:[%s10093_s23 + $0xd] ss:$0 sm:$0xff]  ;;  %v6157_v48 = vld [vmem:[%s10093_s23 + $0x14] ss:$0 sm:$0xff]  ;;  %v4236_v59 = vld [vmem:[#allocation4 + $0x53] sm:$0xf] }
 0xa52   : > { %v4148_v19 = vadd.f32 %v4144_v22, %v4124_v16  ;;  %v4172_v58 = vmul.f32 %v6150_v12, %v4130_v38  ;;  %v4185_v23 = vmul.f32 %v6151_v15, %v4130_v38  ;;  %v4198_v41 = vmul.f32 %v6152_v27, %v4130_v38 }
 0xa53   : > { %v4161_v8 = vadd.f32 %v4157_v40, %v4147_v55  ;;  %v4174_v5 = vadd.f32 %v4170_v10, %v4160_v35  ;;  %v4187_v47 = vadd.f32 %v4183_v32, %v4173_v44  ;;  %v4186_v54 = vmul.f32 %v6151_v15, %v4131_v57  ;;  %v4240_v15 = vld [vmem:[#allocation4 + $0xb3] sm:$0xf]  ;;  %v6159_v40 = vld [vmem:[%s10093_s23 + $0x22] ss:$0 sm:$0xff]  ;;  %v6161_v55 = vld [vmem:[%s10093_s23 + $0x30] ss:$0 sm:$0xff] }
 0xa54   : > { %v4162_v49 = vadd.f32 %v4158_v11, %v4148_v19  ;;  %v4211_v61 = vmul.f32 %v6153_v31, %v4130_v38  ;;  %v4199_v63 = vmul.f32 %v6152_v27, %v4131_v57  ;;  %v4212_v28 = vmul.f32 %v6153_v31, %v4131_v57  ;;  %v6158_v35 = vld [vmem:[%s10093_s23 + $0x1b] ss:$0 sm:$0xff] }
 0xa55   : > { %v4175_v30 = vadd.f32 %v4171_v25, %v4161_v8  ;;  %v4188_v34 = vadd.f32 %v4184_v21, %v4174_v5  ;;  %v4201_v20 = vadd.f32 %v4197_v7, %v4187_v47  ;;  %v4225_v12 = vmul.f32 %v6154_v4, %v4131_v57  ;;  %v4237_v11 = vld [vmem:[#allocation4 + $0x6b] sm:$0xf] }
 0xa56   : > { %v4176_v52 = vadd.f32 %v4172_v58, %v4162_v49  ;;  %v4249_v3 = vmul.f32 %v6155_v26, %v4233_v53  ;;  %v4227_v2 = vmul.f32 %v6154_v4, %v9301_v17  ;;  %v4250_v46 = vmul.f32 %v6155_v26, %v4234_v43 }
 0xa57   : > { %v4189_v51 = vadd.f32 %v4185_v23, %v4175_v30  ;;  %v4202_v13 = vadd.f32 %v4198_v41, %v4188_v34  ;;  %v4215_v60 = vadd.f32 %v4211_v61, %v4201_v20  ;;  %v4228_v6 = vmul.f32 %v6154_v4, %v4134_v50  ;;  %v4239_v41 = vld [vmem:[#allocation4 + $0x9b] sm:$0xf] }
 0xa58   : > { %v4190_v18 = vadd.f32 %v4186_v54, %v4176_v52  ;;  %v4263_v31 = vmul.f32 %v6156_v0, %v4234_v43  ;;  %v4251_v14 = vmul.f32 %v6155_v26, %v4235_v62  ;;  %v4264_v22 = vmul.f32 %v6156_v0, %v4235_v62 }
 0xa59   : > { %v4203_v33 = vadd.f32 %v4199_v63, %v4189_v51  ;;  %v4216_v45 = vadd.f32 %v4212_v28, %v4202_v13  ;;  %v4229_v27 = vadd.f32 %v4225_v12, %v4215_v60  ;;  %v4277_v17 = vmul.f32 %v6157_v48, %v4235_v62  ;;  %v4241_v13 = vld [vmem:[#allocation4 + $0xcb] sm:$0xf] }
 0xa5a   : > { %v4204_v9 = vadd.f32 %v4200_v56, %v4190_v18  ;;  %v6160_v56 = vld [vmem:[%s10093_s23 + $0x29] ss:$0 sm:$0xff]  ;;  %v4334_v19 = vmul.f32 %v6161_v55, %v4240_v15  ;;  %v4308_v44 = vmul.f32 %v6159_v40, %v4240_v15  ;;  %v4252_v25 = vmul.f32 %v6155_v26, %v4236_v59 }
 0xa5b   : > { %v4217_v16 = vadd.f32 %v4213_v29, %v4203_v33  ;;  %v4230_v36 = vadd.f32 %v4226_v37, %v4216_v45  ;;  %v4253_v38 = vadd.f32 %v4249_v3, %v4229_v27  ;;  %v4321_v8 = vmul.f32 %v6160_v56, %v4240_v15  ;;  %v4238_v29 = vld [vmem:[#allocation4 + $0x83] sm:$0xf] }
 0xa5c   : > { %v4218_v10 = vadd.f32 %v4214_v39, %v4204_v9  ;;  %v4265_v5 = vmul.f32 %v6156_v0, %v4236_v59  ;;  %v4278_v7 = vmul.f32 %v6157_v48, %v4236_v59  ;;  %v4266_v39 = vmul.f32 %v6156_v0, %v4237_v11  ;;  %v4242_v45 = vld [vmem:[#allocation4 + $0xe3] sm:$0xf] }
 0xa5d   : > { %v4231_v32 = vadd.f32 %v4227_v2, %v4217_v16  ;;  %v4254_v4 = vadd.f32 %v4250_v46, %v4230_v36  ;;  %v4267_v57 = vadd.f32 %v4263_v31, %v4253_v38  ;;  %v4291_v58 = vmul.f32 %v6158_v35, %v4236_v59  ;;  %v6162_v31 = vld [vmem:[%s10094_s16] ss:$0 sm:$0xff]  ;;  %s10096_s16 = sld [smem:[#allocation27_spill]] }
 0xa5e   : > { %v4232_v21 = vadd.f32 %v4228_v6, %v4218_v10  ;;  %v4279_v23 = vmul.f32 %v6157_v48, %v4237_v11  ;;  %v4292_v34 = vmul.f32 %v6158_v35, %v4237_v11  ;;  %v4305_v54 = vmul.f32 %v6159_v40, %v4237_v11 }
 0xa5f   : > { %v4255_v37 = vadd.f32 %v4251_v14, %v4231_v32  ;;  %v4268_v49 = vadd.f32 %v4264_v22, %v4254_v4  ;;  %v4281_v30 = vadd.f32 %v4277_v17, %v4267_v57  ;;  %v4280_v61 = vmul.f32 %v6157_v48, %v4238_v29 }
 0xa60   : > { %v4256_v47 = vadd.f32 %v4252_v25, %v4232_v21  ;;  %v4293_v50 = vmul.f32 %v6158_v35, %v4238_v29  ;;  %v4306_v51 = vmul.f32 %v6159_v40, %v4238_v29  ;;  %v4294_v62 = vmul.f32 %v6158_v35, %v4239_v41 }
 0xa61   : > { %v4269_v53 = vadd.f32 %v4265_v5, %v4255_v37  ;;  %v4282_v52 = vadd.f32 %v4278_v7, %v4268_v49  ;;  %v4295_v43 = vadd.f32 %v4291_v58, %v4281_v30  ;;  %v4319_v18 = vmul.f32 %v6160_v56, %v4238_v29  ;;  %v6529_v58 = vld [vmem:[%s10095_s22 + $0x8] sm:$0xff]  }
 0xa62   : > { %v4270_v20 = vadd.f32 %v4266_v39, %v4256_v47  ;;  %v4307_v3 = vmul.f32 %v6159_v40, %v4239_v41  ;;  %v4320_v0 = vmul.f32 %v6160_v56, %v4239_v41  ;;  %v4333_v9 = vmul.f32 %v6161_v55, %v4239_v41  ;;  %v6528_v39 = vld [vmem:[%s10095_s22] sm:$0xff]  }
 0xa63   : > { %v4283_v26 = vadd.f32 %v4279_v23, %v4269_v53  ;;  %v4296_v63 = vadd.f32 %v4292_v34, %v4282_v52  ;;  %v4309_v60 = vadd.f32 %v4305_v54, %v4295_v43  ;;  %v4322_v6 = vmul.f32 %v6160_v56, %v4241_v13  ;;  %6389 = vmatpush3.bf16.msra.mxu0 %v6528_v39 }
 0xa64   : > { %v4284_v28 = vadd.f32 %v4280_v61, %v4270_v20  ;;  %v4335_v48 = vmul.f32 %v6161_v55, %v4241_v13  ;;  %v4336_v22 = vmul.f32 %v6161_v55, %v4242_v45  ;;  %6390 = vmatprep.subr.bf16.mxu0 %v10081_v24 }
 0xa65   : > { %v4297_v12 = vadd.f32 %v4293_v50, %v4283_v26  ;;  %v4310_v33 = vadd.f32 %v4306_v51, %v4296_v63  ;;  %v4323_v46 = vadd.f32 %v4319_v18, %v4309_v60  ;;  %v6530_v26 = vld [vmem:[%s10096_s16] sm:$0xff]  }
 0xa66   : > { %v4298_v2 = vadd.f32 %v4294_v62, %v4284_v28  ;;  %6397 = vmatpush3.bf16.msra.mxu1 %v6530_v26  ;;  %v6163_v50 = vld [vmem:[%s10097_s2] ss:$0 sm:$0xff]  ;;  %s10098_s2 = sld [smem:[#allocation25_spill]] }
 0xa67   : > { %v4324_v27 = vadd.f32 %v4320_v0, %v4310_v33  ;;  %v4311_v15 = vadd.f32 %v4307_v3, %v4297_v12  ;;  %v4337_v59 = vadd.f32 %v4333_v9, %v4323_v46  ;;  %6391 = vmatpush3.bf16.msra.mxu0 %v6529_v58  ;;  %6398 = vmatprep.subr.bf16.mxu1 %v10081_v24 }
 0xa68   : > { %v4312_v14 = vadd.f32 %v4308_v44, %v4298_v2  ;;  %6416 = vmatprep.subr.bf16.mxu0 %v10081_v24 }
 0xa69   : > { %v4338_v16 = vadd.f32 %v4334_v19, %v4324_v27  ;;  %v4325_v36 = vadd.f32 %v4321_v8, %v4311_v15  ;;  %v4348_v10 = vadd.f32 %v6162_v31, %v4337_v59 }
 0xa6a   : > { %v4326_v38 = vadd.f32 %v4322_v6, %v4312_v14 }
 0xa6b   : > { %v4350_v17 = vadd.f32 %v6162_v31, %v4338_v16  ;;  %v4339_v40 = vadd.f32 %v4335_v48, %v4325_v36  ;;  %4349 = vst.msk [vmem:[#allocation5] sm:$0xf] %vm3505_vm4, %v4348_v10 }
 0xa6c   : > { %v4340_v35 = vadd.f32 %v4336_v22, %v4326_v38 }
 0xa6d   : > { %4351 = vst.msk [vmem:[#allocation5 + $0x4] sm:$0xf] %vm3505_vm4, %v4350_v17  ;;  %v4352_v11 = vadd.f32 %v6162_v31, %v4339_v40 }
 0xa6e   : > { %v4354_v56 = vadd.f32 %v6162_v31, %v4340_v35 }
 0xa6f   : > { %4353 = vst.msk [vmem:[#allocation5 + $0x8] sm:$0xf] %vm3505_vm4, %v4352_v11 }
 0xa70   : > { %4355 = vst.msk [vmem:[#allocation5 + $0xc] sm:$0xf] %vm3505_vm4, %v4354_v56 }
 0xa74   : > { %v4356_v32 = vld [vmem:[#allocation5] sm:$0xff] }
 0xa75   : > { %v4358_v55 = vsel %vm3502_vm3, %v4356_v32, 0.0 }
 0xa76   : > { %4359 = vadd.xlane.f32.xlu1 %v4358_v55 }
 0xa77   : > { %v4357_v4 = vld [vmem:[#allocation5 + $0x8] sm:$0xff] }
 0xa78   : > { %v4361_v19 = vsel %vm3502_vm3, %v4357_v4, 0.0 }
 0xa79   : > { %4362 = vadd.xlane.f32.xlu0 %v4361_v19 }
 0xb03   : > { %v4360_v44 = vpop.xlane.xlu1 %4359 }
 0xb04   : > { %v4365_v25 = vmul.f32 0.03125, %v4360_v44 }
 0xb06   : > { %v4367_v21 = vsub.f32 %v4356_v32, %v4365_v25  ;;  %v4363_v57 = vpop.xlane.xlu0 %4362 }
 0xb07   : > { %v4366_v8 = vmul.f32 0.03125, %v4363_v57 }
 0xb08   : > { %v4369_v5 = vmul.f32 %v4367_v21, %v4367_v21 }
 0xb09   : > { %v4368_v7 = vsub.f32 %v4357_v4, %v4366_v8 }
 0xb0a   : > { %v4371_v29 = vsel %vm3502_vm3, %v4369_v5, 0.0 }
 0xb0b   : > { %4372 = vadd.xlane.f32.xlu0 %v4371_v29  ;;  %v4370_v37 = vmul.f32 %v4368_v7, %v4368_v7 }
 0xb0d   : > { %v4374_v49 = vsel %vm3502_vm3, %v4370_v37, 0.0 }
 0xb0f   : > { %4375 = vadd.xlane.f32.xlu0 %v4374_v49 }
 0xb98   : > { %v4373_v47 = vpop.xlane.xlu0 %4372 }
 0xb99   : > { %v4377_v30 = vmul.f32 0.03125, %v4373_v47 }
 0xb9b   : > { %v4379_v23 = vadd.f32 1e-06, %v4377_v30 }
 0xb9c   : > { %v4376_v34 = vpop.xlane.xlu0 %4375 }
 0xb9d   : > { %v4378_v41 = vmul.f32 0.03125, %v4376_v34  ;;  %6658 = vrsqrt.f32 %v4379_v23 }
 0xb9f   : > { %v4380_v53 = vadd.f32 1e-06, %v4378_v41 }
 0xba1   : > { %6660 = vrsqrt.f32 %v4380_v53 }
 0xba7   : > { %v6659_v52 = vpop.eup %6658 }
 0xba8   : > { %v4383_v20 = vmul.f32 %v6659_v52, %v4367_v21 }
 0xbab   : > { %v6661_v54 = vpop.eup %6660 }
 0xbac   : > { %v4384_v61 = vmul.f32 %v6661_v54, %v4368_v7 }
 0xbae   : > { %v4385_v43 = vpack.c.bf16 %v4384_v61, %v4383_v20 }
 0xbb0   : > { %6393 = vmatmul.mubr.msk.bf16.vlgmr.msra.gmra.mrb[4].mxu0 %vm3502_vm3, %v4385_v43 }
 0xbb1   : > { %6432 = vmatprep.mubr.msk.bf16.mxu0 %vm6810_vm14, %v10081_v24  ;;  %vm4861_vm14 = vcmask 517120  }
 0xc83   : > { %v4446_v51 = vpop.f32.mrb[4].mxu0 }
 0xc84   : > { %v4447_v63 = vadd.f32 %v6163_v50, %v4446_v51  ;;  %v6394_v13 = vpop.f32.mrb[5].mxu0 }
 0xc85   : > { %v4449_v28 = vpop.f32.mrb[6].mxu0 }
 0xc86   : > { %v4455_v62 = vmul.f32 0.70710677, %v4447_v63  ;;  %v4450_v18 = vadd.f32 %v6163_v50, %v4449_v28  ;;  %v6395_v60 = vpop.f32.mrb[7].mxu0  ;;  %v4453_v23 = vmul.f32 0.5, %v4447_v63 }
 0xc88   : > { %v4457_v12 = vand.u32 2147483647, %v4455_v62  ;;  %v4456_v3 = vmul.f32 0.70710677, %v4450_v18  ;;  %vm4497_vm6 = vcmp.ge.f32.partialorder %v4455_v62, 0.0  ;;  %v4454_v53 = vmul.f32 0.5, %v4450_v18 }
 0xc8a   : > { %v4459_v0 = vmul.f32 0.3275911, %v4457_v12  ;;  %v4458_v33 = vand.u32 2147483647, %v4456_v3  ;;  %v4485_v9 = vsub.f32 0.0, %v4457_v12  ;;  %vm4498_vm7 = vcmp.ge.f32.partialorder %v4456_v3, 0.0 }
 0xc8c   : > { %v4461_v45 = vadd.f32 1.0, %v4459_v0  ;;  %v4460_v2 = vmul.f32 0.3275911, %v4458_v33  ;;  %v4486_v6 = vsub.f32 0.0, %v4458_v33  ;;  %v4487_v31 = vmul.f32 %v4485_v9, %v4457_v12  ;;  %v6531_v0 = vld [vmem:[%s10096_s16 + $0x8] sm:$0xff]   ;;  %v6536_v9 = vld [vmem:[%s10096_s16 + $0x30] sm:$0xff]  }
 0xc8d   : > { %6399 = vmatpush3.bf16.msra.mxu1 %v6531_v0 }
 0xc8e   : > { %6662 = vrcp.f32 %v4461_v45  ;;  %v4462_v46 = vadd.f32 1.0, %v4460_v2  ;;  %v4488_v14 = vmul.f32 %v4486_v6, %v4458_v33  ;;  %v4489_v22 = vmul.f32 1.442695, %v4487_v31  ;;  %v6532_v33 = vld [vmem:[%s10096_s16 + $0x10] sm:$0xff]   ;;  %6400 = vmatprep.subr.bf16.mxu1 %v10081_v24  ;;  %v6533_v45 = vld [vmem:[%s10096_s16 + $0x18] sm:$0xff]   ;;  %v6534_v2 = vld [vmem:[%s10096_s16 + $0x20] sm:$0xff]  }
 0xc8f   : > { %v6537_v6 = vld [vmem:[%s10096_s16 + $0x38] sm:$0xff]  }
 0xc90   : > { %6664 = vrcp.f32 %v4462_v46  ;;  %v4491_v17 = vmul.f32 1.442695, %v4488_v14  ;;  %v6535_v46 = vld [vmem:[%s10096_s16 + $0x28] sm:$0xff]   ;;  %v6167_v14 = vld [vmem:[%s10098_s2] ss:$0 sm:$0xff]  ;;  %s6811_s2 = smov 64  }
 0xc91   : > { %6666 = vpow2.f32 %v4489_v22  ;;  %6401 = vmatpush3.bf16.msra.mxu1 %v6532_v33 }
 0xc92   : > { %6668 = vpow2.f32 %v4491_v17  ;;  %6402 = vmatprep.subr.bf16.mxu1 %v10081_v24 }
 0xc95   : > { %6403 = vmatpush3.bf16.msra.mxu1 %v6533_v45 }
 0xc96   : > { %6404 = vmatprep.subr.bf16.mxu1 %v10081_v24 }
 0xc98   : > { %v6663_v27 = vpop.eup %6662 }
 0xc99   : > { %v4467_v15 = vmul.f32 1.0614054, %v6663_v27  ;;  %6405 = vmatpush3.bf16.msra.mxu1 %v6534_v2 }
 0xc9a   : > { %v6665_v48 = vpop.eup %6664  ;;  %6406 = vmatprep.subr.bf16.mxu1 %v10081_v24 }
 0xc9b   : > { %v4469_v59 = vadd.f32 -1.4531521, %v4467_v15  ;;  %v4468_v16 = vmul.f32 1.0614054, %v6665_v48  ;;  %v6667_v21 = vpop.eup %6666 }
 0xc9c   : > { %v6669_v7 = vpop.eup %6668 }
 0xc9d   : > { %v4471_v36 = vmul.f32 %v6663_v27, %v4469_v59  ;;  %v4470_v10 = vadd.f32 -1.4531521, %v4468_v16  ;;  %6407 = vmatpush3.bf16.msra.mxu1 %v6535_v46 }
 0xc9e   : > { %6408 = vmatprep.subr.bf16.mxu1 %v10081_v24 }
 0xc9f   : > { %v4473_v38 = vadd.f32 1.4214138, %v4471_v36  ;;  %v4472_v40 = vmul.f32 %v6665_v48, %v4470_v10  ;;  %v6168_v36 = vld [vmem:[%s10099_s3] ss:$0 sm:$0xff]  ;;  %s10101_s3 = sld [smem:[#allocation29_spill]] }
 0xca1   : > { %v4475_v35 = vmul.f32 %v6663_v27, %v4473_v38  ;;  %v4474_v11 = vadd.f32 1.4214138, %v4472_v40  ;;  %6409 = vmatpush3.bf16.msra.mxu1 %v6536_v9 }
 0xca2   : > { %6410 = vmatprep.subr.bf16.mxu1 %v10081_v24 }
 0xca3   : > { %v4477_v56 = vadd.f32 -0.28449672, %v4475_v35  ;;  %v4476_v32 = vmul.f32 %v6665_v48, %v4474_v11 }
 0xca5   : > { %v4479_v55 = vmul.f32 %v6663_v27, %v4477_v56  ;;  %v4478_v4 = vadd.f32 -0.28449672, %v4476_v32  ;;  %6411 = vmatpush3.bf16.msra.mxu1 %v6537_v6  ;;  %v6169_v32 = vld [vmem:[%s10100_s5] ss:$0 sm:$0xff]  ;;  %s10102_s5 = smov 32   ;;  %v6544_v2 = vld [vmem:[%s10101_s3 + $0x30] sm:$0xff]  }
 0xca6   : > { %v6545_v46 = vld [vmem:[%s10101_s3 + $0x38] sm:$0xff]  }
 0xca7   : > { %v4481_v19 = vadd.f32 0.2548296, %v4479_v55  ;;  %v4480_v44 = vmul.f32 %v6665_v48, %v4478_v4 }
 0xca9   : > { %v4483_v25 = vmul.f32 %v6663_v27, %v4481_v19  ;;  %v4482_v57 = vadd.f32 0.2548296, %v4480_v44 }
 0xcab   : > { %v4493_v8 = vmul.f32 %v6667_v21, %v4483_v25  ;;  %v4484_v5 = vmul.f32 %v6665_v48, %v4482_v57 }
 0xcad   : > { %v4495_v29 = vsub.f32 1.0, %v4493_v8  ;;  %v4494_v37 = vmul.f32 %v6669_v7, %v4484_v5 }
 0xcaf   : > { %v4499_v49 = vsub.f32 0.0, %v4495_v29  ;;  %v4496_v39 = vsub.f32 1.0, %v4494_v37 }
 0xcb1   : > { %v4501_v58 = vsel %vm4497_vm6, %v4495_v29, %v4499_v49  ;;  %v4500_v30 = vsub.f32 0.0, %v4496_v39 }
 0xcb2   : > { %v4503_v47 = vadd.f32 1.0, %v4501_v58 }
 0xcb3   : > { %v4502_v34 = vsel %vm4498_vm7, %v4496_v39, %v4500_v30 }
 0xcb4   : > { %v4505_v41 = vmul.f32 %v4503_v47, %v4453_v23  ;;  %v4504_v52 = vadd.f32 1.0, %v4502_v34  ;;  %v6538_v34 = vld [vmem:[%s10101_s3] sm:$0xff]  }
 0xcb5   : > { %6417 = vmatpush3.bf16.msra.mxu0 %v6538_v34  ;;  %v6193_v34 = vld [vmem:[%s10103_s8 + $0x2a] ss:$0 sm:$0xff] }
 0xcb6   : > { %v4506_v54 = vmul.f32 %v4504_v52, %v4454_v53  ;;  %v4507_v20 = vmul.f32 %v4505_v41, %v4505_v41  ;;  %6418 = vmatprep.subr.bf16.mxu0 %v10081_v24  ;;  %v6540_v53 = vld [vmem:[%s10101_s3 + $0x10] sm:$0xff]  }
 0xcb8   : > { %v4508_v61 = vmul.f32 %v4506_v54, %v4506_v54 }
 0xcba   : > { %v4509_v43 = vadd.f32 %v4508_v61, %v4507_v20 }
 0xcbc   : > { %v4510_v26 = vrot.slane %v4509_v43, 4 }
 0xcbe   : > { %v4511_v50 = vadd.f32 %v4510_v26, %v4509_v43 }
 0xcc0   : > { %v4512_v51 = vrot.slane %v4511_v50, 2 }
 0xcc2   : > { %v4513_v13 = vadd.f32 %v4512_v51, %v4511_v50  ;;  %v6541_v50 = vld [vmem:[%s10101_s3 + $0x18] sm:$0xff]  }
 0xcc4   : > { %v4514_v28 = vrot.slane %v4513_v13, 1 }
 0xcc6   : > { %v4515_v62 = vadd.f32 %v4514_v28, %v4513_v13 }
 0xcc8   : > { %6670 = vrsqrt.f32 %v4515_v62  ;;  %vm4518_vm8 = vcmp.eq.f32.partialorder %v4515_v62, inf  ;;  %v4521_v18 = vand.u32 2147483648, %v4515_v62  ;;  %vm4520_vm9 = vcmp.eq.f32.partialorder %v4515_v62, 0.0 }
 0xcd2   : > { %v6671_v63 = vpop.eup %6670 }
 0xcd3   : > { %v4517_v60 = vmul.f32 %v6671_v63, %v4515_v62 }
 0xcd5   : > { %v4519_v12 = vsel %vm4518_vm8, %v4515_v62, %v4517_v60  ;;  %v6542_v62 = vld [vmem:[%s10101_s3 + $0x20] sm:$0xff]   ;;  %v6543_v60 = vld [vmem:[%s10101_s3 + $0x28] sm:$0xff]  }
 0xcd6   : > { %v4522_v3 = vsel %vm4520_vm9, %v4521_v18, %v4519_v12 }
 0xcd7   : > { %4523 = vadd.xlane.f32.xlu1 %v4522_v3 }
 0xd64   : > { %v4524_v27 = vpop.xlane.xlu1 %4523 }
 0xd65   : > { %v4526_v31 = vmul.f32 0.0078125, %v4524_v27 }
 0xd67   : > { %v4527_v15 = vadd.f32 1e-06, %v4526_v31 }
 0xd69   : > { %6672 = vrcp.f32 %v4527_v15 }
 0xd73   : > { %v6673_v48 = vpop.eup %6672 }
 0xd74   : > { %v4529_v59 = vmul.f32 %v6673_v48, %v4522_v3 }
 0xd76   : > { %v4531_v22 = vmul.f32 %v4529_v59, %v4505_v41  ;;  %v4532_v16 = vmul.f32 %v4529_v59, %v4506_v54 }
 0xd78   : > { %v4539_v10 = vmul.f32 %v6167_v14, %v4531_v22  ;;  %v4540_v38 = vmul.f32 %v6167_v14, %v4532_v16  ;;  %v6187_v16 = vld [vmem:[%s10103_s8] ss:$0 sm:$0xff] }
 0xd7a   : > { %v4548_v17 = vadd.f32 %v6168_v36, %v4539_v10  ;;  %v4549_v40 = vadd.f32 %v6168_v36, %v4540_v38  ;;  %v6188_v36 = vld [vmem:[%s10103_s8 + $0x7] ss:$0 sm:$0xff]  ;;  %v4937_v10 = vld [vmem:[#allocation6 + $0x5] sm:$0x3]  ;;  %v4938_v38 = vld [vmem:[#allocation6 + $0x1d] sm:$0x3] }
 0xd7c   : > { %v4550_v35 = vadd.f32 %v4548_v17, %v4505_v41  ;;  %v4551_v11 = vadd.f32 %v4549_v40, %v4506_v54  ;;  %v6539_v41 = vld [vmem:[%s10101_s3 + $0x8] sm:$0xff]   ;;  %v4951_v17 = vmul.f32 %v6187_v16, %v4937_v10  ;;  %v4959_v40 = vmul.f32 %v6188_v36, %v4938_v38 }
 0xd7d   : > { %6419 = vmatpush3.bf16.msra.mxu0 %v6539_v41  ;;  %v4943_v41 = vld [vmem:[#allocation6 + $0x95] sm:$0x3] }
 0xd7e   : > { %v4552_v56 = vpack.c.bf16 %v4551_v11, %v4550_v35  ;;  %6420 = vmatprep.subr.bf16.mxu0 %v10081_v24  ;;  %v6189_v35 = vld [vmem:[%s10103_s8 + $0xe] ss:$0 sm:$0xff]  ;;  %v4939_v11 = vld [vmem:[#allocation6 + $0x35] sm:$0x3] }
 0xd80   : > { %6413 = vmatmul.mubr.bf16.vlgmr.msra.gmra.mrb[24].mxu1 %v4552_v56  ;;  %v4952_v56 = vmul.f32 %v6187_v16, %v4938_v38  ;;  %v6199_v38 = vld [vmem:[%s10103_s8 + $0x24] ss:$0 sm:$0xff] }
 0xd81   : > { %6421 = vmatpush3.bf16.msra.mxu0 %v6540_v53 }
 0xd82   : > { %6422 = vmatprep.subr.bf16.mxu0 %v10081_v24 }
 0xd85   : > { %6423 = vmatpush3.bf16.msra.mxu0 %v6541_v50 }
 0xd86   : > { %6424 = vmatprep.subr.bf16.mxu0 %v10081_v24 }
 0xd89   : > { %6425 = vmatpush3.bf16.msra.mxu0 %v6542_v62  ;;  %v6195_v62 = vld [vmem:[%s10103_s8 + $0x8] ss:$0 sm:$0xff] }
 0xd8a   : > { %6426 = vmatprep.subr.bf16.mxu0 %v10081_v24 }
 0xd8d   : > { %6427 = vmatpush3.bf16.msra.mxu0 %v6543_v60 }
 0xd8e   : > { %6428 = vmatprep.subr.bf16.mxu0 %v10081_v24 }
 0xd91   : > { %6429 = vmatpush3.bf16.msra.mxu0 %v6544_v2 }
 0xd92   : > { %6430 = vmatprep.subr.bf16.mxu0 %v10081_v24 }
 0xd95   : > { %6431 = vmatpush3.bf16.msra.mxu0 %v6545_v46 }
 0xe53   : > { %v4658_v55 = vpop.f32.mrb[24].mxu1 }
 0xe54   : > { %v4659_v4 = vadd.f32 %v6169_v32, %v4658_v55  ;;  %v6414_v19 = vpop.f32.mrb[25].mxu1  ;;  %v4961_v55 = vadd.f32 %v4959_v40, %v4951_v17  ;;  %v5018_v17 = vld [vmem:[#allocation6 + $0x7e] sm:$0x3] }
 0xe55   : > { %v4661_v44 = vpop.f32.mrb[26].mxu1  ;;  %v6190_v19 = vld [vmem:[%s10103_s8 + $0x15] ss:$0 sm:$0xff] }
 0xe56   : > { %v4662_v25 = vadd.f32 %v6169_v32, %v4661_v44  ;;  %v6415_v21 = vpop.f32.mrb[27].mxu1  ;;  %v4665_v57 = vadd.f32 %v4659_v4, %v9227_v42  ;;  %v4960_v32 = vmul.f32 %v6188_v36, %v4939_v11  ;;  %v4969_v4 = vmul.f32 %v6189_v35, %v4939_v11  ;;  %v4940_v44 = vld [vmem:[#allocation6 + $0x4d] sm:$0x3] }
 0xe57   : > { %v4970_v21 = vmul.f32 %v6189_v35, %v4940_v44 }
 0xe58   : > { %v4667_v8 = vsel %vm3502_vm3, %v4665_v57, 0.0  ;;  %v4666_v5 = vadd.f32 %v4662_v25, %v9232_v1  ;;  %v4962_v25 = vadd.f32 %v4960_v32, %v4952_v56  ;;  %v5077_v56 = vmul.f32 %v6199_v38, %v5018_v17  ;;  %v6200_v32 = vld [vmem:[%s10103_s8 + $0x2b] ss:$0 sm:$0xff] }
 0xe59   : > { %4668 = vadd.xlane.f32.xlu0 %v4667_v8  ;;  %v4979_v8 = vmul.f32 %v6190_v19, %v4940_v44 }
 0xe5a   : > { %v4670_v7 = vsel %vm3502_vm3, %v4666_v5, 0.0 }
 0xe5b   : > { %4671 = vadd.xlane.f32.xlu1 %v4670_v7  ;;  %v4941_v7 = vld [vmem:[#allocation6 + $0x65] sm:$0x3] }
 0xee6   : > { %v4669_v29 = vpop.xlane.xlu0 %4668 }
 0xee7   : > { %v4673_v37 = vmul.f32 0.03125, %v4669_v29  ;;  %v4972_v29 = vadd.f32 %v4970_v21, %v4962_v25  ;;  %v6201_v21 = vld [vmem:[%s10103_s8 + $0x2] ss:$0 sm:$0xff] }
 0xee8   : > { %v4672_v49 = vpop.xlane.xlu1 %4671 }
 0xee9   : > { %v4675_v39 = vsub.f32 %v4665_v57, %v4673_v37  ;;  %v4674_v58 = vmul.f32 0.03125, %v4672_v49  ;;  %v4971_v57 = vadd.f32 %v4969_v4, %v4961_v55  ;;  %v4980_v37 = vmul.f32 %v6190_v19, %v4941_v7  ;;  %v5019_v55 = vld [vmem:[#allocation6 + $0x96] sm:$0x3] }
 0xeea   : > { %v5078_v19 = vmul.f32 %v6199_v38, %v5019_v55  ;;  %v5087_v25 = vmul.f32 %v6200_v32, %v5019_v55 }
 0xeeb   : > { %v4676_v47 = vsub.f32 %v4666_v5, %v4674_v58  ;;  %v4677_v30 = vmul.f32 %v4675_v39, %v4675_v39  ;;  %v6191_v5 = vld [vmem:[%s10103_s8 + $0x1c] ss:$0 sm:$0xff]  ;;  %v4981_v49 = vadd.f32 %v4979_v8, %v4971_v57  ;;  %v6192_v58 = vld [vmem:[%s10103_s8 + $0x23] ss:$0 sm:$0xff]  ;;  %v5020_v57 = vld [vmem:[#allocation6 + $0xae] sm:$0x3] }
 0xeec   : > { %v5091_v8 = vld [vmem:[#allocation6 + $0x7] sm:$0x3] }
 0xeed   : > { %v4679_v42 = vsel %vm3502_vm3, %v4677_v30, 0.0  ;;  %v4678_v23 = vmul.f32 %v4676_v47, %v4676_v47  ;;  %v4982_v30 = vadd.f32 %v4980_v37, %v4972_v29  ;;  %v5092_v37 = vld [vmem:[#allocation6 + $0x1f] sm:$0x3] }
 0xeee   : > { %4680 = vadd.xlane.f32.xlu0 %v4679_v42 }
 0xeef   : > { %v4682_v1 = vsel %vm3502_vm3, %v4678_v23, 0.0 }
 0xef0   : > { %4683 = vadd.xlane.f32.xlu1 %v4682_v1 }
 0xf7b   : > { %v4681_v52 = vpop.xlane.xlu0 %4680 }
 0xf7c   : > { %v4685_v54 = vmul.f32 0.03125, %v4681_v52  ;;  %v5000_v52 = vmul.f32 %v6192_v58, %v4943_v41 }
 0xf7d   : > { %v4684_v20 = vpop.xlane.xlu1 %4683 }
 0xf7e   : > { %v4687_v61 = vadd.f32 1e-06, %v4685_v54  ;;  %v4686_v43 = vmul.f32 0.03125, %v4684_v20  ;;  %v5009_v20 = vmul.f32 %v6193_v34, %v4943_v41 }
 0xf80   : > { %6674 = vrsqrt.f32 %v4687_v61  ;;  %v4688_v26 = vadd.f32 1e-06, %v4686_v43  ;;  %v6194_v61 = vld [vmem:[%s10103_s8 + $0x1] ss:$0 sm:$0xff]  ;;  %v4944_v43 = vld [vmem:[#allocation6 + $0xad] sm:$0x3] }
 0xf82   : > { %6676 = vrsqrt.f32 %v4688_v26  ;;  %v5013_v26 = vld [vmem:[#allocation6 + $0x6] sm:$0x3] }
 0xf8a   : > { %v6675_v51 = vpop.eup %6674 }
 0xf8b   : > { %v4691_v13 = vmul.f32 %v6675_v51, %v4675_v39  ;;  %v4989_v39 = vmul.f32 %v6191_v5, %v4941_v7  ;;  %v5010_v51 = vmul.f32 %v6193_v34, %v4944_v43  ;;  %v5088_v7 = vmul.f32 %v6200_v32, %v5020_v57 }
 0xf8c   : > { %v6677_v28 = vpop.eup %6676 }
 0xf8d   : > { %4693 = vst.msk [vmem:[#allocation5] sm:$0xff] %vm3502_vm3, %v4691_v13  ;;  %v4692_v63 = vmul.f32 %v6677_v28, %v4676_v47  ;;  %v4942_v47 = vld [vmem:[#allocation6 + $0x7d] sm:$0x3]  ;;  %v4991_v23 = vadd.f32 %v4989_v39, %v4981_v49  ;;  %v5027_v28 = vmul.f32 %v6194_v61, %v5013_v26  ;;  %v5105_v49 = vmul.f32 %v6201_v21, %v5091_v8  ;;  %v6211_v8 = vld [vmem:[%s10103_s8 + $0x18] ss:$0 sm:$0xff] }
 0xf8e   : > { %v4990_v42 = vmul.f32 %v6191_v5, %v4942_v47  ;;  %v4999_v1 = vmul.f32 %v6192_v58, %v4942_v47  ;;  %v6202_v58 = vld [vmem:[%s10103_s8 + $0x9] ss:$0 sm:$0xff] }
 0xf8f   : > { %4694 = vst.msk [vmem:[#allocation5 + $0x8] sm:$0xff] %vm3502_vm3, %v4692_v63  ;;  %v5014_v63 = vld [vmem:[#allocation6 + $0x1e] sm:$0x3]  ;;  %v5115_v34 = vmul.f32 %v6202_v58, %v5092_v37  ;;  %vm5668_vm3 = vcmask 1043456  }
 0xf90   : > { %v4992_v53 = vadd.f32 %v4990_v42, %v4982_v30  ;;  %v5001_v54 = vadd.f32 %v4999_v1, %v4991_v23  ;;  %v5106_v30 = vmul.f32 %v6201_v21, %v5092_v37 }
 0xf92   : > { %v5002_v50 = vadd.f32 %v5000_v52, %v4992_v53  ;;  %v5011_v13 = vadd.f32 %v5009_v20, %v5001_v54  ;;  %v6203_v53 = vld [vmem:[%s10103_s8 + $0x10] ss:$0 sm:$0xff]  ;;  %v5093_v52 = vld [vmem:[#allocation6 + $0x37] sm:$0x3] }
 0xf93   : > { %v5116_v43 = vmul.f32 %v6202_v58, %v5093_v52 }
 0xf94   : > { %v4699_v18 = vld [vmem:[#allocation5 + $0x1] ss:$2 sm:$0x3]  ;;  %v4707_v12 = vld [vmem:[#allocation5 + $0x4] ss:$2 sm:$0x3]  ;;  %v5012_v60 = vadd.f32 %v5010_v51, %v5002_v50  ;;  %v5125_v50 = vmul.f32 %v6203_v53, %v5093_v52 }
 0xf95   : > { %4701 = vrot.lane.b32.xlu0 %v4699_v18, %s10102_s5  ;;  %4709 = vrot.lane.b32.xlu1 %v4707_v12, %s6811_s2  ;;  %v4695_v3 = vld [vmem:[#allocation5] ss:$2 sm:$0x3]  ;;  %v4715_v0 = vld [vmem:[#allocation5 + $0x5] ss:$2 sm:$0x3]  ;;  %v5028_v18 = vmul.f32 %v6194_v61, %v5014_v63  ;;  %v5029_v12 = vadd.f32 %v5027_v28, %v5011_v13 }
 0xf96   : > { %4697 = vst.msk [vmem:[#allocation9] sm:$0x3] %vm4696_vm10, %v4695_v3  ;;  %v4723_v33 = vld [vmem:[#allocation5 + $0x8] ss:$2 sm:$0x3]  ;;  %v5037_v3 = vmul.f32 %v6195_v62, %v5014_v63 }
 0xf97   : > { %v4726_v45 = vld [vmem:[#allocation5 + $0x9] ss:$2 sm:$0x3]  ;;  %4724 = vst.msk [vmem:[#allocation9 + $0x2] sm:$0x3] %vm4696_vm10, %v4723_v33 }
 0xf98   : > { %v4733_v9 = vld [vmem:[#allocation5 + $0xc] ss:$2 sm:$0x3]  ;;  %v4740_v6 = vld [vmem:[#allocation5 + $0xd] ss:$2 sm:$0x3]  ;;  %v5039_v46 = vadd.f32 %v5037_v3, %v5029_v12 }
 0xf99   : > { %4717 = vrot.lane.b32.xlu0 %v4715_v0, %s6812_s6  ;;  %4728 = vrot.lane.b32.xlu1 %v4726_v45, %s10102_s5  ;;  %v6196_v0 = vld [vmem:[%s10103_s8 + $0xf] ss:$0 sm:$0xff]  ;;  %v5015_v33 = vld [vmem:[#allocation6 + $0x36] sm:$0x3]  ;;  %v5030_v45 = vadd.f32 %v5028_v18, %v5012_v60  ;;  %v6204_v51 = vld [vmem:[%s10103_s8 + $0x17] ss:$0 sm:$0xff] }
 0xf9a   : > { %v5038_v2 = vmul.f32 %v6195_v62, %v5015_v33  ;;  %v6206_v13 = vld [vmem:[%s10103_s8 + $0x25] ss:$0 sm:$0xff]  ;;  %v5096_v28 = vld [vmem:[#allocation6 + $0x7f] sm:$0x3]  ;;  %v6205_v60 = vld [vmem:[%s10103_s8 + $0x1e] ss:$0 sm:$0xff] }
 0xf9b   : > { %s10105_s5 = sld [smem:[#allocation32_spill]] }
 0xf9d   : > { %4735 = vrot.lane.b32.xlu1 %v4733_v9, %s6811_s2  ;;  %v5047_v9 = vmul.f32 %v6196_v0, %v5015_v33  ;;  %v6207_v33 = vld [vmem:[%s10103_s8 + $0x2c] ss:$0 sm:$0xff]  ;;  %s10106_s2 = sld [smem:[#allocation33_spill]] }
 0xfa1   : > { %4742 = vrot.lane.b32.xlu1 %v4740_v6, %s6812_s6  ;;  %v6197_v6 = vld [vmem:[%s10103_s8 + $0x16] ss:$0 sm:$0xff]  ;;  %s10104_s6 = sld [smem:[#allocation30_spill]] }
 0xfa7   : > { %v6178_v39 = vld [vmem:[%s10104_s6] ss:$0 sm:$0xff]  ;;  %s10107_s6 = sld [smem:[#allocation34_spill]] }
0x1007   : > { %v4702_v27 = vpop.permute.xlu0 %4701  ;;  %v4710_v31 = vpop.permute.xlu1 %4709 }
0x1008   : > { %4705 = vst.msk [vmem:[#allocation9] sm:$0x3] %vm4704_vm11, %v4702_v27  ;;  %v5016_v27 = vld [vmem:[#allocation6 + $0x4e] sm:$0x3] }
0x1009   : > { %4713 = vst.msk [vmem:[#allocation9] sm:$0x3] %vm4712_vm12, %v4710_v31  ;;  %v5040_v31 = vadd.f32 %v5038_v2, %v5030_v45  ;;  %v5097_v45 = vld [vmem:[#allocation6 + $0x97] sm:$0x3]  ;;  %v5146_v2 = vmul.f32 %v6205_v60, %v5096_v28 }
0x100b   : > { %v4718_v15 = vpop.permute.xlu0 %4717  ;;  %v4729_v48 = vpop.permute.xlu1 %4728 }
0x100c   : > { %4721 = vst.msk [vmem:[#allocation9] sm:$0x3] %vm4720_vm13, %v4718_v15  ;;  %v5048_v15 = vmul.f32 %v6196_v0, %v5016_v27 }
0x100d   : > { %4731 = vst.msk [vmem:[#allocation9 + $0x2] sm:$0x3] %vm4704_vm11, %v4729_v48  ;;  %v5049_v48 = vadd.f32 %v5047_v9, %v5039_v46  ;;  %v5155_v46 = vmul.f32 %v6206_v13, %v5096_v28 }
0x100f   : > { %v4736_v24 = vpop.permute.xlu1 %4735 }
0x1010   : > { %4738 = vst.msk [vmem:[#allocation9 + $0x2] sm:$0x3] %vm4712_vm12, %v4736_v24  ;;  %v5057_v24 = vmul.f32 %v6197_v6, %v5016_v27 }
0x1012   : > { %v5059_v36 = vadd.f32 %v5057_v24, %v5049_v48  ;;  %v5098_v48 = vld [vmem:[#allocation6 + $0xaf] sm:$0x3]  ;;  %v5169_v24 = vld [vmem:[#allocation6 + $0x8] sm:$0x3] }
0x1013   : > { %v4743_v59 = vpop.permute.xlu1 %4742 }
0x1014   : > { %4745 = vst.msk [vmem:[#allocation9 + $0x2] sm:$0x3] %vm4720_vm13, %v4743_v59  ;;  %v6198_v59 = vld [vmem:[%s10103_s8 + $0x1d] ss:$0 sm:$0xff] }
0x1015   : > { %v5068_v35 = vmul.f32 %v6198_v59, %v5018_v17 }
0x101b   : > { %v4746_v14 = vld [vmem:[#allocation9] sm:$0xf] }
0x101c   : > { %v4747_v22 = vpack.c.bf16 %v4746_v14, %v4746_v14  ;;  %v5017_v14 = vld [vmem:[#allocation6 + $0x66] sm:$0x3] }
0x101d   : > { %v5058_v16 = vmul.f32 %v6197_v6, %v5017_v14  ;;  %v5067_v10 = vmul.f32 %v6198_v59, %v5017_v14 }
0x101e   : > { %6433 = vmatmul.mubr.bf16.vlgmr.msra.gmra.mrb[8].mxu0 %v4747_v22  ;;  %v5050_v22 = vadd.f32 %v5048_v15, %v5040_v31  ;;  %v6208_v15 = vld [vmem:[%s10103_s8 + $0x3] ss:$0 sm:$0xff] }
0x101f   : > { %v5069_v11 = vadd.f32 %v5067_v10, %v5059_v36  ;;  %v6209_v36 = vld [vmem:[%s10103_s8 + $0xa] ss:$0 sm:$0xff]  ;;  %v5170_v10 = vld [vmem:[#allocation6 + $0x20] sm:$0x3] }
0x1020   : > { %v5060_v40 = vadd.f32 %v5058_v16, %v5050_v22  ;;  %v5156_v22 = vmul.f32 %v6206_v13, %v5097_v45  ;;  %v5165_v16 = vmul.f32 %v6207_v33, %v5097_v45  ;;  %v5184_v55 = vmul.f32 %v6208_v15, %v5170_v10  ;;  %v5249_v45 = vld [vmem:[#allocation6 + $0x39] sm:$0x3] }
0x1021   : > { %v5079_v44 = vadd.f32 %v5077_v56, %v5069_v11  ;;  %v5171_v11 = vld [vmem:[#allocation6 + $0x38] sm:$0x3] }
0x1022   : > { %v5070_v4 = vadd.f32 %v5068_v35, %v5060_v40  ;;  %v5166_v40 = vmul.f32 %v6207_v33, %v5098_v48  ;;  %v5183_v35 = vmul.f32 %v6208_v15, %v5169_v24  ;;  %v5194_v21 = vmul.f32 %v6209_v36, %v5171_v11 }
0x1023   : > { %v5089_v29 = vadd.f32 %v5087_v25, %v5079_v44 }
0x1024   : > { %v5080_v5 = vadd.f32 %v5078_v19, %v5070_v4  ;;  %v5193_v4 = vmul.f32 %v6209_v36, %v5170_v10  ;;  %v6210_v19 = vld [vmem:[%s10103_s8 + $0x11] ss:$0 sm:$0xff] }
0x1025   : > { %v5107_v1 = vadd.f32 %v5105_v49, %v5089_v29  ;;  %v5203_v57 = vmul.f32 %v6210_v19, %v5171_v11  ;;  %v5174_v29 = vld [vmem:[#allocation6 + $0x80] sm:$0x3] }
0x1026   : > { %v5090_v23 = vadd.f32 %v5088_v7, %v5080_v5  ;;  %v6213_v7 = vld [vmem:[%s10103_s8 + $0x26] ss:$0 sm:$0xff] }
0x1027   : > { %v5117_v26 = vadd.f32 %v5115_v34, %v5107_v1  ;;  %v6214_v34 = vld [vmem:[%s10103_s8 + $0x2d] ss:$0 sm:$0xff]  ;;  %v5233_v52 = vmul.f32 %v6213_v7, %v5174_v29 }
0x1028   : > { %v5108_v61 = vadd.f32 %v5106_v30, %v5090_v23 }
0x1029   : > { %v5127_v63 = vadd.f32 %v5125_v50, %v5117_v26  ;;  %v6215_v26 = vld [vmem:[%s10103_s8 + $0x4] ss:$0 sm:$0xff]  ;;  %v5176_v50 = vld [vmem:[#allocation6 + $0xb0] sm:$0x3] }
0x102a   : > { %v5118_v62 = vadd.f32 %v5116_v43, %v5108_v61 }
0x10f1   : > { %v4853_v47 = vpop.f32.mrb[8].mxu0 }
0x10f2   : > { %v9395_v42 = vadd.f32 %v6178_v39, %v4853_v47  ;;  %v6434_v41 = vpop.f32.mrb[9].mxu0  ;;  %v6212_v39 = vld [vmem:[%s10103_s8 + $0x1f] ss:$0 sm:$0xff] }
0x10f3   : > { %v4856_v54 = vpop.f32.mrb[10].mxu0  ;;  %v5175_v41 = vld [vmem:[#allocation6 + $0x98] sm:$0x3] }
0x10f4   : > { %4884 = vst.msk [vmem:[#allocation6 + $0x50] sm:$0x3] %vm4861_vm14, %v9395_v42  ;;  %v6435_v20 = vpop.f32.mrb[11].mxu0 }
0x10f5   : > { %4887 = vst.msk [vmem:[#allocation6 + $0x66] sm:$0xc] %vm4886_vm15, %v9395_v42 }
0x10fb   : > { %v5094_v18 = vld [vmem:[#allocation6 + $0x4f] sm:$0x3] }
0x10fc   : > { %v5095_v12 = vld [vmem:[#allocation6 + $0x67] sm:$0x3]  ;;  %v5126_v3 = vmul.f32 %v6203_v53, %v5094_v18  ;;  %v5135_v0 = vmul.f32 %v6204_v51, %v5094_v18  ;;  %v5172_v5 = vld [vmem:[#allocation6 + $0x50] sm:$0x3]  ;;  %v5224_v53 = vmul.f32 %v6212_v39, %v5174_v29  ;;  %v5248_v18 = vld [vmem:[#allocation6 + $0x21] sm:$0x3] }
0x10fd   : > { %v5136_v6 = vmul.f32 %v6204_v51, %v5095_v12  ;;  %v5145_v31 = vmul.f32 %v6205_v60, %v5095_v12  ;;  %v5173_v58 = vld [vmem:[#allocation6 + $0x68] sm:$0x3]  ;;  %v5204_v30 = vmul.f32 %v6210_v19, %v5172_v5  ;;  %v5213_v1 = vmul.f32 %v6211_v8, %v5172_v5  ;;  %v6216_v60 = vld [vmem:[%s10103_s8 + $0xb] ss:$0 sm:$0xff]  ;;  %v5254_v5 = vld [vmem:[#allocation6 + $0xb1] sm:$0x3] }
0x10fe   : > { %v5128_v9 = vadd.f32 %v5126_v3, %v5118_v62  ;;  %v5137_v27 = vadd.f32 %v5135_v0, %v5127_v63  ;;  %v5214_v20 = vmul.f32 %v6211_v8, %v5173_v58  ;;  %v5223_v43 = vmul.f32 %v6212_v39, %v5173_v58  ;;  %v5247_v51 = vld [vmem:[#allocation6 + $0x9] sm:$0x3]  ;;  %v6222_v8 = vld [vmem:[%s10103_s8 + $0x5] ss:$0 sm:$0xff]  ;;  %v6223_v58 = vld [vmem:[%s10103_s8 + $0xc] ss:$0 sm:$0xff] }
0x10ff   : > { %v5234_v62 = vmul.f32 %v6213_v7, %v5175_v41  ;;  %v5243_v63 = vmul.f32 %v6214_v34, %v5175_v41  ;;  %v5244_v0 = vmul.f32 %v6214_v34, %v5176_v50  ;;  %v5261_v33 = vmul.f32 %v6215_v26, %v5247_v51  ;;  %v5325_v7 = vld [vmem:[#allocation6 + $0xa] sm:$0x3]  ;;  %v6224_v41 = vld [vmem:[%s10103_s8 + $0x13] ss:$0 sm:$0xff] }
0x1100   : > { %v5138_v59 = vadd.f32 %v5136_v6, %v5128_v9  ;;  %v5147_v14 = vadd.f32 %v5145_v31, %v5137_v27  ;;  %v5262_v9 = vmul.f32 %v6215_v26, %v5248_v18  ;;  %v5271_v6 = vmul.f32 %v6216_v60, %v5248_v18  ;;  %v6217_v27 = vld [vmem:[%s10103_s8 + $0x12] ss:$0 sm:$0xff]  ;;  %v5328_v26 = vld [vmem:[#allocation6 + $0x52] sm:$0x3] }
0x1101   : > { %v5272_v48 = vmul.f32 %v6216_v60, %v5249_v45  ;;  %v5281_v24 = vmul.f32 %v6217_v27, %v5249_v45  ;;  %v5339_v34 = vmul.f32 %v6222_v8, %v5325_v7 }
0x1102   : > { %v5148_v38 = vadd.f32 %v5146_v2, %v5138_v59  ;;  %v5157_v17 = vadd.f32 %v5155_v46, %v5147_v14  ;;  %v6218_v59 = vld [vmem:[%s10103_s8 + $0x19] ss:$0 sm:$0xff]  ;;  %v5250_v14 = vld [vmem:[#allocation6 + $0x51] sm:$0x3] }
0x1104   : > { %v5158_v56 = vadd.f32 %v5156_v22, %v5148_v38  ;;  %v5167_v32 = vadd.f32 %v5165_v16, %v5157_v17  ;;  %v6220_v22 = vld [vmem:[%s10103_s8 + $0x27] ss:$0 sm:$0xff]  ;;  %v5252_v16 = vld [vmem:[#allocation6 + $0x81] sm:$0x3]  ;;  %v6219_v38 = vld [vmem:[%s10103_s8 + $0x20] ss:$0 sm:$0xff] }
0x1105   : > { %v5251_v17 = vld [vmem:[#allocation6 + $0x69] sm:$0x3]  ;;  %v5311_v19 = vmul.f32 %v6220_v22, %v5252_v16 }
0x1106   : > { %v5168_v44 = vadd.f32 %v5166_v40, %v5158_v56  ;;  %v5185_v25 = vadd.f32 %v5183_v35, %v5167_v32  ;;  %v5282_v35 = vmul.f32 %v6217_v27, %v5250_v14  ;;  %v5291_v56 = vmul.f32 %v6218_v59, %v5250_v14  ;;  %v6221_v32 = vld [vmem:[%s10103_s8 + $0x2e] ss:$0 sm:$0xff]  ;;  %v5331_v27 = vld [vmem:[#allocation6 + $0x9a] sm:$0x3]  ;;  %v5332_v14 = vld [vmem:[#allocation6 + $0xb2] sm:$0x3] }
0x1108   : > { %v5186_v37 = vadd.f32 %v5184_v55, %v5168_v44  ;;  %v5195_v49 = vadd.f32 %v5193_v4, %v5185_v25  ;;  %v5253_v55 = vld [vmem:[#allocation6 + $0x99] sm:$0x3]  ;;  %v5302_v4 = vmul.f32 %v6219_v38, %v5252_v16  ;;  %v5292_v25 = vmul.f32 %v6218_v59, %v5251_v17  ;;  %v6229_v59 = vld [vmem:[%s10103_s8 + $0x6] ss:$0 sm:$0xff] }
0x1109   : > { %v5321_v39 = vmul.f32 %v6221_v32, %v5253_v55 }
0x110a   : > { %v5196_v47 = vadd.f32 %v5194_v21, %v5186_v37  ;;  %v5205_v23 = vadd.f32 %v5203_v57, %v5195_v49  ;;  %v5301_v57 = vmul.f32 %v6219_v38, %v5251_v17  ;;  %v5312_v49 = vmul.f32 %v6220_v22, %v5253_v55  ;;  %v5403_v22 = vld [vmem:[#allocation6 + $0xb] sm:$0x3]  ;;  %v6230_v17 = vld [vmem:[%s10103_s8 + $0xd] ss:$0 sm:$0xff]  ;;  %v6231_v55 = vld [vmem:[%s10103_s8 + $0x14] ss:$0 sm:$0xff] }
0x110c   : > { %v5206_v54 = vadd.f32 %v5204_v30, %v5196_v47  ;;  %v5215_v61 = vadd.f32 %v5213_v1, %v5205_v23  ;;  %v5326_v47 = vld [vmem:[#allocation6 + $0x22] sm:$0x3]  ;;  %v5322_v1 = vmul.f32 %v6221_v32, %v5254_v5  ;;  %v5417_v32 = vmul.f32 %v6229_v59, %v5403_v22  ;;  %v6548_v22 = vld [vmem:[%s10106_s2 + $0x4] ss:$8 sps:$4 sm:$0xff]  }
0x110d   : > { %5571 = vmatprep.subr.bf16.mxu1 %v6548_v22 }
0x110e   : > { %v5216_v13 = vadd.f32 %v5214_v20, %v5206_v54  ;;  %v5225_v28 = vadd.f32 %v5223_v43, %v5215_v61  ;;  %v5340_v20 = vmul.f32 %v6222_v8, %v5326_v47  ;;  %v5349_v61 = vmul.f32 %v6223_v58, %v5326_v47  ;;  %v6225_v43 = vld [vmem:[%s10103_s8 + $0x1a] ss:$0 sm:$0xff]  ;;  %v5406_v8 = vld [vmem:[#allocation6 + $0x53] sm:$0x3] }
0x1110   : > { %v5226_v12 = vadd.f32 %v5224_v53, %v5216_v13  ;;  %v5235_v3 = vadd.f32 %v5233_v52, %v5225_v28  ;;  %v5327_v53 = vld [vmem:[#allocation6 + $0x3a] sm:$0x3] }
0x1111   : > { %v5350_v13 = vmul.f32 %v6223_v58, %v5327_v53  ;;  %v5359_v28 = vmul.f32 %v6224_v41, %v5327_v53 }
0x1112   : > { %v5236_v2 = vadd.f32 %v5234_v62, %v5226_v12  ;;  %v5245_v46 = vadd.f32 %v5243_v63, %v5235_v3  ;;  %v6226_v62 = vld [vmem:[%s10103_s8 + $0x21] ss:$0 sm:$0xff]  ;;  %v5329_v63 = vld [vmem:[#allocation6 + $0x6a] sm:$0x3]  ;;  %v5360_v12 = vmul.f32 %v6224_v41, %v5328_v26  ;;  %v5369_v3 = vmul.f32 %v6225_v43, %v5328_v26 }
0x1114   : > { %v5246_v31 = vadd.f32 %v5244_v0, %v5236_v2  ;;  %v5263_v15 = vadd.f32 %v5261_v33, %v5245_v46  ;;  %v6227_v0 = vld [vmem:[%s10103_s8 + $0x28] ss:$0 sm:$0xff]  ;;  %v5330_v33 = vld [vmem:[#allocation6 + $0x82] sm:$0x3]  ;;  %v5370_v46 = vmul.f32 %v6225_v43, %v5329_v63 }
0x1116   : > { %v5264_v36 = vadd.f32 %v5262_v9, %v5246_v31  ;;  %v5273_v10 = vadd.f32 %v5271_v6, %v5263_v15  ;;  %v5379_v9 = vmul.f32 %v6226_v62, %v5329_v63  ;;  %v6228_v6 = vld [vmem:[%s10103_s8 + $0x2f] ss:$0 sm:$0xff] }
0x1117   : > { %v5399_v38 = vmul.f32 %v6228_v6, %v5331_v27 }
0x1118   : > { %v5274_v40 = vadd.f32 %v5272_v48, %v5264_v36  ;;  %v5283_v11 = vadd.f32 %v5281_v24, %v5273_v10  ;;  %v5380_v48 = vmul.f32 %v6226_v62, %v5330_v33  ;;  %v5389_v24 = vmul.f32 %v6227_v0, %v5330_v33 }
0x1119   : > { %v5390_v10 = vmul.f32 %v6227_v0, %v5331_v27  ;;  %v6236_v0 = vld [vmem:[%s10105_s5] ss:$0 sm:$0xff]  ;;  %s10108_s5 = sld [smem:[#allocation35_spill]] }
0x111a   : > { %v5284_v44 = vadd.f32 %v5282_v35, %v5274_v40  ;;  %v5293_v21 = vadd.f32 %v5291_v56, %v5283_v11  ;;  %v5404_v40 = vld [vmem:[#allocation6 + $0x23] sm:$0x3]  ;;  %v5400_v56 = vmul.f32 %v6228_v6, %v5332_v14  ;;  %v6546_v14 = vld [vmem:[%s10106_s2] ss:$8 sps:$4 sm:$0xff]  }
0x111b   : > { %5572 = vmatpush1.bf16.msra.mxu1 %v6546_v14 }
0x111c   : > { %v5294_v29 = vadd.f32 %v5292_v25, %v5284_v44  ;;  %v5303_v37 = vadd.f32 %v5301_v57, %v5293_v21  ;;  %v5418_v25 = vmul.f32 %v6229_v59, %v5404_v40  ;;  %v5427_v21 = vmul.f32 %v6230_v17, %v5404_v40  ;;  %v6232_v57 = vld [vmem:[%s10103_s8 + $0x1b] ss:$0 sm:$0xff]  ;;  %v6557_v40 = vld [vmem:[%s10106_s2 + $0x34] ss:$8 sps:$4 sm:$0xff]  }
0x111e   : > { %v5304_v30 = vadd.f32 %v5302_v4, %v5294_v29  ;;  %v5313_v23 = vadd.f32 %v5311_v19, %v5303_v37  ;;  %v5405_v4 = vld [vmem:[#allocation6 + $0x3b] sm:$0x3] }
0x111f   : > { %v5428_v29 = vmul.f32 %v6230_v17, %v5405_v4  ;;  %v5437_v37 = vmul.f32 %v6231_v55, %v5405_v4  ;;  %v6552_v17 = vld [vmem:[%s10106_s2 + $0x20] ss:$8 sps:$4 sm:$0xff]  }
0x1120   : > { %v5314_v52 = vadd.f32 %v5312_v49, %v5304_v30  ;;  %v5323_v54 = vadd.f32 %v5321_v39, %v5313_v23  ;;  %v6233_v49 = vld [vmem:[%s10103_s8 + $0x22] ss:$0 sm:$0xff]  ;;  %v5407_v39 = vld [vmem:[#allocation6 + $0x6b] sm:$0x3]  ;;  %v5438_v30 = vmul.f32 %v6231_v55, %v5406_v8  ;;  %v5447_v23 = vmul.f32 %v6232_v57, %v5406_v8 }
0x1122   : > { %v5324_v50 = vadd.f32 %v5322_v1, %v5314_v52  ;;  %v5341_v51 = vadd.f32 %v5339_v34, %v5323_v54  ;;  %v6234_v1 = vld [vmem:[%s10103_s8 + $0x29] ss:$0 sm:$0xff]  ;;  %v5408_v34 = vld [vmem:[#allocation6 + $0x83] sm:$0x3]  ;;  %v5448_v52 = vmul.f32 %v6232_v57, %v5407_v39  ;;  %v5457_v54 = vmul.f32 %v6233_v49, %v5407_v39 }
0x1124   : > { %v5342_v60 = vadd.f32 %v5340_v20, %v5324_v50  ;;  %v5351_v18 = vadd.f32 %v5349_v61, %v5341_v51  ;;  %v6235_v20 = vld [vmem:[%s10103_s8 + $0x30] ss:$0 sm:$0xff]  ;;  %v5409_v61 = vld [vmem:[#allocation6 + $0x9b] sm:$0x3]  ;;  %v5458_v50 = vmul.f32 %v6233_v49, %v5408_v34  ;;  %v5467_v51 = vmul.f32 %v6234_v1, %v5408_v34 }
0x1125   : > { %v5468_v63 = vmul.f32 %v6234_v1, %v5409_v61 }
0x1126   : > { %v5352_v45 = vadd.f32 %v5350_v13, %v5342_v60  ;;  %v5361_v2 = vadd.f32 %v5359_v28, %v5351_v18  ;;  %v5410_v13 = vld [vmem:[#allocation6 + $0xb3] sm:$0x3]  ;;  %v5477_v60 = vmul.f32 %v6235_v20, %v5409_v61 }
0x1128   : > { %v5362_v31 = vadd.f32 %v5360_v12, %v5352_v45  ;;  %v5371_v15 = vadd.f32 %v5369_v3, %v5361_v2  ;;  %v5478_v3 = vmul.f32 %v6235_v20, %v5410_v13 }
0x112a   : > { %v5372_v16 = vadd.f32 %v5370_v46, %v5362_v31  ;;  %v5381_v36 = vadd.f32 %v5379_v9, %v5371_v15 }
0x112c   : > { %v5382_v35 = vadd.f32 %v5380_v48, %v5372_v16  ;;  %v5391_v11 = vadd.f32 %v5389_v24, %v5381_v36  ;;  %v6551_v16 = vld [vmem:[%s10106_s2 + $0x14] ss:$8 sps:$4 sm:$0xff]   ;;  %v6549_v36 = vld [vmem:[%s10106_s2 + $0x10] ss:$8 sps:$4 sm:$0xff]  }
0x112d   : > { %5573 = vmatprep.subr.bf16.mxu1 %v6551_v16 }
0x112e   : > { %v5392_v19 = vadd.f32 %v5390_v10, %v5382_v35  ;;  %v5401_v44 = vadd.f32 %v5399_v38, %v5391_v11  ;;  %v6813_v10 = vmov 0   ;;  %v6554_v38 = vld [vmem:[%s10106_s2 + $0x24] ss:$8 sps:$4 sm:$0xff]   ;;  %5574 = vmatpush1.bf16.msra.mxu1 %v6549_v36  ;;  %v6555_v35 = vld [vmem:[%s10106_s2 + $0x30] ss:$8 sps:$4 sm:$0xff]   ;;  %s6264_s2 = sshll.u32 %s7011_s0, 6 }
0x112f   : > { %5603 = vmatprep.mubr.bf16.mxu1 %v6813_v10  ;;  %5575 = vmatprep.subr.bf16.mxu1 %v6554_v38  ;;  %s9493_s9 = scalar_lea.hbm %s6988_s4, %s6264_s2  ;;  %s6814_s0 = smov [#allocation10]  }
0x1130   : > { %v5402_v5 = vadd.f32 %v5400_v56, %v5392_v19  ;;  %v5419_v7 = vadd.f32 %v5417_v32, %v5401_v44  ;;  %v6558_v44 = vld [vmem:[%s6978_s20 + $0x40] sm:$0xff]  }
0x1131   : > { %6314 = vmatprep.subr.bf16.mxu0 %v6558_v44 }
0x1132   : > { %v5420_v58 = vadd.f32 %v5418_v25, %v5402_v5  ;;  %v5429_v47 = vadd.f32 %v5427_v21, %v5419_v7  ;;  %5576 = vmatpush1.bf16.msra.mxu1 %v6552_v17  ;;  %v6559_v25 = vld [vmem:[%s6978_s20] sm:$0xff]   ;;  %v5518_v21 = vlaneseq }
0x1133   : > { %5577 = vmatprep.subr.bf16.mxu1 %v6557_v40  ;;  %6315 = vmatpush3.bf16.msra.mxu0 %v6559_v25  ;;  %v5516_v5 = vld [vmem:[%s10107_s6] sm:$0x3]  ;;  %s1005_s6 = sand.u32 1, %s6763_s10  }
0x1134   : > { %v5430_v41 = vadd.f32 %v5428_v29, %v5420_v58  ;;  %v5439_v53 = vadd.f32 %v5437_v37, %v5429_v47  ;;  %v5519_v57 = vshrl.u32 %v5518_v21, 7 }
0x1136   : > { %v5440_v43 = vadd.f32 %v5438_v30, %v5430_v41  ;;  %v5449_v26 = vadd.f32 %v5447_v23, %v5439_v53  ;;  %5578 = vmatpush1.bf16.msra.mxu1 %v6555_v35  ;;  %v9449_v8 = vsub.s32 0, %v5519_v57  ;;  %v9452_v7 = vsub.s32 1, %v5519_v57 }
0x1138   : > { %v5450_v28 = vadd.f32 %v5448_v52, %v5440_v43  ;;  %v5459_v62 = vadd.f32 %v5457_v54, %v5449_v26  ;;  %v5521_v29 = vrot.slane %v5516_v5, %v9449_v8  ;;  %v5525_v37 = vrot.slane %v5516_v5, %v9452_v7 }
0x113a   : > { %v5460_v18 = vadd.f32 %v5458_v50, %v5450_v28  ;;  %v5469_v12 = vadd.f32 %v5467_v51, %v5459_v62 }
0x113c   : > { %v5470_v33 = vadd.f32 %v5468_v63, %v5460_v18  ;;  %v5479_v45 = vadd.f32 %v5477_v60, %v5469_v12 }
0x113e   : > { %v5480_v2 = vadd.f32 %v5478_v3, %v5470_v33  ;;  %v5488_v46 = vadd.f32 %v6236_v0, %v5479_v45 }
0x1140   : > { %5489 = vst.msk [vmem:[#allocation7] sm:$0x3] %vm4861_vm14, %v5488_v46  ;;  %v5490_v9 = vadd.f32 %v6236_v0, %v5480_v2 }
0x1142   : > { %5491 = vst.msk [vmem:[#allocation7 + $0x2] sm:$0x3] %vm4861_vm14, %v5490_v9 }
0x1149   : > { %v5492_v6 = vld [vmem:[#allocation7] sm:$0xf] }
0x114a   : > { %v5494_v27 = vsel %vm5493_vm0, %v5492_v6, 0.0 }
0x114b   : > { %5495 = vadd.xlane.f32.xlu0 %v5494_v27 }
0x11d8   : > { %v5496_v31 = vpop.xlane.xlu0 %5495 }
0x11d9   : > { %v5497_v15 = vmul.f32 0.015625, %v5496_v31 }
0x11db   : > { %v5498_v48 = vsub.f32 %v5492_v6, %v5497_v15 }
0x11dd   : > { %v5499_v24 = vmul.f32 %v5498_v48, %v5498_v48 }
0x11df   : > { %v5500_v59 = vsel %vm5493_vm0, %v5499_v24, 0.0 }
0x11e0   : > { %5501 = vadd.xlane.f32.xlu1 %v5500_v59 }
0x126d   : > { %v5502_v11 = vpop.xlane.xlu1 %5501 }
0x126e   : > { %v5503_v56 = vmul.f32 0.015625, %v5502_v11 }
0x1270   : > { %v5504_v32 = vadd.f32 1e-06, %v5503_v56 }
0x1272   : > { %6678 = vrsqrt.f32 %v5504_v32 }
0x127c   : > { %v6679_v55 = vpop.eup %6678 }
0x127d   : > { %v5506_v4 = vmul.f32 %v6679_v55, %v5498_v48 }
0x127f   : > { %v5507_v19 = vpack.c.bf16 %v5506_v4, %v5506_v4 }
0x1281   : > { %6245 = vmatmul.mubr.msk.bf16.vlgmr.msra.gmra.mrb[28].mxu1 %vm2994_vm2, %v5507_v19 }
0x1354   : > { %v5605_v49 = vpop.f32.mrb[28].mxu1 }
0x1355   : > { %v5606_v39 = vadd.f32 %v5605_v49, %v5521_v29  ;;  %v5607_v58 = vpop.f32.mrb[29].mxu1 }
0x1356   : > { %v5608_v47 = vadd.f32 %v5607_v58, %v5525_v37  ;;  %v5609_v30 = vpop.f32.mrb[30].mxu1 }
0x1357   : > { %v5614_v23 = vmul.f32 0.70710677, %v5606_v39  ;;  %v5610_v1 = vpop.f32.mrb[31].mxu1  ;;  %v5612_v56 = vmul.f32 0.5, %v5606_v39 }
0x1358   : > { %v5615_v34 = vmul.f32 0.70710677, %v5608_v47  ;;  %v5613_v4 = vmul.f32 0.5, %v5608_v47 }
0x1359   : > { %v5616_v41 = vand.u32 2147483647, %v5614_v23  ;;  %vm5656_vm2 = vcmp.ge.f32.partialorder %v5614_v23, 0.0 }
0x135a   : > { %v5617_v53 = vand.u32 2147483647, %v5615_v34  ;;  %vm5657_vm1 = vcmp.ge.f32.partialorder %v5615_v34, 0.0 }
0x135b   : > { %v5618_v52 = vmul.f32 0.3275911, %v5616_v41  ;;  %v5644_v43 = vsub.f32 0.0, %v5616_v41 }
0x135c   : > { %v5619_v54 = vmul.f32 0.3275911, %v5617_v53  ;;  %v5645_v26 = vsub.f32 0.0, %v5617_v53 }
0x135d   : > { %v5620_v20 = vadd.f32 1.0, %v5618_v52  ;;  %v5646_v51 = vmul.f32 %v5644_v43, %v5616_v41 }
0x135e   : > { %v5621_v61 = vadd.f32 1.0, %v5619_v54  ;;  %v5647_v62 = vmul.f32 %v5645_v26, %v5617_v53 }
0x135f   : > { %6680 = vrcp.f32 %v5620_v20  ;;  %v5648_v18 = vmul.f32 1.442695, %v5646_v51 }
0x1360   : > { %6682 = vrcp.f32 %v5621_v61  ;;  %v5650_v0 = vmul.f32 1.442695, %v5647_v62 }
0x1361   : > { %6684 = vpow2.f32 %v5648_v18  ;;  %v6561_v18 = vld [vmem:[%s6978_s20 + $0x8] sm:$0xff]  }
0x1362   : > { %6686 = vpow2.f32 %v5650_v0  ;;  %v6564_v0 = vld [vmem:[%s6978_s20 + $0x58] sm:$0xff]  }
0x1369   : > { %v6681_v50 = vpop.eup %6680 }
0x136a   : > { %v6683_v13 = vpop.eup %6682  ;;  %v5626_v28 = vmul.f32 1.0614054, %v6681_v50 }
0x136b   : > { %v5627_v63 = vmul.f32 1.0614054, %v6683_v13  ;;  %v6685_v14 = vpop.eup %6684 }
0x136c   : > { %v5628_v60 = vadd.f32 -1.4531521, %v5626_v28  ;;  %v6687_v16 = vpop.eup %6686 }
0x136d   : > { %v5629_v12 = vadd.f32 -1.4531521, %v5627_v63 }
0x136e   : > { %v5630_v3 = vmul.f32 %v6681_v50, %v5628_v60  ;;  %v6560_v60 = vld [vmem:[%s6978_s20 + $0x48] sm:$0xff]  }
0x136f   : > { %v5631_v33 = vmul.f32 %v6683_v13, %v5629_v12  ;;  %v6562_v12 = vld [vmem:[%s6978_s20 + $0x50] sm:$0xff]   ;;  %6316 = vmatprep.subr.bf16.mxu0 %v6560_v60 }
0x1370   : > { %v5632_v45 = vadd.f32 1.4214138, %v5630_v3  ;;  %6317 = vmatpush3.bf16.msra.mxu0 %v6561_v18  ;;  %v6563_v3 = vld [vmem:[%s6978_s20 + $0x10] sm:$0xff]  }
0x1371   : > { %v5633_v2 = vadd.f32 1.4214138, %v5631_v33  ;;  %6318 = vmatprep.subr.bf16.mxu0 %v6562_v12  ;;  %v6565_v33 = vld [vmem:[%s6978_s20 + $0x18] sm:$0xff]  }
0x1372   : > { %v5634_v46 = vmul.f32 %v6681_v50, %v5632_v45  ;;  %v6566_v45 = vld [vmem:[%s6978_s20 + $0x60] sm:$0xff]  }
0x1373   : > { %v5635_v9 = vmul.f32 %v6683_v13, %v5633_v2  ;;  %v6567_v2 = vld [vmem:[%s6978_s20 + $0x20] sm:$0xff]  }
0x1374   : > { %v5636_v6 = vadd.f32 -0.28449672, %v5634_v46  ;;  %6319 = vmatpush3.bf16.msra.mxu0 %v6563_v3  ;;  %v6568_v46 = vld [vmem:[%s6978_s20 + $0x68] sm:$0xff]  }
0x1375   : > { %v5637_v27 = vadd.f32 -0.28449672, %v5635_v9  ;;  %6320 = vmatprep.subr.bf16.mxu0 %v6564_v0  ;;  %v6569_v9 = vld [vmem:[%s6978_s20 + $0x28] sm:$0xff]  }
0x1376   : > { %v5638_v31 = vmul.f32 %v6681_v50, %v5636_v6  ;;  %v6570_v6 = vld [vmem:[%s6978_s20 + $0x70] sm:$0xff]  }
0x1377   : > { %v5639_v15 = vmul.f32 %v6683_v13, %v5637_v27  ;;  %v6571_v27 = vld [vmem:[%s6978_s20 + $0x30] sm:$0xff]  }
0x1378   : > { %v5640_v48 = vadd.f32 0.2548296, %v5638_v31  ;;  %6321 = vmatpush3.bf16.msra.mxu0 %v6565_v33  ;;  %v6572_v31 = vld [vmem:[%s6978_s20 + $0x78] sm:$0xff]  }
0x1379   : > { %v5641_v24 = vadd.f32 0.2548296, %v5639_v15  ;;  %6322 = vmatprep.subr.bf16.mxu0 %v6566_v45  ;;  %v6573_v15 = vld [vmem:[%s6978_s20 + $0x38] sm:$0xff]  }
0x137a   : > { %v5642_v59 = vmul.f32 %v6681_v50, %v5640_v48 }
0x137b   : > { %v5643_v22 = vmul.f32 %v6683_v13, %v5641_v24 }
0x137c   : > { %v5652_v36 = vmul.f32 %v6685_v14, %v5642_v59  ;;  %6323 = vmatpush3.bf16.msra.mxu0 %v6567_v2  ;;  %v5706_v14 = vld [vmem:[%s10108_s5] sm:$0x3]  ;;  %s6027_s5 = sshll.u32 %s1005_s6, 2 }
0x137d   : > { %v5653_v10 = vmul.f32 %v6687_v16, %v5643_v22  ;;  %6324 = vmatprep.subr.bf16.mxu0 %v6568_v46  ;;  %v5722_v16 = vld [vmem:[%s10109_s12] sm:$0x3]  ;;  %s1007_s3 = scalar_lea.vmem [#allocation10], %s6027_s5  ;;  %s5918_s12 = scalar_lea.sflag [#allocation11], %s1005_s6 }
0x137e   : > { %v5654_v38 = vsub.f32 1.0, %v5652_v36  ;;  %v5713_v36 = vrot.slane %v5706_v14, %v9449_v8  ;;  %s5931_s8 = sshll.u32 %s1007_s3, 4  ;;  %s6713_s5 = sshll.u32 %s6814_s0, 4  ;;  %s9495_s8 = int_to_ptr.vmem [resolvable:$true] %s5931_s8  ;;  %s6714_s5 = int_to_ptr.vmem [resolvable:$false] %s6713_s5 }
0x137f   : > { %v5655_v17 = vsub.f32 1.0, %v5653_v10  ;;  %s6709_s13 = scalar_lea.vmem %s9495_s8, 64  ;;  %s6715_s14 = scalar_lea.vmem %s6714_s5, 128 }
0x1380   : > { %v5658_v40 = vsub.f32 0.0, %v5654_v38  ;;  %6325 = vmatpush3.bf16.msra.mxu0 %v6569_v9  ;;  %p6710_p11 = scmp.ne.s32.totalorder %s9495_s8, %s6709_s13  ;;  %p6716_p0 = scmp.lt.s32.totalorder %s9495_s8, %s6714_s5 }
0x1381   : > { %v5659_v35 = vsub.f32 0.0, %v5655_v17  ;;  %6326 = vmatprep.subr.bf16.mxu0 %v6570_v6  ;;  %p6717_p1 = scmp.lt.s32.totalorder %s6715_s14, %s6709_s13 }
0x1382   : > { %v5660_v11 = vsel %vm5656_vm2, %v5654_v38, %v5658_v40  ;;  %p6711_p12 = pnand %p6710_p11, %p7028_p5 }
0x1383   : > { %v5662_v32 = vadd.f32 1.0, %v5660_v11  ;;  %v5661_v55 = vsel %vm5657_vm1, %v5655_v17, %v5659_v35  ;;  %v5717_v17 = vrot.slane %v5706_v14, %v9452_v7  ;;  %v5727_v11 = vrot.slane %v5722_v16, %v9449_v8  ;;  %v6246_v8 = vld [vmem:[%s6983_s27] ss:$0 sm:$0xff]  ;;  %p6718_p2 = por %p6717_p1, %p6716_p0 }
0x1384   : > { %v5663_v19 = vadd.f32 1.0, %v5661_v55  ;;  %6327 = vmatpush3.bf16.msra.mxu0 %v6571_v27  ;;  %p6712_p13 = pneg %p6711_p12 }
0x1385   : > { %v9456_v44 = vmul.f32 %v5662_v32, %v5612_v56  ;;  %6328 = vmatprep.subr.bf16.mxu0 %v6572_v31  ;;  %v5731_v56 = vrot.slane %v5722_v16, %v9452_v7 }
0x1386   : > { %v9458_v25 = vmul.f32 %v5663_v19, %v5613_v4  ;;  %p6719_p3 = pnand %p6718_p2, %p6712_p13 }
0x1387   : > { %v5666_v21 = vmul.f32 %v9456_v44, %v9456_v44 }
0x1388   : > { %v5667_v57 = vmul.f32 %v9458_v25, %v9458_v25  ;;  %6329 = vmatpush3.bf16.msra.mxu0 %v6573_v15 }
0x1389   : > { %v5669_v5 = vsel %vm5668_vm3, %v5666_v21, 0.0 }
0x138a   : > { %v5670_v29 = vrot.slane %v5669_v5, 4  ;;  %v5676_v37 = vsel %vm5668_vm3, %v5667_v57, 0.0 }
0x138b   : > { %v5677_v49 = vrot.slane %v5676_v37, 4 }
0x138c   : > { %v5671_v39 = vadd.f32 %v5670_v29, %v5669_v5 }
0x138d   : > { %v5678_v58 = vadd.f32 %v5677_v49, %v5676_v37 }
0x138e   : > { %v5672_v30 = vrot.slane %v5671_v39, 2 }
0x138f   : > { %v5679_v47 = vrot.slane %v5678_v58, 2 }
0x1390   : > { %v5673_v23 = vadd.f32 %v5672_v30, %v5671_v39 }
0x1391   : > { %v5680_v1 = vadd.f32 %v5679_v47, %v5678_v58 }
0x1392   : > { %v5674_v34 = vrot.slane %v5673_v23, 1 }
0x1393   : > { %v5681_v41 = vrot.slane %v5680_v1, 1 }
0x1394   : > { %v5675_v53 = vadd.f32 %v5674_v34, %v5673_v23 }
0x1395   : > { %v5682_v52 = vadd.f32 %v5681_v41, %v5680_v1 }
0x1396   : > { %6688 = vrsqrt.f32 %v5675_v53  ;;  %vm5685_vm4 = vcmp.eq.f32.partialorder %v5675_v53, inf  ;;  %v5688_v43 = vand.u32 2147483648, %v5675_v53  ;;  %vm5687_vm5 = vcmp.eq.f32.partialorder %v5675_v53, 0.0 }
0x1397   : > { %6690 = vrsqrt.f32 %v5682_v52  ;;  %vm5692_vm6 = vcmp.eq.f32.partialorder %v5682_v52, inf  ;;  %v5695_v51 = vand.u32 2147483648, %v5682_v52  ;;  %vm5694_vm7 = vcmp.eq.f32.partialorder %v5682_v52, 0.0 }
0x13a0   : > { %v6689_v54 = vpop.eup %6688 }
0x13a1   : > { %v6691_v20 = vpop.eup %6690  ;;  %v5684_v61 = vmul.f32 %v6689_v54, %v5675_v53 }
0x13a2   : > { %v5691_v26 = vmul.f32 %v6691_v20, %v5682_v52 }
0x13a3   : > { %v5686_v50 = vsel %vm5685_vm4, %v5675_v53, %v5684_v61 }
0x13a4   : > { %v5689_v13 = vsel %vm5687_vm5, %v5688_v43, %v5686_v50  ;;  %v5693_v28 = vsel %vm5692_vm6, %v5682_v52, %v5691_v26 }
0x13a5   : > { %v5696_v62 = vsel %vm5694_vm7, %v5695_v51, %v5693_v28 }
0x13a6   : > { %v5697_v63 = vadd.f32 %v5696_v62, %v5689_v13 }
0x13a8   : > { %5698 = vadd.xlane.f32.xlu0 %v5697_v63 }
0x1435   : > { %v5699_v48 = vpop.xlane.xlu0 %5698 }
0x1436   : > { %v5701_v24 = vmul.f32 0.00390625, %v5699_v48 }
0x1438   : > { %v5702_v59 = vadd.f32 1e-06, %v5701_v24 }
0x143a   : > { %6692 = vrcp.f32 %v5702_v59 }
0x1444   : > { %v6693_v22 = vpop.eup %6692 }
0x1445   : > { %v5704_v10 = vmul.f32 %v6693_v22, %v5689_v13  ;;  %v5705_v38 = vmul.f32 %v6693_v22, %v5696_v62 }
0x1447   : > { %v5707_v40 = vmul.f32 %v5704_v10, %v9456_v44  ;;  %v5708_v35 = vmul.f32 %v5705_v38, %v9458_v25 }
0x1449   : > { %v5721_v32 = vmul.f32 %v5717_v17, %v5708_v35  ;;  %v5720_v55 = vmul.f32 %v5713_v36, %v5707_v40 }
0x144b   : > { %v5735_v4 = vadd.f32 %v5731_v56, %v5721_v32  ;;  %v5734_v19 = vadd.f32 %v5727_v11, %v5720_v55 }
0x144d   : > { %v5737_v21 = vadd.f32 %v5735_v4, %v9458_v25  ;;  %v5736_v57 = vadd.f32 %v5734_v19, %v9456_v44 }
0x144f   : > { %v5739_v5 = vpack.c.bf16 %v5737_v21, %v5737_v21  ;;  %v5738_v29 = vpack.c.bf16 %v5736_v57, %v5736_v57 }
0x1451   : > { %5907 = vmatprep.mubr.bf16.mxu0 %v5739_v5 }
0x1452   : > { %5908 = vmatmul.mubr.bf16.vlgmr.msra.gmra.mrb[12].mxu0 %v5738_v29 }
0x1525   : > { %v6330_v37 = vpop.f32.mrb[12].mxu0 }
0x1526   : > { %v6331_v7 = vpop.f32.mrb[13].mxu0 }
0x1527   : > { %v6332_v49 = vadd.f32 %v6331_v7, %v6330_v37  ;;  %v6333_v39 = vpop.f32.mrb[14].mxu0 }
0x1528   : > { %v6334_v58 = vpop.f32.mrb[15].mxu0 }
0x1529   : > { %v5910_v25 = vadd.f32 %v6332_v49, %v6246_v8 }
0x152b   : > { %v5915_v44 = vadd.f32 %v5910_v25, %v9395_v42 }
0x152d   : > { %5916 = vst.msk [vmem:[%s1007_s3] sm:$0xf] %vm5493_vm0, %v5915_v44 }
0x152e   : > { %6722 = shalt.err (!%p6719_p3)
}
0x152f   : > { %s6723_s3 = scalar_lea.hbm %s9493_s9, 64  ;;  %s6727_s2 = scalar_lea.hbm %s6988_s4, 128 }
0x1530   : > { %p6724_p4 = scmp.ne.s32.totalorder %s9493_s9, %s6723_s3  ;;  %p6728_p9 = scmp.lt.u32.totalorder %s9493_s9, %s6988_s4 }
0x1531   : > { %p6729_p10 = scmp.lt.u32.totalorder %s6727_s2, %s6723_s3  ;;  %p6731_p12 = scmp.lt.u32.totalorder %s6723_s3, %s9493_s9 }
0x1532   : > { %p6725_p7 = pnand %p6724_p4, %p7028_p5 }
0x1533   : > { %p6730_p11 = por %p6729_p10, %p6728_p9 }
0x1534   : > { %p6726_p8 = pneg %p6725_p7 }
0x1535   : > { %p6732_p0 = por %p6731_p12, %p6730_p11 }
0x1537   : > { %p6733_p13 = pnand %p6732_p0, %p6726_p8 }
0x1539   : > { %6736 = shalt.err (!%p6733_p13)
}
0x153a   : > { %6436 = dma.vmem_to_hbm [thread:$0]  (%p7028_p5), %s9495_s8, 64, %s9493_s9, %s5918_s12  }
0x153b PF: > { %p6442_p1 = scmp.ge.s32.totalorder %s6771_s15, 2  ;;  %s5943_s13 = sand.u32 1, %s6759_s7  }
0x153c   : > { %s5944_s14 = scalar_lea.sflag [#allocation11], %s5943_s13 }
0x153d   : > { %p6439_p2 = pnand %p6442_p1, %p7032_p6 }
0x153f   : > { %6754 = dma.done.wait (!%p6439_p2), %s5944_s14, 64  }
0x1540   : > { %6756 = vsyncadd (!%p6439_p2), %s5944_s14, 4294967232  ;;  %p77_p3 = scmp.ge.s32.totalorder %s7015_s18, 4   ;;  %s10110_s7 = smov %s6763_s10 }
0x1541   : > { %s10111_s10 = smov %s6767_s11  ;;  %s10112_s11 = smov %s7026_s26 }
0x1542   : > { %s10113_s15 = smov %s7015_s18  ;;  %79 = sbr.rel (!%p77_p3) target bundleno = 71 (0x47), region = 259 }
0x1549   :  { %5949 = vsyncpa [#allocation11], 1 }
0x154a   :  { %5951 = vsyncpa [#allocation11 + $0x1], 1 }

</bundles_post_ra>
